<compile_context>
chip_gen: v7x
topology: tpu7x:2x2x1
jax: 0.10.0
libtpu: 0.0.40
codegen_flags: <defaults>
</compile_context>

<pallas_src>
import functools

import jax
import jax.numpy as jnp
from jax.experimental import pallas as pl
from jax.experimental.pallas import tpu as pltpu

EPS = 1e-5
K = 7
PAD = K // 2


# ----------------------------------------------------------------------------
# Fused Pallas kernel
# ----------------------------------------------------------------------------
def _sepconv_bn_relu_kernel(x_ref, wdw_ref, wpw_ref, g_ref, b_ref, o_ref,
                            *, k, n, h, w):
    # x_ref : (N, Hp, Wp8, Cin)  whole padded batch (Wp8 = pad(W+6) to mult. of 8)
    # wdw_ref: (K*K, Cin) depthwise taps; wpw_ref: (Cin, Cout_blk)
    # g_ref/b_ref: (1, Cout_blk) BN gamma/beta
    # o_ref : (N*H*W, Cout_blk)  final (post-BN, post-ReLU) activations
    cin = x_ref.shape[-1]
    x = x_ref[...]                      # load padded input ONCE
    wdw = wdw_ref[...]                  # load all 49 taps ONCE

    # Depthwise 7x7: 7 sublane-shifted views (one per kx); ky slices the major
    # row axis (free whole-tile selection).  49 slab-MACs on the VPU.
    acc = jnp.zeros((n, h, w, cin), jnp.float32)
    for kx in range(k):
        xk = x[:, :, kx:kx + w, :]                       # one shifted copy per kx
        for ky in range(k):
            acc = acc + xk[:, ky:ky + h, :, :] * wdw[ky * k + kx]

    # Pointwise 1x1: single MXU matmul with the batch merged into M.
    y = jnp.dot(acc.reshape(n * h * w, cin), wpw_ref[...],
                preferred_element_type=jnp.float32)      # (N*H*W, Cout_blk)

    # Train-mode BatchNorm (biased batch variance, two-pass) + ReLU.
    inv_m = 1.0 / float(n * h * w)
    mean = jnp.sum(y, axis=0, keepdims=True) * inv_m
    yc = y - mean
    var = jnp.sum(yc * yc, axis=0, keepdims=True) * inv_m
    scale = g_ref[...] * jax.lax.rsqrt(var + EPS)
    o_ref[...] = jnp.maximum(yc * scale + b_ref[...], 0.0)


# ----------------------------------------------------------------------------
# Forward wrapper
# ----------------------------------------------------------------------------
def separable_conv2d7_forward(params, x_nchw):
    # TODO(synk): BatchNorm2d running_mean/running_var (momentum) buffer
    # updates -- a training-time side effect -- are not reproduced;
    # normalization uses batch statistics like a fresh train-mode module.
    w_dw, w_pw = params["w_dw"], params["w_pw"]
    gamma, beta = params["gamma"], params["beta"]
    n, cin, h, w = x_nchw.shape
    cout = w_pw.shape[1]

    # Split Cout across v7x's two TensorCores when it stays lane-dense (128).
    n_co = 2 if cout % 256 == 0 else 1
    co_blk = cout // n_co

    # NCHW -> NHWC; pad H by 3/3 and W by 3/(3 + align) so the padded width is
    # a multiple of 8 (sublane tile) -> all in-kernel slices are aligned.
    x = jnp.transpose(x_nchw, (0, 2, 3, 1)).astype(jnp.float32)
    hp = h + 2 * PAD
    wp = -(-(w + 2 * PAD) // 8) * 8
    xp = jnp.pad(x, ((0, 0), (PAD, PAD), (PAD, wp - w - PAD), (0, 0)))

    out_flat = pl.pallas_call(
        functools.partial(_sepconv_bn_relu_kernel, k=K, n=n, h=h, w=w),
        out_shape=jax.ShapeDtypeStruct((n * h * w, cout), jnp.float32),
        grid=(n_co,),
        in_specs=[
            pl.BlockSpec((n, hp, wp, cin), lambda j: (0, 0, 0, 0)),
            pl.BlockSpec((K * K, cin), lambda j: (0, 0)),
            pl.BlockSpec((cin, co_blk), lambda j: (0, j)),
            pl.BlockSpec((1, co_blk), lambda j: (0, j)),
            pl.BlockSpec((1, co_blk), lambda j: (0, j)),
        ],
        out_specs=pl.BlockSpec((n * h * w, co_blk), lambda j: (0, j)),
        compiler_params=pltpu.CompilerParams(
            dimension_semantics=("parallel",)),
    )(xp, w_dw, w_pw, gamma, beta)

    # (N*H*W, Cout) -> NCHW to match the PyTorch module's output.
    return jnp.transpose(out_flat.reshape(n, h, w, cout), (0, 3, 1, 2))


# ----------------------------------------------------------------------------
# Parameters and pure-jnp reference (for the self-check)
# ----------------------------------------------------------------------------
def init_params(key, cin, cout):
    k1, k2 = jax.random.split(key)
    w_dw = jax.random.normal(k1, (K * K, cin), jnp.float32) / float(K)
    w_pw = jax.random.normal(k2, (cin, cout), jnp.float32) / jnp.sqrt(float(cin))
    return {
        "w_dw": w_dw,                               # torch dw weight[c,0,ky,kx] at [ky*K+kx, c]
        "w_pw": w_pw,                               # torch pw weight[:, :, 0, 0].T
        "gamma": jnp.ones((1, cout), jnp.float32),  # BatchNorm2d.weight (fresh init)
        "beta": jnp.zeros((1, cout), jnp.float32),  # BatchNorm2d.bias   (fresh init)
    }


def reference_forward(params, x_nchw):
    """Pure-jnp mirror of the PyTorch module (no Pallas)."""
    x = jnp.transpose(x_nchw, (0, 2, 3, 1)).astype(jnp.float32)
    xp = jnp.pad(x, ((0, 0), (PAD, PAD), (PAD, PAD), (0, 0)))
    n, hp, wp, cin = xp.shape
    h, w = hp - K + 1, wp - K + 1
    acc = jnp.zeros((n, h, w, cin), jnp.float32)
    for ky in range(K):
        for kx in range(K):
            acc = acc + xp[:, ky:ky + h, kx:kx + w, :] * params["w_dw"][ky * K + kx]
    y = jnp.einsum("nhwc,cd->nhwd", acc, params["w_pw"],
                   precision=jax.lax.Precision.HIGHEST,
                   preferred_element_type=jnp.float32)
    mean = jnp.mean(y, axis=(0, 1, 2), keepdims=True)
    var = jnp.mean(jnp.square(y - mean), axis=(0, 1, 2), keepdims=True)  # biased
    yhat = (y - mean) * jax.lax.rsqrt(var + EPS)
    out = jnp.maximum(yhat * params["gamma"][0] + params["beta"][0], 0.0)
    return jnp.transpose(out, (0, 3, 1, 2))


if __name__ == "__main__":
    # SeparableConv2d7 runs inside LMNet as a 128 -> 256 block on an 8x8
    # feature map; keep the batch small.
    N, CIN, COUT, H, W = 2, 128, 256, 8, 8
    key = jax.random.PRNGKey(0)
    pkey, xkey = jax.random.split(key)
    params = init_params(pkey, CIN, COUT)
    x = jax.random.normal(xkey, (N, CIN, H, W), jnp.float32)

    fwd = jax.jit(separable_conv2d7_forward)
    out = jax.block_until_ready(fwd(params, x))

    ref = jax.block_until_ready(jax.jit(reference_forward)(params, x))

    assert out.shape == (N, COUT, H, W), out.shape
    assert bool(jnp.all(jnp.isfinite(out)))
    max_err = float(jnp.max(jnp.abs(out - ref)))
    assert max_err < 5e-2, f"max abs err {max_err}"
    print("KERNEL_OK")
</pallas_src>

<mosaic_0001>
module attributes {stable_mosaic.version = 11 : i64} {
  func.func @_sepconv_bn_relu_kernel(%arg0: i32, %arg1: memref<2x14x16x128xf32, #tpu.memory_space<vmem>>, %arg2: memref<49x128xf32, #tpu.memory_space<vmem>>, %arg3: memref<128x128xf32, #tpu.memory_space<vmem>>, %arg4: memref<1x128xf32, #tpu.memory_space<vmem>>, %arg5: memref<1x128xf32, #tpu.memory_space<vmem>>, %arg6: memref<128x128xf32, #tpu.memory_space<vmem>>) attributes {dimension_semantics = [#tpu.dimension_semantics<parallel>], iteration_bounds = array<i64: 2>, scalar_prefetch = 0 : i64, scratch_operands = 0 : i64, tpu.core_type = #tpu.core_type<tc>, window_params = [{pipeline_mode = #tpu.pipeline_mode<synchronous>, transform_indices = @transform_0, window_bounds = array<i64: 2, 14, 16, 128>}, {pipeline_mode = #tpu.pipeline_mode<synchronous>, transform_indices = @transform_1, window_bounds = array<i64: 49, 128>}, {transform_indices = @transform_2, window_bounds = array<i64: 128, 128>}, {transform_indices = @transform_3, window_bounds = array<i64: 1, 128>}, {transform_indices = @transform_4, window_bounds = array<i64: 1, 128>}, {transform_indices = @transform_5, window_bounds = array<i64: 128, 128>}]} {
    %c0 = arith.constant 0 : index
    %c0_0 = arith.constant 0 : index
    %c0_1 = arith.constant 0 : index
    %c0_2 = arith.constant 0 : index
    %0 = vector.load %arg1[%c0, %c0_0, %c0_1, %c0_2] : memref<2x14x16x128xf32, #tpu.memory_space<vmem>>, vector<2x14x16x128xf32>
    %c0_3 = arith.constant 0 : index
    %c0_4 = arith.constant 0 : index
    %1 = vector.load %arg2[%c0_3, %c0_4] : memref<49x128xf32, #tpu.memory_space<vmem>>, vector<49x128xf32>
    %cst = arith.constant 0.000000e+00 : f32
    %2 = vector.broadcast %cst : f32 to vector<2x8x8x128xf32>
    %3 = vector.extract_strided_slice %0 {offsets = [0, 0, 0, 0], sizes = [2, 14, 8, 128], strides = [1, 1, 1, 1]} : vector<2x14x16x128xf32> to vector<2x14x8x128xf32>
    %4 = vector.extract_strided_slice %3 {offsets = [0, 0, 0, 0], sizes = [2, 8, 8, 128], strides = [1, 1, 1, 1]} : vector<2x14x8x128xf32> to vector<2x8x8x128xf32>
    %5 = vector.extract_strided_slice %1 {offsets = [0, 0], sizes = [1, 128], strides = [1, 1]} : vector<49x128xf32> to vector<1x128xf32>
    %6 = vector.shape_cast %5 : vector<1x128xf32> to vector<128xf32>
    %7 = vector.shape_cast %6 : vector<128xf32> to vector<1x1x1x128xf32>
    %8 = vector.broadcast %7 : vector<1x1x1x128xf32> to vector<2x8x8x128xf32>
    %9 = arith.mulf %4, %8 : vector<2x8x8x128xf32>
    %10 = arith.addf %2, %9 : vector<2x8x8x128xf32>
    %11 = vector.extract_strided_slice %3 {offsets = [0, 1, 0, 0], sizes = [2, 8, 8, 128], strides = [1, 1, 1, 1]} : vector<2x14x8x128xf32> to vector<2x8x8x128xf32>
    %12 = vector.extract_strided_slice %1 {offsets = [7, 0], sizes = [1, 128], strides = [1, 1]} : vector<49x128xf32> to vector<1x128xf32>
    %13 = vector.shape_cast %12 : vector<1x128xf32> to vector<128xf32>
    %14 = vector.shape_cast %13 : vector<128xf32> to vector<1x1x1x128xf32>
    %15 = vector.broadcast %14 : vector<1x1x1x128xf32> to vector<2x8x8x128xf32>
    %16 = arith.mulf %11, %15 : vector<2x8x8x128xf32>
    %17 = arith.addf %10, %16 : vector<2x8x8x128xf32>
    %18 = vector.extract_strided_slice %3 {offsets = [0, 2, 0, 0], sizes = [2, 8, 8, 128], strides = [1, 1, 1, 1]} : vector<2x14x8x128xf32> to vector<2x8x8x128xf32>
    %19 = vector.extract_strided_slice %1 {offsets = [14, 0], sizes = [1, 128], strides = [1, 1]} : vector<49x128xf32> to vector<1x128xf32>
    %20 = vector.shape_cast %19 : vector<1x128xf32> to vector<128xf32>
    %21 = vector.shape_cast %20 : vector<128xf32> to vector<1x1x1x128xf32>
    %22 = vector.broadcast %21 : vector<1x1x1x128xf32> to vector<2x8x8x128xf32>
    %23 = arith.mulf %18, %22 : vector<2x8x8x128xf32>
    %24 = arith.addf %17, %23 : vector<2x8x8x128xf32>
    %25 = vector.extract_strided_slice %3 {offsets = [0, 3, 0, 0], sizes = [2, 8, 8, 128], strides = [1, 1, 1, 1]} : vector<2x14x8x128xf32> to vector<2x8x8x128xf32>
    %26 = vector.extract_strided_slice %1 {offsets = [21, 0], sizes = [1, 128], strides = [1, 1]} : vector<49x128xf32> to vector<1x128xf32>
    %27 = vector.shape_cast %26 : vector<1x128xf32> to vector<128xf32>
    %28 = vector.shape_cast %27 : vector<128xf32> to vector<1x1x1x128xf32>
    %29 = vector.broadcast %28 : vector<1x1x1x128xf32> to vector<2x8x8x128xf32>
    %30 = arith.mulf %25, %29 : vector<2x8x8x128xf32>
    %31 = arith.addf %24, %30 : vector<2x8x8x128xf32>
    %32 = vector.extract_strided_slice %3 {offsets = [0, 4, 0, 0], sizes = [2, 8, 8, 128], strides = [1, 1, 1, 1]} : vector<2x14x8x128xf32> to vector<2x8x8x128xf32>
    %33 = vector.extract_strided_slice %1 {offsets = [28, 0], sizes = [1, 128], strides = [1, 1]} : vector<49x128xf32> to vector<1x128xf32>
    %34 = vector.shape_cast %33 : vector<1x128xf32> to vector<128xf32>
    %35 = vector.shape_cast %34 : vector<128xf32> to vector<1x1x1x128xf32>
    %36 = vector.broadcast %35 : vector<1x1x1x128xf32> to vector<2x8x8x128xf32>
    %37 = arith.mulf %32, %36 : vector<2x8x8x128xf32>
    %38 = arith.addf %31, %37 : vector<2x8x8x128xf32>
    %39 = vector.extract_strided_slice %3 {offsets = [0, 5, 0, 0], sizes = [2, 8, 8, 128], strides = [1, 1, 1, 1]} : vector<2x14x8x128xf32> to vector<2x8x8x128xf32>
    %40 = vector.extract_strided_slice %1 {offsets = [35, 0], sizes = [1, 128], strides = [1, 1]} : vector<49x128xf32> to vector<1x128xf32>
    %41 = vector.shape_cast %40 : vector<1x128xf32> to vector<128xf32>
    %42 = vector.shape_cast %41 : vector<128xf32> to vector<1x1x1x128xf32>
    %43 = vector.broadcast %42 : vector<1x1x1x128xf32> to vector<2x8x8x128xf32>
    %44 = arith.mulf %39, %43 : vector<2x8x8x128xf32>
    %45 = arith.addf %38, %44 : vector<2x8x8x128xf32>
    %46 = vector.extract_strided_slice %3 {offsets = [0, 6, 0, 0], sizes = [2, 8, 8, 128], strides = [1, 1, 1, 1]} : vector<2x14x8x128xf32> to vector<2x8x8x128xf32>
    %47 = vector.extract_strided_slice %1 {offsets = [42, 0], sizes = [1, 128], strides = [1, 1]} : vector<49x128xf32> to vector<1x128xf32>
    %48 = vector.shape_cast %47 : vector<1x128xf32> to vector<128xf32>
    %49 = vector.shape_cast %48 : vector<128xf32> to vector<1x1x1x128xf32>
    %50 = vector.broadcast %49 : vector<1x1x1x128xf32> to vector<2x8x8x128xf32>
    %51 = arith.mulf %46, %50 : vector<2x8x8x128xf32>
    %52 = arith.addf %45, %51 : vector<2x8x8x128xf32>
    %53 = vector.extract_strided_slice %0 {offsets = [0, 0, 1, 0], sizes = [2, 14, 8, 128], strides = [1, 1, 1, 1]} : vector<2x14x16x128xf32> to vector<2x14x8x128xf32>
    %54 = vector.extract_strided_slice %53 {offsets = [0, 0, 0, 0], sizes = [2, 8, 8, 128], strides = [1, 1, 1, 1]} : vector<2x14x8x128xf32> to vector<2x8x8x128xf32>
    %55 = vector.extract_strided_slice %1 {offsets = [1, 0], sizes = [1, 128], strides = [1, 1]} : vector<49x128xf32> to vector<1x128xf32>
    %56 = vector.shape_cast %55 : vector<1x128xf32> to vector<128xf32>
    %57 = vector.shape_cast %56 : vector<128xf32> to vector<1x1x1x128xf32>
    %58 = vector.broadcast %57 : vector<1x1x1x128xf32> to vector<2x8x8x128xf32>
    %59 = arith.mulf %54, %58 : vector<2x8x8x128xf32>
    %60 = arith.addf %52, %59 : vector<2x8x8x128xf32>
    %61 = vector.extract_strided_slice %53 {offsets = [0, 1, 0, 0], sizes = [2, 8, 8, 128], strides = [1, 1, 1, 1]} : vector<2x14x8x128xf32> to vector<2x8x8x128xf32>
    %62 = vector.extract_strided_slice %1 {offsets = [8, 0], sizes = [1, 128], strides = [1, 1]} : vector<49x128xf32> to vector<1x128xf32>
    %63 = vector.shape_cast %62 : vector<1x128xf32> to vector<128xf32>
    %64 = vector.shape_cast %63 : vector<128xf32> to vector<1x1x1x128xf32>
    %65 = vector.broadcast %64 : vector<1x1x1x128xf32> to vector<2x8x8x128xf32>
    %66 = arith.mulf %61, %65 : vector<2x8x8x128xf32>
    %67 = arith.addf %60, %66 : vector<2x8x8x128xf32>
    %68 = vector.extract_strided_slice %53 {offsets = [0, 2, 0, 0], sizes = [2, 8, 8, 128], strides = [1, 1, 1, 1]} : vector<2x14x8x128xf32> to vector<2x8x8x128xf32>
    %69 = vector.extract_strided_slice %1 {offsets = [15, 0], sizes = [1, 128], strides = [1, 1]} : vector<49x128xf32> to vector<1x128xf32>
    %70 = vector.shape_cast %69 : vector<1x128xf32> to vector<128xf32>
    %71 = vector.shape_cast %70 : vector<128xf32> to vector<1x1x1x128xf32>
    %72 = vector.broadcast %71 : vector<1x1x1x128xf32> to vector<2x8x8x128xf32>
    %73 = arith.mulf %68, %72 : vector<2x8x8x128xf32>
    %74 = arith.addf %67, %73 : vector<2x8x8x128xf32>
    %75 = vector.extract_strided_slice %53 {offsets = [0, 3, 0, 0], sizes = [2, 8, 8, 128], strides = [1, 1, 1, 1]} : vector<2x14x8x128xf32> to vector<2x8x8x128xf32>
    %76 = vector.extract_strided_slice %1 {offsets = [22, 0], sizes = [1, 128], strides = [1, 1]} : vector<49x128xf32> to vector<1x128xf32>
    %77 = vector.shape_cast %76 : vector<1x128xf32> to vector<128xf32>
    %78 = vector.shape_cast %77 : vector<128xf32> to vector<1x1x1x128xf32>
    %79 = vector.broadcast %78 : vector<1x1x1x128xf32> to vector<2x8x8x128xf32>
    %80 = arith.mulf %75, %79 : vector<2x8x8x128xf32>
    %81 = arith.addf %74, %80 : vector<2x8x8x128xf32>
    %82 = vector.extract_strided_slice %53 {offsets = [0, 4, 0, 0], sizes = [2, 8, 8, 128], strides = [1, 1, 1, 1]} : vector<2x14x8x128xf32> to vector<2x8x8x128xf32>
    %83 = vector.extract_strided_slice %1 {offsets = [29, 0], sizes = [1, 128], strides = [1, 1]} : vector<49x128xf32> to vector<1x128xf32>
    %84 = vector.shape_cast %83 : vector<1x128xf32> to vector<128xf32>
    %85 = vector.shape_cast %84 : vector<128xf32> to vector<1x1x1x128xf32>
    %86 = vector.broadcast %85 : vector<1x1x1x128xf32> to vector<2x8x8x128xf32>
    %87 = arith.mulf %82, %86 : vector<2x8x8x128xf32>
    %88 = arith.addf %81, %87 : vector<2x8x8x128xf32>
    %89 = vector.extract_strided_slice %53 {offsets = [0, 5, 0, 0], sizes = [2, 8, 8, 128], strides = [1, 1, 1, 1]} : vector<2x14x8x128xf32> to vector<2x8x8x128xf32>
    %90 = vector.extract_strided_slice %1 {offsets = [36, 0], sizes = [1, 128], strides = [1, 1]} : vector<49x128xf32> to vector<1x128xf32>
    %91 = vector.shape_cast %90 : vector<1x128xf32> to vector<128xf32>
    %92 = vector.shape_cast %91 : vector<128xf32> to vector<1x1x1x128xf32>
    %93 = vector.broadcast %92 : vector<1x1x1x128xf32> to vector<2x8x8x128xf32>
    %94 = arith.mulf %89, %93 : vector<2x8x8x128xf32>
    %95 = arith.addf %88, %94 : vector<2x8x8x128xf32>
    %96 = vector.extract_strided_slice %53 {offsets = [0, 6, 0, 0], sizes = [2, 8, 8, 128], strides = [1, 1, 1, 1]} : vector<2x14x8x128xf32> to vector<2x8x8x128xf32>
    %97 = vector.extract_strided_slice %1 {offsets = [43, 0], sizes = [1, 128], strides = [1, 1]} : vector<49x128xf32> to vector<1x128xf32>
    %98 = vector.shape_cast %97 : vector<1x128xf32> to vector<128xf32>
    %99 = vector.shape_cast %98 : vector<128xf32> to vector<1x1x1x128xf32>
    %100 = vector.broadcast %99 : vector<1x1x1x128xf32> to vector<2x8x8x128xf32>
    %101 = arith.mulf %96, %100 : vector<2x8x8x128xf32>
    %102 = arith.addf %95, %101 : vector<2x8x8x128xf32>
    %103 = vector.extract_strided_slice %0 {offsets = [0, 0, 2, 0], sizes = [2, 14, 8, 128], strides = [1, 1, 1, 1]} : vector<2x14x16x128xf32> to vector<2x14x8x128xf32>
    %104 = vector.extract_strided_slice %103 {offsets = [0, 0, 0, 0], sizes = [2, 8, 8, 128], strides = [1, 1, 1, 1]} : vector<2x14x8x128xf32> to vector<2x8x8x128xf32>
    %105 = vector.extract_strided_slice %1 {offsets = [2, 0], sizes = [1, 128], strides = [1, 1]} : vector<49x128xf32> to vector<1x128xf32>
    %106 = vector.shape_cast %105 : vector<1x128xf32> to vector<128xf32>
    %107 = vector.shape_cast %106 : vector<128xf32> to vector<1x1x1x128xf32>
    %108 = vector.broadcast %107 : vector<1x1x1x128xf32> to vector<2x8x8x128xf32>
    %109 = arith.mulf %104, %108 : vector<2x8x8x128xf32>
    %110 = arith.addf %102, %109 : vector<2x8x8x128xf32>
    %111 = vector.extract_strided_slice %103 {offsets = [0, 1, 0, 0], sizes = [2, 8, 8, 128], strides = [1, 1, 1, 1]} : vector<2x14x8x128xf32> to vector<2x8x8x128xf32>
    %112 = vector.extract_strided_slice %1 {offsets = [9, 0], sizes = [1, 128], strides = [1, 1]} : vector<49x128xf32> to vector<1x128xf32>
    %113 = vector.shape_cast %112 : vector<1x128xf32> to vector<128xf32>
    %114 = vector.shape_cast %113 : vector<128xf32> to vector<1x1x1x128xf32>
    %115 = vector.broadcast %114 : vector<1x1x1x128xf32> to vector<2x8x8x128xf32>
    %116 = arith.mulf %111, %115 : vector<2x8x8x128xf32>
    %117 = arith.addf %110, %116 : vector<2x8x8x128xf32>
    %118 = vector.extract_strided_slice %103 {offsets = [0, 2, 0, 0], sizes = [2, 8, 8, 128], strides = [1, 1, 1, 1]} : vector<2x14x8x128xf32> to vector<2x8x8x128xf32>
    %119 = vector.extract_strided_slice %1 {offsets = [16, 0], sizes = [1, 128], strides = [1, 1]} : vector<49x128xf32> to vector<1x128xf32>
    %120 = vector.shape_cast %119 : vector<1x128xf32> to vector<128xf32>
    %121 = vector.shape_cast %120 : vector<128xf32> to vector<1x1x1x128xf32>
    %122 = vector.broadcast %121 : vector<1x1x1x128xf32> to vector<2x8x8x128xf32>
    %123 = arith.mulf %118, %122 : vector<2x8x8x128xf32>
    %124 = arith.addf %117, %123 : vector<2x8x8x128xf32>
    %125 = vector.extract_strided_slice %103 {offsets = [0, 3, 0, 0], sizes = [2, 8, 8, 128], strides = [1, 1, 1, 1]} : vector<2x14x8x128xf32> to vector<2x8x8x128xf32>
    %126 = vector.extract_strided_slice %1 {offsets = [23, 0], sizes = [1, 128], strides = [1, 1]} : vector<49x128xf32> to vector<1x128xf32>
    %127 = vector.shape_cast %126 : vector<1x128xf32> to vector<128xf32>
    %128 = vector.shape_cast %127 : vector<128xf32> to vector<1x1x1x128xf32>
    %129 = vector.broadcast %128 : vector<1x1x1x128xf32> to vector<2x8x8x128xf32>
    %130 = arith.mulf %125, %129 : vector<2x8x8x128xf32>
    %131 = arith.addf %124, %130 : vector<2x8x8x128xf32>
    %132 = vector.extract_strided_slice %103 {offsets = [0, 4, 0, 0], sizes = [2, 8, 8, 128], strides = [1, 1, 1, 1]} : vector<2x14x8x128xf32> to vector<2x8x8x128xf32>
    %133 = vector.extract_strided_slice %1 {offsets = [30, 0], sizes = [1, 128], strides = [1, 1]} : vector<49x128xf32> to vector<1x128xf32>
    %134 = vector.shape_cast %133 : vector<1x128xf32> to vector<128xf32>
    %135 = vector.shape_cast %134 : vector<128xf32> to vector<1x1x1x128xf32>
    %136 = vector.broadcast %135 : vector<1x1x1x128xf32> to vector<2x8x8x128xf32>
    %137 = arith.mulf %132, %136 : vector<2x8x8x128xf32>
    %138 = arith.addf %131, %137 : vector<2x8x8x128xf32>
    %139 = vector.extract_strided_slice %103 {offsets = [0, 5, 0, 0], sizes = [2, 8, 8, 128], strides = [1, 1, 1, 1]} : vector<2x14x8x128xf32> to vector<2x8x8x128xf32>
    %140 = vector.extract_strided_slice %1 {offsets = [37, 0], sizes = [1, 128], strides = [1, 1]} : vector<49x128xf32> to vector<1x128xf32>
    %141 = vector.shape_cast %140 : vector<1x128xf32> to vector<128xf32>
    %142 = vector.shape_cast %141 : vector<128xf32> to vector<1x1x1x128xf32>
    %143 = vector.broadcast %142 : vector<1x1x1x128xf32> to vector<2x8x8x128xf32>
    %144 = arith.mulf %139, %143 : vector<2x8x8x128xf32>
    %145 = arith.addf %138, %144 : vector<2x8x8x128xf32>
    %146 = vector.extract_strided_slice %103 {offsets = [0, 6, 0, 0], sizes = [2, 8, 8, 128], strides = [1, 1, 1, 1]} : vector<2x14x8x128xf32> to vector<2x8x8x128xf32>
    %147 = vector.extract_strided_slice %1 {offsets = [44, 0], sizes = [1, 128], strides = [1, 1]} : vector<49x128xf32> to vector<1x128xf32>
    %148 = vector.shape_cast %147 : vector<1x128xf32> to vector<128xf32>
    %149 = vector.shape_cast %148 : vector<128xf32> to vector<1x1x1x128xf32>
    %150 = vector.broadcast %149 : vector<1x1x1x128xf32> to vector<2x8x8x128xf32>
    %151 = arith.mulf %146, %150 : vector<2x8x8x128xf32>
    %152 = arith.addf %145, %151 : vector<2x8x8x128xf32>
    %153 = vector.extract_strided_slice %0 {offsets = [0, 0, 3, 0], sizes = [2, 14, 8, 128], strides = [1, 1, 1, 1]} : vector<2x14x16x128xf32> to vector<2x14x8x128xf32>
    %154 = vector.extract_strided_slice %153 {offsets = [0, 0, 0, 0], sizes = [2, 8, 8, 128], strides = [1, 1, 1, 1]} : vector<2x14x8x128xf32> to vector<2x8x8x128xf32>
    %155 = vector.extract_strided_slice %1 {offsets = [3, 0], sizes = [1, 128], strides = [1, 1]} : vector<49x128xf32> to vector<1x128xf32>
    %156 = vector.shape_cast %155 : vector<1x128xf32> to vector<128xf32>
    %157 = vector.shape_cast %156 : vector<128xf32> to vector<1x1x1x128xf32>
    %158 = vector.broadcast %157 : vector<1x1x1x128xf32> to vector<2x8x8x128xf32>
    %159 = arith.mulf %154, %158 : vector<2x8x8x128xf32>
    %160 = arith.addf %152, %159 : vector<2x8x8x128xf32>
    %161 = vector.extract_strided_slice %153 {offsets = [0, 1, 0, 0], sizes = [2, 8, 8, 128], strides = [1, 1, 1, 1]} : vector<2x14x8x128xf32> to vector<2x8x8x128xf32>
    %162 = vector.extract_strided_slice %1 {offsets = [10, 0], sizes = [1, 128], strides = [1, 1]} : vector<49x128xf32> to vector<1x128xf32>
    %163 = vector.shape_cast %162 : vector<1x128xf32> to vector<128xf32>
    %164 = vector.shape_cast %163 : vector<128xf32> to vector<1x1x1x128xf32>
    %165 = vector.broadcast %164 : vector<1x1x1x128xf32> to vector<2x8x8x128xf32>
    %166 = arith.mulf %161, %165 : vector<2x8x8x128xf32>
    %167 = arith.addf %160, %166 : vector<2x8x8x128xf32>
    %168 = vector.extract_strided_slice %153 {offsets = [0, 2, 0, 0], sizes = [2, 8, 8, 128], strides = [1, 1, 1, 1]} : vector<2x14x8x128xf32> to vector<2x8x8x128xf32>
    %169 = vector.extract_strided_slice %1 {offsets = [17, 0], sizes = [1, 128], strides = [1, 1]} : vector<49x128xf32> to vector<1x128xf32>
    %170 = vector.shape_cast %169 : vector<1x128xf32> to vector<128xf32>
    %171 = vector.shape_cast %170 : vector<128xf32> to vector<1x1x1x128xf32>
    %172 = vector.broadcast %171 : vector<1x1x1x128xf32> to vector<2x8x8x128xf32>
    %173 = arith.mulf %168, %172 : vector<2x8x8x128xf32>
    %174 = arith.addf %167, %173 : vector<2x8x8x128xf32>
    %175 = vector.extract_strided_slice %153 {offsets = [0, 3, 0, 0], sizes = [2, 8, 8, 128], strides = [1, 1, 1, 1]} : vector<2x14x8x128xf32> to vector<2x8x8x128xf32>
    %176 = vector.extract_strided_slice %1 {offsets = [24, 0], sizes = [1, 128], strides = [1, 1]} : vector<49x128xf32> to vector<1x128xf32>
    %177 = vector.shape_cast %176 : vector<1x128xf32> to vector<128xf32>
    %178 = vector.shape_cast %177 : vector<128xf32> to vector<1x1x1x128xf32>
    %179 = vector.broadcast %178 : vector<1x1x1x128xf32> to vector<2x8x8x128xf32>
    %180 = arith.mulf %175, %179 : vector<2x8x8x128xf32>
    %181 = arith.addf %174, %180 : vector<2x8x8x128xf32>
    %182 = vector.extract_strided_slice %153 {offsets = [0, 4, 0, 0], sizes = [2, 8, 8, 128], strides = [1, 1, 1, 1]} : vector<2x14x8x128xf32> to vector<2x8x8x128xf32>
    %183 = vector.extract_strided_slice %1 {offsets = [31, 0], sizes = [1, 128], strides = [1, 1]} : vector<49x128xf32> to vector<1x128xf32>
    %184 = vector.shape_cast %183 : vector<1x128xf32> to vector<128xf32>
    %185 = vector.shape_cast %184 : vector<128xf32> to vector<1x1x1x128xf32>
    %186 = vector.broadcast %185 : vector<1x1x1x128xf32> to vector<2x8x8x128xf32>
    %187 = arith.mulf %182, %186 : vector<2x8x8x128xf32>
    %188 = arith.addf %181, %187 : vector<2x8x8x128xf32>
    %189 = vector.extract_strided_slice %153 {offsets = [0, 5, 0, 0], sizes = [2, 8, 8, 128], strides = [1, 1, 1, 1]} : vector<2x14x8x128xf32> to vector<2x8x8x128xf32>
    %190 = vector.extract_strided_slice %1 {offsets = [38, 0], sizes = [1, 128], strides = [1, 1]} : vector<49x128xf32> to vector<1x128xf32>
    %191 = vector.shape_cast %190 : vector<1x128xf32> to vector<128xf32>
    %192 = vector.shape_cast %191 : vector<128xf32> to vector<1x1x1x128xf32>
    %193 = vector.broadcast %192 : vector<1x1x1x128xf32> to vector<2x8x8x128xf32>
    %194 = arith.mulf %189, %193 : vector<2x8x8x128xf32>
    %195 = arith.addf %188, %194 : vector<2x8x8x128xf32>
    %196 = vector.extract_strided_slice %153 {offsets = [0, 6, 0, 0], sizes = [2, 8, 8, 128], strides = [1, 1, 1, 1]} : vector<2x14x8x128xf32> to vector<2x8x8x128xf32>
    %197 = vector.extract_strided_slice %1 {offsets = [45, 0], sizes = [1, 128], strides = [1, 1]} : vector<49x128xf32> to vector<1x128xf32>
    %198 = vector.shape_cast %197 : vector<1x128xf32> to vector<128xf32>
    %199 = vector.shape_cast %198 : vector<128xf32> to vector<1x1x1x128xf32>
    %200 = vector.broadcast %199 : vector<1x1x1x128xf32> to vector<2x8x8x128xf32>
    %201 = arith.mulf %196, %200 : vector<2x8x8x128xf32>
    %202 = arith.addf %195, %201 : vector<2x8x8x128xf32>
    %203 = vector.extract_strided_slice %0 {offsets = [0, 0, 4, 0], sizes = [2, 14, 8, 128], strides = [1, 1, 1, 1]} : vector<2x14x16x128xf32> to vector<2x14x8x128xf32>
    %204 = vector.extract_strided_slice %203 {offsets = [0, 0, 0, 0], sizes = [2, 8, 8, 128], strides = [1, 1, 1, 1]} : vector<2x14x8x128xf32> to vector<2x8x8x128xf32>
    %205 = vector.extract_strided_slice %1 {offsets = [4, 0], sizes = [1, 128], strides = [1, 1]} : vector<49x128xf32> to vector<1x128xf32>
    %206 = vector.shape_cast %205 : vector<1x128xf32> to vector<128xf32>
    %207 = vector.shape_cast %206 : vector<128xf32> to vector<1x1x1x128xf32>
    %208 = vector.broadcast %207 : vector<1x1x1x128xf32> to vector<2x8x8x128xf32>
    %209 = arith.mulf %204, %208 : vector<2x8x8x128xf32>
    %210 = arith.addf %202, %209 : vector<2x8x8x128xf32>
    %211 = vector.extract_strided_slice %203 {offsets = [0, 1, 0, 0], sizes = [2, 8, 8, 128], strides = [1, 1, 1, 1]} : vector<2x14x8x128xf32> to vector<2x8x8x128xf32>
    %212 = vector.extract_strided_slice %1 {offsets = [11, 0], sizes = [1, 128], strides = [1, 1]} : vector<49x128xf32> to vector<1x128xf32>
    %213 = vector.shape_cast %212 : vector<1x128xf32> to vector<128xf32>
    %214 = vector.shape_cast %213 : vector<128xf32> to vector<1x1x1x128xf32>
    %215 = vector.broadcast %214 : vector<1x1x1x128xf32> to vector<2x8x8x128xf32>
    %216 = arith.mulf %211, %215 : vector<2x8x8x128xf32>
    %217 = arith.addf %210, %216 : vector<2x8x8x128xf32>
    %218 = vector.extract_strided_slice %203 {offsets = [0, 2, 0, 0], sizes = [2, 8, 8, 128], strides = [1, 1, 1, 1]} : vector<2x14x8x128xf32> to vector<2x8x8x128xf32>
    %219 = vector.extract_strided_slice %1 {offsets = [18, 0], sizes = [1, 128], strides = [1, 1]} : vector<49x128xf32> to vector<1x128xf32>
    %220 = vector.shape_cast %219 : vector<1x128xf32> to vector<128xf32>
    %221 = vector.shape_cast %220 : vector<128xf32> to vector<1x1x1x128xf32>
    %222 = vector.broadcast %221 : vector<1x1x1x128xf32> to vector<2x8x8x128xf32>
    %223 = arith.mulf %218, %222 : vector<2x8x8x128xf32>
    %224 = arith.addf %217, %223 : vector<2x8x8x128xf32>
    %225 = vector.extract_strided_slice %203 {offsets = [0, 3, 0, 0], sizes = [2, 8, 8, 128], strides = [1, 1, 1, 1]} : vector<2x14x8x128xf32> to vector<2x8x8x128xf32>
    %226 = vector.extract_strided_slice %1 {offsets = [25, 0], sizes = [1, 128], strides = [1, 1]} : vector<49x128xf32> to vector<1x128xf32>
    %227 = vector.shape_cast %226 : vector<1x128xf32> to vector<128xf32>
    %228 = vector.shape_cast %227 : vector<128xf32> to vector<1x1x1x128xf32>
    %229 = vector.broadcast %228 : vector<1x1x1x128xf32> to vector<2x8x8x128xf32>
    %230 = arith.mulf %225, %229 : vector<2x8x8x128xf32>
    %231 = arith.addf %224, %230 : vector<2x8x8x128xf32>
    %232 = vector.extract_strided_slice %203 {offsets = [0, 4, 0, 0], sizes = [2, 8, 8, 128], strides = [1, 1, 1, 1]} : vector<2x14x8x128xf32> to vector<2x8x8x128xf32>
    %233 = vector.extract_strided_slice %1 {offsets = [32, 0], sizes = [1, 128], strides = [1, 1]} : vector<49x128xf32> to vector<1x128xf32>
    %234 = vector.shape_cast %233 : vector<1x128xf32> to vector<128xf32>
    %235 = vector.shape_cast %234 : vector<128xf32> to vector<1x1x1x128xf32>
    %236 = vector.broadcast %235 : vector<1x1x1x128xf32> to vector<2x8x8x128xf32>
    %237 = arith.mulf %232, %236 : vector<2x8x8x128xf32>
    %238 = arith.addf %231, %237 : vector<2x8x8x128xf32>
    %239 = vector.extract_strided_slice %203 {offsets = [0, 5, 0, 0], sizes = [2, 8, 8, 128], strides = [1, 1, 1, 1]} : vector<2x14x8x128xf32> to vector<2x8x8x128xf32>
    %240 = vector.extract_strided_slice %1 {offsets = [39, 0], sizes = [1, 128], strides = [1, 1]} : vector<49x128xf32> to vector<1x128xf32>
    %241 = vector.shape_cast %240 : vector<1x128xf32> to vector<128xf32>
    %242 = vector.shape_cast %241 : vector<128xf32> to vector<1x1x1x128xf32>
    %243 = vector.broadcast %242 : vector<1x1x1x128xf32> to vector<2x8x8x128xf32>
    %244 = arith.mulf %239, %243 : vector<2x8x8x128xf32>
    %245 = arith.addf %238, %244 : vector<2x8x8x128xf32>
    %246 = vector.extract_strided_slice %203 {offsets = [0, 6, 0, 0], sizes = [2, 8, 8, 128], strides = [1, 1, 1, 1]} : vector<2x14x8x128xf32> to vector<2x8x8x128xf32>
    %247 = vector.extract_strided_slice %1 {offsets = [46, 0], sizes = [1, 128], strides = [1, 1]} : vector<49x128xf32> to vector<1x128xf32>
    %248 = vector.shape_cast %247 : vector<1x128xf32> to vector<128xf32>
    %249 = vector.shape_cast %248 : vector<128xf32> to vector<1x1x1x128xf32>
    %250 = vector.broadcast %249 : vector<1x1x1x128xf32> to vector<2x8x8x128xf32>
    %251 = arith.mulf %246, %250 : vector<2x8x8x128xf32>
    %252 = arith.addf %245, %251 : vector<2x8x8x128xf32>
    %253 = vector.extract_strided_slice %0 {offsets = [0, 0, 5, 0], sizes = [2, 14, 8, 128], strides = [1, 1, 1, 1]} : vector<2x14x16x128xf32> to vector<2x14x8x128xf32>
    %254 = vector.extract_strided_slice %253 {offsets = [0, 0, 0, 0], sizes = [2, 8, 8, 128], strides = [1, 1, 1, 1]} : vector<2x14x8x128xf32> to vector<2x8x8x128xf32>
    %255 = vector.extract_strided_slice %1 {offsets = [5, 0], sizes = [1, 128], strides = [1, 1]} : vector<49x128xf32> to vector<1x128xf32>
    %256 = vector.shape_cast %255 : vector<1x128xf32> to vector<128xf32>
    %257 = vector.shape_cast %256 : vector<128xf32> to vector<1x1x1x128xf32>
    %258 = vector.broadcast %257 : vector<1x1x1x128xf32> to vector<2x8x8x128xf32>
    %259 = arith.mulf %254, %258 : vector<2x8x8x128xf32>
    %260 = arith.addf %252, %259 : vector<2x8x8x128xf32>
    %261 = vector.extract_strided_slice %253 {offsets = [0, 1, 0, 0], sizes = [2, 8, 8, 128], strides = [1, 1, 1, 1]} : vector<2x14x8x128xf32> to vector<2x8x8x128xf32>
    %262 = vector.extract_strided_slice %1 {offsets = [12, 0], sizes = [1, 128], strides = [1, 1]} : vector<49x128xf32> to vector<1x128xf32>
    %263 = vector.shape_cast %262 : vector<1x128xf32> to vector<128xf32>
    %264 = vector.shape_cast %263 : vector<128xf32> to vector<1x1x1x128xf32>
    %265 = vector.broadcast %264 : vector<1x1x1x128xf32> to vector<2x8x8x128xf32>
    %266 = arith.mulf %261, %265 : vector<2x8x8x128xf32>
    %267 = arith.addf %260, %266 : vector<2x8x8x128xf32>
    %268 = vector.extract_strided_slice %253 {offsets = [0, 2, 0, 0], sizes = [2, 8, 8, 128], strides = [1, 1, 1, 1]} : vector<2x14x8x128xf32> to vector<2x8x8x128xf32>
    %269 = vector.extract_strided_slice %1 {offsets = [19, 0], sizes = [1, 128], strides = [1, 1]} : vector<49x128xf32> to vector<1x128xf32>
    %270 = vector.shape_cast %269 : vector<1x128xf32> to vector<128xf32>
    %271 = vector.shape_cast %270 : vector<128xf32> to vector<1x1x1x128xf32>
    %272 = vector.broadcast %271 : vector<1x1x1x128xf32> to vector<2x8x8x128xf32>
    %273 = arith.mulf %268, %272 : vector<2x8x8x128xf32>
    %274 = arith.addf %267, %273 : vector<2x8x8x128xf32>
    %275 = vector.extract_strided_slice %253 {offsets = [0, 3, 0, 0], sizes = [2, 8, 8, 128], strides = [1, 1, 1, 1]} : vector<2x14x8x128xf32> to vector<2x8x8x128xf32>
    %276 = vector.extract_strided_slice %1 {offsets = [26, 0], sizes = [1, 128], strides = [1, 1]} : vector<49x128xf32> to vector<1x128xf32>
    %277 = vector.shape_cast %276 : vector<1x128xf32> to vector<128xf32>
    %278 = vector.shape_cast %277 : vector<128xf32> to vector<1x1x1x128xf32>
    %279 = vector.broadcast %278 : vector<1x1x1x128xf32> to vector<2x8x8x128xf32>
    %280 = arith.mulf %275, %279 : vector<2x8x8x128xf32>
    %281 = arith.addf %274, %280 : vector<2x8x8x128xf32>
    %282 = vector.extract_strided_slice %253 {offsets = [0, 4, 0, 0], sizes = [2, 8, 8, 128], strides = [1, 1, 1, 1]} : vector<2x14x8x128xf32> to vector<2x8x8x128xf32>
    %283 = vector.extract_strided_slice %1 {offsets = [33, 0], sizes = [1, 128], strides = [1, 1]} : vector<49x128xf32> to vector<1x128xf32>
    %284 = vector.shape_cast %283 : vector<1x128xf32> to vector<128xf32>
    %285 = vector.shape_cast %284 : vector<128xf32> to vector<1x1x1x128xf32>
    %286 = vector.broadcast %285 : vector<1x1x1x128xf32> to vector<2x8x8x128xf32>
    %287 = arith.mulf %282, %286 : vector<2x8x8x128xf32>
    %288 = arith.addf %281, %287 : vector<2x8x8x128xf32>
    %289 = vector.extract_strided_slice %253 {offsets = [0, 5, 0, 0], sizes = [2, 8, 8, 128], strides = [1, 1, 1, 1]} : vector<2x14x8x128xf32> to vector<2x8x8x128xf32>
    %290 = vector.extract_strided_slice %1 {offsets = [40, 0], sizes = [1, 128], strides = [1, 1]} : vector<49x128xf32> to vector<1x128xf32>
    %291 = vector.shape_cast %290 : vector<1x128xf32> to vector<128xf32>
    %292 = vector.shape_cast %291 : vector<128xf32> to vector<1x1x1x128xf32>
    %293 = vector.broadcast %292 : vector<1x1x1x128xf32> to vector<2x8x8x128xf32>
    %294 = arith.mulf %289, %293 : vector<2x8x8x128xf32>
    %295 = arith.addf %288, %294 : vector<2x8x8x128xf32>
    %296 = vector.extract_strided_slice %253 {offsets = [0, 6, 0, 0], sizes = [2, 8, 8, 128], strides = [1, 1, 1, 1]} : vector<2x14x8x128xf32> to vector<2x8x8x128xf32>
    %297 = vector.extract_strided_slice %1 {offsets = [47, 0], sizes = [1, 128], strides = [1, 1]} : vector<49x128xf32> to vector<1x128xf32>
    %298 = vector.shape_cast %297 : vector<1x128xf32> to vector<128xf32>
    %299 = vector.shape_cast %298 : vector<128xf32> to vector<1x1x1x128xf32>
    %300 = vector.broadcast %299 : vector<1x1x1x128xf32> to vector<2x8x8x128xf32>
    %301 = arith.mulf %296, %300 : vector<2x8x8x128xf32>
    %302 = arith.addf %295, %301 : vector<2x8x8x128xf32>
    %303 = vector.extract_strided_slice %0 {offsets = [0, 0, 6, 0], sizes = [2, 14, 8, 128], strides = [1, 1, 1, 1]} : vector<2x14x16x128xf32> to vector<2x14x8x128xf32>
    %304 = vector.extract_strided_slice %303 {offsets = [0, 0, 0, 0], sizes = [2, 8, 8, 128], strides = [1, 1, 1, 1]} : vector<2x14x8x128xf32> to vector<2x8x8x128xf32>
    %305 = vector.extract_strided_slice %1 {offsets = [6, 0], sizes = [1, 128], strides = [1, 1]} : vector<49x128xf32> to vector<1x128xf32>
    %306 = vector.shape_cast %305 : vector<1x128xf32> to vector<128xf32>
    %307 = vector.shape_cast %306 : vector<128xf32> to vector<1x1x1x128xf32>
    %308 = vector.broadcast %307 : vector<1x1x1x128xf32> to vector<2x8x8x128xf32>
    %309 = arith.mulf %304, %308 : vector<2x8x8x128xf32>
    %310 = arith.addf %302, %309 : vector<2x8x8x128xf32>
    %311 = vector.extract_strided_slice %303 {offsets = [0, 1, 0, 0], sizes = [2, 8, 8, 128], strides = [1, 1, 1, 1]} : vector<2x14x8x128xf32> to vector<2x8x8x128xf32>
    %312 = vector.extract_strided_slice %1 {offsets = [13, 0], sizes = [1, 128], strides = [1, 1]} : vector<49x128xf32> to vector<1x128xf32>
    %313 = vector.shape_cast %312 : vector<1x128xf32> to vector<128xf32>
    %314 = vector.shape_cast %313 : vector<128xf32> to vector<1x1x1x128xf32>
    %315 = vector.broadcast %314 : vector<1x1x1x128xf32> to vector<2x8x8x128xf32>
    %316 = arith.mulf %311, %315 : vector<2x8x8x128xf32>
    %317 = arith.addf %310, %316 : vector<2x8x8x128xf32>
    %318 = vector.extract_strided_slice %303 {offsets = [0, 2, 0, 0], sizes = [2, 8, 8, 128], strides = [1, 1, 1, 1]} : vector<2x14x8x128xf32> to vector<2x8x8x128xf32>
    %319 = vector.extract_strided_slice %1 {offsets = [20, 0], sizes = [1, 128], strides = [1, 1]} : vector<49x128xf32> to vector<1x128xf32>
    %320 = vector.shape_cast %319 : vector<1x128xf32> to vector<128xf32>
    %321 = vector.shape_cast %320 : vector<128xf32> to vector<1x1x1x128xf32>
    %322 = vector.broadcast %321 : vector<1x1x1x128xf32> to vector<2x8x8x128xf32>
    %323 = arith.mulf %318, %322 : vector<2x8x8x128xf32>
    %324 = arith.addf %317, %323 : vector<2x8x8x128xf32>
    %325 = vector.extract_strided_slice %303 {offsets = [0, 3, 0, 0], sizes = [2, 8, 8, 128], strides = [1, 1, 1, 1]} : vector<2x14x8x128xf32> to vector<2x8x8x128xf32>
    %326 = vector.extract_strided_slice %1 {offsets = [27, 0], sizes = [1, 128], strides = [1, 1]} : vector<49x128xf32> to vector<1x128xf32>
    %327 = vector.shape_cast %326 : vector<1x128xf32> to vector<128xf32>
    %328 = vector.shape_cast %327 : vector<128xf32> to vector<1x1x1x128xf32>
    %329 = vector.broadcast %328 : vector<1x1x1x128xf32> to vector<2x8x8x128xf32>
    %330 = arith.mulf %325, %329 : vector<2x8x8x128xf32>
    %331 = arith.addf %324, %330 : vector<2x8x8x128xf32>
    %332 = vector.extract_strided_slice %303 {offsets = [0, 4, 0, 0], sizes = [2, 8, 8, 128], strides = [1, 1, 1, 1]} : vector<2x14x8x128xf32> to vector<2x8x8x128xf32>
    %333 = vector.extract_strided_slice %1 {offsets = [34, 0], sizes = [1, 128], strides = [1, 1]} : vector<49x128xf32> to vector<1x128xf32>
    %334 = vector.shape_cast %333 : vector<1x128xf32> to vector<128xf32>
    %335 = vector.shape_cast %334 : vector<128xf32> to vector<1x1x1x128xf32>
    %336 = vector.broadcast %335 : vector<1x1x1x128xf32> to vector<2x8x8x128xf32>
    %337 = arith.mulf %332, %336 : vector<2x8x8x128xf32>
    %338 = arith.addf %331, %337 : vector<2x8x8x128xf32>
    %339 = vector.extract_strided_slice %303 {offsets = [0, 5, 0, 0], sizes = [2, 8, 8, 128], strides = [1, 1, 1, 1]} : vector<2x14x8x128xf32> to vector<2x8x8x128xf32>
    %340 = vector.extract_strided_slice %1 {offsets = [41, 0], sizes = [1, 128], strides = [1, 1]} : vector<49x128xf32> to vector<1x128xf32>
    %341 = vector.shape_cast %340 : vector<1x128xf32> to vector<128xf32>
    %342 = vector.shape_cast %341 : vector<128xf32> to vector<1x1x1x128xf32>
    %343 = vector.broadcast %342 : vector<1x1x1x128xf32> to vector<2x8x8x128xf32>
    %344 = arith.mulf %339, %343 : vector<2x8x8x128xf32>
    %345 = arith.addf %338, %344 : vector<2x8x8x128xf32>
    %346 = vector.extract_strided_slice %303 {offsets = [0, 6, 0, 0], sizes = [2, 8, 8, 128], strides = [1, 1, 1, 1]} : vector<2x14x8x128xf32> to vector<2x8x8x128xf32>
    %347 = vector.extract_strided_slice %1 {offsets = [48, 0], sizes = [1, 128], strides = [1, 1]} : vector<49x128xf32> to vector<1x128xf32>
    %348 = vector.shape_cast %347 : vector<1x128xf32> to vector<128xf32>
    %349 = vector.shape_cast %348 : vector<128xf32> to vector<1x1x1x128xf32>
    %350 = vector.broadcast %349 : vector<1x1x1x128xf32> to vector<2x8x8x128xf32>
    %351 = arith.mulf %346, %350 : vector<2x8x8x128xf32>
    %352 = arith.addf %345, %351 : vector<2x8x8x128xf32>
    %353 = vector.shape_cast %352 : vector<2x8x8x128xf32> to vector<128x128xf32>
    %c0_5 = arith.constant 0 : index
    %c0_6 = arith.constant 0 : index
    %354 = vector.load %arg3[%c0_5, %c0_6] : memref<128x128xf32, #tpu.memory_space<vmem>>, vector<128x128xf32>
    %cst_7 = arith.constant dense<0.000000e+00> : vector<128x128xf32>
    %355 = tpu.matmul %353, %354, %cst_7 {dimension_numbers = #tpu.dot_dimension_numbers<[1], [0], [0], [1], [0, 0, 1, 1], [], []>} : vector<128x128xf32>, vector<128x128xf32>, vector<128x128xf32> -> vector<128x128xf32>
    %cst_8 = arith.constant dense<0.000000e+00> : vector<128xf32>
    %356 = vector.multi_reduction <add>, %355, %cst_8 [0] : vector<128x128xf32> to vector<128xf32>
    %357 = vector.shape_cast %356 : vector<128xf32> to vector<1x128xf32>
    %cst_9 = arith.constant 7.812500e-03 : f32
    %358 = vector.broadcast %cst_9 : f32 to vector<1x128xf32>
    %359 = arith.mulf %357, %358 : vector<1x128xf32>
    %360 = vector.broadcast %359 : vector<1x128xf32> to vector<128x128xf32>
    %361 = arith.subf %355, %360 : vector<128x128xf32>
    %362 = arith.mulf %361, %361 : vector<128x128xf32>
    %cst_10 = arith.constant dense<0.000000e+00> : vector<128xf32>
    %363 = vector.multi_reduction <add>, %362, %cst_10 [0] : vector<128x128xf32> to vector<128xf32>
    %364 = vector.shape_cast %363 : vector<128xf32> to vector<1x128xf32>
    %cst_11 = arith.constant 7.812500e-03 : f32
    %365 = vector.broadcast %cst_11 : f32 to vector<1x128xf32>
    %366 = arith.mulf %364, %365 : vector<1x128xf32>
    %c0_12 = arith.constant 0 : index
    %c0_13 = arith.constant 0 : index
    %367 = vector.load %arg4[%c0_12, %c0_13] : memref<1x128xf32, #tpu.memory_space<vmem>>, vector<1x128xf32>
    %cst_14 = arith.constant 9.99999974E-6 : f32
    %368 = vector.broadcast %cst_14 : f32 to vector<1x128xf32>
    %369 = arith.addf %366, %368 : vector<1x128xf32>
    %370 = math.rsqrt %369 : vector<1x128xf32>
    %371 = arith.mulf %367, %370 : vector<1x128xf32>
    %372 = vector.broadcast %371 : vector<1x128xf32> to vector<128x128xf32>
    %373 = arith.mulf %361, %372 : vector<128x128xf32>
    %c0_15 = arith.constant 0 : index
    %c0_16 = arith.constant 0 : index
    %374 = vector.load %arg5[%c0_15, %c0_16] : memref<1x128xf32, #tpu.memory_space<vmem>>, vector<1x128xf32>
    %375 = vector.broadcast %374 : vector<1x128xf32> to vector<128x128xf32>
    %376 = arith.addf %373, %375 : vector<128x128xf32>
    %cst_17 = arith.constant 0.000000e+00 : f32
    %377 = vector.broadcast %cst_17 : f32 to vector<128x128xf32>
    %378 = arith.maximumf %376, %377 : vector<128x128xf32>
    %c0_18 = arith.constant 0 : index
    %c0_19 = arith.constant 0 : index
    %379 = vector.load %arg6[%c0_18, %c0_19] : memref<128x128xf32, #tpu.memory_space<vmem>>, vector<128x128xf32>
    tpu.vector_store %arg6[%c0_18, %c0_19], %378 {strides = array<i32>} : memref<128x128xf32, #tpu.memory_space<vmem>>, vector<128x128xf32>,
    return
  }
  func.func @transform_0(%arg0: i32) -> (i32, i32, i32, i32) {
    %c0_i32 = arith.constant 0 : i32
    %c0_i32_0 = arith.constant 0 : i32
    %c0_i32_1 = arith.constant 0 : i32
    %c0_i32_2 = arith.constant 0 : i32
    %c0_i32_3 = arith.constant 0 : i32
    return %c0_i32, %c0_i32_0, %c0_i32_1, %c0_i32_2 : i32, i32, i32, i32
  }
  func.func @transform_1(%arg0: i32) -> (i32, i32) {
    %c0_i32 = arith.constant 0 : i32
    %c0_i32_0 = arith.constant 0 : i32
    %c0_i32_1 = arith.constant 0 : i32
    return %c0_i32, %c0_i32_0 : i32, i32
  }
  func.func @transform_2(%arg0: i32) -> (i32, i32) {
    %c0_i32 = arith.constant 0 : i32
    %c0_i32_0 = arith.constant 0 : i32
    return %c0_i32, %arg0 : i32, i32
  }
  func.func @transform_3(%arg0: i32) -> (i32, i32) {
    %c0_i32 = arith.constant 0 : i32
    %c0_i32_0 = arith.constant 0 : i32
    return %c0_i32, %arg0 : i32, i32
  }
  func.func @transform_4(%arg0: i32) -> (i32, i32) {
    %c0_i32 = arith.constant 0 : i32
    %c0_i32_0 = arith.constant 0 : i32
    return %c0_i32, %arg0 : i32, i32
  }
  func.func @transform_5(%arg0: i32) -> (i32, i32) {
    %c0_i32 = arith.constant 0 : i32
    %c0_i32_0 = arith.constant 0 : i32
    return %c0_i32, %arg0 : i32, i32
  }
}

</mosaic_0001>

<bundles_post_ra>
// kernel: separable_conv2d7_forward.1
= control target key start
LH: loop header
LB: loop body
LE: loop exit
PB: predicated region body
PF: predicated region fallthrough
CT: control target
= control target key end

     0   :  { %10 = vsyncpa [#allocation4], 0  ;;  %s16630_s0 = inlined_call_operand.vmem [shape: f32[2,14,16,128], index: 0, kind: input, shape index: {}]   ;;  %s16631_s1 = inlined_call_operand.vmem [shape: f32[49,128], index: 1, kind: input, shape index: {}]   ;;  %s16632_s2 = inlined_call_operand.vmem [shape: f32[128,256], index: 2, kind: input, shape index: {}]   ;;  %s16633_s3 = inlined_call_operand.vmem [shape: f32[1,256], index: 3, kind: input, shape index: {}]   ;;  %s16634_s4 = inlined_call_operand.vmem [shape: f32[1,256], index: 4, kind: input, shape index: {}]   ;;  %s16635_s5 = inlined_call_operand.hbm [shape: f32[128,256], index: 5, kind: output, shape index: {}]  }
   0x1   :  { %12 = vsyncpa [#allocation4 + $0x1], 0  ;;  %s7935_s18 = smov 0   ;;  %s7937_s19 = smov 0  }
   0x2   :  { %s7939_s20 = smov 0   ;;  %s7941_s21 = smov 0  }
   0x3 LB: > { %s7956_s22 = sadd.s32 4294967295, %s7899_s21   ;;  %s7299_s23 = sadd.s32 4294967294, %s7899_s21   ;;  %s7899_s21 = sphi %s7941_s21, %s18691_s21   ;;  %s7895_s20 = sphi %s7939_s20, %s18690_s20   ;;  %s7891_s19 = sphi %s7937_s19, %s18689_s19   ;;  %s7887_s18 = sphi %s7935_s18, %s18688_s18  }
   0x4   : > { %s7960_s24 = sadd.s32 1, %s7899_s21   ;;  %s67_s25 = sadd.s32 1, %s7895_s20 }
   0x5   : > { %s64_s26 = ssub.s32 %s7899_s21, %s7960_s24  ;;  %p74_p0 = scmp.ne.s32.totalorder %s7895_s20, %s7891_s19 }
   0x6   : > { %p65_p1 = scmp.eq.s32.totalorder %s64_s26, 0  ;;  %p75_p2 = scmp.eq.s32.totalorder %s7899_s21, 0 }
   0x7   : > { %p156_p3 = scmp.eq.s32.totalorder %s7956_s22, 1  ;;  %p161_p4 = scmp.ne.s32.totalorder %s7891_s19, %s7887_s18 }
   0x8   : > { %s7972_s27 = scalar_select %p65_p1, %s7895_s20, %s67_s25  }
   0x9   : > { %p76_p5 = por %p75_p2, %p74_p0  ;;  %p7974_p6 = por %p156_p3, %p74_p0 }
   0xa   : > { %p162_p7 = scmp.eq.s32.totalorder %s7299_s23, 1  ;;  %p7301_p9 = scmp.ge.s32.totalorder %s7899_s21, 2 }
   0xc   : > { %p7978_p8 = por %p162_p7, %p161_p4  ;;  %184 = sbr.rel (%p7301_p9) target bundleno = 31 (0x1f), region = 24 }
  0x13   : > { %187 = sbr.rel (!%p76_p5) target bundleno = 31 (0x1f), region = 28  ;;  %s189_s30 = sand.u32 (%p76_p5), 1, %s7895_s20  }
  0x14   : > { %s7303_s6 = sshll.u32 (%p76_p5), %s7899_s21, 3  ;;  %s7302_s7 = sshll.u32 (%p76_p5), %s189_s30, 7 }
  0x15   : > { %s7990_s10 = scalar_lea.vmem (%p76_p5), %s16632_s2, %s7303_s6  ;;  %s191_s11 = scalar_lea.vmem (%p76_p5), [#allocation2], %s7302_s7 }
  0x16   : > { %v251_v0 = vld [vmem:[%s7990_s10] sm:$0xff] (%p76_p5)  ;;  %v253_v1 = vld [vmem:[%s7990_s10 + $0x10] sm:$0xff] (%p76_p5) }
  0x17   : > { %v255_v2 = vld [vmem:[%s7990_s10 + $0x20] sm:$0xff] (%p76_p5)  ;;  %252 = vst [vmem:[%s191_s11] sm:$0xff] (%p76_p5), %v251_v0  ;;  %254 = vst [vmem:[%s191_s11 + $0x8] sm:$0xff] (%p76_p5), %v253_v1  ;;  %v257_v3 = vld [vmem:[%s7990_s10 + $0x30] sm:$0xff] (%p76_p5) }
  0x18   : > { %256 = vst [vmem:[%s191_s11 + $0x10] sm:$0xff] (%p76_p5), %v255_v2  ;;  %v259_v4 = vld [vmem:[%s7990_s10 + $0x40] sm:$0xff] (%p76_p5)  ;;  %v261_v5 = vld [vmem:[%s7990_s10 + $0x50] sm:$0xff] (%p76_p5)  ;;  %258 = vst [vmem:[%s191_s11 + $0x18] sm:$0xff] (%p76_p5), %v257_v3 }
  0x19   : > { %260 = vst [vmem:[%s191_s11 + $0x20] sm:$0xff] (%p76_p5), %v259_v4  ;;  %262 = vst [vmem:[%s191_s11 + $0x28] sm:$0xff] (%p76_p5), %v261_v5  ;;  %v263_v6 = vld [vmem:[%s7990_s10 + $0x60] sm:$0xff] (%p76_p5)  ;;  %v265_v7 = vld [vmem:[%s7990_s10 + $0x70] sm:$0xff] (%p76_p5) }
  0x1a   : > { %v267_v8 = vld [vmem:[%s7990_s10 + $0x80] sm:$0xff]  ;;  %264 = vst [vmem:[%s191_s11 + $0x30] sm:$0xff] %v263_v6  ;;  %266 = vst [vmem:[%s191_s11 + $0x38] sm:$0xff] %v265_v7  ;;  %v269_v9 = vld [vmem:[%s7990_s10 + $0x90] sm:$0xff] }
  0x1b   : > { %268 = vst [vmem:[%s191_s11 + $0x40] sm:$0xff] %v267_v8  ;;  %v271_v10 = vld [vmem:[%s7990_s10 + $0xa0] sm:$0xff]  ;;  %v273_v11 = vld [vmem:[%s7990_s10 + $0xb0] sm:$0xff]  ;;  %270 = vst [vmem:[%s191_s11 + $0x48] sm:$0xff] %v269_v9 }
  0x1c   : > { %272 = vst [vmem:[%s191_s11 + $0x50] sm:$0xff] %v271_v10  ;;  %274 = vst [vmem:[%s191_s11 + $0x58] sm:$0xff] %v273_v11  ;;  %v275_v12 = vld [vmem:[%s7990_s10 + $0xc0] sm:$0xff]  ;;  %v277_v13 = vld [vmem:[%s7990_s10 + $0xd0] sm:$0xff] }
  0x1d   : > { %v279_v14 = vld [vmem:[%s7990_s10 + $0xe0] sm:$0xff]  ;;  %276 = vst [vmem:[%s191_s11 + $0x60] sm:$0xff] %v275_v12  ;;  %278 = vst [vmem:[%s191_s11 + $0x68] sm:$0xff] %v277_v13  ;;  %v281_v15 = vld [vmem:[%s7990_s10 + $0xf0] sm:$0xff] }
  0x1e   : > { %280 = vst [vmem:[%s191_s11 + $0x70] sm:$0xff] %v279_v14  ;;  %282 = vst [vmem:[%s191_s11 + $0x78] sm:$0xff] %v281_v15 }
  0x1f PF: > { %p7304_p10 = scmp.ge.s32.totalorder %s7899_s21, 1  ;;  %p299_p11 = scmp.lt.s32.totalorder %s7899_s21, 3 }
  0x21   : > { %p300_p12 = pnand %p7304_p10, %p299_p11 }
  0x23   : > { %303 = sbr.rel (%p300_p12) target bundleno = 1486 (0x5ce), region = 74 }
  0x2a   : > { %v408_v16 = vlaneseq  ;;  %v8015_v19 = vld [vmem:[%s16631_s1] sm:$0xff]  ;;  %v8026_v23 = vld [vmem:[%s16631_s1 + $0x8] sm:$0xff]  ;;  %v8042_v28 = vld [vmem:[%s16631_s1 + $0x10] sm:$0xff]  ;;  %vm728_vm0 = vcmask 1046528   ;;  %vm1765_vm1 = vcmask 1045504   ;;  %vm2802_vm2 = vcmask 1044480  }
  0x2b   : > { %17256 = vst [vmem:[#allocation7_spill] sm:$0xff] %v8015_v19  ;;  %17260 = vst [vmem:[#allocation11_spill] sm:$0xff] %v8026_v23  ;;  %v8037_v27 = vld [vmem:[%s16630_s0] sm:$0xff]  ;;  %v8047_v29 = vld [vmem:[%s16631_s1 + $0x18] sm:$0xff]  ;;  %vm3839_vm3 = vcmask 1043456   ;;  %vm4876_vm4 = vcmask 1042432  }
  0x2c   : > { %v409_v17 = vshrl.u32 %v408_v16, 7  ;;  %17263 = vst [vmem:[#allocation14_spill] sm:$0xff] %v8037_v27  ;;  %17264 = vst [vmem:[#allocation15_spill] sm:$0xff] %v8042_v28  ;;  %v8052_v30 = vld [vmem:[%s16630_s0 + $0x10] sm:$0xff]  ;;  %v8059_v32 = vld [vmem:[%s16630_s0 + $0x20] sm:$0xff]  ;;  %vm5913_vm5 = vcmask 1041408  }
  0x2d   : > { %17265 = vst [vmem:[#allocation16_spill] sm:$0xff] %v8047_v29  ;;  %17266 = vst [vmem:[#allocation17_spill] sm:$0xff] %v8052_v30  ;;  %v8064_v33 = vld [vmem:[%s16630_s0 + $0x30] sm:$0xff]  ;;  %v8069_v34 = vld [vmem:[%s16630_s0 + $0xe0] sm:$0xff]  ;;  %s306_s23 = sand.u32 1, %s7891_s19   ;;  %p339_p13 = scmp.lt.s32.totalorder %s7956_s22, 1 }
  0x2e   : > { %v8010_v18 = vsub.s32 0, %v409_v17  ;;  %v8017_v20 = vsub.s32 7, %v409_v17  ;;  %v8019_v21 = vsub.s32 6, %v409_v17  ;;  %v8021_v22 = vsub.s32 1, %v409_v17  ;;  %17268 = vst [vmem:[#allocation19_spill] sm:$0xff] %v8059_v32  ;;  %17269 = vst [vmem:[#allocation20_spill] sm:$0xff] %v8064_v33 }
  0x2f   : > { %v8030_v25 = vsub.s32 5, %v409_v17  ;;  %v8032_v26 = vsub.s32 4, %v409_v17  ;;  %v8054_v31 = vsub.s32 3, %v409_v17  ;;  %17270 = vst [vmem:[#allocation21_spill] sm:$0xff] %v8069_v34  ;;  %v8077_v37 = vsub.s32 2, %v409_v17  ;;  %v8086_v39 = vld [vmem:[%s16630_s0 + $0x40] sm:$0xff] }
  0x30   : > { %17255 = vst [vmem:[#allocation6_spill] sm:$0xff] %v8010_v18  ;;  %17257 = vst [vmem:[#allocation8_spill] sm:$0xff] %v8017_v20  ;;  %v411_v24 = vrot.slane %v8015_v19, %v8010_v18  ;;  %v447_v35 = vrot.slane %v8015_v19, %v8017_v20  ;;  %v8075_v36 = vrot.slane %v8026_v23, %v8019_v21  ;;  %v8091_v40 = vld [vmem:[%s16630_s0 + $0x50] sm:$0xff]  ;;  %v8114_v46 = vld [vmem:[%s16630_s0 + $0x60] sm:$0xff]  ;;  %s16108_s25 = sshll.u32 %s306_s23, 7  ;;  %s7310_s9 = sshll.u32 %s7956_s22, 7 }
  0x31   : > { %17258 = vst [vmem:[#allocation9_spill] sm:$0xff] %v8019_v21  ;;  %17259 = vst [vmem:[#allocation10_spill] sm:$0xff] %v8021_v22  ;;  %v8081_v38 = vrot.slane %v8015_v19, %v8021_v22  ;;  %v8096_v41 = vld [vmem:[%s16630_s0 + $0xf0] sm:$0xff]  ;;  %v8101_v43 = vrot.slane %v8042_v28, %v8030_v25  ;;  %v8105_v44 = vrot.slane %v8047_v29, %v8032_v26  ;;  %v8124_v48 = vld [vmem:[%s16630_s0 + $0x80] sm:$0xff]  ;;  %s16189_s8 = scalar_lea.vmem [#allocation2], %s16108_s25  ;;  %s16560_s10 = scalar_lea.vmem [#allocation3], %s16108_s25 }
  0x32   : > { %17261 = vst [vmem:[#allocation12_spill] sm:$0xff] %v8030_v25  ;;  %17262 = vst [vmem:[#allocation13_spill] sm:$0xff] %v8032_v26  ;;  %v412_v42 = vmul.f32 %v411_v24, %v8037_v27  ;;  %v8109_v45 = vrot.slane %v8026_v23, %v8010_v18  ;;  %v8119_v47 = vld [vmem:[%s16630_s0 + $0x70] sm:$0xff]  ;;  %v413_v49 = vmul.f32 %v411_v24, %v8052_v30  ;;  %v8133_v53 = vld [vmem:[%s16630_s0 + $0x100] sm:$0xff]  ;;  %s340_s15 = scalar_select %p339_p13, %s7956_s22, 1 }
  0x33   : > { %17267 = vst [vmem:[#allocation18_spill] sm:$0xff] %v8054_v31  ;;  %17271 = vst [vmem:[#allocation22_spill] sm:$0xff] %v8077_v37  ;;  %v414_v50 = vmul.f32 %v411_v24, %v8059_v32  ;;  %v415_v51 = vmul.f32 %v411_v24, %v8064_v33  ;;  %v416_v52 = vmul.f32 %v411_v24, %v8086_v39  ;;  %v8138_v54 = vld [vmem:[%s16630_s0 + $0x110] sm:$0xff]  ;;  %v8143_v55 = vld [vmem:[%s16630_s0 + $0x120] sm:$0xff]  ;;  %s7213_s11 = sshll.u32 %s16560_s10, 4  ;;  %s16566_s25 = scalar_lea.hbm %s16635_s5, %s7310_s9  ;;  %s16572_s11 = int_to_ptr.vmem [resolvable:$true] %s7213_s11 }
  0x34   : > { %17272 = vst [vmem:[#allocation23_spill] sm:$0xff] %v8081_v38  ;;  %17273 = vst [vmem:[#allocation24_spill] sm:$0xff] %v8086_v39  ;;  %v417_v56 = vmul.f32 %v411_v24, %v8091_v40  ;;  %v418_v57 = vmul.f32 %v411_v24, %v8114_v46  ;;  %v419_v58 = vmul.f32 %v411_v24, %v8119_v47  ;;  %v8152_v60 = vld [vmem:[%s16630_s0 + $0x130] sm:$0xff]  ;;  %v8157_v61 = vld [vmem:[%s16630_s0 + $0x140] sm:$0xff]  ;;  %s341_s26 = scalar_lea.vmem %s16633_s3, %s340_s15  ;;  %s344_s7 = scalar_lea.vmem %s16634_s4, %s340_s15 }
  0x35   : > { %17274 = vst [vmem:[#allocation25_spill] sm:$0xff] %v8091_v40  ;;  %17275 = vst [vmem:[#allocation26_spill] sm:$0xff] %v8096_v41  ;;  %v420_v59 = vmul.f32 %v411_v24, %v8069_v34  ;;  %v8162_v62 = vld [vmem:[%s16630_s0 + $0x150] sm:$0xff]  ;;  %v421_v63 = vmul.f32 %v411_v24, %v8096_v41  ;;  %v422_v0 = vmul.f32 %v411_v24, %v8133_v53  ;;  %v8175_v7 = vld [vmem:[%s16630_s0 + $0x160] sm:$0xff]  ;;  %s16588_s12 = scalar_lea.sflag [#allocation4], %s306_s23  ;;  %s7837_s13 = scalar_lea.vmem %s16572_s11, 2048 }
  0x36   : > { %17276 = vst [vmem:[#allocation27_spill] sm:$0xff] %v8105_v44  ;;  %17277 = vst [vmem:[#allocation28_spill] sm:$0xff] %v8109_v45  ;;  %v423_v1 = vmul.f32 %v411_v24, %v8138_v54  ;;  %v424_v2 = vmul.f32 %v411_v24, %v8143_v55  ;;  %v425_v3 = vmul.f32 %v411_v24, %v8152_v60  ;;  %p7838_p0 = scmp.ne.s32.totalorder %s16572_s11, %s7837_s13  ;;  %s7901_s14 = smov [#allocation3]  }
  0x37   : > { %17278 = vst [vmem:[#allocation29_spill] sm:$0xff] %v8114_v46  ;;  %17279 = vst [vmem:[#allocation30_spill] sm:$0xff] %v8119_v47  ;;  %v426_v4 = vmul.f32 %v411_v24, %v8157_v61  ;;  %v427_v5 = vmul.f32 %v411_v24, %v8162_v62  ;;  %v448_v6 = vmul.f32 %v447_v35, %v8052_v30  ;;  %v8195_v30 = vld [vmem:[%s16630_s0 + $0x90] sm:$0xff]  ;;  %s7841_s15 = sshll.u32 %s7901_s14, 4  ;;  %s7842_s15 = int_to_ptr.vmem [resolvable:$false] %s7841_s15 }
  0x38   : > { %17280 = vst [vmem:[#allocation31_spill] sm:$0xff] %v8124_v48  ;;  %17281 = vst [vmem:[#allocation32_spill] sm:$0xff] %v8133_v53  ;;  %v449_v8 = vmul.f32 %v447_v35, %v8059_v32  ;;  %v450_v9 = vmul.f32 %v447_v35, %v8064_v33  ;;  %v451_v10 = vmul.f32 %v447_v35, %v8086_v39  ;;  %p7839_p1 = pnand %p7838_p0, %p7974_p6  ;;  %s7843_s16 = scalar_lea.vmem %s7842_s15, 4096 }
  0x39   : > { %17282 = vst [vmem:[#allocation33_spill] sm:$0xff] %v8138_v54  ;;  %17283 = vst [vmem:[#allocation34_spill] sm:$0xff] %v8143_v55  ;;  %v452_v11 = vmul.f32 %v447_v35, %v8091_v40  ;;  %v453_v12 = vmul.f32 %v447_v35, %v8114_v46  ;;  %v454_v13 = vmul.f32 %v447_v35, %v8119_v47  ;;  %p7844_p3 = scmp.lt.s32.totalorder %s16572_s11, %s7842_s15  ;;  %p7845_p4 = scmp.lt.s32.totalorder %s7843_s16, %s7837_s13 }
  0x3a   : > { %17284 = vst [vmem:[#allocation35_spill] sm:$0xff] %v8152_v60  ;;  %17285 = vst [vmem:[#allocation36_spill] sm:$0xff] %v8157_v61  ;;  %v455_v14 = vmul.f32 %v447_v35, %v8124_v48  ;;  %v456_v15 = vmul.f32 %v447_v35, %v8096_v41  ;;  %v457_v16 = vmul.f32 %v447_v35, %v8133_v53  ;;  %p7840_p2 = pneg %p7839_p1 }
  0x3b   : > { %17286 = vst [vmem:[#allocation37_spill] sm:$0xff] %v8162_v62  ;;  %17287 = vst [vmem:[#allocation38_spill] sm:$0xff] %v8175_v7  ;;  %v458_v17 = vmul.f32 %v447_v35, %v8138_v54  ;;  %v459_v24 = vmul.f32 %v447_v35, %v8143_v55  ;;  %v460_v18 = vmul.f32 %v447_v35, %v8152_v60  ;;  %p7846_p5 = por %p7845_p4, %p7844_p3 }
  0x3c   : > { %v461_v22 = vmul.f32 %v447_v35, %v8157_v61  ;;  %v462_v19 = vmul.f32 %v447_v35, %v8162_v62  ;;  %v463_v26 = vmul.f32 %v447_v35, %v8175_v7  ;;  %v464_v29 = vadd.f32 %v448_v6, %v412_v42  ;;  %17288 = vst [vmem:[#allocation39_spill] sm:$0xff] %v8195_v30 }
  0x3d   : > { %v465_v25 = vadd.f32 %v449_v8, %v413_v49  ;;  %v466_v28 = vadd.f32 %v450_v9, %v414_v50  ;;  %v467_v21 = vadd.f32 %v451_v10, %v415_v51  ;;  %v468_v23 = vadd.f32 %v452_v11, %v416_v52  ;;  %v8202_v50 = vld [vmem:[%s16630_s0 + $0x170] sm:$0xff]  ;;  %p7847_p7 = pnand %p7846_p5, %p7840_p2 }
  0x3e   : > { %v469_v20 = vadd.f32 %v453_v12, %v417_v56  ;;  %v470_v45 = vadd.f32 %v454_v13, %v418_v57  ;;  %v471_v41 = vadd.f32 %v455_v14, %v419_v58  ;;  %v472_v34 = vadd.f32 %v456_v15, %v420_v59  ;;  %17289 = vst [vmem:[#allocation40_spill] sm:$0xff] %v8202_v50  ;;  %v8237_v14 = vld [vmem:[%s16630_s0 + $0xa0] sm:$0xff] }
  0x3f   : > { %v473_v38 = vadd.f32 %v457_v16, %v421_v63  ;;  %v474_v27 = vadd.f32 %v458_v17, %v422_v0  ;;  %v475_v37 = vadd.f32 %v459_v24, %v423_v1  ;;  %v476_v31 = vadd.f32 %v460_v18, %v424_v2  ;;  %17290 = vst [vmem:[#allocation41_spill] sm:$0xff] %v8237_v14 }
  0x40   : > { %v477_v44 = vadd.f32 %v461_v22, %v425_v3  ;;  %v478_v35 = vadd.f32 %v462_v19, %v426_v4  ;;  %v479_v42 = vadd.f32 %v463_v26, %v427_v5  ;;  %v484_v49 = vmul.f32 %v8075_v36, %v8059_v32 }
  0x41   : > { %v485_v51 = vmul.f32 %v8075_v36, %v8064_v33  ;;  %v486_v52 = vmul.f32 %v8075_v36, %v8086_v39  ;;  %v487_v18 = vmul.f32 %v8075_v36, %v8091_v40  ;;  %v488_v19 = vmul.f32 %v8075_v36, %v8114_v46 }
  0x42   : > { %v489_v22 = vmul.f32 %v8075_v36, %v8119_v47  ;;  %v490_v26 = vmul.f32 %v8075_v36, %v8124_v48  ;;  %v491_v56 = vmul.f32 %v8075_v36, %v8195_v30  ;;  %v492_v57 = vmul.f32 %v8075_v36, %v8133_v53 }
  0x43   : > { %v493_v58 = vmul.f32 %v8075_v36, %v8138_v54  ;;  %v494_v59 = vmul.f32 %v8075_v36, %v8143_v55  ;;  %v495_v63 = vmul.f32 %v8075_v36, %v8152_v60  ;;  %v496_v0 = vmul.f32 %v8075_v36, %v8157_v61 }
  0x44   : > { %v497_v1 = vmul.f32 %v8075_v36, %v8162_v62  ;;  %v498_v2 = vmul.f32 %v8075_v36, %v8175_v7  ;;  %v499_v3 = vmul.f32 %v8075_v36, %v8202_v50  ;;  %v500_v4 = vadd.f32 %v484_v49, %v464_v29 }
  0x45   : > { %v501_v5 = vadd.f32 %v485_v51, %v465_v25  ;;  %v502_v6 = vadd.f32 %v486_v52, %v466_v28  ;;  %v503_v8 = vadd.f32 %v487_v18, %v467_v21  ;;  %v504_v9 = vadd.f32 %v488_v19, %v468_v23 }
  0x46   : > { %v505_v10 = vadd.f32 %v489_v22, %v469_v20  ;;  %v506_v11 = vadd.f32 %v490_v26, %v470_v45  ;;  %v507_v12 = vadd.f32 %v491_v56, %v471_v41  ;;  %v508_v13 = vadd.f32 %v492_v57, %v472_v34  ;;  %v8244_v20 = vld [vmem:[%s16630_s0 + $0x180] sm:$0xff] }
  0x47   : > { %v509_v15 = vadd.f32 %v493_v58, %v473_v38  ;;  %v510_v16 = vadd.f32 %v494_v59, %v474_v27  ;;  %v511_v17 = vadd.f32 %v495_v63, %v475_v37  ;;  %v512_v24 = vadd.f32 %v496_v0, %v476_v31  ;;  %17291 = vst [vmem:[#allocation42_spill] sm:$0xff] %v8244_v20  ;;  %v8279_v63 = vld [vmem:[%s16630_s0 + $0xb0] sm:$0xff] }
  0x48   : > { %v513_v53 = vadd.f32 %v497_v1, %v477_v44  ;;  %v514_v36 = vadd.f32 %v498_v2, %v478_v35  ;;  %v515_v29 = vadd.f32 %v499_v3, %v479_v42  ;;  %v520_v21 = vmul.f32 %v8101_v43, %v8064_v33 }
  0x49   : > { %v521_v23 = vmul.f32 %v8101_v43, %v8086_v39  ;;  %v522_v25 = vmul.f32 %v8101_v43, %v8091_v40  ;;  %v523_v27 = vmul.f32 %v8101_v43, %v8114_v46  ;;  %v524_v28 = vmul.f32 %v8101_v43, %v8119_v47 }
  0x4a   : > { %v525_v31 = vmul.f32 %v8101_v43, %v8124_v48  ;;  %v526_v34 = vmul.f32 %v8101_v43, %v8195_v30  ;;  %v527_v37 = vmul.f32 %v8101_v43, %v8237_v14  ;;  %v528_v38 = vmul.f32 %v8101_v43, %v8138_v54 }
  0x4b   : > { %v529_v41 = vmul.f32 %v8101_v43, %v8143_v55  ;;  %v530_v44 = vmul.f32 %v8101_v43, %v8152_v60  ;;  %v531_v45 = vmul.f32 %v8101_v43, %v8157_v61  ;;  %v532_v35 = vmul.f32 %v8101_v43, %v8162_v62 }
  0x4c   : > { %v533_v42 = vmul.f32 %v8101_v43, %v8175_v7  ;;  %v534_v49 = vmul.f32 %v8101_v43, %v8202_v50  ;;  %v535_v51 = vmul.f32 %v8101_v43, %v8244_v20  ;;  %v536_v52 = vadd.f32 %v520_v21, %v500_v4 }
  0x4d   : > { %v537_v18 = vadd.f32 %v521_v23, %v501_v5  ;;  %v538_v19 = vadd.f32 %v522_v25, %v502_v6  ;;  %v539_v22 = vadd.f32 %v523_v27, %v503_v8  ;;  %v540_v26 = vadd.f32 %v524_v28, %v504_v9  ;;  %v17292_v5 = vld [vmem:[#allocation27_spill] sm:$0xff]  ;;  %v8286_v8 = vld [vmem:[%s16630_s0 + $0x190] sm:$0xff] }
  0x4e   : > { %v541_v56 = vadd.f32 %v525_v31, %v505_v10  ;;  %v542_v57 = vadd.f32 %v526_v34, %v506_v11  ;;  %v543_v58 = vadd.f32 %v527_v37, %v507_v12  ;;  %v544_v59 = vadd.f32 %v528_v38, %v508_v13 }
  0x4f   : > { %v545_v0 = vadd.f32 %v529_v41, %v509_v15  ;;  %v546_v1 = vadd.f32 %v530_v44, %v510_v16  ;;  %v547_v2 = vadd.f32 %v531_v45, %v511_v17  ;;  %v548_v3 = vadd.f32 %v532_v35, %v512_v24  ;;  %v8307_v17 = vld [vmem:[%s16631_s1 + $0x20] sm:$0xff]  ;;  %v346_v41 = vld [vmem:[%s16630_s0 + $0x8] sm:$0xff] }
  0x50   : > { %v549_v54 = vadd.f32 %v533_v42, %v513_v53  ;;  %v550_v43 = vadd.f32 %v534_v49, %v514_v36  ;;  %v551_v4 = vadd.f32 %v535_v51, %v515_v29  ;;  %v556_v6 = vmul.f32 %v17292_v5, %v8086_v39  ;;  %17293 = vst [vmem:[#allocation27_spill] sm:$0xff] %v8307_v17  ;;  %v8329_v44 = vld [vmem:[%s16631_s1 + $0x28] sm:$0xff]  ;;  %v17295_v49 = vld [vmem:[#allocation18_spill] sm:$0xff] }
  0x51   : > { %v557_v9 = vmul.f32 %v17292_v5, %v8091_v40  ;;  %v558_v10 = vmul.f32 %v17292_v5, %v8114_v46  ;;  %v559_v11 = vmul.f32 %v17292_v5, %v8119_v47  ;;  %v560_v53 = vmul.f32 %v17292_v5, %v8124_v48  ;;  %17294 = vst [vmem:[#allocation43_spill] sm:$0xff] %v8329_v44 }
  0x52   : > { %v561_v12 = vmul.f32 %v17292_v5, %v8195_v30  ;;  %v562_v13 = vmul.f32 %v17292_v5, %v8237_v14  ;;  %v563_v15 = vmul.f32 %v17292_v5, %v8279_v63  ;;  %v564_v16 = vmul.f32 %v17292_v5, %v8143_v55 }
  0x53   : > { %v565_v24 = vmul.f32 %v17292_v5, %v8152_v60  ;;  %v566_v36 = vmul.f32 %v17292_v5, %v8157_v61  ;;  %v567_v29 = vmul.f32 %v17292_v5, %v8162_v62  ;;  %v568_v21 = vmul.f32 %v17292_v5, %v8175_v7 }
  0x54   : > { %v569_v23 = vmul.f32 %v17292_v5, %v8202_v50  ;;  %v570_v25 = vmul.f32 %v17292_v5, %v8244_v20  ;;  %v571_v27 = vmul.f32 %v17292_v5, %v8286_v8  ;;  %v572_v28 = vadd.f32 %v556_v6, %v536_v52  ;;  %v8336_v52 = vld [vmem:[%s16630_s0 + $0x18] sm:$0xff] }
  0x55   : > { %v573_v31 = vadd.f32 %v557_v9, %v537_v18  ;;  %v574_v34 = vadd.f32 %v558_v10, %v538_v19  ;;  %v575_v37 = vadd.f32 %v559_v11, %v539_v22  ;;  %v576_v38 = vadd.f32 %v560_v53, %v540_v26  ;;  %17296 = vst [vmem:[#allocation44_spill] sm:$0xff] %v8336_v52  ;;  %v8341_v18 = vld [vmem:[%s16630_s0 + $0x28] sm:$0xff]  ;;  %v369_v9 = vld [vmem:[%s16630_s0 + $0xc0] sm:$0xff] }
  0x56   : > { %v577_v45 = vadd.f32 %v561_v12, %v541_v56  ;;  %v578_v35 = vadd.f32 %v562_v13, %v542_v57  ;;  %v579_v42 = vadd.f32 %v563_v15, %v543_v58  ;;  %v591_v51 = vrot.slane %v8307_v17, %v17295_v49  ;;  %17297 = vst [vmem:[#allocation45_spill] sm:$0xff] %v8341_v18  ;;  %v17298_v10 = vld [vmem:[#allocation22_spill] sm:$0xff]  ;;  %v17300_v12 = vld [vmem:[#allocation23_spill] sm:$0xff] }
  0x57   : > { %v580_v19 = vadd.f32 %v564_v16, %v544_v59  ;;  %v581_v22 = vadd.f32 %v565_v24, %v545_v0  ;;  %v582_v26 = vadd.f32 %v566_v36, %v546_v1  ;;  %v583_v5 = vadd.f32 %v567_v29, %v547_v2  ;;  %v17299_v53 = vld [vmem:[#allocation14_spill] sm:$0xff]  ;;  %v17303_v0 = vld [vmem:[#allocation17_spill] sm:$0xff] }
  0x58   : > { %v584_v56 = vadd.f32 %v568_v21, %v548_v3  ;;  %v585_v57 = vadd.f32 %v569_v23, %v549_v54  ;;  %v586_v58 = vadd.f32 %v570_v25, %v550_v43  ;;  %v587_v6 = vadd.f32 %v571_v27, %v551_v4  ;;  %v397_v4 = vld [vmem:[%s16630_s0 + $0x1a0] sm:$0xff] }
  0x59   : > { %v627_v11 = vrot.slane %v8329_v44, %v17298_v10  ;;  %v8350_v13 = vmul.f32 %v17300_v12, %v17299_v53  ;;  %v8353_v59 = vmul.f32 %v17300_v12, %v346_v41  ;;  %v8357_v1 = vmul.f32 %v17300_v12, %v17303_v0 }
  0x5a   : > { %v592_v54 = vmul.f32 %v591_v51, %v8091_v40  ;;  %v8362_v2 = vmul.f32 %v17300_v12, %v8336_v52  ;;  %v8366_v3 = vmul.f32 %v17300_v12, %v8059_v32  ;;  %v8370_v43 = vmul.f32 %v17300_v12, %v8341_v18 }
  0x5b   : > { %17301 = vst [vmem:[#allocation14_spill] sm:$0xff] %v8350_v13  ;;  %17302 = vst [vmem:[#allocation46_spill] sm:$0xff] %v8353_v59  ;;  %v593_v15 = vmul.f32 %v591_v51, %v8114_v46  ;;  %v594_v16 = vmul.f32 %v591_v51, %v8119_v47  ;;  %v595_v24 = vmul.f32 %v591_v51, %v8124_v48 }
  0x5c   : > { %17304 = vst [vmem:[#allocation47_spill] sm:$0xff] %v8357_v1  ;;  %17305 = vst [vmem:[#allocation48_spill] sm:$0xff] %v8362_v2  ;;  %v596_v36 = vmul.f32 %v591_v51, %v8195_v30  ;;  %v597_v29 = vmul.f32 %v591_v51, %v8237_v14  ;;  %v598_v21 = vmul.f32 %v591_v51, %v8279_v63  ;;  %v371_v1 = vld [vmem:[%s16630_s0 + $0xd0] sm:$0xff] }
  0x5d   : > { %17306 = vst [vmem:[#allocation49_spill] sm:$0xff] %v8366_v3  ;;  %17307 = vst [vmem:[#allocation50_spill] sm:$0xff] %v8370_v43  ;;  %v599_v23 = vmul.f32 %v591_v51, %v369_v9  ;;  %v600_v25 = vmul.f32 %v591_v51, %v8152_v60  ;;  %v601_v27 = vmul.f32 %v591_v51, %v8157_v61 }
  0x5e   : > { %v602_v41 = vmul.f32 %v591_v51, %v8162_v62  ;;  %v603_v53 = vmul.f32 %v591_v51, %v8175_v7  ;;  %v604_v10 = vmul.f32 %v591_v51, %v8202_v50  ;;  %v605_v44 = vmul.f32 %v591_v51, %v8244_v20 }
  0x5f   : > { %v606_v49 = vmul.f32 %v591_v51, %v8286_v8  ;;  %v607_v17 = vmul.f32 %v591_v51, %v397_v4  ;;  %v608_v18 = vadd.f32 %v592_v54, %v572_v28  ;;  %v609_v32 = vadd.f32 %v593_v15, %v573_v31  ;;  %v399_v31 = vld [vmem:[%s16630_s0 + $0x1b0] sm:$0xff]  ;;  %v8442_v54 = vld [vmem:[%s16630_s0 + $0x68] sm:$0xff] }
  0x60   : > { %v610_v52 = vadd.f32 %v594_v16, %v574_v34  ;;  %v611_v0 = vadd.f32 %v595_v24, %v575_v37  ;;  %v612_v43 = vadd.f32 %v596_v36, %v576_v38  ;;  %v613_v3 = vadd.f32 %v597_v29, %v577_v45  ;;  %17311 = vst [vmem:[#allocation54_spill] sm:$0xff] %v8442_v54  ;;  %v17316_v29 = vld [vmem:[#allocation24_spill] sm:$0xff] }
  0x61   : > { %v614_v60 = vadd.f32 %v598_v21, %v578_v35  ;;  %v615_v55 = vadd.f32 %v599_v23, %v579_v42  ;;  %v616_v2 = vadd.f32 %v600_v25, %v580_v19  ;;  %v617_v59 = vadd.f32 %v601_v27, %v581_v22  ;;  %v17317_v21 = vld [vmem:[#allocation25_spill] sm:$0xff]  ;;  %v8494_v25 = vld [vmem:[%s16630_s0 + $0x108] sm:$0xff] }
  0x62   : > { %v618_v13 = vadd.f32 %v602_v41, %v582_v26  ;;  %v619_v40 = vadd.f32 %v603_v53, %v583_v5  ;;  %v620_v39 = vadd.f32 %v604_v10, %v584_v56  ;;  %v621_v12 = vadd.f32 %v605_v44, %v585_v57  ;;  %17318 = vst [vmem:[#allocation56_spill] sm:$0xff] %v8494_v25 }
  0x63   : > { %v622_v33 = vadd.f32 %v606_v49, %v586_v58  ;;  %v623_v51 = vadd.f32 %v607_v17, %v587_v6  ;;  %v628_v28 = vmul.f32 %v627_v11, %v8114_v46  ;;  %v629_v34 = vmul.f32 %v627_v11, %v8119_v47 }
  0x64   : > { %v630_v37 = vmul.f32 %v627_v11, %v8124_v48  ;;  %v631_v38 = vmul.f32 %v627_v11, %v8195_v30  ;;  %v632_v45 = vmul.f32 %v627_v11, %v8237_v14  ;;  %v633_v35 = vmul.f32 %v627_v11, %v8279_v63  ;;  %v17331_v30 = vld [vmem:[#allocation48_spill] sm:$0xff] }
  0x65   : > { %v634_v42 = vmul.f32 %v627_v11, %v369_v9  ;;  %v635_v44 = vmul.f32 %v627_v11, %v371_v1  ;;  %v636_v17 = vmul.f32 %v627_v11, %v8157_v61  ;;  %v637_v49 = vmul.f32 %v627_v11, %v8162_v62  ;;  %v8419_v1 = vld [vmem:[%s16630_s0 + $0x38] sm:$0xff] }
  0x66   : > { %v638_v19 = vmul.f32 %v627_v11, %v8175_v7  ;;  %v639_v22 = vmul.f32 %v627_v11, %v8202_v50  ;;  %v640_v26 = vmul.f32 %v627_v11, %v8244_v20  ;;  %v641_v5 = vmul.f32 %v627_v11, %v8286_v8  ;;  %17308 = vst [vmem:[#allocation51_spill] sm:$0xff] %v8419_v1  ;;  %v8424_v8 = vld [vmem:[%s16630_s0 + $0x48] sm:$0xff]  ;;  %v17329_v20 = vld [vmem:[#allocation33_spill] sm:$0xff] }
  0x67   : > { %v642_v56 = vmul.f32 %v627_v11, %v397_v4  ;;  %v643_v57 = vmul.f32 %v627_v11, %v399_v31  ;;  %v8406_v58 = vadd.f32 %v628_v28, %v608_v18  ;;  %v8408_v6 = vadd.f32 %v629_v34, %v609_v32  ;;  %17309 = vst [vmem:[#allocation52_spill] sm:$0xff] %v8424_v8  ;;  %v374_v4 = vld [vmem:[%s16630_s0 + $0xe8] sm:$0xff]  ;;  %v8515_v28 = vld [vmem:[%s16630_s0 + $0x118] sm:$0xff] }
  0x68   : > { %v8410_v63 = vadd.f32 %v630_v37, %v610_v52  ;;  %v8412_v9 = vadd.f32 %v631_v38, %v611_v0  ;;  %v8414_v10 = vadd.f32 %v632_v45, %v612_v43  ;;  %v8426_v18 = vadd.f32 %v633_v35, %v613_v3  ;;  %v8437_v0 = vld [vmem:[%s16630_s0 + $0x58] sm:$0xff]  ;;  %17319 = vst [vmem:[#allocation57_spill] sm:$0xff] %v8515_v28  ;;  %v17321_v45 = vld [vmem:[#allocation26_spill] sm:$0xff]  ;;  %v17330_v50 = vld [vmem:[#allocation47_spill] sm:$0xff] }
  0x69   : > { %v8428_v32 = vadd.f32 %v634_v42, %v614_v60  ;;  %v8430_v52 = vadd.f32 %v635_v44, %v615_v55  ;;  %v8432_v11 = vadd.f32 %v636_v17, %v616_v2  ;;  %17310 = vst [vmem:[#allocation53_spill] sm:$0xff] %v8437_v0  ;;  %v8444_v43 = vadd.f32 %v637_v49, %v617_v59  ;;  %v8455_v2 = vld [vmem:[%s16630_s0 + $0x78] sm:$0xff]  ;;  %v8527_v42 = vld [vmem:[%s16630_s0 + $0x128] sm:$0xff]  ;;  %v17324_v49 = vld [vmem:[#allocation32_spill] sm:$0xff] }
  0x6a   : > { %v8446_v3 = vadd.f32 %v638_v19, %v618_v13  ;;  %v8448_v60 = vadd.f32 %v639_v22, %v619_v40  ;;  %v8450_v55 = vadd.f32 %v640_v26, %v620_v39  ;;  %17312 = vst [vmem:[#allocation55_spill] sm:$0xff] %v8455_v2  ;;  %v8460_v15 = vadd.f32 %v641_v5, %v621_v12  ;;  %v17313_v13 = vld [vmem:[#allocation20_spill] sm:$0xff]  ;;  %v17314_v40 = vld [vmem:[#allocation23_spill] sm:$0xff]  ;;  %v8473_v39 = vld [vmem:[%s16630_s0 + $0xf8] sm:$0xff] }
  0x6b   : > { %v8462_v16 = vadd.f32 %v642_v56, %v622_v33  ;;  %v8464_v59 = vadd.f32 %v643_v57, %v623_v51  ;;  %v8468_v24 = vmul.f32 %v17314_v40, %v17313_v13  ;;  %17315 = vst [vmem:[#allocation23_spill] sm:$0xff] %v8473_v39  ;;  %v8477_v36 = vmul.f32 %v17314_v40, %v8419_v1  ;;  %v17320_v34 = vld [vmem:[#allocation21_spill] sm:$0xff]  ;;  %v17325_v22 = vld [vmem:[#allocation14_spill] sm:$0xff]  ;;  %v8543_v57 = vld [vmem:[%s16630_s0 + $0x148] sm:$0xff] }
  0x6c   : > { %v8481_v12 = vmul.f32 %v17314_v40, %v17316_v29  ;;  %v8485_v33 = vmul.f32 %v17314_v40, %v8424_v8  ;;  %v8489_v23 = vmul.f32 %v17314_v40, %v17317_v21  ;;  %v8498_v27 = vmul.f32 %v17314_v40, %v8437_v0  ;;  %17322 = vst [vmem:[#allocation21_spill] sm:$0xff] %v8527_v42  ;;  %v8532_v44 = vld [vmem:[%s16630_s0 + $0x138] sm:$0xff]  ;;  %v17326_v5 = vld [vmem:[#allocation46_spill] sm:$0xff] }
  0x6d   : > { %v8502_v41 = vmul.f32 %v17314_v40, %v8114_v46  ;;  %v8506_v53 = vmul.f32 %v17314_v40, %v8442_v54  ;;  %v8510_v51 = vmul.f32 %v17314_v40, %v8119_v47  ;;  %v679_v31 = vmul.f32 %v17314_v40, %v8455_v2  ;;  %17323 = vst [vmem:[#allocation58_spill] sm:$0xff] %v8532_v44  ;;  %v17334_v2 = vld [vmem:[#allocation50_spill] sm:$0xff]  ;;  %v17335_v54 = vld [vmem:[#allocation35_spill] sm:$0xff] }
  0x6e   : > { %v680_v37 = vmul.f32 %v17314_v40, %v17320_v34  ;;  %v681_v38 = vmul.f32 %v17314_v40, %v374_v4  ;;  %v682_v35 = vmul.f32 %v17314_v40, %v17321_v45  ;;  %v683_v17 = vmul.f32 %v17314_v40, %v8473_v39  ;;  %17327 = vst [vmem:[#allocation14_spill] sm:$0xff] %v8543_v57  ;;  %v8548_v4 = vld [vmem:[%s16630_s0 + $0x158] sm:$0xff] }
  0x6f   : > { %v684_v19 = vmul.f32 %v17314_v40, %v17324_v49  ;;  %v729_v26 = vrot.slane %v17325_v22, 1  ;;  %v730_v56 = vrot.slane %v17326_v5, 1  ;;  %17328 = vst [vmem:[#allocation46_spill] sm:$0xff] %v8548_v4  ;;  %v685_v34 = vmul.f32 %v17314_v40, %v8494_v25  ;;  %v17332_v49 = vld [vmem:[#allocation34_spill] sm:$0xff]  ;;  %v17333_v45 = vld [vmem:[#allocation49_spill] sm:$0xff] }
  0x70   : > { %v686_v14 = vmul.f32 %v17314_v40, %v17329_v20  ;;  %v732_v22 = vrot.slane %v17330_v50, 1  ;;  %v733_v5 = vrot.slane %v17331_v30, 1  ;;  %v687_v7 = vmul.f32 %v17314_v40, %v8515_v28 }
  0x71   : > { %v688_v39 = vmul.f32 %v17314_v40, %v17332_v49  ;;  %v735_v48 = vrot.slane %v17333_v45, 1  ;;  %v736_v47 = vrot.slane %v17334_v2, 1  ;;  %v689_v25 = vmul.f32 %v17314_v40, %v8527_v42 }
  0x72   : > { %v690_v20 = vmul.f32 %v17314_v40, %v17335_v54  ;;  %v691_v50 = vmul.f32 %v17314_v40, %v8532_v44  ;;  %v692_v30 = vmul.f32 %v17314_v40, %v8157_v61  ;;  %v693_v28 = vmul.f32 %v17314_v40, %v8543_v57 }
  0x73   : > { %v694_v45 = vmul.f32 %v17314_v40, %v8162_v62  ;;  %v695_v2 = vmul.f32 %v17314_v40, %v8548_v4  ;;  %v731_v42 = vsel %vm728_vm0, %v729_v26, %v730_v56  ;;  %v734_v49 = vsel %vm728_vm0, %v732_v22, %v733_v5 }
  0x74   : > { %v738_v54 = vrot.slane %v8468_v24, 1  ;;  %v739_v44 = vrot.slane %v8477_v36, 1  ;;  %v741_v46 = vrot.slane %v8481_v12, 1  ;;  %v737_v61 = vsel %vm728_vm0, %v735_v48, %v736_v47 }
  0x75   : > { %v742_v57 = vrot.slane %v8485_v33, 1  ;;  %v744_v0 = vrot.slane %v8489_v23, 1  ;;  %v745_v62 = vrot.slane %v8498_v27, 1  ;;  %v747_v40 = vrot.slane %v8502_v41, 1 }
  0x76   : > { %v748_v26 = vrot.slane %v8506_v53, 1  ;;  %v750_v56 = vrot.slane %v8510_v51, 1  ;;  %v751_v22 = vrot.slane %v679_v31, 1  ;;  %v753_v24 = vrot.slane %v680_v37, 1 }
  0x77   : > { %v754_v5 = vrot.slane %v681_v38, 1  ;;  %v756_v36 = vrot.slane %v682_v35, 1  ;;  %v757_v4 = vrot.slane %v683_v17, 1  ;;  %v759_v12 = vrot.slane %v684_v19, 1  ;;  %v17344_v17 = vld [vmem:[#allocation20_spill] sm:$0xff] }
  0x78   : > { %v760_v21 = vrot.slane %v685_v34, 1  ;;  %v762_v47 = vrot.slane %v686_v14, 1  ;;  %v763_v48 = vrot.slane %v687_v7, 1  ;;  %v765_v33 = vrot.slane %v688_v39, 1  ;;  %v17347_v34 = vld [vmem:[#allocation52_spill] sm:$0xff] }
  0x79   : > { %v766_v8 = vrot.slane %v689_v25, 1  ;;  %v768_v23 = vrot.slane %v690_v20, 1  ;;  %v769_v29 = vrot.slane %v691_v50, 1  ;;  %v771_v27 = vrot.slane %v692_v30, 1  ;;  %v17348_v30 = vld [vmem:[#allocation25_spill] sm:$0xff] }
  0x7a   : > { %v772_v1 = vrot.slane %v693_v28, 1  ;;  %v774_v41 = vrot.slane %v694_v45, 1  ;;  %v775_v13 = vrot.slane %v695_v2, 1  ;;  %v740_v53 = vsel %vm728_vm0, %v738_v54, %v739_v44  ;;  %v17349_v2 = vld [vmem:[#allocation53_spill] sm:$0xff] }
  0x7b   : > { %v743_v51 = vsel %vm728_vm0, %v741_v46, %v742_v57  ;;  %v746_v31 = vsel %vm728_vm0, %v744_v0, %v745_v62  ;;  %v749_v37 = vsel %vm728_vm0, %v747_v40, %v748_v26  ;;  %v752_v38 = vsel %vm728_vm0, %v750_v56, %v751_v22  ;;  %v17346_v57 = vld [vmem:[#allocation24_spill] sm:$0xff]  ;;  %v17350_v26 = vld [vmem:[#allocation29_spill] sm:$0xff]  ;;  %v17351_v22 = vld [vmem:[#allocation54_spill] sm:$0xff] }
  0x7c   : > { %v755_v7 = vsel %vm728_vm0, %v753_v24, %v754_v5  ;;  %v758_v14 = vsel %vm728_vm0, %v756_v36, %v757_v4  ;;  %v761_v20 = vsel %vm728_vm0, %v759_v12, %v760_v21  ;;  %v764_v39 = vsel %vm728_vm0, %v762_v47, %v763_v48  ;;  %v17352_v5 = vld [vmem:[#allocation30_spill] sm:$0xff]  ;;  %v17353_v12 = vld [vmem:[#allocation55_spill] sm:$0xff] }
  0x7d   : > { %v767_v25 = vsel %vm728_vm0, %v765_v33, %v766_v8  ;;  %v770_v54 = vsel %vm728_vm0, %v768_v23, %v769_v29  ;;  %v8600_v46 = vadd.f32 %v731_v42, %v8406_v58  ;;  %v773_v62 = vsel %vm728_vm0, %v771_v27, %v772_v1  ;;  %v17354_v48 = vld [vmem:[#allocation31_spill] sm:$0xff]  ;;  %v17355_v27 = vld [vmem:[#allocation26_spill] sm:$0xff] }
  0x7e   : > { %v776_v0 = vsel %vm728_vm0, %v774_v41, %v775_v13  ;;  %v8605_v28 = vadd.f32 %v734_v49, %v8408_v6  ;;  %v8608_v35 = vadd.f32 %v737_v61, %v8410_v63  ;;  %v8611_v21 = vadd.f32 %v740_v53, %v8412_v9  ;;  %v17345_v49 = vld [vmem:[#allocation51_spill] sm:$0xff] }
  0x7f   : > { %v8614_v8 = vadd.f32 %v743_v51, %v8414_v10  ;;  %v8617_v29 = vadd.f32 %v746_v31, %v8426_v18  ;;  %v8620_v58 = vadd.f32 %v749_v37, %v8428_v32  ;;  %v8623_v1 = vadd.f32 %v752_v38, %v8430_v52  ;;  %v17356_v53 = vld [vmem:[#allocation23_spill] sm:$0xff]  ;;  %v17357_v31 = vld [vmem:[#allocation32_spill] sm:$0xff] }
  0x80   : > { %v8626_v6 = vadd.f32 %v755_v7, %v8432_v11  ;;  %v8629_v61 = vadd.f32 %v758_v14, %v8444_v43  ;;  %v8632_v63 = vadd.f32 %v761_v20, %v8446_v3  ;;  %v8635_v9 = vadd.f32 %v764_v39, %v8448_v60  ;;  %v17338_v11 = vld [vmem:[#allocation17_spill] sm:$0xff]  ;;  %v17339_v43 = vld [vmem:[#allocation28_spill] sm:$0xff]  ;;  %v17341_v60 = vld [vmem:[#allocation19_spill] sm:$0xff] }
  0x81   : > { %v8638_v10 = vadd.f32 %v767_v25, %v8450_v55  ;;  %v8641_v18 = vadd.f32 %v770_v54, %v8460_v15  ;;  %v8644_v32 = vadd.f32 %v773_v62, %v8462_v16  ;;  %v8647_v52 = vadd.f32 %v776_v0, %v8464_v59  ;;  %v17340_v3 = vld [vmem:[#allocation44_spill] sm:$0xff]  ;;  %v8658_v55 = vld [vmem:[%s16630_s0 + $0x88] sm:$0xff]  ;;  %v17343_v15 = vld [vmem:[#allocation45_spill] sm:$0xff] }
  0x82   : > { %v813_v13 = vmul.f32 %v17339_v43, %v17338_v11  ;;  %v814_v42 = vmul.f32 %v17339_v43, %v17340_v3  ;;  %v815_v44 = vmul.f32 %v17339_v43, %v17341_v60  ;;  %17342 = vst [vmem:[#allocation49_spill] sm:$0xff] %v8658_v55  ;;  %v816_v16 = vmul.f32 %v17339_v43, %v17343_v15  ;;  %v17358_v38 = vld [vmem:[#allocation56_spill] sm:$0xff]  ;;  %v17359_v14 = vld [vmem:[#allocation33_spill] sm:$0xff]  ;;  %v8705_v54 = vld [vmem:[%s16630_s0 + $0x168] sm:$0xff] }
  0x83   : > { %17336 = vst [vmem:[#allocation47_spill] sm:$0xff] %v8644_v32  ;;  %17337 = vst [vmem:[#allocation48_spill] sm:$0xff] %v8647_v52  ;;  %v817_v59 = vmul.f32 %v17339_v43, %v17344_v17  ;;  %v818_v19 = vmul.f32 %v17339_v43, %v17345_v49  ;;  %v8668_v4 = vmul.f32 %v17339_v43, %v17346_v57  ;;  %v17361_v62 = vld [vmem:[#allocation57_spill] sm:$0xff]  ;;  %v17362_v11 = vld [vmem:[#allocation34_spill] sm:$0xff] }
  0x84   : > { %v8672_v50 = vmul.f32 %v17339_v43, %v17347_v34  ;;  %v8676_v45 = vmul.f32 %v17339_v43, %v17348_v30  ;;  %v822_v40 = vmul.f32 %v17339_v43, %v17349_v2  ;;  %v823_v56 = vmul.f32 %v17339_v43, %v17350_v26  ;;  %17360 = vst [vmem:[#allocation50_spill] sm:$0xff] %v8705_v54  ;;  %v17370_v2 = vld [vmem:[#allocation38_spill] sm:$0xff] }
  0x85   : > { %v824_v24 = vmul.f32 %v17339_v43, %v17351_v22  ;;  %v825_v36 = vmul.f32 %v17339_v43, %v17352_v5  ;;  %v826_v47 = vmul.f32 %v17339_v43, %v17353_v12  ;;  %v827_v33 = vmul.f32 %v17339_v43, %v17354_v48  ;;  %v17365_v48 = vld [vmem:[#allocation58_spill] sm:$0xff]  ;;  %v17366_v5 = vld [vmem:[#allocation36_spill] sm:$0xff] }
  0x86   : > { %v828_v23 = vmul.f32 %v17339_v43, %v8658_v55  ;;  %v829_v41 = vmul.f32 %v17339_v43, %v17355_v27  ;;  %v830_v51 = vmul.f32 %v17339_v43, %v17356_v53  ;;  %v831_v37 = vmul.f32 %v17339_v43, %v17357_v31  ;;  %v17363_v31 = vld [vmem:[#allocation21_spill] sm:$0xff]  ;;  %v17364_v55 = vld [vmem:[#allocation35_spill] sm:$0xff] }
  0x87   : > { %v832_v7 = vmul.f32 %v17339_v43, %v17358_v38  ;;  %v833_v20 = vmul.f32 %v17339_v43, %v17359_v14  ;;  %v877_v39 = vrot.slane %v813_v13, 1  ;;  %v878_v25 = vrot.slane %v814_v42, 1 }
  0x88   : > { %v834_v0 = vmul.f32 %v17339_v43, %v17361_v62  ;;  %v835_v3 = vmul.f32 %v17339_v43, %v17362_v11  ;;  %v880_v27 = vrot.slane %v815_v44, 1  ;;  %v881_v53 = vrot.slane %v816_v16, 1  ;;  %v17367_v62 = vld [vmem:[#allocation14_spill] sm:$0xff]  ;;  %v17368_v11 = vld [vmem:[#allocation37_spill] sm:$0xff] }
  0x89   : > { %v836_v38 = vmul.f32 %v17339_v43, %v17363_v31  ;;  %v837_v13 = vmul.f32 %v17339_v43, %v17364_v55  ;;  %v883_v42 = vrot.slane %v817_v59, 1  ;;  %v884_v14 = vrot.slane %v818_v19, 1  ;;  %v17369_v16 = vld [vmem:[#allocation46_spill] sm:$0xff] }
  0x8a   : > { %v838_v12 = vmul.f32 %v17339_v43, %v17365_v48  ;;  %v839_v22 = vmul.f32 %v17339_v43, %v17366_v5  ;;  %v840_v26 = vmul.f32 %v17339_v43, %v17367_v62  ;;  %v841_v44 = vmul.f32 %v17339_v43, %v17368_v11 }
  0x8b   : > { %v842_v31 = vmul.f32 %v17339_v43, %v17369_v16  ;;  %v843_v55 = vmul.f32 %v17339_v43, %v17370_v2  ;;  %v844_v59 = vmul.f32 %v17339_v43, %v8705_v54  ;;  %v879_v19 = vsel %vm728_vm0, %v877_v39, %v878_v25 }
  0x8c   : > { %v882_v48 = vsel %vm728_vm0, %v880_v27, %v881_v53  ;;  %v886_v5 = vrot.slane %v8668_v4, 1  ;;  %v887_v62 = vrot.slane %v8672_v50, 1  ;;  %v889_v30 = vrot.slane %v8676_v45, 1 }
  0x8d   : > { %v885_v11 = vsel %vm728_vm0, %v883_v42, %v884_v14  ;;  %v890_v34 = vrot.slane %v822_v40, 1  ;;  %v892_v16 = vrot.slane %v823_v56, 1  ;;  %v893_v57 = vrot.slane %v824_v24, 1 }
  0x8e   : > { %v895_v49 = vrot.slane %v825_v36, 1  ;;  %v896_v2 = vrot.slane %v826_v47, 1  ;;  %v898_v17 = vrot.slane %v827_v33, 1  ;;  %v899_v15 = vrot.slane %v828_v23, 1 }
  0x8f   : > { %v901_v43 = vrot.slane %v829_v41, 1  ;;  %v902_v54 = vrot.slane %v830_v51, 1  ;;  %v904_v39 = vrot.slane %v831_v37, 1  ;;  %v905_v25 = vrot.slane %v832_v7, 1  ;;  %v17378_v7 = vld [vmem:[#allocation15_spill] sm:$0xff] }
  0x90   : > { %v907_v27 = vrot.slane %v833_v20, 1  ;;  %v908_v53 = vrot.slane %v834_v0, 1  ;;  %v910_v4 = vrot.slane %v835_v3, 1  ;;  %v911_v60 = vrot.slane %v836_v38, 1  ;;  %v17384_v0 = vld [vmem:[#allocation13_spill] sm:$0xff]  ;;  %v17387_v3 = vld [vmem:[#allocation18_spill] sm:$0xff] }
  0x91   : > { %v913_v50 = vrot.slane %v837_v13, 1  ;;  %v914_v52 = vrot.slane %v838_v12, 1  ;;  %v916_v45 = vrot.slane %v839_v22, 1  ;;  %v917_v32 = vrot.slane %v840_v26, 1  ;;  %v17388_v13 = vld [vmem:[#allocation43_spill] sm:$0xff] }
  0x92   : > { %v919_v14 = vrot.slane %v841_v44, 1  ;;  %v920_v40 = vrot.slane %v842_v31, 1  ;;  %v922_v56 = vrot.slane %v843_v55, 1  ;;  %v923_v24 = vrot.slane %v844_v59, 1  ;;  %v17390_v44 = vld [vmem:[#allocation22_spill] sm:$0xff] }
  0x93   : > { %v888_v36 = vsel %vm728_vm0, %v886_v5, %v887_v62  ;;  %v891_v47 = vsel %vm728_vm0, %v889_v30, %v890_v34  ;;  %v894_v33 = vsel %vm728_vm0, %v892_v16, %v893_v57  ;;  %v897_v23 = vsel %vm728_vm0, %v895_v49, %v896_v2  ;;  %v17383_v62 = vld [vmem:[#allocation19_spill] sm:$0xff] }
  0x94   : > { %v900_v41 = vsel %vm728_vm0, %v898_v17, %v899_v15  ;;  %v903_v51 = vsel %vm728_vm0, %v901_v43, %v902_v54  ;;  %v906_v12 = vsel %vm728_vm0, %v904_v39, %v905_v25  ;;  %v909_v26 = vsel %vm728_vm0, %v907_v27, %v908_v53  ;;  %v17381_v54 = vld [vmem:[#allocation16_spill] sm:$0xff]  ;;  %v17391_v16 = vld [vmem:[#allocation7_spill] sm:$0xff]  ;;  %v17394_v43 = vld [vmem:[#allocation45_spill] sm:$0xff] }
  0x95   : > { %v912_v22 = vsel %vm728_vm0, %v910_v4, %v911_v60  ;;  %v915_v55 = vsel %vm728_vm0, %v913_v50, %v914_v52  ;;  %v918_v5 = vsel %vm728_vm0, %v916_v45, %v917_v32  ;;  %v8747_v34 = vadd.f32 %v879_v19, %v8600_v46  ;;  %v17371_v46 = vld [vmem:[#allocation8_spill] sm:$0xff]  ;;  %v17372_v60 = vld [vmem:[#allocation11_spill] sm:$0xff]  ;;  %v8822_v19 = vld [vmem:[%s16630_s0 + $0x98] sm:$0xff] }
  0x96   : > { %v921_v57 = vsel %vm728_vm0, %v919_v14, %v920_v40  ;;  %v924_v49 = vsel %vm728_vm0, %v922_v56, %v923_v24  ;;  %v8752_v15 = vadd.f32 %v882_v48, %v8605_v28  ;;  %v8755_v17 = vadd.f32 %v885_v11, %v8608_v35  ;;  %v17385_v11 = vld [vmem:[#allocation27_spill] sm:$0xff]  ;;  %v17395_v25 = vld [vmem:[#allocation20_spill] sm:$0xff]  ;;  %v17399_v56 = vld [vmem:[#allocation25_spill] sm:$0xff] }
  0x97   : > { %v8758_v30 = vadd.f32 %v888_v36, %v8611_v21  ;;  %v8761_v52 = vadd.f32 %v891_v47, %v8614_v8  ;;  %v8764_v32 = vadd.f32 %v894_v33, %v8617_v29  ;;  %v960_v2 = vrot.slane %v17372_v60, %v17371_v46  ;;  %v17396_v53 = vld [vmem:[#allocation51_spill] sm:$0xff]  ;;  %v17397_v50 = vld [vmem:[#allocation24_spill] sm:$0xff]  ;;  %v17400_v36 = vld [vmem:[#allocation53_spill] sm:$0xff] }
  0x98   : > { %v8769_v31 = vadd.f32 %v897_v23, %v8620_v58  ;;  %v8772_v28 = vadd.f32 %v900_v41, %v8623_v1  ;;  %v8775_v35 = vadd.f32 %v903_v51, %v8626_v6  ;;  %v8778_v21 = vadd.f32 %v906_v12, %v8629_v61  ;;  %v17373_v1 = vld [vmem:[#allocation47_spill] sm:$0xff]  ;;  %v17375_v6 = vld [vmem:[#allocation48_spill] sm:$0xff]  ;;  %v17377_v61 = vld [vmem:[#allocation9_spill] sm:$0xff] }
  0x99   : > { %v8781_v8 = vadd.f32 %v909_v26, %v8632_v63  ;;  %v8784_v29 = vadd.f32 %v912_v22, %v8635_v9  ;;  %v8787_v48 = vadd.f32 %v915_v55, %v8638_v10  ;;  %v8790_v58 = vadd.f32 %v918_v5, %v8641_v18  ;;  %v17380_v63 = vld [vmem:[#allocation12_spill] sm:$0xff]  ;;  %17393 = vst [vmem:[#allocation48_spill] sm:$0xff] %v8822_v19  ;;  %v17401_v33 = vld [vmem:[#allocation29_spill] sm:$0xff]  ;;  %v17402_v41 = vld [vmem:[#allocation54_spill] sm:$0xff] }
  0x9a   : > { %v8793_v37 = vadd.f32 %v921_v57, %v17373_v1  ;;  %v8796_v38 = vadd.f32 %v924_v49, %v17375_v6  ;;  %v8800_v20 = vrot.slane %v17378_v7, %v17377_v61  ;;  %v8804_v9 = vrot.slane %v17381_v54, %v17380_v63  ;;  %v17398_v14 = vld [vmem:[#allocation52_spill] sm:$0xff]  ;;  %v17403_v12 = vld [vmem:[#allocation30_spill] sm:$0xff]  ;;  %v17404_v22 = vld [vmem:[#allocation55_spill] sm:$0xff] }
  0x9b   : > { %v961_v10 = vmul.f32 %v960_v2, %v17383_v62  ;;  %v8809_v18 = vrot.slane %v17385_v11, %v17384_v0  ;;  %v8813_v42 = vrot.slane %v17388_v13, %v17387_v3  ;;  %v8817_v59 = vrot.slane %v17391_v16, %v17390_v44  ;;  %v17405_v5 = vld [vmem:[#allocation31_spill] sm:$0xff]  ;;  %v17406_v49 = vld [vmem:[#allocation49_spill] sm:$0xff]  ;;  %v17408_v54 = vld [vmem:[#allocation32_spill] sm:$0xff] }
  0x9c   : > { %17374 = vst [vmem:[#allocation17_spill] sm:$0xff] %v8793_v37  ;;  %17376 = vst [vmem:[#allocation28_spill] sm:$0xff] %v8796_v38  ;;  %v962_v39 = vmul.f32 %v960_v2, %v17394_v43  ;;  %v963_v27 = vmul.f32 %v960_v2, %v17395_v25  ;;  %v964_v4 = vmul.f32 %v960_v2, %v17396_v53  ;;  %v17407_v1 = vld [vmem:[#allocation39_spill] sm:$0xff]  ;;  %v17409_v11 = vld [vmem:[#allocation56_spill] sm:$0xff] }
  0x9d   : > { %17379 = vst [vmem:[#allocation44_spill] sm:$0xff] %v8800_v20  ;;  %17382 = vst [vmem:[#allocation26_spill] sm:$0xff] %v8804_v9  ;;  %v965_v45 = vmul.f32 %v960_v2, %v17397_v50  ;;  %v966_v40 = vmul.f32 %v960_v2, %v17398_v14  ;;  %v967_v24 = vmul.f32 %v960_v2, %v17399_v56  ;;  %v17410_v16 = vld [vmem:[#allocation33_spill] sm:$0xff]  ;;  %v17412_v56 = vld [vmem:[#allocation34_spill] sm:$0xff]  ;;  %v1025_v0 = vrot.slane %v961_v10, 1 }
  0x9e   : > { %17386 = vst [vmem:[#allocation23_spill] sm:$0xff] %v8809_v18  ;;  %17389 = vst [vmem:[#allocation11_spill] sm:$0xff] %v8813_v42  ;;  %v968_v47 = vmul.f32 %v960_v2, %v17400_v36  ;;  %v969_v23 = vmul.f32 %v960_v2, %v17401_v33  ;;  %v970_v51 = vmul.f32 %v960_v2, %v17402_v41  ;;  %v17411_v25 = vld [vmem:[#allocation57_spill] sm:$0xff]  ;;  %v17414_v3 = vld [vmem:[#allocation35_spill] sm:$0xff]  ;;  %v1026_v63 = vrot.slane %v962_v39, 1 }
  0x9f   : > { %17392 = vst [vmem:[#allocation47_spill] sm:$0xff] %v8817_v59  ;;  %v971_v26 = vmul.f32 %v960_v2, %v17403_v12  ;;  %v972_v55 = vmul.f32 %v960_v2, %v17404_v22  ;;  %v973_v57 = vmul.f32 %v960_v2, %v17405_v5  ;;  %v974_v60 = vmul.f32 %v960_v2, %v17406_v49  ;;  %v17413_v12 = vld [vmem:[#allocation21_spill] sm:$0xff]  ;;  %v17417_v18 = vld [vmem:[#allocation36_spill] sm:$0xff]  ;;  %v17421_v39 = vld [vmem:[#allocation38_spill] sm:$0xff] }
  0xa0   : > { %v975_v6 = vmul.f32 %v960_v2, %v17407_v1  ;;  %v976_v7 = vmul.f32 %v960_v2, %v8822_v19  ;;  %v977_v62 = vmul.f32 %v960_v2, %v17408_v54  ;;  %v978_v13 = vmul.f32 %v960_v2, %v17409_v11  ;;  %v8849_v61 = vld [vmem:[%s16630_s0 + $0x178] sm:$0xff]  ;;  %v17422_v49 = vld [vmem:[#allocation50_spill] sm:$0xff]  ;;  %v17423_v41 = vld [vmem:[#allocation40_spill] sm:$0xff] }
  0xa1   : > { %v979_v43 = vmul.f32 %v960_v2, %v17410_v16  ;;  %v980_v50 = vmul.f32 %v960_v2, %v17411_v25  ;;  %v981_v33 = vmul.f32 %v960_v2, %v17412_v56  ;;  %v982_v44 = vmul.f32 %v960_v2, %v17413_v12  ;;  %17415 = vst [vmem:[#allocation15_spill] sm:$0xff] %v8849_v61  ;;  %v17416_v16 = vld [vmem:[#allocation58_spill] sm:$0xff]  ;;  %v17419_v12 = vld [vmem:[#allocation37_spill] sm:$0xff] }
  0xa2   : > { %v983_v5 = vmul.f32 %v960_v2, %v17414_v3  ;;  %v1028_v54 = vrot.slane %v963_v27, 1  ;;  %v1029_v46 = vrot.slane %v964_v4, 1  ;;  %v1031_v11 = vrot.slane %v965_v45, 1  ;;  %v17418_v56 = vld [vmem:[#allocation14_spill] sm:$0xff] }
  0xa3   : > { %v1032_v59 = vrot.slane %v966_v40, 1  ;;  %v984_v42 = vmul.f32 %v960_v2, %v17416_v16  ;;  %v985_v9 = vmul.f32 %v960_v2, %v17417_v18  ;;  %v986_v25 = vmul.f32 %v960_v2, %v17418_v56  ;;  %v17420_v3 = vld [vmem:[#allocation46_spill] sm:$0xff] }
  0xa4   : > { %v987_v19 = vmul.f32 %v960_v2, %v17419_v12  ;;  %v988_v10 = vmul.f32 %v960_v2, %v17420_v3  ;;  %v989_v1 = vmul.f32 %v960_v2, %v17421_v39  ;;  %v990_v22 = vmul.f32 %v960_v2, %v17422_v49 }
  0xa5   : > { %v991_v36 = vmul.f32 %v960_v2, %v17423_v41  ;;  %v992_v27 = vmul.f32 %v960_v2, %v8849_v61  ;;  %v1027_v4 = vsel %vm728_vm0, %v1025_v0, %v1026_v63  ;;  %v1034_v45 = vrot.slane %v967_v24, 1 }
  0xa6   : > { %v1035_v40 = vrot.slane %v968_v47, 1  ;;  %v1030_v18 = vsel %vm728_vm0, %v1028_v54, %v1029_v46  ;;  %v1033_v56 = vsel %vm728_vm0, %v1031_v11, %v1032_v59  ;;  %v1037_v16 = vrot.slane %v969_v23, 1  ;;  %v17431_v11 = vld [vmem:[#allocation52_spill] sm:$0xff] }
  0xa7   : > { %v1038_v12 = vrot.slane %v970_v51, 1  ;;  %v1040_v14 = vrot.slane %v971_v26, 1  ;;  %v1041_v3 = vrot.slane %v972_v55, 1  ;;  %v1043_v53 = vrot.slane %v973_v57, 1 }
  0xa8   : > { %v1044_v39 = vrot.slane %v974_v60, 1  ;;  %v1046_v20 = vrot.slane %v975_v6, 1  ;;  %v1047_v49 = vrot.slane %v976_v7, 1  ;;  %v1049_v38 = vrot.slane %v977_v62, 1 }
  0xa9   : > { %v1050_v41 = vrot.slane %v978_v13, 1  ;;  %v1052_v37 = vrot.slane %v979_v43, 1  ;;  %v1053_v2 = vrot.slane %v980_v50, 1  ;;  %v1055_v61 = vrot.slane %v981_v33, 1  ;;  %v8941_v33 = vld [vmem:[%s16630_s0 + $0x40] sm:$0xff] }
  0xaa   : > { %v1056_v63 = vrot.slane %v982_v44, 1  ;;  %v1058_v0 = vrot.slane %v983_v5, 1  ;;  %v1059_v24 = vrot.slane %v984_v42, 1  ;;  %v1061_v47 = vrot.slane %v985_v9, 1  ;;  %17430 = vst [vmem:[#allocation27_spill] sm:$0xff] %v8941_v33 }
  0xab   : > { %v1062_v46 = vrot.slane %v986_v25, 1  ;;  %v1064_v54 = vrot.slane %v987_v19, 1  ;;  %v1065_v59 = vrot.slane %v988_v10, 1  ;;  %v1067_v23 = vrot.slane %v989_v1, 1  ;;  %v17433_v10 = vld [vmem:[#allocation53_spill] sm:$0xff] }
  0xac   : > { %v1068_v51 = vrot.slane %v990_v22, 1  ;;  %v1036_v26 = vsel %vm728_vm0, %v1034_v45, %v1035_v40  ;;  %v1039_v55 = vsel %vm728_vm0, %v1037_v16, %v1038_v12  ;;  %v1070_v57 = vrot.slane %v991_v36, 1  ;;  %v17435_v40 = vld [vmem:[#allocation54_spill] sm:$0xff]  ;;  %v8972_v12 = vld [vmem:[%s16630_s0 + $0x70] sm:$0xff] }
  0xad   : > { %v1071_v60 = vrot.slane %v992_v27, 1  ;;  %v1042_v6 = vsel %vm728_vm0, %v1040_v14, %v1041_v3  ;;  %v1045_v7 = vsel %vm728_vm0, %v1043_v53, %v1044_v39  ;;  %v1048_v44 = vsel %vm728_vm0, %v1046_v20, %v1047_v49  ;;  %17436 = vst [vmem:[#allocation45_spill] sm:$0xff] %v8972_v12 }
  0xae   : > { %v1051_v42 = vsel %vm728_vm0, %v1049_v38, %v1050_v41  ;;  %v1054_v9 = vsel %vm728_vm0, %v1052_v37, %v1053_v2  ;;  %v1057_v19 = vsel %vm728_vm0, %v1055_v61, %v1056_v63  ;;  %v1060_v22 = vsel %vm728_vm0, %v1058_v0, %v1059_v24  ;;  %v17437_v41 = vld [vmem:[#allocation55_spill] sm:$0xff]  ;;  %v8985_v63 = vld [vmem:[%s16630_s0 + $0x80] sm:$0xff]  ;;  %v17439_v24 = vld [vmem:[#allocation49_spill] sm:$0xff] }
  0xaf   : > { %v1063_v1 = vsel %vm728_vm0, %v1061_v47, %v1062_v46  ;;  %v1066_v62 = vsel %vm728_vm0, %v1064_v54, %v1065_v59  ;;  %v1069_v36 = vsel %vm728_vm0, %v1067_v23, %v1068_v51  ;;  %v8876_v14 = vadd.f32 %v1027_v4, %v8747_v34  ;;  %v8959_v4 = vld [vmem:[%s16630_s0 + $0x60] sm:$0xff]  ;;  %17438 = vst [vmem:[#allocation20_spill] sm:$0xff] %v8985_v63  ;;  %v17440_v46 = vld [vmem:[#allocation39_spill] sm:$0xff]  ;;  %v17441_v59 = vld [vmem:[#allocation48_spill] sm:$0xff] }
  0xb0   : > { %v8879_v53 = vadd.f32 %v1030_v18, %v8752_v15  ;;  %v1072_v38 = vsel %vm728_vm0, %v1070_v57, %v1071_v60  ;;  %v8883_v37 = vadd.f32 %v1033_v56, %v8755_v17  ;;  %v8886_v61 = vadd.f32 %v1036_v26, %v8758_v30  ;;  %v8950_v56 = vld [vmem:[%s16630_s0 + $0x50] sm:$0xff]  ;;  %17434 = vst [vmem:[#allocation7_spill] sm:$0xff] %v8959_v4  ;;  %v17442_v51 = vld [vmem:[#allocation41_spill] sm:$0xff] }
  0xb1   : > { %v8889_v20 = vadd.f32 %v1039_v55, %v8761_v52  ;;  %v8892_v49 = vadd.f32 %v1042_v6, %v8764_v32  ;;  %v8895_v34 = vadd.f32 %v1045_v7, %v8769_v31  ;;  %v8898_v15 = vadd.f32 %v1048_v44, %v8772_v28  ;;  %v17424_v28 = vld [vmem:[#allocation17_spill] sm:$0xff]  ;;  %17432 = vst [vmem:[#allocation43_spill] sm:$0xff] %v8950_v56  ;;  %v9014_v57 = vld [vmem:[%s16630_s0 + $0x110] sm:$0xff]  ;;  %v9027_v44 = vld [vmem:[%s16630_s0 + $0x120] sm:$0xff] }
  0xb2   : > { %v8901_v13 = vadd.f32 %v1051_v42, %v8775_v35  ;;  %v8904_v17 = vadd.f32 %v1054_v9, %v8778_v21  ;;  %v8907_v30 = vadd.f32 %v1057_v19, %v8781_v8  ;;  %v8910_v52 = vadd.f32 %v1060_v22, %v8784_v29  ;;  %v17425_v35 = vld [vmem:[#allocation28_spill] sm:$0xff]  ;;  %17443 = vst [vmem:[#allocation24_spill] sm:$0xff] %v9014_v57  ;;  %v17444_v6 = vld [vmem:[#allocation57_spill] sm:$0xff] }
  0xb3   : > { %v8913_v32 = vadd.f32 %v1063_v1, %v8787_v48  ;;  %v8916_v31 = vadd.f32 %v1066_v62, %v8790_v58  ;;  %v8919_v43 = vadd.f32 %v1069_v36, %v17424_v28  ;;  %v8922_v25 = vadd.f32 %v1072_v38, %v17425_v35  ;;  %v8927_v21 = vld [vmem:[%s16630_s0 + $0x30] sm:$0xff]  ;;  %v8934_v48 = vld [vmem:[%s16630_s0 + $0xa8] sm:$0xff]  ;;  %17445 = vst [vmem:[#allocation25_spill] sm:$0xff] %v9027_v44  ;;  %v17446_v9 = vld [vmem:[#allocation21_spill] sm:$0xff] }
  0xb4   : > { %17426 = vst [vmem:[#allocation16_spill] sm:$0xff] %v8927_v21  ;;  %v17427_v8 = vld [vmem:[#allocation44_spill] sm:$0xff]  ;;  %17428 = vst [vmem:[#allocation19_spill] sm:$0xff] %v8934_v48  ;;  %v17429_v58 = vld [vmem:[#allocation51_spill] sm:$0xff] }
  0xb5   : > { %v1109_v29 = vmul.f32 %v8927_v21, %v17427_v8  ;;  %v1110_v50 = vmul.f32 %v17427_v8, %v17429_v58  ;;  %v1111_v5 = vmul.f32 %v8941_v33, %v17427_v8  ;;  %v1112_v16 = vmul.f32 %v17427_v8, %v17431_v11  ;;  %v9038_v22 = vld [vmem:[%s16630_s0 + $0x130] sm:$0xff]  ;;  %v17448_v62 = vld [vmem:[#allocation58_spill] sm:$0xff] }
  0xb6   : > { %v1113_v3 = vmul.f32 %v8950_v56, %v17427_v8  ;;  %v1114_v27 = vmul.f32 %v17427_v8, %v17433_v10  ;;  %v8963_v45 = vmul.f32 %v8959_v4, %v17427_v8  ;;  %v8967_v18 = vmul.f32 %v17427_v8, %v17435_v40  ;;  %17447 = vst [vmem:[#allocation29_spill] sm:$0xff] %v9038_v22  ;;  %v9047_v38 = vld [vmem:[%s16630_s0 + $0x140] sm:$0xff] }
  0xb7   : > { %v8976_v39 = vmul.f32 %v8972_v12, %v17427_v8  ;;  %v8980_v2 = vmul.f32 %v17427_v8, %v17437_v41  ;;  %v8989_v0 = vmul.f32 %v8985_v63, %v17427_v8  ;;  %v8993_v47 = vmul.f32 %v17427_v8, %v17439_v24  ;;  %17449 = vst [vmem:[#allocation30_spill] sm:$0xff] %v9047_v38 }
  0xb8   : > { %v8997_v54 = vmul.f32 %v17427_v8, %v17440_v46  ;;  %v9001_v23 = vmul.f32 %v17427_v8, %v17441_v59  ;;  %v9005_v26 = vmul.f32 %v17427_v8, %v17442_v51  ;;  %v9009_v55 = vmul.f32 %v17427_v8, %v8934_v48  ;;  %v9054_v46 = vld [vmem:[%s16630_s0 + $0x188] sm:$0xff]  ;;  %v17458_v48 = vld [vmem:[#allocation42_spill] sm:$0xff] }
  0xb9   : > { %v9018_v60 = vmul.f32 %v9014_v57, %v17427_v8  ;;  %v9022_v7 = vmul.f32 %v17427_v8, %v17444_v6  ;;  %v9031_v42 = vmul.f32 %v9027_v44, %v17427_v8  ;;  %v1128_v19 = vmul.f32 %v17427_v8, %v17446_v9  ;;  %17450 = vst [vmem:[#allocation31_spill] sm:$0xff] %v9054_v46  ;;  %v9061_v9 = vld [vmem:[%s16630_s0 + $0x150] sm:$0xff] }
  0xba   : > { %v1129_v1 = vmul.f32 %v9038_v22, %v17427_v8  ;;  %v1130_v36 = vmul.f32 %v17427_v8, %v17448_v62  ;;  %v1131_v28 = vmul.f32 %v9047_v38, %v17427_v8  ;;  %v1173_v35 = vrot.slane %v1109_v29, 1  ;;  %v17451_v62 = vld [vmem:[#allocation14_spill] sm:$0xff]  ;;  %17452 = vst [vmem:[#allocation32_spill] sm:$0xff] %v9061_v9 }
  0xbb   : > { %v1174_v58 = vrot.slane %v1110_v50, 1  ;;  %v1176_v51 = vrot.slane %v1111_v5, 1  ;;  %v1177_v6 = vrot.slane %v1112_v16, 1  ;;  %v1179_v57 = vrot.slane %v1113_v3, 1  ;;  %v17453_v50 = vld [vmem:[#allocation46_spill] sm:$0xff] }
  0xbc   : > { %v1180_v21 = vrot.slane %v1114_v27, 1  ;;  %v1132_v22 = vmul.f32 %v17427_v8, %v17451_v62  ;;  %v1133_v29 = vmul.f32 %v9061_v9, %v17427_v8  ;;  %v1134_v38 = vmul.f32 %v17427_v8, %v17453_v50  ;;  %v9070_v5 = vld [vmem:[%s16630_s0 + $0x160] sm:$0xff]  ;;  %v9079_v62 = vld [vmem:[%s16630_s0 + $0x170] sm:$0xff]  ;;  %v17457_v50 = vld [vmem:[#allocation15_spill] sm:$0xff] }
  0xbd   : > { %17454 = vst [vmem:[#allocation56_spill] sm:$0xff] %v9070_v5  ;;  %v1135_v16 = vmul.f32 %v9070_v5, %v17427_v8  ;;  %v17455_v3 = vld [vmem:[#allocation50_spill] sm:$0xff]  ;;  %17456 = vst [vmem:[#allocation33_spill] sm:$0xff] %v9079_v62  ;;  %v1137_v9 = vmul.f32 %v9079_v62, %v17427_v8  ;;  %v1138_v44 = vmul.f32 %v17427_v8, %v17457_v50  ;;  %v1183_v63 = vrot.slane %v8967_v18, 1 }
  0xbe   : > { %v1136_v27 = vmul.f32 %v17427_v8, %v17455_v3  ;;  %v1139_v59 = vmul.f32 %v17427_v8, %v17458_v48  ;;  %v1140_v5 = vmul.f32 %v17427_v8, %v9054_v46  ;;  %v1175_v24 = vsel %vm728_vm0, %v1173_v35, %v1174_v58 }
  0xbf   : > { %v1182_v3 = vrot.slane %v8963_v45, 1  ;;  %v1178_v41 = vsel %vm728_vm0, %v1176_v51, %v1177_v6  ;;  %v1181_v12 = vsel %vm728_vm0, %v1179_v57, %v1180_v21  ;;  %v1185_v62 = vrot.slane %v8976_v39, 1 }
  0xc0   : > { %v1186_v50 = vrot.slane %v8980_v2, 1  ;;  %v1188_v40 = vrot.slane %v8989_v0, 1  ;;  %v1189_v48 = vrot.slane %v8993_v47, 1  ;;  %v1191_v8 = vrot.slane %v8997_v54, 1 }
  0xc1   : > { %v1192_v35 = vrot.slane %v9001_v23, 1  ;;  %v1194_v45 = vrot.slane %v9005_v26, 1  ;;  %v1195_v18 = vrot.slane %v9009_v55, 1  ;;  %v1197_v58 = vrot.slane %v9018_v60, 1 }
  0xc2   : > { %v1198_v21 = vrot.slane %v9022_v7, 1  ;;  %v1200_v39 = vrot.slane %v9031_v42, 1  ;;  %v1201_v57 = vrot.slane %v1128_v19, 1  ;;  %v1203_v2 = vrot.slane %v1129_v1, 1 }
  0xc3   : > { %v1204_v51 = vrot.slane %v1130_v36, 1  ;;  %v1206_v0 = vrot.slane %v1131_v28, 1  ;;  %v1207_v6 = vrot.slane %v1132_v22, 1  ;;  %v1209_v47 = vrot.slane %v1133_v29, 1 }
  0xc4   : > { %v1210_v46 = vrot.slane %v1134_v38, 1  ;;  %v1212_v54 = vrot.slane %v1135_v16, 1  ;;  %v1213_v4 = vrot.slane %v1136_v27, 1  ;;  %v1215_v23 = vrot.slane %v1137_v9, 1 }
  0xc5   : > { %v1216_v10 = vrot.slane %v1138_v44, 1  ;;  %v1184_v26 = vsel %vm728_vm0, %v1182_v3, %v1183_v63  ;;  %v1187_v55 = vsel %vm728_vm0, %v1185_v62, %v1186_v50  ;;  %v1218_v60 = vrot.slane %v1139_v59, 1  ;;  %v17466_v3 = vld [vmem:[#allocation55_spill] sm:$0xff] }
  0xc6   : > { %v1219_v56 = vrot.slane %v1140_v5, 1  ;;  %v1190_v7 = vsel %vm728_vm0, %v1188_v40, %v1189_v48  ;;  %v1193_v42 = vsel %vm728_vm0, %v1191_v8, %v1192_v35  ;;  %v1196_v19 = vsel %vm728_vm0, %v1194_v45, %v1195_v18  ;;  %v17465_v5 = vld [vmem:[#allocation45_spill] sm:$0xff]  ;;  %v9202_v45 = vld [vmem:[%s16630_s0 + $0x90] sm:$0xff] }
  0xc7   : > { %v1199_v22 = vsel %vm728_vm0, %v1197_v58, %v1198_v21  ;;  %v1202_v1 = vsel %vm728_vm0, %v1200_v39, %v1201_v57  ;;  %v1205_v36 = vsel %vm728_vm0, %v1203_v2, %v1204_v51  ;;  %v1208_v44 = vsel %vm728_vm0, %v1206_v0, %v1207_v6  ;;  %v17468_v8 = vld [vmem:[#allocation49_spill] sm:$0xff]  ;;  %17469 = vst [vmem:[#allocation35_spill] sm:$0xff] %v9202_v45  ;;  %v17470_v58 = vld [vmem:[#allocation48_spill] sm:$0xff]  ;;  %v9215_v39 = vld [vmem:[%s16630_s0 + $0xa0] sm:$0xff] }
  0xc8   : > { %v1211_v63 = vsel %vm728_vm0, %v1209_v47, %v1210_v46  ;;  %v1214_v9 = vsel %vm728_vm0, %v1212_v54, %v1213_v4  ;;  %v1217_v59 = vsel %vm728_vm0, %v1215_v23, %v1216_v10  ;;  %v9118_v40 = vadd.f32 %v1175_v24, %v8876_v14  ;;  %v17464_v24 = vld [vmem:[#allocation54_spill] sm:$0xff]  ;;  %17471 = vst [vmem:[#allocation36_spill] sm:$0xff] %v9215_v39  ;;  %v17472_v2 = vld [vmem:[#allocation19_spill] sm:$0xff]  ;;  %v9228_v0 = vld [vmem:[%s16630_s0 + $0xb0] sm:$0xff] }
  0xc9   : > { %v9121_v62 = vadd.f32 %v1178_v41, %v8879_v53  ;;  %v1220_v38 = vsel %vm728_vm0, %v1218_v60, %v1219_v56  ;;  %v9125_v28 = vadd.f32 %v1181_v12, %v8883_v37  ;;  %v9128_v29 = vadd.f32 %v1184_v26, %v8886_v61  ;;  %v17462_v12 = vld [vmem:[#allocation53_spill] sm:$0xff]  ;;  %17473 = vst [vmem:[#allocation37_spill] sm:$0xff] %v9228_v0 }
  0xca   : > { %v9131_v46 = vadd.f32 %v1187_v55, %v8889_v20  ;;  %v9134_v4 = vadd.f32 %v1190_v7, %v8892_v49  ;;  %v9137_v14 = vadd.f32 %v1193_v42, %v8895_v34  ;;  %v9140_v53 = vadd.f32 %v1196_v19, %v8898_v15  ;;  %v17474_v54 = vld [vmem:[#allocation25_spill] sm:$0xff]  ;;  %v17477_v42 = vld [vmem:[#allocation58_spill] sm:$0xff] }
  0xcb   : > { %v9143_v56 = vadd.f32 %v1199_v22, %v8901_v13  ;;  %v9146_v37 = vadd.f32 %v1202_v1, %v8904_v17  ;;  %v9149_v61 = vadd.f32 %v1205_v36, %v8907_v30  ;;  %v9152_v20 = vadd.f32 %v1208_v44, %v8910_v52  ;;  %v17459_v17 = vld [vmem:[#allocation26_spill] sm:$0xff]  ;;  %v9171_v30 = vld [vmem:[%s16630_s0 + $0xb8] sm:$0xff] }
  0xcc   : > { %v9155_v49 = vadd.f32 %v1211_v63, %v8913_v32  ;;  %v9158_v34 = vadd.f32 %v1214_v9, %v8916_v31  ;;  %v9161_v15 = vadd.f32 %v1217_v59, %v8919_v43  ;;  %v9164_v13 = vadd.f32 %v1220_v38, %v8922_v25  ;;  %17460 = vst [vmem:[#allocation34_spill] sm:$0xff] %v9171_v30  ;;  %v17461_v32 = vld [vmem:[#allocation43_spill] sm:$0xff]  ;;  %v17475_v26 = vld [vmem:[#allocation21_spill] sm:$0xff]  ;;  %v17478_v22 = vld [vmem:[#allocation30_spill] sm:$0xff] }
  0xcd   : > { %v1257_v10 = vmul.f32 %v8941_v33, %v17459_v17  ;;  %v1258_v52 = vmul.f32 %v17459_v17, %v17431_v11  ;;  %v1259_v31 = vmul.f32 %v17461_v32, %v17459_v17  ;;  %v1260_v43 = vmul.f32 %v17459_v17, %v17462_v12  ;;  %v17463_v25 = vld [vmem:[#allocation7_spill] sm:$0xff]  ;;  %v17467_v11 = vld [vmem:[#allocation20_spill] sm:$0xff]  ;;  %v17476_v60 = vld [vmem:[#allocation29_spill] sm:$0xff] }
  0xce   : > { %v1261_v41 = vmul.f32 %v17463_v25, %v17459_v17  ;;  %v1262_v50 = vmul.f32 %v17459_v17, %v17464_v24  ;;  %v9185_v16 = vmul.f32 %v17465_v5, %v17459_v17  ;;  %v9189_v27 = vmul.f32 %v17459_v17, %v17466_v3  ;;  %v17479_v36 = vld [vmem:[#allocation14_spill] sm:$0xff]  ;;  %v17480_v63 = vld [vmem:[#allocation32_spill] sm:$0xff] }
  0xcf   : > { %v9193_v48 = vmul.f32 %v17467_v11, %v17459_v17  ;;  %v9197_v35 = vmul.f32 %v17459_v17, %v17468_v8  ;;  %v9206_v18 = vmul.f32 %v9202_v45, %v17459_v17  ;;  %v9210_v21 = vmul.f32 %v17459_v17, %v17470_v58 }
  0xd0   : > { %v9219_v57 = vmul.f32 %v9215_v39, %v17459_v17  ;;  %v9223_v51 = vmul.f32 %v17459_v17, %v17472_v2  ;;  %v1271_v6 = vmul.f32 %v9228_v0, %v17459_v17  ;;  %v1272_v47 = vmul.f32 %v17459_v17, %v9171_v30  ;;  %v17482_v30 = vld [vmem:[#allocation46_spill] sm:$0xff]  ;;  %v17483_v0 = vld [vmem:[#allocation56_spill] sm:$0xff]  ;;  %v17486_v39 = vld [vmem:[#allocation15_spill] sm:$0xff] }
  0xd1   : > { %v1273_v23 = vmul.f32 %v17474_v54, %v17459_v17  ;;  %v1274_v55 = vmul.f32 %v17459_v17, %v17475_v26  ;;  %v1275_v7 = vmul.f32 %v17476_v60, %v17459_v17  ;;  %v1276_v19 = vmul.f32 %v17459_v17, %v17477_v42  ;;  %v9251_v26 = vld [vmem:[%s16630_s0 + $0x198] sm:$0xff]  ;;  %v17484_v2 = vld [vmem:[#allocation50_spill] sm:$0xff] }
  0xd2   : > { %v1277_v1 = vmul.f32 %v17478_v22, %v17459_v17  ;;  %v1278_v44 = vmul.f32 %v17459_v17, %v17479_v36  ;;  %v1279_v9 = vmul.f32 %v17480_v63, %v17459_v17  ;;  %v1321_v59 = vrot.slane %v1257_v10, 1  ;;  %17481 = vst [vmem:[#allocation38_spill] sm:$0xff] %v9251_v26  ;;  %v17485_v10 = vld [vmem:[#allocation33_spill] sm:$0xff] }
  0xd3   : > { %v1322_v38 = vrot.slane %v1258_v52, 1  ;;  %v1324_v54 = vrot.slane %v1259_v31, 1  ;;  %v1325_v33 = vrot.slane %v1260_v43, 1  ;;  %v1327_v60 = vrot.slane %v1261_v41, 1  ;;  %v9266_v31 = vld [vmem:[%s16630_s0 + $0x180] sm:$0xff]  ;;  %v17488_v41 = vld [vmem:[#allocation31_spill] sm:$0xff] }
  0xd4   : > { %v1328_v42 = vrot.slane %v1262_v50, 1  ;;  %v1280_v22 = vmul.f32 %v17459_v17, %v17482_v30  ;;  %v1281_v36 = vmul.f32 %v17483_v0, %v17459_v17  ;;  %v1282_v63 = vmul.f32 %v17459_v17, %v17484_v2  ;;  %17487 = vst [vmem:[#allocation40_spill] sm:$0xff] %v9266_v31  ;;  %v9275_v2 = vld [vmem:[%s16630_s0 + $0x190] sm:$0xff] }
  0xd5   : > { %v1283_v52 = vmul.f32 %v17485_v10, %v17459_v17  ;;  %v1284_v58 = vmul.f32 %v17459_v17, %v17486_v39  ;;  %v1285_v43 = vmul.f32 %v9266_v31, %v17459_v17  ;;  %v1286_v50 = vmul.f32 %v17459_v17, %v17488_v41  ;;  %17489 = vst [vmem:[#allocation17_spill] sm:$0xff] %v9275_v2 }
  0xd6   : > { %v1287_v10 = vmul.f32 %v9275_v2, %v17459_v17  ;;  %v1288_v39 = vmul.f32 %v17459_v17, %v9251_v26  ;;  %v1323_v0 = vsel %vm728_vm0, %v1321_v59, %v1322_v38  ;;  %v1330_v30 = vrot.slane %v9185_v16, 1 }
  0xd7   : > { %v1331_v31 = vrot.slane %v9189_v27, 1  ;;  %v1326_v45 = vsel %vm728_vm0, %v1324_v54, %v1325_v33  ;;  %v1329_v41 = vsel %vm728_vm0, %v1327_v60, %v1328_v42  ;;  %v1333_v8 = vrot.slane %v9193_v48, 1 }
  0xd8   : > { %v1334_v11 = vrot.slane %v9197_v35, 1  ;;  %v1336_v3 = vrot.slane %v9206_v18, 1  ;;  %v1337_v2 = vrot.slane %v9210_v21, 1  ;;  %v1339_v17 = vrot.slane %v9219_v57, 1 }
  0xd9   : > { %v1340_v59 = vrot.slane %v9223_v51, 1  ;;  %v1342_v38 = vrot.slane %v1271_v6, 1  ;;  %v1343_v16 = vrot.slane %v1272_v47, 1  ;;  %v1345_v26 = vrot.slane %v1273_v23, 1 }
  0xda   : > { %v1346_v27 = vrot.slane %v1274_v55, 1  ;;  %v1348_v5 = vrot.slane %v1275_v7, 1  ;;  %v1349_v33 = vrot.slane %v1276_v19, 1  ;;  %v1351_v54 = vrot.slane %v1277_v1, 1 }
  0xdb   : > { %v1352_v60 = vrot.slane %v1278_v44, 1  ;;  %v1354_v42 = vrot.slane %v1279_v9, 1  ;;  %v1355_v48 = vrot.slane %v1280_v22, 1  ;;  %v1357_v24 = vrot.slane %v1281_v36, 1  ;;  %v17494_v44 = vld [vmem:[#allocation54_spill] sm:$0xff]  ;;  %v17496_v9 = vld [vmem:[#allocation55_spill] sm:$0xff] }
  0xdc   : > { %v1358_v35 = vrot.slane %v1282_v63, 1  ;;  %v1360_v25 = vrot.slane %v1283_v52, 1  ;;  %v1361_v18 = vrot.slane %v1284_v58, 1  ;;  %v1363_v12 = vrot.slane %v1285_v43, 1 }
  0xdd   : > { %v1364_v21 = vrot.slane %v1286_v50, 1  ;;  %v1332_v57 = vsel %vm728_vm0, %v1330_v30, %v1331_v31  ;;  %v1335_v51 = vsel %vm728_vm0, %v1333_v8, %v1334_v11  ;;  %v1366_v6 = vrot.slane %v1287_v10, 1  ;;  %v17497_v10 = vld [vmem:[#allocation20_spill] sm:$0xff]  ;;  %v17498_v31 = vld [vmem:[#allocation49_spill] sm:$0xff] }
  0xde   : > { %v1367_v47 = vrot.slane %v1288_v39, 1  ;;  %v1338_v23 = vsel %vm728_vm0, %v1336_v3, %v1337_v2  ;;  %v1341_v55 = vsel %vm728_vm0, %v1339_v17, %v1340_v59  ;;  %v1344_v7 = vsel %vm728_vm0, %v1342_v38, %v1343_v16  ;;  %v17500_v17 = vld [vmem:[#allocation48_spill] sm:$0xff] }
  0xdf   : > { %v1347_v19 = vsel %vm728_vm0, %v1345_v26, %v1346_v27  ;;  %v1350_v22 = vsel %vm728_vm0, %v1348_v5, %v1349_v33  ;;  %v1353_v58 = vsel %vm728_vm0, %v1351_v54, %v1352_v60  ;;  %v1356_v1 = vsel %vm728_vm0, %v1354_v42, %v1355_v48  ;;  %v17501_v38 = vld [vmem:[#allocation36_spill] sm:$0xff]  ;;  %v17502_v27 = vld [vmem:[#allocation19_spill] sm:$0xff]  ;;  %v17503_v54 = vld [vmem:[#allocation37_spill] sm:$0xff] }
  0xe0   : > { %v1359_v30 = vsel %vm728_vm0, %v1357_v24, %v1358_v35  ;;  %v1362_v11 = vsel %vm728_vm0, %v1360_v25, %v1361_v18  ;;  %v1365_v8 = vsel %vm728_vm0, %v1363_v12, %v1364_v21  ;;  %v9305_v3 = vadd.f32 %v1323_v0, %v9118_v40  ;;  %v17504_v42 = vld [vmem:[#allocation34_spill] sm:$0xff] }
  0xe1   : > { %v9308_v39 = vadd.f32 %v1326_v45, %v9121_v62  ;;  %v1368_v2 = vsel %vm728_vm0, %v1366_v6, %v1367_v47  ;;  %v9312_v5 = vadd.f32 %v1329_v41, %v9125_v28  ;;  %v9315_v36 = vadd.f32 %v1332_v57, %v9128_v29  ;;  %v17499_v41 = vld [vmem:[#allocation35_spill] sm:$0xff]  ;;  %v9401_v35 = vld [vmem:[%s16630_s0 + $0xc0] sm:$0xff]  ;;  %v17506_v57 = vld [vmem:[#allocation29_spill] sm:$0xff] }
  0xe2   : > { %v9318_v24 = vadd.f32 %v1335_v51, %v9131_v46  ;;  %v9321_v25 = vadd.f32 %v1338_v23, %v9134_v4  ;;  %v9324_v40 = vadd.f32 %v1341_v55, %v9137_v14  ;;  %v9327_v62 = vadd.f32 %v1344_v7, %v9140_v53  ;;  %17505 = vst [vmem:[#allocation44_spill] sm:$0xff] %v9401_v35  ;;  %v17507_v6 = vld [vmem:[#allocation58_spill] sm:$0xff] }
  0xe3   : > { %v9330_v12 = vadd.f32 %v1347_v19, %v9143_v56  ;;  %v9333_v28 = vadd.f32 %v1350_v22, %v9146_v37  ;;  %v9336_v29 = vadd.f32 %v1353_v58, %v9149_v61  ;;  %v9339_v46 = vadd.f32 %v1356_v1, %v9152_v20  ;;  %v17490_v37 = vld [vmem:[#allocation23_spill] sm:$0xff]  ;;  %v17492_v20 = vld [vmem:[#allocation53_spill] sm:$0xff]  ;;  %v17508_v23 = vld [vmem:[#allocation30_spill] sm:$0xff] }
  0xe4   : > { %v9342_v4 = vadd.f32 %v1359_v30, %v9155_v49  ;;  %v9345_v14 = vadd.f32 %v1362_v11, %v9158_v34  ;;  %v9348_v53 = vadd.f32 %v1365_v8, %v9161_v15  ;;  %v9351_v56 = vadd.f32 %v1368_v2, %v9164_v13  ;;  %v9358_v61 = vld [vmem:[%s16630_s0 + $0xc8] sm:$0xff]  ;;  %v17495_v13 = vld [vmem:[#allocation45_spill] sm:$0xff]  ;;  %v17509_v7 = vld [vmem:[#allocation14_spill] sm:$0xff] }
  0xe5   : > { %v1405_v45 = vmul.f32 %v17461_v32, %v17490_v37  ;;  %17491 = vst [vmem:[#allocation28_spill] sm:$0xff] %v9358_v61  ;;  %v1406_v49 = vmul.f32 %v17490_v37, %v17492_v20  ;;  %v17493_v34 = vld [vmem:[#allocation7_spill] sm:$0xff]  ;;  %v1408_v15 = vmul.f32 %v17490_v37, %v17494_v44  ;;  %v1409_v63 = vmul.f32 %v17495_v13, %v17490_v37  ;;  %v17510_v22 = vld [vmem:[#allocation32_spill] sm:$0xff]  ;;  %v17511_v1 = vld [vmem:[#allocation46_spill] sm:$0xff] }
  0xe6   : > { %v1407_v0 = vmul.f32 %v17493_v34, %v17490_v37  ;;  %v1410_v26 = vmul.f32 %v17490_v37, %v17496_v9  ;;  %v9372_v52 = vmul.f32 %v17497_v10, %v17490_v37  ;;  %v9376_v43 = vmul.f32 %v17490_v37, %v17498_v31  ;;  %v17512_v11 = vld [vmem:[#allocation56_spill] sm:$0xff]  ;;  %v9424_v44 = vld [vmem:[%s16630_s0 + $0x1a8] sm:$0xff]  ;;  %v17514_v32 = vld [vmem:[#allocation50_spill] sm:$0xff] }
  0xe7   : > { %v9380_v50 = vmul.f32 %v17499_v41, %v17490_v37  ;;  %v1414_v59 = vmul.f32 %v17490_v37, %v17500_v17  ;;  %v9386_v16 = vmul.f32 %v17501_v38, %v17490_v37  ;;  %v9390_v33 = vmul.f32 %v17490_v37, %v17502_v27  ;;  %17513 = vst [vmem:[#allocation51_spill] sm:$0xff] %v9424_v44 }
  0xe8   : > { %v9394_v60 = vmul.f32 %v17503_v54, %v17490_v37  ;;  %v1418_v48 = vmul.f32 %v17490_v37, %v17504_v42  ;;  %v1419_v18 = vmul.f32 %v9401_v35, %v17490_v37  ;;  %v1420_v21 = vmul.f32 %v17490_v37, %v9358_v61  ;;  %v17516_v61 = vld [vmem:[#allocation15_spill] sm:$0xff] }
  0xe9   : > { %v1421_v51 = vmul.f32 %v17506_v57, %v17490_v37  ;;  %v1422_v47 = vmul.f32 %v17490_v37, %v17507_v6  ;;  %v1423_v55 = vmul.f32 %v17508_v23, %v17490_v37  ;;  %v1424_v19 = vmul.f32 %v17490_v37, %v17509_v7  ;;  %v17515_v23 = vld [vmem:[#allocation33_spill] sm:$0xff]  ;;  %v17518_v35 = vld [vmem:[#allocation31_spill] sm:$0xff] }
  0xea   : > { %v1425_v58 = vmul.f32 %v17510_v22, %v17490_v37  ;;  %v1426_v30 = vmul.f32 %v17490_v37, %v17511_v1  ;;  %v1427_v8 = vmul.f32 %v17512_v11, %v17490_v37  ;;  %v1469_v2 = vrot.slane %v1405_v45, 1  ;;  %v17517_v45 = vld [vmem:[#allocation40_spill] sm:$0xff] }
  0xeb   : > { %v1470_v20 = vrot.slane %v1406_v49, 1  ;;  %v1472_v9 = vrot.slane %v1407_v0, 1  ;;  %v1473_v6 = vrot.slane %v1408_v15, 1  ;;  %v1475_v57 = vrot.slane %v1409_v63, 1  ;;  %v17519_v0 = vld [vmem:[#allocation17_spill] sm:$0xff]  ;;  %v17520_v63 = vld [vmem:[#allocation38_spill] sm:$0xff] }
  0xec   : > { %v1476_v7 = vrot.slane %v1410_v26, 1  ;;  %v1428_v22 = vmul.f32 %v17490_v37, %v17514_v32  ;;  %v1429_v1 = vmul.f32 %v17515_v23, %v17490_v37  ;;  %v1430_v11 = vmul.f32 %v17490_v37, %v17516_v61  ;;  %v9443_v32 = vld [vmem:[%s16630_s0 + $0x1a0] sm:$0xff] }
  0xed   : > { %v1431_v49 = vmul.f32 %v17517_v45, %v17490_v37  ;;  %v1432_v42 = vmul.f32 %v17490_v37, %v17518_v35  ;;  %v1433_v15 = vmul.f32 %v17519_v0, %v17490_v37  ;;  %v1434_v26 = vmul.f32 %v17490_v37, %v17520_v63  ;;  %17521 = vst [vmem:[#allocation52_spill] sm:$0xff] %v9443_v32 }
  0xee   : > { %v1435_v61 = vmul.f32 %v9443_v32, %v17490_v37  ;;  %v1436_v45 = vmul.f32 %v17490_v37, %v9424_v44  ;;  %v1471_v23 = vsel %vm728_vm0, %v1469_v2, %v1470_v20  ;;  %v1478_v35 = vrot.slane %v9372_v52, 1 }
  0xef   : > { %v1479_v0 = vrot.slane %v9376_v43, 1  ;;  %v1474_v54 = vsel %vm728_vm0, %v1472_v9, %v1473_v6  ;;  %v1477_v63 = vsel %vm728_vm0, %v1475_v57, %v1476_v7  ;;  %v1481_v27 = vrot.slane %v9380_v50, 1 }
  0xf0   : > { %v1482_v38 = vrot.slane %v1414_v59, 1  ;;  %v1484_v17 = vrot.slane %v9386_v16, 1  ;;  %v1485_v32 = vrot.slane %v9390_v33, 1  ;;  %v1487_v41 = vrot.slane %v9394_v60, 1 }
  0xf1   : > { %v1488_v37 = vrot.slane %v1418_v48, 1  ;;  %v1490_v44 = vrot.slane %v1419_v18, 1  ;;  %v1491_v2 = vrot.slane %v1420_v21, 1  ;;  %v1493_v20 = vrot.slane %v1421_v51, 1 }
  0xf2   : > { %v1494_v52 = vrot.slane %v1422_v47, 1  ;;  %v1496_v31 = vrot.slane %v1423_v55, 1  ;;  %v1497_v43 = vrot.slane %v1424_v19, 1  ;;  %v1499_v10 = vrot.slane %v1425_v58, 1 }
  0xf3   : > { %v1500_v9 = vrot.slane %v1426_v30, 1  ;;  %v1502_v6 = vrot.slane %v1427_v8, 1  ;;  %v1503_v57 = vrot.slane %v1428_v22, 1  ;;  %v1505_v7 = vrot.slane %v1429_v1, 1  ;;  %v17527_v30 = vld [vmem:[#allocation20_spill] sm:$0xff]  ;;  %v17528_v8 = vld [vmem:[#allocation49_spill] sm:$0xff] }
  0xf4   : > { %v1506_v50 = vrot.slane %v1430_v11, 1  ;;  %v1508_v59 = vrot.slane %v1431_v49, 1  ;;  %v1509_v13 = vrot.slane %v1432_v42, 1  ;;  %v1511_v16 = vrot.slane %v1433_v15, 1  ;;  %v17529_v1 = vld [vmem:[#allocation35_spill] sm:$0xff]  ;;  %v17530_v49 = vld [vmem:[#allocation48_spill] sm:$0xff] }
  0xf5   : > { %v1512_v34 = vrot.slane %v1434_v26, 1  ;;  %v1480_v33 = vsel %vm728_vm0, %v1478_v35, %v1479_v0  ;;  %v1483_v60 = vsel %vm728_vm0, %v1481_v27, %v1482_v38  ;;  %v1514_v48 = vrot.slane %v1435_v61, 1  ;;  %v17531_v15 = vld [vmem:[#allocation36_spill] sm:$0xff]  ;;  %v17532_v26 = vld [vmem:[#allocation19_spill] sm:$0xff] }
  0xf6   : > { %v1515_v18 = vrot.slane %v1436_v45, 1  ;;  %v1486_v21 = vsel %vm728_vm0, %v1484_v17, %v1485_v32  ;;  %v1489_v51 = vsel %vm728_vm0, %v1487_v41, %v1488_v37  ;;  %v1492_v47 = vsel %vm728_vm0, %v1490_v44, %v1491_v2  ;;  %v17533_v2 = vld [vmem:[#allocation37_spill] sm:$0xff] }
  0xf7   : > { %v1495_v55 = vsel %vm728_vm0, %v1493_v20, %v1494_v52  ;;  %v1498_v19 = vsel %vm728_vm0, %v1496_v31, %v1497_v43  ;;  %v1501_v42 = vsel %vm728_vm0, %v1499_v10, %v1500_v9  ;;  %v1504_v22 = vsel %vm728_vm0, %v1502_v6, %v1503_v57  ;;  %v17534_v52 = vld [vmem:[#allocation34_spill] sm:$0xff]  ;;  %v17535_v9 = vld [vmem:[#allocation44_spill] sm:$0xff] }
  0xf8   : > { %v1507_v35 = vsel %vm728_vm0, %v1505_v7, %v1506_v50  ;;  %v1510_v38 = vsel %vm728_vm0, %v1508_v59, %v1509_v13  ;;  %v1513_v61 = vsel %vm728_vm0, %v1511_v16, %v1512_v34  ;;  %v9471_v32 = vadd.f32 %v1471_v23, %v9305_v3  ;;  %v17536_v57 = vld [vmem:[#allocation28_spill] sm:$0xff] }
  0xf9   : > { %v9474_v41 = vadd.f32 %v1474_v54, %v9308_v39  ;;  %v1516_v17 = vsel %vm728_vm0, %v1514_v48, %v1515_v18  ;;  %v9478_v31 = vadd.f32 %v1477_v63, %v9312_v5  ;;  %v9481_v10 = vadd.f32 %v1480_v33, %v9315_v36  ;;  %v17523_v54 = vld [vmem:[#allocation7_spill] sm:$0xff]  ;;  %v7515_v50 = vld [vmem:[%s16630_s0 + $0xd0] sm:$0xff]  ;;  %v17537_v33 = vld [vmem:[#allocation30_spill] sm:$0xff] }
  0xfa   : > { %v9484_v27 = vadd.f32 %v1483_v60, %v9318_v24  ;;  %v9487_v13 = vadd.f32 %v1486_v21, %v9321_v25  ;;  %v9490_v3 = vadd.f32 %v1489_v51, %v9324_v40  ;;  %v9493_v39 = vadd.f32 %v1492_v47, %v9327_v62  ;;  %v9588_v48 = vld [vmem:[%s16630_s0 + $0x148] sm:$0xff]  ;;  %v17539_v21 = vld [vmem:[#allocation32_spill] sm:$0xff]  ;;  %v9597_v47 = vld [vmem:[%s16630_s0 + $0x158] sm:$0xff] }
  0xfb   : > { %v9496_v34 = vadd.f32 %v1495_v55, %v9330_v12  ;;  %v9499_v5 = vadd.f32 %v1498_v19, %v9333_v28  ;;  %v9502_v36 = vadd.f32 %v1501_v42, %v9336_v29  ;;  %v9505_v24 = vadd.f32 %v1504_v22, %v9339_v46  ;;  %v17522_v28 = vld [vmem:[#allocation11_spill] sm:$0xff]  ;;  %v372_v29 = vld [vmem:[%s16630_s0 + $0xd8] sm:$0xff]  ;;  %17538 = vst [vmem:[#allocation57_spill] sm:$0xff] %v9588_v48  ;;  %v17541_v19 = vld [vmem:[#allocation56_spill] sm:$0xff] }
  0xfc   : > { %v9508_v25 = vadd.f32 %v1507_v35, %v9342_v4  ;;  %v9511_v40 = vadd.f32 %v1510_v38, %v9345_v14  ;;  %v9514_v62 = vadd.f32 %v1513_v61, %v9348_v53  ;;  %v9517_v12 = vadd.f32 %v1516_v17, %v9351_v56  ;;  %v9527_v46 = vld [vmem:[%s16630_s0 + $0x68] sm:$0xff]  ;;  %v17525_v14 = vld [vmem:[#allocation45_spill] sm:$0xff]  ;;  %17540 = vst [vmem:[#allocation42_spill] sm:$0xff] %v9597_v47  ;;  %v17542_v22 = vld [vmem:[#allocation50_spill] sm:$0xff] }
  0xfd   : > { %v1553_v23 = vmul.f32 %v17523_v54, %v17522_v28  ;;  %17524 = vst [vmem:[#allocation39_spill] sm:$0xff] %v9527_v46  ;;  %v1554_v4 = vmul.f32 %v9527_v46, %v17522_v28  ;;  %v1555_v53 = vmul.f32 %v17525_v14, %v17522_v28  ;;  %v9536_v56 = vld [vmem:[%s16630_s0 + $0x78] sm:$0xff]  ;;  %v1557_v11 = vmul.f32 %v17527_v30, %v17522_v28 }
  0xfe   : > { %17526 = vst [vmem:[#allocation41_spill] sm:$0xff] %v9536_v56  ;;  %v1556_v58 = vmul.f32 %v9536_v56, %v17522_v28  ;;  %v1558_v44 = vmul.f32 %v17522_v28, %v17528_v8  ;;  %v9546_v45 = vmul.f32 %v17529_v1, %v17522_v28  ;;  %v9550_v0 = vmul.f32 %v17522_v28, %v17530_v49  ;;  %v17543_v38 = vld [vmem:[#allocation33_spill] sm:$0xff] }
  0xff   : > { %v9554_v63 = vmul.f32 %v17531_v15, %v17522_v28  ;;  %v9558_v37 = vmul.f32 %v17522_v28, %v17532_v26  ;;  %v9562_v20 = vmul.f32 %v17533_v2, %v17522_v28  ;;  %v9566_v43 = vmul.f32 %v17522_v28, %v17534_v52  ;;  %v400_v8 = vld [vmem:[%s16630_s0 + $0x1b8] sm:$0xff]  ;;  %v17544_v52 = vld [vmem:[#allocation15_spill] sm:$0xff] }
 0x100   : > { %v9570_v6 = vmul.f32 %v17535_v9, %v17522_v28  ;;  %v9574_v7 = vmul.f32 %v17522_v28, %v17536_v57  ;;  %v9580_v59 = vmul.f32 %v7515_v50, %v17522_v28  ;;  %v1568_v16 = vmul.f32 %v17522_v28, %v372_v29  ;;  %v17545_v57 = vld [vmem:[#allocation40_spill] sm:$0xff] }
 0x101   : > { %v1569_v60 = vmul.f32 %v17537_v33, %v17522_v28  ;;  %v1570_v18 = vmul.f32 %v9588_v48, %v17522_v28  ;;  %v1571_v51 = vmul.f32 %v17539_v21, %v17522_v28  ;;  %v1572_v55 = vmul.f32 %v9597_v47, %v17522_v28 }
 0x102   : > { %v1573_v42 = vmul.f32 %v17541_v19, %v17522_v28  ;;  %v1574_v35 = vmul.f32 %v17522_v28, %v17542_v22  ;;  %v1575_v61 = vmul.f32 %v17543_v38, %v17522_v28  ;;  %v1617_v17 = vrot.slane %v1553_v23, 1  ;;  %v17546_v22 = vld [vmem:[#allocation31_spill] sm:$0xff]  ;;  %v17547_v23 = vld [vmem:[#allocation17_spill] sm:$0xff]  ;;  %v17548_v38 = vld [vmem:[#allocation38_spill] sm:$0xff] }
 0x103   : > { %v1618_v29 = vrot.slane %v1554_v4, 1  ;;  %v1620_v49 = vrot.slane %v1555_v53, 1  ;;  %v1621_v15 = vrot.slane %v1556_v58, 1  ;;  %v1623_v26 = vrot.slane %v1557_v11, 1  ;;  %v17549_v53 = vld [vmem:[#allocation52_spill] sm:$0xff]  ;;  %v17550_v11 = vld [vmem:[#allocation51_spill] sm:$0xff] }
 0x104   : > { %v1624_v2 = vrot.slane %v1558_v44, 1  ;;  %v1576_v9 = vmul.f32 %v17522_v28, %v17544_v52  ;;  %v1577_v50 = vmul.f32 %v17545_v57, %v17522_v28  ;;  %v1578_v1 = vmul.f32 %v17522_v28, %v17546_v22  ;;  %v7518_v52 = vld [vmem:[%s16630_s0 + $0x1b0] sm:$0xff] }
 0x105   : > { %v1579_v4 = vmul.f32 %v17547_v23, %v17522_v28  ;;  %v1580_v19 = vmul.f32 %v17522_v28, %v17548_v38  ;;  %v1581_v58 = vmul.f32 %v17549_v53, %v17522_v28  ;;  %v1582_v44 = vmul.f32 %v17522_v28, %v17550_v11 }
 0x106   : > { %v1583_v57 = vmul.f32 %v7518_v52, %v17522_v28  ;;  %v1584_v22 = vmul.f32 %v17522_v28, %v400_v8  ;;  %v1619_v30 = vsel %vm728_vm0, %v1617_v17, %v1618_v29  ;;  %v1626_v23 = vrot.slane %v9546_v45, 1 }
 0x107   : > { %v1627_v38 = vrot.slane %v9550_v0, 1  ;;  %v1622_v47 = vsel %vm728_vm0, %v1620_v49, %v1621_v15  ;;  %v1625_v53 = vsel %vm728_vm0, %v1623_v26, %v1624_v2  ;;  %v1629_v11 = vrot.slane %v9554_v63, 1 }
 0x108   : > { %v1630_v21 = vrot.slane %v9558_v37, 1  ;;  %v1632_v48 = vrot.slane %v9562_v20, 1  ;;  %v1633_v52 = vrot.slane %v9566_v43, 1  ;;  %v1635_v28 = vrot.slane %v9570_v6, 1 }
 0x109   : > { %v1636_v17 = vrot.slane %v9574_v7, 1  ;;  %v1638_v45 = vrot.slane %v9580_v59, 1  ;;  %v1639_v29 = vrot.slane %v1568_v16, 1  ;;  %v1641_v0 = vrot.slane %v1569_v60, 1 }
 0x10a   : > { %v1642_v8 = vrot.slane %v1570_v18, 1  ;;  %v1644_v49 = vrot.slane %v1571_v51, 1  ;;  %v1645_v15 = vrot.slane %v1572_v55, 1  ;;  %v1647_v26 = vrot.slane %v1573_v42, 1 }
 0x10b   : > { %v1648_v2 = vrot.slane %v1574_v35, 1  ;;  %v1650_v63 = vrot.slane %v1575_v61, 1  ;;  %v1651_v33 = vrot.slane %v1576_v9, 1  ;;  %v1653_v37 = vrot.slane %v1577_v50, 1 }
 0x10c   : > { %v1654_v56 = vrot.slane %v1578_v1, 1  ;;  %v1656_v20 = vrot.slane %v1579_v4, 1  ;;  %v1657_v14 = vrot.slane %v1580_v19, 1  ;;  %v1659_v43 = vrot.slane %v1581_v58, 1 }
 0x10d   : > { %v1660_v46 = vrot.slane %v1582_v44, 1  ;;  %v1628_v6 = vsel %vm728_vm0, %v1626_v23, %v1627_v38  ;;  %v1631_v7 = vsel %vm728_vm0, %v1629_v11, %v1630_v21  ;;  %v1662_v59 = vrot.slane %v1583_v57, 1  ;;  %v9736_v57 = vld [vmem:[%s16630_s0 + $0x28] sm:$0xff]  ;;  %v17555_v23 = vld [vmem:[#allocation16_spill] sm:$0xff] }
 0x10e   : > { %v1663_v16 = vrot.slane %v1584_v22, 1  ;;  %v1634_v60 = vsel %vm728_vm0, %v1632_v48, %v1633_v52  ;;  %v1637_v18 = vsel %vm728_vm0, %v1635_v28, %v1636_v17  ;;  %v1640_v51 = vsel %vm728_vm0, %v1638_v45, %v1639_v29  ;;  %17554 = vst [vmem:[#allocation23_spill] sm:$0xff] %v9736_v57  ;;  %v17557_v52 = vld [vmem:[#allocation27_spill] sm:$0xff] }
 0x10f   : > { %v1643_v55 = vsel %vm728_vm0, %v1641_v0, %v1642_v8  ;;  %v1646_v1 = vsel %vm728_vm0, %v1644_v49, %v1645_v15  ;;  %v1649_v19 = vsel %vm728_vm0, %v1647_v26, %v1648_v2  ;;  %v1652_v42 = vsel %vm728_vm0, %v1650_v63, %v1651_v33  ;;  %v9762_v17 = vld [vmem:[%s16630_s0 + $0x48] sm:$0xff]  ;;  %v9775_v8 = vld [vmem:[%s16630_s0 + $0x58] sm:$0xff] }
 0x110   : > { %v1655_v35 = vsel %vm728_vm0, %v1653_v37, %v1654_v56  ;;  %v1658_v21 = vsel %vm728_vm0, %v1656_v20, %v1657_v14  ;;  %v1661_v61 = vsel %vm728_vm0, %v1659_v43, %v1660_v46  ;;  %v9654_v48 = vadd.f32 %v1619_v30, %v9471_v32  ;;  %17558 = vst [vmem:[#allocation54_spill] sm:$0xff] %v9762_v17  ;;  %v17559_v29 = vld [vmem:[#allocation43_spill] sm:$0xff]  ;;  %v17562_v63 = vld [vmem:[#allocation45_spill] sm:$0xff] }
 0x111   : > { %v9657_v9 = vadd.f32 %v1622_v47, %v9474_v41  ;;  %v1664_v50 = vsel %vm728_vm0, %v1662_v59, %v1663_v16  ;;  %v9661_v4 = vadd.f32 %v1625_v53, %v9478_v31  ;;  %v9664_v58 = vadd.f32 %v1628_v6, %v9481_v10  ;;  %v9727_v47 = vld [vmem:[%s16630_s0 + $0x20] sm:$0xff]  ;;  %v9749_v53 = vld [vmem:[%s16630_s0 + $0x38] sm:$0xff]  ;;  %17560 = vst [vmem:[#allocation55_spill] sm:$0xff] %v9775_v8  ;;  %v17561_v26 = vld [vmem:[#allocation39_spill] sm:$0xff] }
 0x112   : > { %v9667_v56 = vadd.f32 %v1631_v7, %v9484_v27  ;;  %v9670_v14 = vadd.f32 %v1634_v60, %v9487_v13  ;;  %v9673_v32 = vadd.f32 %v1637_v18, %v9490_v3  ;;  %v9676_v41 = vadd.f32 %v1640_v51, %v9493_v39  ;;  %17553 = vst [vmem:[#allocation21_spill] sm:$0xff] %v9727_v47  ;;  %v17563_v20 = vld [vmem:[#allocation41_spill] sm:$0xff]  ;;  %v7528_v6 = vld [vmem:[%s16630_s0 + $0xe0] sm:$0xff]  ;;  %v7529_v59 = vld [vmem:[%s16630_s0 + $0xe8] sm:$0xff] }
 0x113   : > { %v9679_v46 = vadd.f32 %v1643_v55, %v9496_v34  ;;  %v9682_v31 = vadd.f32 %v1646_v1, %v9499_v5  ;;  %v9685_v10 = vadd.f32 %v1649_v19, %v9502_v36  ;;  %v9688_v27 = vadd.f32 %v1652_v42, %v9505_v24  ;;  %v7519_v5 = vld [vmem:[%s16630_s0] sm:$0xff]  ;;  %v17551_v36 = vld [vmem:[#allocation47_spill] sm:$0xff]  ;;  %17556 = vst [vmem:[#allocation53_spill] sm:$0xff] %v9749_v53  ;;  %v9812_v60 = vld [vmem:[%s16630_s0 + $0xf0] sm:$0xff] }
 0x114   : > { %v9691_v13 = vadd.f32 %v1655_v35, %v9508_v25  ;;  %v9694_v3 = vadd.f32 %v1658_v21, %v9511_v40  ;;  %v9697_v39 = vadd.f32 %v1661_v61, %v9514_v62  ;;  %v9700_v34 = vadd.f32 %v1664_v50, %v9517_v12  ;;  %v7520_v24 = vld [vmem:[%s16630_s0 + $0x8] sm:$0xff]  ;;  %v9713_v40 = vld [vmem:[%s16630_s0 + $0x10] sm:$0xff]  ;;  %v9720_v12 = vld [vmem:[%s16630_s0 + $0x18] sm:$0xff]  ;;  %17564 = vst [vmem:[#allocation58_spill] sm:$0xff] %v9812_v60 }
 0x115   : > { %v1701_v30 = vmul.f32 %v7519_v5, %v17551_v36  ;;  %v1702_v25 = vmul.f32 %v7520_v24, %v17551_v36  ;;  %v1703_v62 = vmul.f32 %v9713_v40, %v17551_v36  ;;  %17552 = vst [vmem:[#allocation26_spill] sm:$0xff] %v9720_v12  ;;  %v1704_v33 = vmul.f32 %v9720_v12, %v17551_v36  ;;  %v9821_v51 = vld [vmem:[%s16630_s0 + $0xf8] sm:$0xff]  ;;  %v9828_v1 = vld [vmem:[%s16630_s0 + $0x100] sm:$0xff]  ;;  %v9835_v42 = vld [vmem:[%s16630_s0 + $0x108] sm:$0xff] }
 0x116   : > { %v9731_v44 = vmul.f32 %v9727_v47, %v17551_v36  ;;  %v9740_v22 = vmul.f32 %v9736_v57, %v17551_v36  ;;  %v9744_v38 = vmul.f32 %v17555_v23, %v17551_v36  ;;  %v9753_v11 = vmul.f32 %v9749_v53, %v17551_v36  ;;  %17565 = vst [vmem:[#allocation14_spill] sm:$0xff] %v9821_v51  ;;  %v17568_v21 = vld [vmem:[#allocation24_spill] sm:$0xff]  ;;  %v9844_v24 = vld [vmem:[%s16630_s0 + $0x118] sm:$0xff] }
 0x117   : > { %v9757_v28 = vmul.f32 %v17557_v52, %v17551_v36  ;;  %v9766_v45 = vmul.f32 %v9762_v17, %v17551_v36  ;;  %v9770_v0 = vmul.f32 %v17559_v29, %v17551_v36  ;;  %v9779_v49 = vmul.f32 %v9775_v8, %v17551_v36  ;;  %17566 = vst [vmem:[#allocation46_spill] sm:$0xff] %v9828_v1 }
 0x118   : > { %v9783_v15 = vmul.f32 %v17523_v54, %v17551_v36  ;;  %v9787_v2 = vmul.f32 %v17561_v26, %v17551_v36  ;;  %v9791_v37 = vmul.f32 %v17562_v63, %v17551_v36  ;;  %v9795_v43 = vmul.f32 %v17563_v20, %v17551_v36  ;;  %17567 = vst [vmem:[#allocation11_spill] sm:$0xff] %v9835_v42  ;;  %v17575_v20 = vld [vmem:[#allocation57_spill] sm:$0xff]  ;;  %v17576_v26 = vld [vmem:[#allocation32_spill] sm:$0xff]  ;;  %v17577_v54 = vld [vmem:[#allocation42_spill] sm:$0xff] }
 0x119   : > { %v9801_v7 = vmul.f32 %v7528_v6, %v17551_v36  ;;  %v9807_v16 = vmul.f32 %v7529_v59, %v17551_v36  ;;  %v9816_v18 = vmul.f32 %v9812_v60, %v17551_v36  ;;  %v1720_v55 = vmul.f32 %v9821_v51, %v17551_v36  ;;  %17569 = vst [vmem:[#allocation49_spill] sm:$0xff] %v9844_v24  ;;  %v17570_v51 = vld [vmem:[#allocation25_spill] sm:$0xff] }
 0x11a   : > { %v1721_v19 = vmul.f32 %v9828_v1, %v17551_v36  ;;  %v1722_v35 = vmul.f32 %v9835_v42, %v17551_v36  ;;  %v1723_v61 = vmul.f32 %v17568_v21, %v17551_v36  ;;  %v1766_v50 = vrot.slane %v1701_v30, 2  ;;  %v9853_v21 = vld [vmem:[%s16630_s0 + $0x128] sm:$0xff] }
 0x11b   : > { %v1767_v5 = vrot.slane %v1702_v25, 2  ;;  %v1724_v6 = vmul.f32 %v9844_v24, %v17551_v36  ;;  %v1769_v59 = vrot.slane %v1703_v62, 2  ;;  %v1770_v1 = vrot.slane %v1704_v33, 2  ;;  %17571 = vst [vmem:[#allocation48_spill] sm:$0xff] %v9853_v21  ;;  %v17572_v25 = vld [vmem:[#allocation29_spill] sm:$0xff]  ;;  %v17574_v33 = vld [vmem:[#allocation30_spill] sm:$0xff] }
 0x11c   : > { %v1725_v60 = vmul.f32 %v17570_v51, %v17551_v36  ;;  %v1726_v30 = vmul.f32 %v9853_v21, %v17551_v36  ;;  %v1727_v42 = vmul.f32 %v17572_v25, %v17551_v36  ;;  %v9862_v24 = vld [vmem:[%s16630_s0 + $0x138] sm:$0xff]  ;;  %v1729_v51 = vmul.f32 %v17574_v33, %v17551_v36 }
 0x11d   : > { %17573 = vst [vmem:[#allocation36_spill] sm:$0xff] %v9862_v24  ;;  %v1728_v62 = vmul.f32 %v9862_v24, %v17551_v36  ;;  %v1730_v63 = vmul.f32 %v17575_v20, %v17551_v36  ;;  %v1731_v21 = vmul.f32 %v17576_v26, %v17551_v36  ;;  %v1732_v25 = vmul.f32 %v17577_v54, %v17551_v36 }
 0x11e   : > { %v1768_v8 = vsel %vm1765_vm1, %v1766_v50, %v1767_v5  ;;  %v1772_v29 = vrot.slane %v9731_v44, 2  ;;  %v1773_v17 = vrot.slane %v9740_v22, 2  ;;  %v1775_v24 = vrot.slane %v9744_v38, 2 }
 0x11f   : > { %v1771_v52 = vsel %vm1765_vm1, %v1769_v59, %v1770_v1  ;;  %v1776_v33 = vrot.slane %v9753_v11, 2  ;;  %v1778_v20 = vrot.slane %v9757_v28, 2  ;;  %v1779_v53 = vrot.slane %v9766_v45, 2 }
 0x120   : > { %v1781_v26 = vrot.slane %v9770_v0, 2  ;;  %v1782_v36 = vrot.slane %v9779_v49, 2  ;;  %v1784_v50 = vrot.slane %v9783_v15, 2  ;;  %v1785_v44 = vrot.slane %v9787_v2, 2 }
 0x121   : > { %v1787_v22 = vrot.slane %v9791_v37, 2  ;;  %v1788_v38 = vrot.slane %v9795_v43, 2  ;;  %v1790_v1 = vrot.slane %v9801_v7, 2  ;;  %v1791_v11 = vrot.slane %v9807_v16, 2 }
 0x122   : > { %v1793_v28 = vrot.slane %v9816_v18, 2  ;;  %v1794_v5 = vrot.slane %v1720_v55, 2  ;;  %v1796_v45 = vrot.slane %v1721_v19, 2  ;;  %v1797_v59 = vrot.slane %v1722_v35, 2 }
 0x123   : > { %v1799_v0 = vrot.slane %v1723_v61, 2  ;;  %v1800_v54 = vrot.slane %v1724_v6, 2  ;;  %v1802_v49 = vrot.slane %v1725_v60, 2  ;;  %v1803_v23 = vrot.slane %v1726_v30, 2  ;;  %v17588_v6 = vld [vmem:[#allocation26_spill] sm:$0xff] }
 0x124   : > { %v1805_v15 = vrot.slane %v1727_v42, 2  ;;  %v1806_v57 = vrot.slane %v1728_v62, 2  ;;  %v1808_v2 = vrot.slane %v1729_v51, 2  ;;  %v1809_v47 = vrot.slane %v1730_v63, 2  ;;  %v17589_v62 = vld [vmem:[#allocation12_spill] sm:$0xff] }
 0x125   : > { %v1774_v37 = vsel %vm1765_vm1, %v1772_v29, %v1773_v17  ;;  %v1777_v43 = vsel %vm1765_vm1, %v1775_v24, %v1776_v33  ;;  %v1811_v7 = vrot.slane %v1731_v21, 2  ;;  %v1812_v12 = vrot.slane %v1732_v25, 2  ;;  %v7540_v25 = vld [vmem:[%s16631_s1 + $0x20] sm:$0xff] }
 0x126   : > { %v1780_v16 = vsel %vm1765_vm1, %v1778_v20, %v1779_v53  ;;  %v1783_v18 = vsel %vm1765_vm1, %v1781_v26, %v1782_v36  ;;  %v1786_v55 = vsel %vm1765_vm1, %v1784_v50, %v1785_v44  ;;  %v1789_v19 = vsel %vm1765_vm1, %v1787_v22, %v1788_v38  ;;  %v7541_v36 = vld [vmem:[%s16631_s1 + $0x28] sm:$0xff]  ;;  %v17591_v50 = vld [vmem:[#allocation13_spill] sm:$0xff] }
 0x127   : > { %v1792_v60 = vsel %vm1765_vm1, %v1790_v1, %v1791_v11  ;;  %v1795_v42 = vsel %vm1765_vm1, %v1793_v28, %v1794_v5  ;;  %v1798_v63 = vsel %vm1765_vm1, %v1796_v45, %v1797_v59  ;;  %v1801_v17 = vsel %vm1765_vm1, %v1799_v0, %v1800_v54  ;;  %v17593_v22 = vld [vmem:[#allocation21_spill] sm:$0xff]  ;;  %v17594_v1 = vld [vmem:[#allocation23_spill] sm:$0xff]  ;;  %v17595_v11 = vld [vmem:[#allocation16_spill] sm:$0xff] }
 0x128   : > { %v1804_v29 = vsel %vm1765_vm1, %v1802_v49, %v1803_v23  ;;  %v1807_v51 = vsel %vm1765_vm1, %v1805_v15, %v1806_v57  ;;  %v1810_v53 = vsel %vm1765_vm1, %v1808_v2, %v1809_v47  ;;  %v9905_v26 = vadd.f32 %v1768_v8, %v9654_v48  ;;  %v17596_v5 = vld [vmem:[#allocation53_spill] sm:$0xff]  ;;  %v17597_v59 = vld [vmem:[#allocation27_spill] sm:$0xff]  ;;  %v17598_v49 = vld [vmem:[#allocation54_spill] sm:$0xff] }
 0x129   : > { %v1813_v20 = vsel %vm1765_vm1, %v1811_v7, %v1812_v12  ;;  %v9909_v35 = vadd.f32 %v1771_v52, %v9657_v9  ;;  %v9912_v21 = vadd.f32 %v1774_v37, %v9661_v4  ;;  %v9915_v61 = vadd.f32 %v1777_v43, %v9664_v58  ;;  %v7537_v9 = vld [vmem:[%s16631_s1 + $0x8] sm:$0xff]  ;;  %v17578_v12 = vld [vmem:[#allocation10_spill] sm:$0xff] }
 0x12a   : > { %v9918_v54 = vadd.f32 %v1780_v16, %v9667_v56  ;;  %v9921_v57 = vadd.f32 %v1783_v18, %v9670_v14  ;;  %v9924_v48 = vadd.f32 %v1786_v55, %v9673_v32  ;;  %v1849_v47 = vrot.slane %v7537_v9, %v17578_v12  ;;  %v17599_v2 = vld [vmem:[#allocation43_spill] sm:$0xff]  ;;  %v17607_v9 = vld [vmem:[#allocation58_spill] sm:$0xff] }
 0x12b   : > { %v9931_v4 = vadd.f32 %v1789_v19, %v9676_v41  ;;  %v9934_v58 = vadd.f32 %v1792_v60, %v9679_v46  ;;  %v9937_v56 = vadd.f32 %v1795_v42, %v9682_v31  ;;  %v9940_v14 = vadd.f32 %v1798_v63, %v9685_v10  ;;  %v7538_v31 = vld [vmem:[%s16631_s1 + $0x10] sm:$0xff]  ;;  %v17582_v10 = vld [vmem:[#allocation6_spill] sm:$0xff]  ;;  %v17600_v43 = vld [vmem:[#allocation55_spill] sm:$0xff] }
 0x12c   : > { %v9943_v32 = vadd.f32 %v1801_v17, %v9688_v27  ;;  %v9946_v23 = vadd.f32 %v1804_v29, %v9691_v13  ;;  %v9949_v52 = vadd.f32 %v1807_v51, %v9694_v3  ;;  %v9952_v41 = vadd.f32 %v1810_v53, %v9697_v39  ;;  %v17584_v27 = vld [vmem:[#allocation8_spill] sm:$0xff]  ;;  %v7539_v13 = vld [vmem:[%s16631_s1 + $0x18] sm:$0xff]  ;;  %v17601_v16 = vld [vmem:[#allocation7_spill] sm:$0xff] }
 0x12d   : > { %v9955_v46 = vadd.f32 %v1813_v20, %v9700_v34  ;;  %v9961_v8 = vrot.slane %v7538_v31, %v17582_v10  ;;  %v9964_v24 = vrot.slane %v7538_v31, %v17584_v27  ;;  %v17586_v3 = vld [vmem:[#allocation9_spill] sm:$0xff]  ;;  %v1850_v34 = vmul.f32 %v9713_v40, %v1849_v47  ;;  %v17602_v55 = vld [vmem:[#allocation39_spill] sm:$0xff]  ;;  %v17605_v29 = vld [vmem:[#allocation20_spill] sm:$0xff] }
 0x12e   : > { %17579 = vst [vmem:[#allocation19_spill] sm:$0xff] %v9949_v52  ;;  %17580 = vst [vmem:[#allocation37_spill] sm:$0xff] %v9952_v41  ;;  %v9970_v39 = vrot.slane %v7539_v13, %v17586_v3  ;;  %v1851_v30 = vmul.f32 %v17588_v6, %v1849_v47  ;;  %v9978_v33 = vrot.slane %v7540_v25, %v17589_v62  ;;  %v17603_v60 = vld [vmem:[#allocation45_spill] sm:$0xff]  ;;  %v10002_v53 = vld [vmem:[%s16630_s0 + $0x88] sm:$0xff] }
 0x12f   : > { %17581 = vst [vmem:[#allocation34_spill] sm:$0xff] %v9955_v46  ;;  %17583 = vst [vmem:[#allocation44_spill] sm:$0xff] %v9961_v8  ;;  %v9984_v44 = vrot.slane %v7541_v36, %v17591_v50  ;;  %v1852_v38 = vmul.f32 %v17593_v22, %v1849_v47  ;;  %v1853_v40 = vmul.f32 %v17594_v1, %v1849_v47  ;;  %v17604_v63 = vld [vmem:[#allocation41_spill] sm:$0xff]  ;;  %v17608_v13 = vld [vmem:[#allocation14_spill] sm:$0xff] }
 0x130   : > { %17585 = vst [vmem:[#allocation28_spill] sm:$0xff] %v9964_v24  ;;  %17587 = vst [vmem:[#allocation50_spill] sm:$0xff] %v9970_v39  ;;  %v1854_v28 = vmul.f32 %v17595_v11, %v1849_v47  ;;  %v1855_v45 = vmul.f32 %v17596_v5, %v1849_v47  ;;  %v1856_v0 = vmul.f32 %v17597_v59, %v1849_v47  ;;  %v17609_v25 = vld [vmem:[#allocation46_spill] sm:$0xff]  ;;  %v17610_v11 = vld [vmem:[#allocation11_spill] sm:$0xff]  ;;  %v1915_v62 = vrot.slane %v1851_v30, 2 }
 0x131   : > { %17590 = vst [vmem:[#allocation33_spill] sm:$0xff] %v9978_v33  ;;  %17592 = vst [vmem:[#allocation15_spill] sm:$0xff] %v9984_v44  ;;  %v1857_v15 = vmul.f32 %v17598_v49, %v1849_v47  ;;  %v1858_v37 = vmul.f32 %v17599_v2, %v1849_v47  ;;  %v1859_v7 = vmul.f32 %v17600_v43, %v1849_v47  ;;  %v17611_v2 = vld [vmem:[#allocation24_spill] sm:$0xff]  ;;  %v1917_v3 = vrot.slane %v1852_v38, 2  ;;  %v17613_v10 = vld [vmem:[#allocation25_spill] sm:$0xff] }
 0x132   : > { %v1860_v18 = vmul.f32 %v17601_v16, %v1849_v47  ;;  %v1861_v19 = vmul.f32 %v17602_v55, %v1849_v47  ;;  %v1862_v42 = vmul.f32 %v17603_v60, %v1849_v47  ;;  %v1863_v17 = vmul.f32 %v17604_v63, %v1849_v47  ;;  %17606 = vst [vmem:[#allocation40_spill] sm:$0xff] %v10002_v53  ;;  %v17612_v60 = vld [vmem:[#allocation49_spill] sm:$0xff]  ;;  %v17614_v44 = vld [vmem:[#allocation48_spill] sm:$0xff]  ;;  %v17620_v43 = vld [vmem:[#allocation42_spill] sm:$0xff] }
 0x133   : > { %v1864_v51 = vmul.f32 %v17605_v29, %v1849_v47  ;;  %v1865_v20 = vmul.f32 %v10002_v53, %v1849_v47  ;;  %v1866_v31 = vmul.f32 %v17607_v9, %v1849_v47  ;;  %v1867_v6 = vmul.f32 %v17608_v13, %v1849_v47  ;;  %v17615_v39 = vld [vmem:[#allocation29_spill] sm:$0xff]  ;;  %v17616_v24 = vld [vmem:[#allocation36_spill] sm:$0xff]  ;;  %v17617_v53 = vld [vmem:[#allocation30_spill] sm:$0xff] }
 0x134   : > { %v1868_v36 = vmul.f32 %v17609_v25, %v1849_v47  ;;  %v1869_v59 = vmul.f32 %v17610_v11, %v1849_v47  ;;  %v1870_v16 = vmul.f32 %v17611_v2, %v1849_v47  ;;  %v1871_v50 = vmul.f32 %v17612_v60, %v1849_v47  ;;  %v17618_v63 = vld [vmem:[#allocation57_spill] sm:$0xff]  ;;  %v17619_v55 = vld [vmem:[#allocation32_spill] sm:$0xff] }
 0x135   : > { %v1914_v29 = vrot.slane %v1850_v34, 2  ;;  %v1918_v27 = vrot.slane %v1853_v40, 2  ;;  %v1872_v12 = vmul.f32 %v17613_v10, %v1849_v47  ;;  %v1873_v33 = vmul.f32 %v17614_v44, %v1849_v47  ;;  %v17621_v34 = vld [vmem:[#allocation56_spill] sm:$0xff]  ;;  %v10023_v10 = vld [vmem:[%s16630_s0 + $0x168] sm:$0xff] }
 0x136   : > { %v1874_v9 = vmul.f32 %v17615_v39, %v1849_v47  ;;  %v1875_v13 = vmul.f32 %v17616_v24, %v1849_v47  ;;  %v1876_v25 = vmul.f32 %v17617_v53, %v1849_v47  ;;  %v1877_v11 = vmul.f32 %v17618_v63, %v1849_v47  ;;  %17622 = vst [vmem:[#allocation31_spill] sm:$0xff] %v10023_v10 }
 0x137   : > { %v1878_v2 = vmul.f32 %v17619_v55, %v1849_v47  ;;  %v1879_v60 = vmul.f32 %v17620_v43, %v1849_v47  ;;  %v1880_v30 = vmul.f32 %v17621_v34, %v1849_v47  ;;  %v1881_v38 = vmul.f32 %v10023_v10, %v1849_v47 }
 0x138   : > { %v1920_v39 = vrot.slane %v1854_v28, 2  ;;  %v1921_v40 = vrot.slane %v1855_v45, 2  ;;  %v1916_v24 = vsel %vm1765_vm1, %v1914_v29, %v1915_v62  ;;  %v1919_v53 = vsel %vm1765_vm1, %v1917_v3, %v1918_v27 }
 0x139   : > { %v1923_v63 = vrot.slane %v1856_v0, 2  ;;  %v1924_v44 = vrot.slane %v1857_v15, 2  ;;  %v1926_v55 = vrot.slane %v1858_v37, 2  ;;  %v1927_v49 = vrot.slane %v1859_v7, 2 }
 0x13a   : > { %v1929_v43 = vrot.slane %v1860_v18, 2  ;;  %v1930_v5 = vrot.slane %v1861_v19, 2  ;;  %v1932_v34 = vrot.slane %v1862_v42, 2  ;;  %v1933_v1 = vrot.slane %v1863_v17, 2 }
 0x13b   : > { %v1935_v22 = vrot.slane %v1864_v51, 2  ;;  %v1936_v8 = vrot.slane %v1865_v20, 2  ;;  %v1938_v46 = vrot.slane %v1866_v31, 2  ;;  %v1939_v41 = vrot.slane %v1867_v6, 2 }
 0x13c   : > { %v1941_v52 = vrot.slane %v1868_v36, 2  ;;  %v1942_v47 = vrot.slane %v1869_v59, 2  ;;  %v1944_v28 = vrot.slane %v1870_v16, 2  ;;  %v1945_v45 = vrot.slane %v1871_v50, 2 }
 0x13d   : > { %v1947_v10 = vrot.slane %v1872_v12, 2  ;;  %v1948_v62 = vrot.slane %v1873_v33, 2  ;;  %v1950_v29 = vrot.slane %v1874_v9, 2  ;;  %v1951_v27 = vrot.slane %v1875_v13, 2  ;;  %v10106_v13 = vld [vmem:[%s16630_s0 + $0x40] sm:$0xff] }
 0x13e   : > { %v1953_v3 = vrot.slane %v1876_v25, 2  ;;  %v1954_v0 = vrot.slane %v1877_v11, 2  ;;  %v1922_v15 = vsel %vm1765_vm1, %v1920_v39, %v1921_v40  ;;  %v1925_v37 = vsel %vm1765_vm1, %v1923_v63, %v1924_v44  ;;  %v17627_v11 = vld [vmem:[#allocation21_spill] sm:$0xff]  ;;  %17631 = vst [vmem:[#allocation38_spill] sm:$0xff] %v10106_v13  ;;  %v17634_v40 = vld [vmem:[#allocation55_spill] sm:$0xff] }
 0x13f   : > { %v1956_v7 = vrot.slane %v1878_v2, 2  ;;  %v1957_v18 = vrot.slane %v1879_v60, 2  ;;  %v1928_v19 = vsel %vm1765_vm1, %v1926_v55, %v1927_v49  ;;  %v1931_v42 = vsel %vm1765_vm1, %v1929_v43, %v1930_v5  ;;  %v17630_v60 = vld [vmem:[#allocation53_spill] sm:$0xff]  ;;  %v10132_v55 = vld [vmem:[%s16630_s0 + $0x60] sm:$0xff] }
 0x140   : > { %v1959_v17 = vrot.slane %v1880_v30, 2  ;;  %v1960_v51 = vrot.slane %v1881_v38, 2  ;;  %v1934_v50 = vsel %vm1765_vm1, %v1932_v34, %v1933_v1  ;;  %v1937_v12 = vsel %vm1765_vm1, %v1935_v22, %v1936_v8  ;;  %v17632_v30 = vld [vmem:[#allocation54_spill] sm:$0xff]  ;;  %v10119_v38 = vld [vmem:[%s16630_s0 + $0x50] sm:$0xff]  ;;  %17635 = vst [vmem:[#allocation51_spill] sm:$0xff] %v10132_v55 }
 0x141   : > { %v1940_v33 = vsel %vm1765_vm1, %v1938_v46, %v1939_v41  ;;  %v1943_v20 = vsel %vm1765_vm1, %v1941_v52, %v1942_v47  ;;  %v1946_v31 = vsel %vm1765_vm1, %v1944_v28, %v1945_v45  ;;  %v1949_v44 = vsel %vm1765_vm1, %v1947_v10, %v1948_v62  ;;  %17633 = vst [vmem:[#allocation52_spill] sm:$0xff] %v10119_v38  ;;  %v17636_v47 = vld [vmem:[#allocation39_spill] sm:$0xff]  ;;  %v10145_v45 = vld [vmem:[%s16630_s0 + $0x70] sm:$0xff] }
 0x142   : > { %v1952_v63 = vsel %vm1765_vm1, %v1950_v29, %v1951_v27  ;;  %v1955_v49 = vsel %vm1765_vm1, %v1953_v3, %v1954_v0  ;;  %v1958_v5 = vsel %vm1765_vm1, %v1956_v7, %v1957_v18  ;;  %v10042_v43 = vadd.f32 %v1916_v24, %v9905_v26  ;;  %17637 = vst [vmem:[#allocation47_spill] sm:$0xff] %v10145_v45  ;;  %v17638_v29 = vld [vmem:[#allocation41_spill] sm:$0xff]  ;;  %v10158_v3 = vld [vmem:[%s16630_s0 + $0x80] sm:$0xff]  ;;  %v17641_v7 = vld [vmem:[#allocation35_spill] sm:$0xff] }
 0x143   : > { %v10045_v1 = vadd.f32 %v1919_v53, %v9909_v35  ;;  %v10048_v41 = vadd.f32 %v1922_v15, %v9912_v21  ;;  %v1961_v52 = vsel %vm1765_vm1, %v1959_v17, %v1960_v51  ;;  %v10052_v46 = vadd.f32 %v1925_v37, %v9915_v61  ;;  %17639 = vst [vmem:[#allocation26_spill] sm:$0xff] %v10158_v3  ;;  %v17640_v15 = vld [vmem:[#allocation40_spill] sm:$0xff]  ;;  %v17643_v17 = vld [vmem:[#allocation46_spill] sm:$0xff] }
 0x144   : > { %v10055_v8 = vadd.f32 %v1928_v19, %v9918_v54  ;;  %v10058_v22 = vadd.f32 %v1931_v42, %v9921_v57  ;;  %v10061_v26 = vadd.f32 %v1934_v50, %v9924_v48  ;;  %v10064_v35 = vadd.f32 %v1937_v12, %v9931_v4  ;;  %v17623_v48 = vld [vmem:[#allocation19_spill] sm:$0xff]  ;;  %v17624_v4 = vld [vmem:[#allocation37_spill] sm:$0xff] }
 0x145   : > { %v10067_v21 = vadd.f32 %v1940_v33, %v9934_v58  ;;  %v10070_v24 = vadd.f32 %v1943_v20, %v9937_v56  ;;  %v10073_v61 = vadd.f32 %v1946_v31, %v9940_v14  ;;  %v10076_v54 = vadd.f32 %v1949_v44, %v9943_v32  ;;  %v17625_v58 = vld [vmem:[#allocation34_spill] sm:$0xff]  ;;  %v17626_v56 = vld [vmem:[#allocation44_spill] sm:$0xff]  ;;  %v17628_v14 = vld [vmem:[#allocation23_spill] sm:$0xff] }
 0x146   : > { %v10079_v57 = vadd.f32 %v1952_v63, %v9946_v23  ;;  %v10082_v6 = vadd.f32 %v1955_v49, %v17623_v48  ;;  %v10085_v25 = vadd.f32 %v1958_v5, %v17624_v4  ;;  %v10088_v36 = vadd.f32 %v1961_v52, %v17625_v58  ;;  %v10097_v32 = vld [vmem:[%s16630_s0 + $0x30] sm:$0xff]  ;;  %v10175_v19 = vld [vmem:[%s16630_s0 + $0x98] sm:$0xff]  ;;  %v17644_v50 = vld [vmem:[#allocation11_spill] sm:$0xff] }
 0x147   : > { %v1998_v59 = vmul.f32 %v17627_v11, %v17626_v56  ;;  %v1999_v16 = vmul.f32 %v17628_v14, %v17626_v56  ;;  %17629 = vst [vmem:[#allocation17_spill] sm:$0xff] %v10097_v32  ;;  %v2000_v23 = vmul.f32 %v10097_v32, %v17626_v56  ;;  %v2001_v9 = vmul.f32 %v17630_v60, %v17626_v56  ;;  %v10192_v33 = vld [vmem:[%s16630_s0 + $0x110] sm:$0xff]  ;;  %v17646_v31 = vld [vmem:[#allocation49_spill] sm:$0xff]  ;;  %v10205_v63 = vld [vmem:[%s16630_s0 + $0x120] sm:$0xff] }
 0x148   : > { %v10110_v2 = vmul.f32 %v10106_v13, %v17626_v56  ;;  %v10114_v10 = vmul.f32 %v17632_v30, %v17626_v56  ;;  %v10123_v39 = vmul.f32 %v10119_v38, %v17626_v56  ;;  %v10127_v53 = vmul.f32 %v17634_v40, %v17626_v56  ;;  %17642 = vst [vmem:[#allocation16_spill] sm:$0xff] %v10175_v19  ;;  %v17648_v5 = vld [vmem:[#allocation48_spill] sm:$0xff] }
 0x149   : > { %v10136_v34 = vmul.f32 %v10132_v55, %v17626_v56  ;;  %v10140_v28 = vmul.f32 %v17636_v47, %v17626_v56  ;;  %v10149_v62 = vmul.f32 %v10145_v45, %v17626_v56  ;;  %v10153_v27 = vmul.f32 %v17638_v29, %v17626_v56  ;;  %17645 = vst [vmem:[#allocation27_spill] sm:$0xff] %v10192_v33  ;;  %v10214_v14 = vld [vmem:[%s16630_s0 + $0x130] sm:$0xff] }
 0x14a   : > { %v10162_v0 = vmul.f32 %v10158_v3, %v17626_v56  ;;  %v10166_v37 = vmul.f32 %v17640_v15, %v17626_v56  ;;  %v10170_v18 = vmul.f32 %v17641_v7, %v17626_v56  ;;  %v10179_v42 = vmul.f32 %v10175_v19, %v17626_v56  ;;  %17647 = vst [vmem:[#allocation43_spill] sm:$0xff] %v10205_v63  ;;  %v10250_v19 = vld [vmem:[%s16630_s0 + $0x170] sm:$0xff] }
 0x14b   : > { %v10183_v51 = vmul.f32 %v17643_v17, %v17626_v56  ;;  %v10187_v12 = vmul.f32 %v17644_v50, %v17626_v56  ;;  %v10196_v20 = vmul.f32 %v10192_v33, %v17626_v56  ;;  %v10200_v44 = vmul.f32 %v17646_v31, %v17626_v56  ;;  %17649 = vst [vmem:[#allocation7_spill] sm:$0xff] %v10214_v14  ;;  %v17650_v17 = vld [vmem:[#allocation36_spill] sm:$0xff]  ;;  %v10241_v31 = vld [vmem:[%s16630_s0 + $0x160] sm:$0xff] }
 0x14c   : > { %v2018_v49 = vmul.f32 %v10205_v63, %v17626_v56  ;;  %v2019_v52 = vmul.f32 %v17648_v5, %v17626_v56  ;;  %v2062_v48 = vrot.slane %v1998_v59, 2  ;;  %v2063_v4 = vrot.slane %v1999_v16, 2  ;;  %v10223_v63 = vld [vmem:[%s16630_s0 + $0x140] sm:$0xff]  ;;  %v17652_v16 = vld [vmem:[#allocation57_spill] sm:$0xff]  ;;  %17655 = vst [vmem:[#allocation58_spill] sm:$0xff] %v10241_v31  ;;  %17657 = vst [vmem:[#allocation14_spill] sm:$0xff] %v10250_v19 }
 0x14d   : > { %v2065_v58 = vrot.slane %v2000_v23, 2  ;;  %v2066_v11 = vrot.slane %v2001_v9, 2  ;;  %v2020_v7 = vmul.f32 %v10214_v14, %v17626_v56  ;;  %v2021_v50 = vmul.f32 %v17650_v17, %v17626_v56  ;;  %17651 = vst [vmem:[#allocation45_spill] sm:$0xff] %v10223_v63  ;;  %v10232_v9 = vld [vmem:[%s16630_s0 + $0x150] sm:$0xff]  ;;  %v17654_v17 = vld [vmem:[#allocation42_spill] sm:$0xff] }
 0x14e   : > { %v2022_v59 = vmul.f32 %v10223_v63, %v17626_v56  ;;  %v2023_v23 = vmul.f32 %v17652_v16, %v17626_v56  ;;  %17653 = vst [vmem:[#allocation20_spill] sm:$0xff] %v10232_v9  ;;  %v2024_v14 = vmul.f32 %v10232_v9, %v17626_v56  ;;  %v2025_v5 = vmul.f32 %v17654_v17, %v17626_v56  ;;  %v17656_v16 = vld [vmem:[#allocation31_spill] sm:$0xff]  ;;  %v10257_v17 = vld [vmem:[%s16630_s0 + $0x178] sm:$0xff] }
 0x14f   : > { %v2026_v63 = vmul.f32 %v10241_v31, %v17626_v56  ;;  %v2027_v33 = vmul.f32 %v17656_v16, %v17626_v56  ;;  %v2028_v9 = vmul.f32 %v10250_v19, %v17626_v56  ;;  %17658 = vst [vmem:[#allocation24_spill] sm:$0xff] %v10257_v17  ;;  %v2029_v15 = vmul.f32 %v10257_v17, %v17626_v56 }
 0x150   : > { %v2068_v31 = vrot.slane %v10110_v2, 2  ;;  %v2069_v16 = vrot.slane %v10114_v10, 2  ;;  %v2064_v3 = vsel %vm1765_vm1, %v2062_v48, %v2063_v4  ;;  %v2067_v29 = vsel %vm1765_vm1, %v2065_v58, %v2066_v11 }
 0x151   : > { %v2071_v45 = vrot.slane %v10123_v39, 2  ;;  %v2072_v19 = vrot.slane %v10127_v53, 2  ;;  %v2074_v47 = vrot.slane %v10136_v34, 2  ;;  %v2075_v55 = vrot.slane %v10140_v28, 2 }
 0x152   : > { %v2077_v40 = vrot.slane %v10149_v62, 2  ;;  %v2078_v56 = vrot.slane %v10153_v27, 2  ;;  %v2080_v2 = vrot.slane %v10162_v0, 2  ;;  %v2081_v10 = vrot.slane %v10166_v37, 2 }
 0x153   : > { %v2083_v48 = vrot.slane %v10170_v18, 2  ;;  %v2084_v4 = vrot.slane %v10179_v42, 2  ;;  %v2086_v39 = vrot.slane %v10183_v51, 2  ;;  %v2087_v53 = vrot.slane %v10187_v12, 2 }
 0x154   : > { %v2089_v34 = vrot.slane %v10196_v20, 2  ;;  %v2090_v28 = vrot.slane %v10200_v44, 2  ;;  %v2092_v58 = vrot.slane %v2018_v49, 2  ;;  %v2093_v62 = vrot.slane %v2019_v52, 2 }
 0x155   : > { %v2095_v11 = vrot.slane %v2020_v7, 2  ;;  %v2096_v27 = vrot.slane %v2021_v50, 2  ;;  %v2098_v17 = vrot.slane %v2022_v59, 2  ;;  %v2099_v0 = vrot.slane %v2023_v23, 2  ;;  %v17664_v59 = vld [vmem:[#allocation51_spill] sm:$0xff] }
 0x156   : > { %v2101_v38 = vrot.slane %v2024_v14, 2  ;;  %v2102_v37 = vrot.slane %v2025_v5, 2  ;;  %v2070_v18 = vsel %vm1765_vm1, %v2068_v31, %v2069_v16  ;;  %v2073_v42 = vsel %vm1765_vm1, %v2071_v45, %v2072_v19 }
 0x157   : > { %v2104_v30 = vrot.slane %v2026_v63, 2  ;;  %v2105_v51 = vrot.slane %v2027_v33, 2  ;;  %v2076_v12 = vsel %vm1765_vm1, %v2074_v47, %v2075_v55  ;;  %v2079_v20 = vsel %vm1765_vm1, %v2077_v40, %v2078_v56 }
 0x158   : > { %v2107_v13 = vrot.slane %v2028_v9, 2  ;;  %v2108_v44 = vrot.slane %v2029_v15, 2  ;;  %v2082_v49 = vsel %vm1765_vm1, %v2080_v2, %v2081_v10  ;;  %v2085_v52 = vsel %vm1765_vm1, %v2083_v48, %v2084_v4  ;;  %v17666_v9 = vld [vmem:[#allocation47_spill] sm:$0xff]  ;;  %v17667_v2 = vld [vmem:[#allocation41_spill] sm:$0xff]  ;;  %v17668_v48 = vld [vmem:[#allocation26_spill] sm:$0xff] }
 0x159   : > { %v2088_v7 = vsel %vm1765_vm1, %v2086_v39, %v2087_v53  ;;  %v2091_v5 = vsel %vm1765_vm1, %v2089_v34, %v2090_v28  ;;  %v2094_v31 = vsel %vm1765_vm1, %v2092_v58, %v2093_v62  ;;  %v2097_v45 = vsel %vm1765_vm1, %v2095_v11, %v2096_v27  ;;  %v17669_v39 = vld [vmem:[#allocation40_spill] sm:$0xff]  ;;  %v10397_v11 = vld [vmem:[%s16630_s0 + $0xa0] sm:$0xff] }
 0x15a   : > { %v2100_v19 = vsel %vm1765_vm1, %v2098_v17, %v2099_v0  ;;  %v2103_v55 = vsel %vm1765_vm1, %v2101_v38, %v2102_v37  ;;  %v2106_v40 = vsel %vm1765_vm1, %v2104_v30, %v2105_v51  ;;  %v10293_v47 = vadd.f32 %v2064_v3, %v10042_v43  ;;  %v10384_v34 = vld [vmem:[%s16630_s0 + $0x90] sm:$0xff]  ;;  %17672 = vst [vmem:[#allocation29_spill] sm:$0xff] %v10397_v11  ;;  %v10404_v0 = vld [vmem:[%s16630_s0 + $0xa8] sm:$0xff]  ;;  %v17675_v51 = vld [vmem:[#allocation49_spill] sm:$0xff] }
 0x15b   : > { %v10296_v15 = vadd.f32 %v2067_v29, %v10045_v1  ;;  %v10299_v33 = vadd.f32 %v2070_v18, %v10048_v41  ;;  %v2109_v63 = vsel %vm1765_vm1, %v2107_v13, %v2108_v44  ;;  %v10303_v14 = vadd.f32 %v2073_v42, %v10052_v46  ;;  %17670 = vst [vmem:[#allocation25_spill] sm:$0xff] %v10384_v34  ;;  %v17671_v58 = vld [vmem:[#allocation16_spill] sm:$0xff]  ;;  %v17674_v18 = vld [vmem:[#allocation27_spill] sm:$0xff] }
 0x15c   : > { %v10306_v17 = vadd.f32 %v2076_v12, %v10055_v8  ;;  %v10309_v38 = vadd.f32 %v2079_v20, %v10058_v22  ;;  %v10312_v43 = vadd.f32 %v2082_v49, %v10061_v26  ;;  %v10315_v1 = vadd.f32 %v2085_v52, %v10064_v35  ;;  %17673 = vst [vmem:[#allocation30_spill] sm:$0xff] %v10404_v0  ;;  %v17676_v20 = vld [vmem:[#allocation43_spill] sm:$0xff]  ;;  %v17677_v49 = vld [vmem:[#allocation48_spill] sm:$0xff] }
 0x15d   : > { %v10318_v41 = vadd.f32 %v2088_v7, %v10067_v21  ;;  %v10321_v13 = vadd.f32 %v2091_v5, %v10070_v24  ;;  %v10324_v46 = vadd.f32 %v2094_v31, %v10073_v61  ;;  %v10327_v8 = vadd.f32 %v2097_v45, %v10076_v54  ;;  %v17659_v24 = vld [vmem:[#allocation28_spill] sm:$0xff]  ;;  %v17660_v54 = vld [vmem:[#allocation38_spill] sm:$0xff]  ;;  %v17678_v7 = vld [vmem:[#allocation7_spill] sm:$0xff] }
 0x15e   : > { %v10330_v22 = vadd.f32 %v2100_v19, %v10079_v57  ;;  %v10333_v26 = vadd.f32 %v2103_v55, %v10082_v6  ;;  %v10336_v35 = vadd.f32 %v2106_v40, %v10085_v25  ;;  %v10339_v21 = vadd.f32 %v2109_v63, %v10088_v36  ;;  %v17661_v57 = vld [vmem:[#allocation54_spill] sm:$0xff]  ;;  %v17662_v6 = vld [vmem:[#allocation52_spill] sm:$0xff]  ;;  %v17663_v25 = vld [vmem:[#allocation55_spill] sm:$0xff] }
 0x15f   : > { %v2146_v30 = vmul.f32 %v10097_v32, %v17659_v24  ;;  %v2147_v61 = vmul.f32 %v17630_v60, %v17659_v24  ;;  %v2148_v29 = vmul.f32 %v17660_v54, %v17659_v24  ;;  %v2149_v3 = vmul.f32 %v17661_v57, %v17659_v24  ;;  %v17665_v60 = vld [vmem:[#allocation39_spill] sm:$0xff]  ;;  %v17679_v31 = vld [vmem:[#allocation36_spill] sm:$0xff] }
 0x160   : > { %v10351_v50 = vmul.f32 %v17662_v6, %v17659_v24  ;;  %v10355_v36 = vmul.f32 %v17663_v25, %v17659_v24  ;;  %v10359_v16 = vmul.f32 %v17664_v59, %v17659_v24  ;;  %v10363_v23 = vmul.f32 %v17665_v60, %v17659_v24 }
 0x161   : > { %v10367_v56 = vmul.f32 %v17666_v9, %v17659_v24  ;;  %v10371_v10 = vmul.f32 %v17667_v2, %v17659_v24  ;;  %v10375_v4 = vmul.f32 %v17668_v48, %v17659_v24  ;;  %v10379_v53 = vmul.f32 %v17669_v39, %v17659_v24 }
 0x162   : > { %v10388_v28 = vmul.f32 %v10384_v34, %v17659_v24  ;;  %v10392_v62 = vmul.f32 %v17671_v58, %v17659_v24  ;;  %v2160_v27 = vmul.f32 %v10397_v11, %v17659_v24  ;;  %v2161_v37 = vmul.f32 %v10404_v0, %v17659_v24 }
 0x163   : > { %v2162_v42 = vmul.f32 %v17674_v18, %v17659_v24  ;;  %v2163_v12 = vmul.f32 %v17675_v51, %v17659_v24  ;;  %v2164_v44 = vmul.f32 %v17676_v20, %v17659_v24  ;;  %v2165_v52 = vmul.f32 %v17677_v49, %v17659_v24  ;;  %v17680_v18 = vld [vmem:[#allocation45_spill] sm:$0xff]  ;;  %v17682_v20 = vld [vmem:[#allocation20_spill] sm:$0xff]  ;;  %v17683_v49 = vld [vmem:[#allocation42_spill] sm:$0xff] }
 0x164   : > { %v2166_v5 = vmul.f32 %v17678_v7, %v17659_v24  ;;  %v2167_v45 = vmul.f32 %v17679_v31, %v17659_v24  ;;  %v2210_v19 = vrot.slane %v2146_v30, 2  ;;  %v2211_v55 = vrot.slane %v2147_v61, 2  ;;  %v17681_v51 = vld [vmem:[#allocation57_spill] sm:$0xff]  ;;  %v17684_v7 = vld [vmem:[#allocation58_spill] sm:$0xff]  ;;  %v17685_v30 = vld [vmem:[#allocation31_spill] sm:$0xff] }
 0x165   : > { %v2213_v40 = vrot.slane %v2148_v29, 2  ;;  %v2214_v63 = vrot.slane %v2149_v3, 2  ;;  %v2168_v32 = vmul.f32 %v17680_v18, %v17659_v24  ;;  %v2169_v0 = vmul.f32 %v17681_v51, %v17659_v24  ;;  %v17686_v29 = vld [vmem:[#allocation14_spill] sm:$0xff]  ;;  %v17687_v18 = vld [vmem:[#allocation24_spill] sm:$0xff] }
 0x166   : > { %v2170_v11 = vmul.f32 %v17682_v20, %v17659_v24  ;;  %v2171_v58 = vmul.f32 %v17683_v49, %v17659_v24  ;;  %v2172_v34 = vmul.f32 %v17684_v7, %v17659_v24  ;;  %v2173_v61 = vmul.f32 %v17685_v30, %v17659_v24  ;;  %v10439_v51 = vld [vmem:[%s16630_s0 + $0x180] sm:$0xff]  ;;  %v10446_v7 = vld [vmem:[%s16630_s0 + $0x188] sm:$0xff] }
 0x167   : > { %v2174_v3 = vmul.f32 %v17686_v29, %v17659_v24  ;;  %v2175_v31 = vmul.f32 %v17687_v18, %v17659_v24  ;;  %17688 = vst [vmem:[#allocation32_spill] sm:$0xff] %v10439_v51  ;;  %v2176_v49 = vmul.f32 %v10439_v51, %v17659_v24  ;;  %17689 = vst [vmem:[#allocation56_spill] sm:$0xff] %v10446_v7  ;;  %v2216_v29 = vrot.slane %v10351_v50, 2 }
 0x168   : > { %v2177_v30 = vmul.f32 %v10446_v7, %v17659_v24  ;;  %v2217_v18 = vrot.slane %v10355_v36, 2  ;;  %v2212_v20 = vsel %vm1765_vm1, %v2210_v19, %v2211_v55  ;;  %v2215_v39 = vsel %vm1765_vm1, %v2213_v40, %v2214_v63 }
 0x169   : > { %v2219_v48 = vrot.slane %v10359_v16, 2  ;;  %v2220_v51 = vrot.slane %v10363_v23, 2  ;;  %v2222_v2 = vrot.slane %v10367_v56, 2  ;;  %v2223_v9 = vrot.slane %v10371_v10, 2 }
 0x16a   : > { %v2225_v60 = vrot.slane %v10375_v4, 2  ;;  %v2226_v24 = vrot.slane %v10379_v53, 2  ;;  %v2228_v50 = vrot.slane %v10388_v28, 2  ;;  %v2229_v36 = vrot.slane %v10392_v62, 2 }
 0x16b   : > { %v2231_v7 = vrot.slane %v2160_v27, 2  ;;  %v2232_v19 = vrot.slane %v2161_v37, 2  ;;  %v2234_v55 = vrot.slane %v2162_v42, 2  ;;  %v2235_v40 = vrot.slane %v2163_v12, 2 }
 0x16c   : > { %v2237_v63 = vrot.slane %v2164_v44, 2  ;;  %v2238_v16 = vrot.slane %v2165_v52, 2  ;;  %v2240_v59 = vrot.slane %v2166_v5, 2  ;;  %v2241_v23 = vrot.slane %v2167_v45, 2  ;;  %v17697_v45 = vld [vmem:[#allocation47_spill] sm:$0xff] }
 0x16d   : > { %v2243_v25 = vrot.slane %v2168_v32, 2  ;;  %v2244_v56 = vrot.slane %v2169_v0, 2  ;;  %v2246_v6 = vrot.slane %v2170_v11, 2  ;;  %v2247_v10 = vrot.slane %v2171_v58, 2 }
 0x16e   : > { %v2249_v57 = vrot.slane %v2172_v34, 2  ;;  %v2250_v4 = vrot.slane %v2173_v61, 2  ;;  %v2218_v53 = vsel %vm1765_vm1, %v2216_v29, %v2217_v18  ;;  %v2221_v28 = vsel %vm1765_vm1, %v2219_v48, %v2220_v51  ;;  %v17699_v29 = vld [vmem:[#allocation26_spill] sm:$0xff] }
 0x16f   : > { %v2252_v54 = vrot.slane %v2174_v3, 2  ;;  %v2253_v62 = vrot.slane %v2175_v31, 2  ;;  %v2224_v27 = vsel %vm1765_vm1, %v2222_v2, %v2223_v9  ;;  %v2227_v37 = vsel %vm1765_vm1, %v2225_v60, %v2226_v24  ;;  %v17700_v24 = vld [vmem:[#allocation40_spill] sm:$0xff] }
 0x170   : > { %v2255_v42 = vrot.slane %v2176_v49, 2  ;;  %v2256_v12 = vrot.slane %v2177_v30, 2  ;;  %v2230_v44 = vsel %vm1765_vm1, %v2228_v50, %v2229_v36  ;;  %v2233_v32 = vsel %vm1765_vm1, %v2231_v7, %v2232_v19  ;;  %v17698_v30 = vld [vmem:[#allocation41_spill] sm:$0xff] }
 0x171   : > { %v2236_v58 = vsel %vm1765_vm1, %v2234_v55, %v2235_v40  ;;  %v2239_v34 = vsel %vm1765_vm1, %v2237_v63, %v2238_v16  ;;  %v2242_v11 = vsel %vm1765_vm1, %v2240_v59, %v2241_v23  ;;  %v2245_v48 = vsel %vm1765_vm1, %v2243_v25, %v2244_v56  ;;  %v17691_v25 = vld [vmem:[#allocation38_spill] sm:$0xff]  ;;  %v17701_v36 = vld [vmem:[#allocation25_spill] sm:$0xff]  ;;  %v17702_v55 = vld [vmem:[#allocation16_spill] sm:$0xff] }
 0x172   : > { %v2248_v0 = vsel %vm1765_vm1, %v2246_v6, %v2247_v10  ;;  %v2251_v9 = vsel %vm1765_vm1, %v2249_v57, %v2250_v4  ;;  %v2254_v60 = vsel %vm1765_vm1, %v2252_v54, %v2253_v62  ;;  %v10476_v2 = vadd.f32 %v2212_v20, %v10293_v47  ;;  %v17703_v63 = vld [vmem:[#allocation29_spill] sm:$0xff]  ;;  %v17704_v23 = vld [vmem:[#allocation30_spill] sm:$0xff]  ;;  %v10571_v10 = vld [vmem:[%s16630_s0 + $0xb0] sm:$0xff] }
 0x173   : > { %v10479_v18 = vadd.f32 %v2215_v39, %v10296_v15  ;;  %v10482_v49 = vadd.f32 %v2218_v53, %v10299_v33  ;;  %v2257_v52 = vsel %vm1765_vm1, %v2255_v42, %v2256_v12  ;;  %v10486_v59 = vadd.f32 %v2221_v28, %v10303_v14  ;;  %17705 = vst [vmem:[#allocation19_spill] sm:$0xff] %v10571_v10  ;;  %v10578_v53 = vld [vmem:[%s16630_s0 + $0xb8] sm:$0xff]  ;;  %v17707_v62 = vld [vmem:[#allocation43_spill] sm:$0xff] }
 0x174   : > { %v10489_v6 = vadd.f32 %v2224_v27, %v10306_v17  ;;  %v10492_v57 = vadd.f32 %v2227_v37, %v10309_v38  ;;  %v10495_v47 = vadd.f32 %v2230_v44, %v10312_v43  ;;  %v10498_v15 = vadd.f32 %v2233_v32, %v10315_v1  ;;  %17706 = vst [vmem:[#allocation37_spill] sm:$0xff] %v10578_v53  ;;  %v17708_v37 = vld [vmem:[#allocation48_spill] sm:$0xff]  ;;  %v17709_v12 = vld [vmem:[#allocation7_spill] sm:$0xff] }
 0x175   : > { %v10501_v33 = vadd.f32 %v2236_v58, %v10318_v41  ;;  %v10504_v54 = vadd.f32 %v2239_v34, %v10321_v13  ;;  %v10507_v14 = vadd.f32 %v2242_v11, %v10324_v46  ;;  %v10510_v17 = vadd.f32 %v2245_v48, %v10327_v8  ;;  %v17690_v13 = vld [vmem:[#allocation50_spill] sm:$0xff]  ;;  %v17693_v8 = vld [vmem:[#allocation52_spill] sm:$0xff]  ;;  %v17711_v34 = vld [vmem:[#allocation45_spill] sm:$0xff] }
 0x176   : > { %v10513_v38 = vadd.f32 %v2248_v0, %v10330_v22  ;;  %v10516_v43 = vadd.f32 %v2251_v9, %v10333_v26  ;;  %v10519_v1 = vadd.f32 %v2254_v60, %v10336_v35  ;;  %v10522_v41 = vadd.f32 %v2257_v52, %v10339_v21  ;;  %v17692_v46 = vld [vmem:[#allocation54_spill] sm:$0xff]  ;;  %v17694_v22 = vld [vmem:[#allocation55_spill] sm:$0xff]  ;;  %v17710_v32 = vld [vmem:[#allocation36_spill] sm:$0xff] }
 0x177   : > { %v2294_v39 = vmul.f32 %v17691_v25, %v17690_v13  ;;  %v2295_v20 = vmul.f32 %v17692_v46, %v17690_v13  ;;  %v2296_v7 = vmul.f32 %v17693_v8, %v17690_v13  ;;  %v2297_v5 = vmul.f32 %v17694_v22, %v17690_v13  ;;  %v17695_v26 = vld [vmem:[#allocation51_spill] sm:$0xff]  ;;  %v17712_v48 = vld [vmem:[#allocation57_spill] sm:$0xff]  ;;  %v17715_v25 = vld [vmem:[#allocation58_spill] sm:$0xff] }
 0x178   : > { %v10534_v31 = vmul.f32 %v17695_v26, %v17690_v13  ;;  %v17696_v35 = vld [vmem:[#allocation39_spill] sm:$0xff]  ;;  %v10542_v51 = vmul.f32 %v17697_v45, %v17690_v13  ;;  %v2301_v61 = vmul.f32 %v17698_v30, %v17690_v13  ;;  %v10548_v3 = vmul.f32 %v17699_v29, %v17690_v13 }
 0x179   : > { %v10538_v21 = vmul.f32 %v17696_v35, %v17690_v13  ;;  %v10552_v50 = vmul.f32 %v17700_v24, %v17690_v13  ;;  %v10556_v19 = vmul.f32 %v17701_v36, %v17690_v13  ;;  %v2305_v40 = vmul.f32 %v17702_v55, %v17690_v13  ;;  %v17713_v35 = vld [vmem:[#allocation20_spill] sm:$0xff] }
 0x17a   : > { %v10562_v16 = vmul.f32 %v17703_v63, %v17690_v13  ;;  %v10566_v56 = vmul.f32 %v17704_v23, %v17690_v13  ;;  %v2308_v4 = vmul.f32 %v10571_v10, %v17690_v13  ;;  %v2309_v28 = vmul.f32 %v10578_v53, %v17690_v13 }
 0x17b   : > { %v2310_v27 = vmul.f32 %v17707_v62, %v17690_v13  ;;  %v2311_v42 = vmul.f32 %v17708_v37, %v17690_v13  ;;  %v2312_v44 = vmul.f32 %v17709_v12, %v17690_v13  ;;  %v2313_v58 = vmul.f32 %v17710_v32, %v17690_v13  ;;  %v17714_v37 = vld [vmem:[#allocation42_spill] sm:$0xff]  ;;  %v17716_v32 = vld [vmem:[#allocation31_spill] sm:$0xff] }
 0x17c   : > { %v2314_v11 = vmul.f32 %v17711_v34, %v17690_v13  ;;  %v2315_v0 = vmul.f32 %v17712_v48, %v17690_v13  ;;  %v2358_v9 = vrot.slane %v2294_v39, 2  ;;  %v2359_v60 = vrot.slane %v2295_v20, 2  ;;  %v17717_v34 = vld [vmem:[#allocation14_spill] sm:$0xff]  ;;  %v17718_v39 = vld [vmem:[#allocation24_spill] sm:$0xff] }
 0x17d   : > { %v2361_v52 = vrot.slane %v2296_v7, 2  ;;  %v2362_v46 = vrot.slane %v2297_v5, 2  ;;  %v2316_v30 = vmul.f32 %v17713_v35, %v17690_v13  ;;  %v2317_v62 = vmul.f32 %v17714_v37, %v17690_v13  ;;  %v17719_v7 = vld [vmem:[#allocation32_spill] sm:$0xff] }
 0x17e   : > { %v2318_v12 = vmul.f32 %v17715_v25, %v17690_v13  ;;  %v2319_v53 = vmul.f32 %v17716_v32, %v17690_v13  ;;  %v2320_v10 = vmul.f32 %v17717_v34, %v17690_v13  ;;  %v2321_v20 = vmul.f32 %v17718_v39, %v17690_v13  ;;  %v17720_v48 = vld [vmem:[#allocation56_spill] sm:$0xff]  ;;  %v10620_v34 = vld [vmem:[%s16630_s0 + $0x198] sm:$0xff] }
 0x17f   : > { %v2322_v5 = vmul.f32 %v17719_v7, %v17690_v13  ;;  %v2323_v35 = vmul.f32 %v17720_v48, %v17690_v13  ;;  %v10613_v37 = vld [vmem:[%s16630_s0 + $0x190] sm:$0xff]  ;;  %17722 = vst [vmem:[#allocation44_spill] sm:$0xff] %v10620_v34  ;;  %v2325_v39 = vmul.f32 %v10620_v34, %v17690_v13  ;;  %v2364_v7 = vrot.slane %v10534_v31, 2 }
 0x180   : > { %17721 = vst [vmem:[#allocation34_spill] sm:$0xff] %v10613_v37  ;;  %v2324_v32 = vmul.f32 %v10613_v37, %v17690_v13  ;;  %v2365_v48 = vrot.slane %v10538_v21, 2  ;;  %v2360_v25 = vsel %vm1765_vm1, %v2358_v9, %v2359_v60  ;;  %v2363_v23 = vsel %vm1765_vm1, %v2361_v52, %v2362_v46 }
 0x181   : > { %v2367_v63 = vrot.slane %v10542_v51, 2  ;;  %v2368_v55 = vrot.slane %v2301_v61, 2  ;;  %v2370_v37 = vrot.slane %v10548_v3, 2  ;;  %v2371_v36 = vrot.slane %v10552_v50, 2 }
 0x182   : > { %v2373_v24 = vrot.slane %v10556_v19, 2  ;;  %v2374_v29 = vrot.slane %v2305_v40, 2  ;;  %v2376_v13 = vrot.slane %v10562_v16, 2  ;;  %v2377_v31 = vrot.slane %v10566_v56, 2 }
 0x183   : > { %v2379_v34 = vrot.slane %v2308_v4, 2  ;;  %v2380_v21 = vrot.slane %v2309_v28, 2  ;;  %v2382_v45 = vrot.slane %v2310_v27, 2  ;;  %v2383_v9 = vrot.slane %v2311_v42, 2 }
 0x184   : > { %v2385_v60 = vrot.slane %v2312_v44, 2  ;;  %v2386_v52 = vrot.slane %v2313_v58, 2  ;;  %v2388_v46 = vrot.slane %v2314_v11, 2  ;;  %v2389_v51 = vrot.slane %v2315_v0, 2 }
 0x185   : > { %v2391_v61 = vrot.slane %v2316_v30, 2  ;;  %v2392_v26 = vrot.slane %v2317_v62, 2  ;;  %v2394_v3 = vrot.slane %v2318_v12, 2  ;;  %v2395_v22 = vrot.slane %v2319_v53, 2 }
 0x186   : > { %v2397_v50 = vrot.slane %v2320_v10, 2  ;;  %v2398_v8 = vrot.slane %v2321_v20, 2  ;;  %v2366_v19 = vsel %vm1765_vm1, %v2364_v7, %v2365_v48  ;;  %v2369_v40 = vsel %vm1765_vm1, %v2367_v63, %v2368_v55  ;;  %v17731_v7 = vld [vmem:[#allocation40_spill] sm:$0xff]  ;;  %v17732_v48 = vld [vmem:[#allocation25_spill] sm:$0xff] }
 0x187   : > { %v2400_v16 = vrot.slane %v2322_v5, 2  ;;  %v2401_v56 = vrot.slane %v2323_v35, 2  ;;  %v2372_v4 = vsel %vm1765_vm1, %v2370_v37, %v2371_v36  ;;  %v2375_v28 = vsel %vm1765_vm1, %v2373_v24, %v2374_v29  ;;  %v10716_v35 = vld [vmem:[%s16630_s0 + $0x78] sm:$0xff] }
 0x188   : > { %v2403_v27 = vrot.slane %v2324_v32, 2  ;;  %v2404_v42 = vrot.slane %v2325_v39, 2  ;;  %v2378_v44 = vsel %vm1765_vm1, %v2376_v13, %v2377_v31  ;;  %v2381_v62 = vsel %vm1765_vm1, %v2379_v34, %v2380_v21  ;;  %17729 = vst [vmem:[#allocation23_spill] sm:$0xff] %v10716_v35  ;;  %v17730_v39 = vld [vmem:[#allocation26_spill] sm:$0xff]  ;;  %v17733_v13 = vld [vmem:[#allocation16_spill] sm:$0xff]  ;;  %v17734_v21 = vld [vmem:[#allocation29_spill] sm:$0xff] }
 0x189   : > { %v2384_v53 = vsel %vm1765_vm1, %v2382_v45, %v2383_v9  ;;  %v2387_v10 = vsel %vm1765_vm1, %v2385_v60, %v2386_v52  ;;  %v2390_v12 = vsel %vm1765_vm1, %v2388_v46, %v2389_v51  ;;  %v2393_v55 = vsel %vm1765_vm1, %v2391_v61, %v2392_v26  ;;  %v17724_v26 = vld [vmem:[#allocation52_spill] sm:$0xff]  ;;  %v17735_v60 = vld [vmem:[#allocation30_spill] sm:$0xff]  ;;  %v17736_v46 = vld [vmem:[#allocation19_spill] sm:$0xff] }
 0x18a   : > { %v2396_v63 = vsel %vm1765_vm1, %v2394_v3, %v2395_v22  ;;  %v2399_v36 = vsel %vm1765_vm1, %v2397_v50, %v2398_v8  ;;  %v2402_v29 = vsel %vm1765_vm1, %v2400_v16, %v2401_v56  ;;  %v10648_v24 = vadd.f32 %v2360_v25, %v10476_v2  ;;  %v17737_v61 = vld [vmem:[#allocation37_spill] sm:$0xff]  ;;  %v10757_v50 = vld [vmem:[%s16630_s0 + $0xc0] sm:$0xff]  ;;  %v17740_v56 = vld [vmem:[#allocation7_spill] sm:$0xff] }
 0x18b   : > { %v10651_v32 = vadd.f32 %v2363_v23, %v10479_v18  ;;  %v10654_v45 = vadd.f32 %v2366_v19, %v10482_v49  ;;  %v2405_v58 = vsel %vm1765_vm1, %v2403_v27, %v2404_v42  ;;  %v10658_v34 = vadd.f32 %v2369_v40, %v10486_v59  ;;  %17738 = vst [vmem:[#allocation53_spill] sm:$0xff] %v10757_v50  ;;  %v10766_v40 = vld [vmem:[%s16630_s0 + $0xc8] sm:$0xff]  ;;  %v17742_v42 = vld [vmem:[#allocation45_spill] sm:$0xff] }
 0x18c   : > { %v10661_v22 = vadd.f32 %v2372_v4, %v10489_v6  ;;  %v10664_v8 = vadd.f32 %v2375_v28, %v10492_v57  ;;  %v10667_v2 = vadd.f32 %v2378_v44, %v10495_v47  ;;  %v10670_v18 = vadd.f32 %v2381_v62, %v10498_v15  ;;  %17739 = vst [vmem:[#allocation35_spill] sm:$0xff] %v10766_v40  ;;  %v17741_v28 = vld [vmem:[#allocation36_spill] sm:$0xff]  ;;  %v10779_v62 = vld [vmem:[%s16630_s0 + $0x148] sm:$0xff] }
 0x18d   : > { %v10673_v49 = vadd.f32 %v2384_v53, %v10501_v33  ;;  %v10676_v25 = vadd.f32 %v2387_v10, %v10504_v54  ;;  %v10679_v59 = vadd.f32 %v2390_v12, %v10507_v14  ;;  %v10682_v6 = vadd.f32 %v2393_v55, %v10510_v17  ;;  %v17723_v54 = vld [vmem:[#allocation33_spill] sm:$0xff]  ;;  %v17725_v14 = vld [vmem:[#allocation55_spill] sm:$0xff]  ;;  %17743 = vst [vmem:[#allocation46_spill] sm:$0xff] %v10779_v62  ;;  %v17744_v10 = vld [vmem:[#allocation20_spill] sm:$0xff] }
 0x18e   : > { %v10685_v57 = vadd.f32 %v2396_v63, %v10513_v38  ;;  %v10688_v47 = vadd.f32 %v2399_v36, %v10516_v43  ;;  %v10691_v15 = vadd.f32 %v2402_v29, %v10519_v1  ;;  %v10694_v33 = vadd.f32 %v2405_v58, %v10522_v41  ;;  %v17726_v17 = vld [vmem:[#allocation51_spill] sm:$0xff]  ;;  %v10788_v55 = vld [vmem:[%s16630_s0 + $0x158] sm:$0xff] }
 0x18f   : > { %v2442_v23 = vmul.f32 %v17724_v26, %v17723_v54  ;;  %v2443_v11 = vmul.f32 %v17725_v14, %v17723_v54  ;;  %v2444_v0 = vmul.f32 %v17726_v17, %v17723_v54  ;;  %v10705_v38 = vld [vmem:[%s16630_s0 + $0x68] sm:$0xff]  ;;  %v10720_v30 = vmul.f32 %v10716_v35, %v17723_v54  ;;  %17745 = vst [vmem:[#allocation11_spill] sm:$0xff] %v10788_v55 }
 0x190   : > { %17727 = vst [vmem:[#allocation21_spill] sm:$0xff] %v10705_v38  ;;  %v2445_v43 = vmul.f32 %v10705_v38, %v17723_v54  ;;  %v17728_v1 = vld [vmem:[#allocation47_spill] sm:$0xff]  ;;  %v10724_v20 = vmul.f32 %v17730_v39, %v17723_v54  ;;  %v10728_v5 = vmul.f32 %v17731_v7, %v17723_v54  ;;  %v10732_v37 = vmul.f32 %v17732_v48, %v17723_v54 }
 0x191   : > { %v10711_v41 = vmul.f32 %v17728_v1, %v17723_v54  ;;  %v10736_v31 = vmul.f32 %v17733_v13, %v17723_v54  ;;  %v10740_v9 = vmul.f32 %v17734_v21, %v17723_v54  ;;  %v10744_v52 = vmul.f32 %v17735_v60, %v17723_v54  ;;  %v17747_v26 = vld [vmem:[#allocation31_spill] sm:$0xff] }
 0x192   : > { %v10748_v51 = vmul.f32 %v17736_v46, %v17723_v54  ;;  %v10752_v3 = vmul.f32 %v17737_v61, %v17723_v54  ;;  %v10761_v19 = vmul.f32 %v10757_v50, %v17723_v54  ;;  %v2457_v16 = vmul.f32 %v10766_v40, %v17723_v54  ;;  %v17749_v40 = vld [vmem:[#allocation24_spill] sm:$0xff] }
 0x193   : > { %v2458_v4 = vmul.f32 %v17740_v56, %v17723_v54  ;;  %v2459_v27 = vmul.f32 %v17741_v28, %v17723_v54  ;;  %v2460_v44 = vmul.f32 %v17742_v42, %v17723_v54  ;;  %v2461_v53 = vmul.f32 %v10779_v62, %v17723_v54  ;;  %v17746_v28 = vld [vmem:[#allocation58_spill] sm:$0xff]  ;;  %v17750_v61 = vld [vmem:[#allocation32_spill] sm:$0xff] }
 0x194   : > { %v2462_v12 = vmul.f32 %v17744_v10, %v17723_v54  ;;  %v2463_v63 = vmul.f32 %v10788_v55, %v17723_v54  ;;  %v2506_v36 = vrot.slane %v2442_v23, 2  ;;  %v2507_v29 = vrot.slane %v2443_v11, 2  ;;  %v17748_v10 = vld [vmem:[#allocation14_spill] sm:$0xff]  ;;  %v17751_v23 = vld [vmem:[#allocation56_spill] sm:$0xff] }
 0x195   : > { %v2509_v58 = vrot.slane %v2444_v0, 2  ;;  %v2510_v14 = vrot.slane %v2445_v43, 2  ;;  %v2464_v56 = vmul.f32 %v17746_v28, %v17723_v54  ;;  %v2465_v62 = vmul.f32 %v17747_v26, %v17723_v54  ;;  %v17752_v0 = vld [vmem:[#allocation34_spill] sm:$0xff]  ;;  %v17753_v28 = vld [vmem:[#allocation44_spill] sm:$0xff] }
 0x196   : > { %v2466_v42 = vmul.f32 %v17748_v10, %v17723_v54  ;;  %v2467_v50 = vmul.f32 %v17749_v40, %v17723_v54  ;;  %v2468_v46 = vmul.f32 %v17750_v61, %v17723_v54  ;;  %v2469_v11 = vmul.f32 %v17751_v23, %v17723_v54  ;;  %v10811_v26 = vld [vmem:[%s16630_s0 + $0x1a0] sm:$0xff]  ;;  %v10818_v61 = vld [vmem:[%s16630_s0 + $0x1a8] sm:$0xff] }
 0x197   : > { %v2470_v43 = vmul.f32 %v17752_v0, %v17723_v54  ;;  %v2471_v55 = vmul.f32 %v17753_v28, %v17723_v54  ;;  %17754 = vst [vmem:[#allocation28_spill] sm:$0xff] %v10811_v26  ;;  %v2472_v40 = vmul.f32 %v10811_v26, %v17723_v54  ;;  %17755 = vst [vmem:[#allocation49_spill] sm:$0xff] %v10818_v61  ;;  %v2512_v0 = vrot.slane %v10711_v41, 2 }
 0x198   : > { %v2473_v23 = vmul.f32 %v10818_v61, %v17723_v54  ;;  %v2513_v28 = vrot.slane %v10720_v30, 2  ;;  %v2508_v10 = vsel %vm1765_vm1, %v2506_v36, %v2507_v29  ;;  %v2511_v60 = vsel %vm1765_vm1, %v2509_v58, %v2510_v14 }
 0x199   : > { %v2515_v21 = vrot.slane %v10724_v20, 2  ;;  %v2516_v26 = vrot.slane %v10728_v5, 2  ;;  %v2518_v13 = vrot.slane %v10732_v37, 2  ;;  %v2519_v48 = vrot.slane %v10736_v31, 2 }
 0x19a   : > { %v2521_v7 = vrot.slane %v10740_v9, 2  ;;  %v2522_v54 = vrot.slane %v10744_v52, 2  ;;  %v2524_v41 = vrot.slane %v10748_v51, 2  ;;  %v2525_v30 = vrot.slane %v10752_v3, 2 }
 0x19b   : > { %v2527_v36 = vrot.slane %v10761_v19, 2  ;;  %v2528_v29 = vrot.slane %v2457_v16, 2  ;;  %v2530_v58 = vrot.slane %v2458_v4, 2  ;;  %v2531_v14 = vrot.slane %v2459_v27, 2 }
 0x19c   : > { %v2533_v20 = vrot.slane %v2460_v44, 2  ;;  %v2534_v61 = vrot.slane %v2461_v53, 2  ;;  %v2536_v5 = vrot.slane %v2462_v12, 2  ;;  %v2537_v39 = vrot.slane %v2463_v63, 2  ;;  %v17763_v63 = vld [vmem:[#allocation25_spill] sm:$0xff] }
 0x19d   : > { %v2539_v37 = vrot.slane %v2464_v56, 2  ;;  %v2540_v35 = vrot.slane %v2465_v62, 2  ;;  %v2542_v31 = vrot.slane %v2466_v42, 2  ;;  %v2543_v1 = vrot.slane %v2467_v50, 2 }
 0x19e   : > { %v2545_v9 = vrot.slane %v2468_v46, 2  ;;  %v2546_v38 = vrot.slane %v2469_v11, 2  ;;  %v2514_v52 = vsel %vm1765_vm1, %v2512_v0, %v2513_v28  ;;  %v2517_v51 = vsel %vm1765_vm1, %v2515_v21, %v2516_v26  ;;  %v17765_v0 = vld [vmem:[#allocation29_spill] sm:$0xff] }
 0x19f   : > { %v2548_v3 = vrot.slane %v2470_v43, 2  ;;  %v2549_v17 = vrot.slane %v2471_v55, 2  ;;  %v2520_v19 = vsel %vm1765_vm1, %v2518_v13, %v2519_v48  ;;  %v2523_v16 = vsel %vm1765_vm1, %v2521_v7, %v2522_v54  ;;  %v17766_v54 = vld [vmem:[#allocation30_spill] sm:$0xff] }
 0x1a0   : > { %v2551_v4 = vrot.slane %v2472_v40, 2  ;;  %v2552_v27 = vrot.slane %v2473_v23, 2  ;;  %v2526_v44 = vsel %vm1765_vm1, %v2524_v41, %v2525_v30  ;;  %v2529_v56 = vsel %vm1765_vm1, %v2527_v36, %v2528_v29  ;;  %v17764_v23 = vld [vmem:[#allocation16_spill] sm:$0xff]  ;;  %v17767_v30 = vld [vmem:[#allocation19_spill] sm:$0xff]  ;;  %v17768_v29 = vld [vmem:[#allocation37_spill] sm:$0xff] }
 0x1a1   : > { %v2532_v50 = vsel %vm1765_vm1, %v2530_v58, %v2531_v14  ;;  %v2535_v46 = vsel %vm1765_vm1, %v2533_v20, %v2534_v61  ;;  %v2538_v42 = vsel %vm1765_vm1, %v2536_v5, %v2537_v39  ;;  %v2541_v26 = vsel %vm1765_vm1, %v2539_v37, %v2540_v35  ;;  %v17757_v35 = vld [vmem:[#allocation51_spill] sm:$0xff]  ;;  %v17769_v14 = vld [vmem:[#allocation53_spill] sm:$0xff] }
 0x1a2   : > { %v2544_v21 = vsel %vm1765_vm1, %v2542_v31, %v2543_v1  ;;  %v2547_v48 = vsel %vm1765_vm1, %v2545_v9, %v2546_v38  ;;  %v2550_v7 = vsel %vm1765_vm1, %v2548_v3, %v2549_v17  ;;  %v10849_v13 = vadd.f32 %v2508_v10, %v10648_v24  ;;  %v17770_v5 = vld [vmem:[#allocation35_spill] sm:$0xff]  ;;  %v7576_v31 = vld [vmem:[%s16630_s0 + $0xd0] sm:$0xff]  ;;  %v17771_v3 = vld [vmem:[#allocation45_spill] sm:$0xff] }
 0x1a3   : > { %v10852_v40 = vadd.f32 %v2511_v60, %v10651_v32  ;;  %v10855_v62 = vadd.f32 %v2514_v52, %v10654_v45  ;;  %v2553_v61 = vsel %vm1765_vm1, %v2551_v4, %v2552_v27  ;;  %v10859_v39 = vadd.f32 %v2517_v51, %v10658_v34  ;;  %v7577_v52 = vld [vmem:[%s16630_s0 + $0xd8] sm:$0xff]  ;;  %v17773_v27 = vld [vmem:[#allocation20_spill] sm:$0xff] }
 0x1a4   : > { %v10862_v1 = vadd.f32 %v2520_v19, %v10661_v22  ;;  %v10865_v38 = vadd.f32 %v2523_v16, %v10664_v8  ;;  %v10868_v24 = vadd.f32 %v2526_v44, %v10667_v2  ;;  %v10871_v32 = vadd.f32 %v2529_v56, %v10670_v18  ;;  %v17772_v16 = vld [vmem:[#allocation46_spill] sm:$0xff]  ;;  %v17774_v56 = vld [vmem:[#allocation11_spill] sm:$0xff] }
 0x1a5   : > { %v10874_v45 = vadd.f32 %v2532_v50, %v10673_v49  ;;  %v10877_v17 = vadd.f32 %v2535_v46, %v10676_v25  ;;  %v10880_v34 = vadd.f32 %v2538_v42, %v10679_v59  ;;  %v10883_v22 = vadd.f32 %v2541_v26, %v10682_v6  ;;  %v17756_v25 = vld [vmem:[#allocation15_spill] sm:$0xff]  ;;  %v17758_v59 = vld [vmem:[#allocation21_spill] sm:$0xff]  ;;  %v17775_v46 = vld [vmem:[#allocation58_spill] sm:$0xff] }
 0x1a6   : > { %v10886_v8 = vadd.f32 %v2544_v21, %v10685_v57  ;;  %v10889_v2 = vadd.f32 %v2547_v48, %v10688_v47  ;;  %v10892_v18 = vadd.f32 %v2550_v7, %v10691_v15  ;;  %v10895_v49 = vadd.f32 %v2553_v61, %v10694_v33  ;;  %v17759_v6 = vld [vmem:[#allocation47_spill] sm:$0xff]  ;;  %v17761_v47 = vld [vmem:[#allocation26_spill] sm:$0xff]  ;;  %v17762_v15 = vld [vmem:[#allocation40_spill] sm:$0xff] }
 0x1a7   : > { %v2590_v60 = vmul.f32 %v17757_v35, %v17756_v25  ;;  %v2591_v53 = vmul.f32 %v17758_v59, %v17756_v25  ;;  %v2592_v10 = vmul.f32 %v17759_v6, %v17756_v25  ;;  %v17760_v57 = vld [vmem:[#allocation23_spill] sm:$0xff]  ;;  %v10907_v55 = vmul.f32 %v17761_v47, %v17756_v25 }
 0x1a8   : > { %v2593_v12 = vmul.f32 %v17760_v57, %v17756_v25  ;;  %v10911_v33 = vmul.f32 %v17762_v15, %v17756_v25  ;;  %v10915_v28 = vmul.f32 %v17763_v63, %v17756_v25  ;;  %v2597_v11 = vmul.f32 %v17764_v23, %v17756_v25  ;;  %v17776_v26 = vld [vmem:[#allocation31_spill] sm:$0xff]  ;;  %v17777_v15 = vld [vmem:[#allocation14_spill] sm:$0xff]  ;;  %v17778_v23 = vld [vmem:[#allocation24_spill] sm:$0xff] }
 0x1a9   : > { %v10921_v43 = vmul.f32 %v17765_v0, %v17756_v25  ;;  %v10925_v41 = vmul.f32 %v17766_v54, %v17756_v25  ;;  %v10929_v36 = vmul.f32 %v17767_v30, %v17756_v25  ;;  %v2601_v58 = vmul.f32 %v17768_v29, %v17756_v25  ;;  %v17779_v54 = vld [vmem:[#allocation32_spill] sm:$0xff] }
 0x1aa   : > { %v10935_v20 = vmul.f32 %v17769_v14, %v17756_v25  ;;  %v10939_v37 = vmul.f32 %v17770_v5, %v17756_v25  ;;  %v2604_v9 = vmul.f32 %v7576_v31, %v17756_v25  ;;  %v2605_v51 = vmul.f32 %v7577_v52, %v17756_v25  ;;  %v17780_v29 = vld [vmem:[#allocation56_spill] sm:$0xff]  ;;  %v17781_v5 = vld [vmem:[#allocation34_spill] sm:$0xff]  ;;  %v17784_v52 = vld [vmem:[#allocation49_spill] sm:$0xff] }
 0x1ab   : > { %v2606_v19 = vmul.f32 %v17771_v3, %v17756_v25  ;;  %v2607_v4 = vmul.f32 %v17772_v16, %v17756_v25  ;;  %v2608_v44 = vmul.f32 %v17773_v27, %v17756_v25  ;;  %v2609_v50 = vmul.f32 %v17774_v56, %v17756_v25 }
 0x1ac   : > { %v2610_v42 = vmul.f32 %v17775_v46, %v17756_v25  ;;  %v2611_v21 = vmul.f32 %v17776_v26, %v17756_v25  ;;  %v2654_v48 = vrot.slane %v2590_v60, 2  ;;  %v2655_v7 = vrot.slane %v2591_v53, 2  ;;  %v17782_v60 = vld [vmem:[#allocation44_spill] sm:$0xff] }
 0x1ad   : > { %v2657_v61 = vrot.slane %v2592_v10, 2  ;;  %v2658_v47 = vrot.slane %v2593_v12, 2  ;;  %v2612_v63 = vmul.f32 %v17777_v15, %v17756_v25  ;;  %v2613_v0 = vmul.f32 %v17778_v23, %v17756_v25  ;;  %v17783_v10 = vld [vmem:[#allocation28_spill] sm:$0xff]  ;;  %v7579_v23 = vld [vmem:[%s16630_s0 + $0x1b8] sm:$0xff] }
 0x1ae   : > { %v2614_v30 = vmul.f32 %v17779_v54, %v17756_v25  ;;  %v2615_v14 = vmul.f32 %v17780_v29, %v17756_v25  ;;  %v2616_v31 = vmul.f32 %v17781_v5, %v17756_v25  ;;  %v2617_v53 = vmul.f32 %v17782_v60, %v17756_v25  ;;  %v7578_v26 = vld [vmem:[%s16630_s0 + $0x1b0] sm:$0xff] }
 0x1af   : > { %v2618_v12 = vmul.f32 %v17783_v10, %v17756_v25  ;;  %v2619_v46 = vmul.f32 %v17784_v52, %v17756_v25  ;;  %v2620_v15 = vmul.f32 %v7578_v26, %v17756_v25  ;;  %v2621_v54 = vmul.f32 %v7579_v23, %v17756_v25 }
 0x1b0   : > { %v2660_v29 = vrot.slane %v10907_v55, 2  ;;  %v2661_v5 = vrot.slane %v10911_v33, 2  ;;  %v2656_v60 = vsel %vm1765_vm1, %v2654_v48, %v2655_v7  ;;  %v2659_v10 = vsel %vm1765_vm1, %v2657_v61, %v2658_v47 }
 0x1b1   : > { %v2663_v52 = vrot.slane %v10915_v28, 2  ;;  %v2664_v56 = vrot.slane %v2597_v11, 2  ;;  %v2666_v27 = vrot.slane %v10921_v43, 2  ;;  %v2667_v26 = vrot.slane %v10925_v41, 2 }
 0x1b2   : > { %v2669_v16 = vrot.slane %v10929_v36, 2  ;;  %v2670_v3 = vrot.slane %v2601_v58, 2  ;;  %v2672_v25 = vrot.slane %v10935_v20, 2  ;;  %v2673_v55 = vrot.slane %v10939_v37, 2 }
 0x1b3   : > { %v2675_v23 = vrot.slane %v2604_v9, 2  ;;  %v2676_v33 = vrot.slane %v2605_v51, 2  ;;  %v2678_v57 = vrot.slane %v2606_v19, 2  ;;  %v2679_v48 = vrot.slane %v2607_v4, 2 }
 0x1b4   : > { %v2681_v7 = vrot.slane %v2608_v44, 2  ;;  %v2682_v61 = vrot.slane %v2609_v50, 2  ;;  %v2684_v47 = vrot.slane %v2610_v42, 2  ;;  %v2685_v28 = vrot.slane %v2611_v21, 2 }
 0x1b5   : > { %v2687_v11 = vrot.slane %v2612_v63, 2  ;;  %v2688_v6 = vrot.slane %v2613_v0, 2  ;;  %v2690_v43 = vrot.slane %v2614_v30, 2  ;;  %v2691_v59 = vrot.slane %v2615_v14, 2 }
 0x1b6   : > { %v2693_v41 = vrot.slane %v2616_v31, 2  ;;  %v2694_v35 = vrot.slane %v2617_v53, 2  ;;  %v2662_v36 = vsel %vm1765_vm1, %v2660_v29, %v2661_v5  ;;  %v2665_v58 = vsel %vm1765_vm1, %v2663_v52, %v2664_v56  ;;  %v17791_v29 = vld [vmem:[#allocation8_spill] sm:$0xff] }
 0x1b7   : > { %v2696_v20 = vrot.slane %v2618_v12, 2  ;;  %v2697_v37 = vrot.slane %v2619_v46, 2  ;;  %v2668_v9 = vsel %vm1765_vm1, %v2666_v27, %v2667_v26  ;;  %v2671_v51 = vsel %vm1765_vm1, %v2669_v16, %v2670_v3  ;;  %v7585_v26 = vld [vmem:[%s16630_s0] sm:$0xff] }
 0x1b8   : > { %v2699_v19 = vrot.slane %v2620_v15, 2  ;;  %v2700_v4 = vrot.slane %v2621_v54, 2  ;;  %v2674_v44 = vsel %vm1765_vm1, %v2672_v25, %v2673_v55  ;;  %v2677_v50 = vsel %vm1765_vm1, %v2675_v23, %v2676_v33  ;;  %v7586_v55 = vld [vmem:[%s16630_s0 + $0x8] sm:$0xff]  ;;  %v11101_v33 = vld [vmem:[%s16630_s0 + $0x10] sm:$0xff] }
 0x1b9   : > { %v2680_v42 = vsel %vm1765_vm1, %v2678_v57, %v2679_v48  ;;  %v2683_v21 = vsel %vm1765_vm1, %v2681_v7, %v2682_v61  ;;  %v2686_v63 = vsel %vm1765_vm1, %v2684_v47, %v2685_v28  ;;  %v2689_v56 = vsel %vm1765_vm1, %v2687_v11, %v2688_v6  ;;  %v17785_v6 = vld [vmem:[#allocation18_spill] sm:$0xff]  ;;  %v11108_v7 = vld [vmem:[%s16630_s0 + $0x18] sm:$0xff]  ;;  %v11122_v11 = vld [vmem:[%s16630_s0 + $0x28] sm:$0xff] }
 0x1ba   : > { %v2692_v0 = vsel %vm1765_vm1, %v2690_v43, %v2691_v59  ;;  %v2695_v27 = vsel %vm1765_vm1, %v2693_v41, %v2694_v35  ;;  %v2698_v3 = vsel %vm1765_vm1, %v2696_v20, %v2697_v37  ;;  %v11009_v16 = vadd.f32 %v2656_v60, %v10849_v13  ;;  %v7584_v60 = vld [vmem:[%s16631_s1 + $0x20] sm:$0xff]  ;;  %17796 = vst [vmem:[#allocation57_spill] sm:$0xff] %v11122_v11  ;;  %v17797_v41 = vld [vmem:[#allocation17_spill] sm:$0xff] }
 0x1bb   : > { %v11012_v30 = vadd.f32 %v2659_v10, %v10852_v40  ;;  %v11015_v57 = vadd.f32 %v2662_v36, %v10855_v62  ;;  %v2701_v14 = vsel %vm1765_vm1, %v2699_v19, %v2700_v4  ;;  %v11019_v31 = vadd.f32 %v2665_v58, %v10859_v39  ;;  %v7580_v39 = vld [vmem:[%s16631_s1] sm:$0xff]  ;;  %v17793_v10 = vld [vmem:[#allocation9_spill] sm:$0xff]  ;;  %v17801_v4 = vld [vmem:[#allocation52_spill] sm:$0xff] }
 0x1bc   : > { %v11022_v59 = vadd.f32 %v2668_v9, %v10862_v1  ;;  %v11025_v35 = vadd.f32 %v2671_v51, %v10865_v38  ;;  %v11028_v13 = vadd.f32 %v2674_v44, %v10868_v24  ;;  %v11031_v40 = vadd.f32 %v2677_v50, %v10871_v32  ;;  %v11115_v47 = vld [vmem:[%s16630_s0 + $0x20] sm:$0xff]  ;;  %v11131_v58 = vld [vmem:[%s16630_s0 + $0x38] sm:$0xff]  ;;  %v11142_v51 = vld [vmem:[%s16630_s0 + $0x48] sm:$0xff] }
 0x1bd   : > { %v11034_v62 = vadd.f32 %v2680_v42, %v10874_v45  ;;  %v11040_v53 = vrot.slane %v7580_v39, %v17785_v6  ;;  %v11043_v1 = vadd.f32 %v2683_v21, %v10877_v17  ;;  %v11046_v38 = vadd.f32 %v2686_v63, %v10880_v34  ;;  %v7581_v17 = vld [vmem:[%s16631_s1 + $0x8] sm:$0xff]  ;;  %v17786_v34 = vld [vmem:[#allocation22_spill] sm:$0xff]  ;;  %17795 = vst [vmem:[#allocation48_spill] sm:$0xff] %v11115_v47  ;;  %v11155_v50 = vld [vmem:[%s16630_s0 + $0x58] sm:$0xff] }
 0x1be   : > { %v11049_v24 = vadd.f32 %v2689_v56, %v10883_v22  ;;  %v11052_v32 = vadd.f32 %v2692_v0, %v10886_v8  ;;  %v11055_v45 = vadd.f32 %v2695_v27, %v10889_v2  ;;  %v11058_v12 = vadd.f32 %v2698_v3, %v10892_v18  ;;  %v7582_v22 = vld [vmem:[%s16631_s1 + $0x10] sm:$0xff]  ;;  %v17787_v8 = vld [vmem:[#allocation10_spill] sm:$0xff]  ;;  %v7583_v18 = vld [vmem:[%s16631_s1 + $0x18] sm:$0xff]  ;;  %17798 = vst [vmem:[#allocation42_spill] sm:$0xff] %v11131_v58 }
 0x1bf   : > { %v11061_v46 = vadd.f32 %v2701_v14, %v10895_v49  ;;  %v11067_v15 = vrot.slane %v7581_v17, %v17786_v34  ;;  %v11073_v2 = vrot.slane %v7582_v22, %v17787_v8  ;;  %v17789_v49 = vld [vmem:[#allocation6_spill] sm:$0xff]  ;;  %v11082_v5 = vrot.slane %v7583_v18, %v17791_v29  ;;  %17800 = vst [vmem:[#allocation33_spill] sm:$0xff] %v11142_v51  ;;  %v17803_v21 = vld [vmem:[#allocation51_spill] sm:$0xff]  ;;  %v17804_v56 = vld [vmem:[#allocation21_spill] sm:$0xff] }
 0x1c0   : > { %v11079_v54 = vrot.slane %v7583_v18, %v17789_v49  ;;  %v11088_v52 = vrot.slane %v7584_v60, %v17793_v10  ;;  %v2738_v25 = vmul.f32 %v7585_v26, %v11040_v53  ;;  %v2739_v23 = vmul.f32 %v7586_v55, %v11040_v53  ;;  %v17799_v37 = vld [vmem:[#allocation38_spill] sm:$0xff]  ;;  %17802 = vst [vmem:[#allocation55_spill] sm:$0xff] %v11155_v50  ;;  %v17805_v27 = vld [vmem:[#allocation47_spill] sm:$0xff]  ;;  %v11192_v26 = vld [vmem:[%s16630_s0 + $0xf0] sm:$0xff] }
 0x1c1   : > { %17788 = vst [vmem:[#allocation50_spill] sm:$0xff] %v11073_v2  ;;  %17792 = vst [vmem:[#allocation39_spill] sm:$0xff] %v11082_v5  ;;  %v2740_v48 = vmul.f32 %v11101_v33, %v11040_v53  ;;  %v2741_v61 = vmul.f32 %v11108_v7, %v11040_v53  ;;  %v2742_v28 = vmul.f32 %v11115_v47, %v11040_v53  ;;  %v17806_v14 = vld [vmem:[#allocation23_spill] sm:$0xff]  ;;  %v7594_v17 = vld [vmem:[%s16630_s0 + $0xe0] sm:$0xff] }
 0x1c2   : > { %17790 = vst [vmem:[#allocation54_spill] sm:$0xff] %v11079_v54  ;;  %17794 = vst [vmem:[#allocation41_spill] sm:$0xff] %v11088_v52  ;;  %v2743_v43 = vmul.f32 %v11122_v11, %v11040_v53  ;;  %v2744_v36 = vmul.f32 %v17797_v41, %v11040_v53  ;;  %v2745_v20 = vmul.f32 %v11131_v58, %v11040_v53  ;;  %v7595_v18 = vld [vmem:[%s16630_s0 + $0xe8] sm:$0xff]  ;;  %v11201_v41 = vld [vmem:[%s16630_s0 + $0xf8] sm:$0xff]  ;;  %v2803_v8 = vrot.slane %v2738_v25, 3 }
 0x1c3   : > { %v11137_v9 = vmul.f32 %v17799_v37, %v11040_v53  ;;  %v11146_v19 = vmul.f32 %v11142_v51, %v11040_v53  ;;  %v11150_v44 = vmul.f32 %v17801_v4, %v11040_v53  ;;  %v11159_v42 = vmul.f32 %v11155_v50, %v11040_v53  ;;  %17807 = vst [vmem:[#allocation36_spill] sm:$0xff] %v11192_v26  ;;  %v11208_v4 = vld [vmem:[%s16630_s0 + $0x100] sm:$0xff]  ;;  %v11224_v29 = vld [vmem:[%s16630_s0 + $0x118] sm:$0xff]  ;;  %v17815_v25 = vld [vmem:[#allocation7_spill] sm:$0xff] }
 0x1c4   : > { %v11163_v63 = vmul.f32 %v17803_v21, %v11040_v53  ;;  %v11167_v0 = vmul.f32 %v17804_v56, %v11040_v53  ;;  %v11171_v3 = vmul.f32 %v17805_v27, %v11040_v53  ;;  %v11175_v39 = vmul.f32 %v17806_v14, %v11040_v53  ;;  %17808 = vst [vmem:[#allocation15_spill] sm:$0xff] %v11201_v41  ;;  %v11215_v27 = vld [vmem:[%s16630_s0 + $0x108] sm:$0xff] }
 0x1c5   : > { %v11181_v22 = vmul.f32 %v7594_v17, %v11040_v53  ;;  %v11187_v60 = vmul.f32 %v7595_v18, %v11040_v53  ;;  %v11196_v55 = vmul.f32 %v11192_v26, %v11040_v53  ;;  %v2757_v37 = vmul.f32 %v11201_v41, %v11040_v53  ;;  %17809 = vst [vmem:[#allocation26_spill] sm:$0xff] %v11208_v4  ;;  %v17811_v18 = vld [vmem:[#allocation27_spill] sm:$0xff] }
 0x1c6   : > { %v2758_v21 = vmul.f32 %v11208_v4, %v11040_v53  ;;  %17810 = vst [vmem:[#allocation40_spill] sm:$0xff] %v11215_v27  ;;  %v2759_v17 = vmul.f32 %v11215_v27, %v11040_v53  ;;  %v2760_v10 = vmul.f32 %v17811_v18, %v11040_v53  ;;  %17812 = vst [vmem:[#allocation25_spill] sm:$0xff] %v11224_v29  ;;  %v2804_v34 = vrot.slane %v2739_v23, 3  ;;  %v17813_v27 = vld [vmem:[#allocation43_spill] sm:$0xff] }
 0x1c7   : > { %v2761_v49 = vmul.f32 %v11224_v29, %v11040_v53  ;;  %v2806_v6 = vrot.slane %v2740_v48, 3  ;;  %v2807_v52 = vrot.slane %v2741_v61, 3  ;;  %v2809_v5 = vrot.slane %v2742_v28, 3  ;;  %v11233_v18 = vld [vmem:[%s16630_s0 + $0x128] sm:$0xff]  ;;  %v11242_v48 = vld [vmem:[%s16630_s0 + $0x138] sm:$0xff] }
 0x1c8   : > { %v2810_v54 = vrot.slane %v2743_v43, 3  ;;  %v2812_v2 = vrot.slane %v2744_v36, 3  ;;  %v2813_v4 = vrot.slane %v2745_v20, 3  ;;  %v2762_v41 = vmul.f32 %v17813_v27, %v11040_v53  ;;  %17814 = vst [vmem:[#allocation16_spill] sm:$0xff] %v11233_v18  ;;  %17816 = vst [vmem:[#allocation29_spill] sm:$0xff] %v11242_v48  ;;  %v17817_v28 = vld [vmem:[#allocation45_spill] sm:$0xff] }
 0x1c9   : > { %v2763_v26 = vmul.f32 %v11233_v18, %v11040_v53  ;;  %v2764_v23 = vmul.f32 %v17815_v25, %v11040_v53  ;;  %v2765_v61 = vmul.f32 %v11242_v48, %v11040_v53  ;;  %v2766_v43 = vmul.f32 %v17817_v28, %v11040_v53  ;;  %v17818_v36 = vld [vmem:[#allocation46_spill] sm:$0xff]  ;;  %v17819_v27 = vld [vmem:[#allocation20_spill] sm:$0xff]  ;;  %v17820_v29 = vld [vmem:[#allocation11_spill] sm:$0xff] }
 0x1ca   : > { %v2767_v20 = vmul.f32 %v17818_v36, %v11040_v53  ;;  %v2768_v18 = vmul.f32 %v17819_v27, %v11040_v53  ;;  %v2769_v25 = vmul.f32 %v17820_v29, %v11040_v53  ;;  %v2805_v14 = vsel %vm2802_vm2, %v2803_v8, %v2804_v34 }
 0x1cb   : > { %v2808_v56 = vsel %vm2802_vm2, %v2806_v6, %v2807_v52  ;;  %v2815_v50 = vrot.slane %v11137_v9, 3  ;;  %v2816_v48 = vrot.slane %v11146_v19, 3  ;;  %v2811_v51 = vsel %vm2802_vm2, %v2809_v5, %v2810_v54 }
 0x1cc   : > { %v2814_v28 = vsel %vm2802_vm2, %v2812_v2, %v2813_v4  ;;  %v2818_v36 = vrot.slane %v11150_v44, 3  ;;  %v2819_v58 = vrot.slane %v11159_v42, 3  ;;  %v2821_v27 = vrot.slane %v11163_v63, 3 }
 0x1cd   : > { %v2822_v53 = vrot.slane %v11167_v0, 3  ;;  %v2824_v34 = vrot.slane %v11171_v3, 3  ;;  %v2825_v6 = vrot.slane %v11175_v39, 3  ;;  %v2827_v8 = vrot.slane %v11181_v22, 3 }
 0x1ce   : > { %v2828_v52 = vrot.slane %v11187_v60, 3  ;;  %v2830_v54 = vrot.slane %v11196_v55, 3  ;;  %v2831_v5 = vrot.slane %v2757_v37, 3  ;;  %v2833_v2 = vrot.slane %v2758_v21, 3 }
 0x1cf   : > { %v2834_v9 = vrot.slane %v2759_v17, 3  ;;  %v2836_v19 = vrot.slane %v2760_v10, 3  ;;  %v2837_v44 = vrot.slane %v2761_v49, 3  ;;  %v2839_v42 = vrot.slane %v2762_v41, 3 }
 0x1d0   : > { %v2840_v4 = vrot.slane %v2763_v26, 3  ;;  %v2842_v63 = vrot.slane %v2764_v23, 3  ;;  %v2843_v29 = vrot.slane %v2765_v61, 3  ;;  %v2845_v0 = vrot.slane %v2766_v43, 3 }
 0x1d1   : > { %v2846_v11 = vrot.slane %v2767_v20, 3  ;;  %v2848_v3 = vrot.slane %v2768_v18, 3  ;;  %v2849_v47 = vrot.slane %v2769_v25, 3  ;;  %v2817_v39 = vsel %vm2802_vm2, %v2815_v50, %v2816_v48  ;;  %v17827_v25 = vld [vmem:[#allocation55_spill] sm:$0xff] }
 0x1d2   : > { %v2820_v22 = vsel %vm2802_vm2, %v2818_v36, %v2819_v58  ;;  %v2823_v60 = vsel %vm2802_vm2, %v2821_v27, %v2822_v53  ;;  %v2826_v55 = vsel %vm2802_vm2, %v2824_v34, %v2825_v6  ;;  %v2829_v37 = vsel %vm2802_vm2, %v2827_v8, %v2828_v52  ;;  %v11358_v36 = vld [vmem:[%s16630_s0 + $0x50] sm:$0xff]  ;;  %v11371_v27 = vld [vmem:[%s16630_s0 + $0x60] sm:$0xff]  ;;  %v17829_v34 = vld [vmem:[#allocation21_spill] sm:$0xff] }
 0x1d3   : > { %v2832_v49 = vsel %vm2802_vm2, %v2830_v54, %v2831_v5  ;;  %v2835_v10 = vsel %vm2802_vm2, %v2833_v2, %v2834_v9  ;;  %v2838_v26 = vsel %vm2802_vm2, %v2836_v19, %v2837_v44  ;;  %v2841_v41 = vsel %vm2802_vm2, %v2839_v42, %v2840_v4  ;;  %17826 = vst [vmem:[#allocation19_spill] sm:$0xff] %v11358_v36  ;;  %v11384_v8 = vld [vmem:[%s16630_s0 + $0x70] sm:$0xff]  ;;  %v17831_v54 = vld [vmem:[#allocation23_spill] sm:$0xff]  ;;  %v11397_v2 = vld [vmem:[%s16630_s0 + $0x80] sm:$0xff] }
 0x1d4   : > { %v2844_v21 = vsel %vm2802_vm2, %v2842_v63, %v2843_v29  ;;  %v11280_v50 = vadd.f32 %v2805_v14, %v11009_v16  ;;  %v11283_v58 = vadd.f32 %v2808_v56, %v11012_v30  ;;  %v2847_v17 = vsel %vm2802_vm2, %v2845_v0, %v2846_v11  ;;  %v17825_v14 = vld [vmem:[#allocation33_spill] sm:$0xff]  ;;  %17828 = vst [vmem:[#allocation37_spill] sm:$0xff] %v11371_v27  ;;  %v11406_v19 = vld [vmem:[%s16630_s0 + $0x88] sm:$0xff]  ;;  %v17834_v42 = vld [vmem:[#allocation36_spill] sm:$0xff] }
 0x1d5   : > { %v2850_v18 = vsel %vm2802_vm2, %v2848_v3, %v2849_v47  ;;  %v11288_v23 = vadd.f32 %v2811_v51, %v11015_v57  ;;  %v11291_v48 = vadd.f32 %v2814_v28, %v11019_v31  ;;  %v11294_v61 = vadd.f32 %v2817_v39, %v11022_v59  ;;  %17830 = vst [vmem:[#allocation53_spill] sm:$0xff] %v11384_v8  ;;  %v17835_v63 = vld [vmem:[#allocation15_spill] sm:$0xff]  ;;  %v17836_v3 = vld [vmem:[#allocation26_spill] sm:$0xff] }
 0x1d6   : > { %v11297_v29 = vadd.f32 %v2820_v22, %v11025_v35  ;;  %v11300_v16 = vadd.f32 %v2823_v60, %v11028_v13  ;;  %v11303_v30 = vadd.f32 %v2826_v55, %v11031_v40  ;;  %v11306_v47 = vadd.f32 %v2829_v37, %v11034_v62  ;;  %17832 = vst [vmem:[#allocation35_spill] sm:$0xff] %v11397_v2  ;;  %v17837_v22 = vld [vmem:[#allocation40_spill] sm:$0xff] }
 0x1d7   : > { %v11309_v57 = vadd.f32 %v2832_v49, %v11043_v1  ;;  %v11312_v31 = vadd.f32 %v2835_v10, %v11046_v38  ;;  %v11315_v59 = vadd.f32 %v2838_v26, %v11049_v24  ;;  %v11318_v35 = vadd.f32 %v2841_v41, %v11052_v32  ;;  %v17821_v24 = vld [vmem:[#allocation48_spill] sm:$0xff]  ;;  %v17822_v32 = vld [vmem:[#allocation57_spill] sm:$0xff]  ;;  %17833 = vst [vmem:[#allocation58_spill] sm:$0xff] %v11406_v19  ;;  %v11440_v26 = vld [vmem:[%s16630_s0 + $0x120] sm:$0xff] }
 0x1d8   : > { %v11321_v13 = vadd.f32 %v2844_v21, %v11055_v45  ;;  %v11324_v40 = vadd.f32 %v2847_v17, %v11058_v12  ;;  %v11327_v62 = vadd.f32 %v2850_v18, %v11061_v46  ;;  %v2887_v1 = vmul.f32 %v11101_v33, %v11067_v15  ;;  %v11340_v45 = vld [vmem:[%s16630_s0 + $0x30] sm:$0xff]  ;;  %v17823_v46 = vld [vmem:[#allocation42_spill] sm:$0xff]  ;;  %v17839_v49 = vld [vmem:[#allocation25_spill] sm:$0xff]  ;;  %17840 = vst [vmem:[#allocation14_spill] sm:$0xff] %v11440_v26 }
 0x1d9   : > { %v2888_v38 = vmul.f32 %v11108_v7, %v11067_v15  ;;  %v2889_v11 = vmul.f32 %v17821_v24, %v11067_v15  ;;  %v2890_v51 = vmul.f32 %v17822_v32, %v11067_v15  ;;  %v2891_v12 = vmul.f32 %v11340_v45, %v11067_v15  ;;  %v11349_v7 = vld [vmem:[%s16630_s0 + $0x40] sm:$0xff]  ;;  %v11431_v55 = vld [vmem:[%s16630_s0 + $0x110] sm:$0xff] }
 0x1da   : > { %v2892_v33 = vmul.f32 %v17823_v46, %v11067_v15  ;;  %17824 = vst [vmem:[#allocation30_spill] sm:$0xff] %v11349_v7  ;;  %v2893_v56 = vmul.f32 %v11349_v7, %v11067_v15  ;;  %v2894_v43 = vmul.f32 %v17825_v14, %v11067_v15  ;;  %v11362_v20 = vmul.f32 %v11358_v36, %v11067_v15  ;;  %v17841_v21 = vld [vmem:[#allocation16_spill] sm:$0xff] }
 0x1db   : > { %v11366_v28 = vmul.f32 %v17827_v25, %v11067_v15  ;;  %v11375_v53 = vmul.f32 %v11371_v27, %v11067_v15  ;;  %v11379_v6 = vmul.f32 %v17829_v34, %v11067_v15  ;;  %v11388_v52 = vmul.f32 %v11384_v8, %v11067_v15  ;;  %17838 = vst [vmem:[#allocation31_spill] sm:$0xff] %v11431_v55 }
 0x1dc   : > { %v11392_v5 = vmul.f32 %v17831_v54, %v11067_v15  ;;  %v11401_v9 = vmul.f32 %v11397_v2, %v11067_v15  ;;  %v11410_v44 = vmul.f32 %v11406_v19, %v11067_v15  ;;  %v11414_v4 = vmul.f32 %v17834_v42, %v11067_v15 }
 0x1dd   : > { %v11418_v0 = vmul.f32 %v17835_v63, %v11067_v15  ;;  %v11422_v39 = vmul.f32 %v17836_v3, %v11067_v15  ;;  %v11426_v60 = vmul.f32 %v17837_v22, %v11067_v15  ;;  %v2907_v37 = vmul.f32 %v11431_v55, %v11067_v15 }
 0x1de   : > { %v2908_v10 = vmul.f32 %v17839_v49, %v11067_v15  ;;  %v2909_v41 = vmul.f32 %v11440_v26, %v11067_v15  ;;  %v2910_v17 = vmul.f32 %v17841_v21, %v11067_v15  ;;  %v2951_v18 = vrot.slane %v2887_v1, 3  ;;  %v11449_v49 = vld [vmem:[%s16630_s0 + $0x130] sm:$0xff]  ;;  %v17843_v26 = vld [vmem:[#allocation29_spill] sm:$0xff]  ;;  %v11458_v1 = vld [vmem:[%s16630_s0 + $0x140] sm:$0xff] }
 0x1df   : > { %v2952_v42 = vrot.slane %v2888_v38, 3  ;;  %v2954_v63 = vrot.slane %v2889_v11, 3  ;;  %v2955_v22 = vrot.slane %v2890_v51, 3  ;;  %v2957_v3 = vrot.slane %v2891_v12, 3  ;;  %17842 = vst [vmem:[#allocation24_spill] sm:$0xff] %v11449_v49  ;;  %17844 = vst [vmem:[#allocation32_spill] sm:$0xff] %v11458_v1 }
 0x1e0   : > { %v2958_v55 = vrot.slane %v2892_v33, 3  ;;  %v2960_v19 = vrot.slane %v2893_v56, 3  ;;  %v2961_v2 = vrot.slane %v2894_v43, 3  ;;  %v2911_v54 = vmul.f32 %v11449_v49, %v11067_v15  ;;  %v17845_v11 = vld [vmem:[#allocation46_spill] sm:$0xff]  ;;  %v11467_v12 = vld [vmem:[%s16630_s0 + $0x150] sm:$0xff]  ;;  %v17847_v56 = vld [vmem:[#allocation11_spill] sm:$0xff] }
 0x1e1   : > { %v2912_v8 = vmul.f32 %v17843_v26, %v11067_v15  ;;  %v2913_v38 = vmul.f32 %v11458_v1, %v11067_v15  ;;  %v2914_v51 = vmul.f32 %v17845_v11, %v11067_v15  ;;  %17846 = vst [vmem:[#allocation56_spill] sm:$0xff] %v11467_v12  ;;  %v2915_v33 = vmul.f32 %v11467_v12, %v11067_v15  ;;  %v11476_v26 = vld [vmem:[%s16630_s0 + $0x160] sm:$0xff]  ;;  %v11483_v11 = vld [vmem:[%s16630_s0 + $0x168] sm:$0xff] }
 0x1e2   : > { %v2916_v43 = vmul.f32 %v17847_v56, %v11067_v15  ;;  %17848 = vst [vmem:[#allocation34_spill] sm:$0xff] %v11476_v26  ;;  %v2917_v1 = vmul.f32 %v11476_v26, %v11067_v15  ;;  %17849 = vst [vmem:[#allocation44_spill] sm:$0xff] %v11483_v11  ;;  %v2918_v49 = vmul.f32 %v11483_v11, %v11067_v15  ;;  %v2963_v21 = vrot.slane %v11362_v20, 3 }
 0x1e3   : > { %v2953_v12 = vsel %vm2802_vm2, %v2951_v18, %v2952_v42  ;;  %v2956_v56 = vsel %vm2802_vm2, %v2954_v63, %v2955_v22  ;;  %v2964_v34 = vrot.slane %v11366_v28, 3  ;;  %v2959_v27 = vsel %vm2802_vm2, %v2957_v3, %v2958_v55 }
 0x1e4   : > { %v2962_v26 = vsel %vm2802_vm2, %v2960_v19, %v2961_v2  ;;  %v2966_v25 = vrot.slane %v11375_v53, 3  ;;  %v2967_v36 = vrot.slane %v11379_v6, 3  ;;  %v2969_v14 = vrot.slane %v11388_v52, 3 }
 0x1e5   : > { %v2970_v15 = vrot.slane %v11392_v5, 3  ;;  %v2972_v18 = vrot.slane %v11401_v9, 3  ;;  %v2973_v22 = vrot.slane %v11410_v44, 3  ;;  %v2975_v20 = vrot.slane %v11414_v4, 3 }
 0x1e6   : > { %v2976_v28 = vrot.slane %v11418_v0, 3  ;;  %v2978_v3 = vrot.slane %v11422_v39, 3  ;;  %v2979_v2 = vrot.slane %v11426_v60, 3  ;;  %v2981_v19 = vrot.slane %v2907_v37, 3 }
 0x1e7   : > { %v2982_v53 = vrot.slane %v2908_v10, 3  ;;  %v2984_v55 = vrot.slane %v2909_v41, 3  ;;  %v2985_v6 = vrot.slane %v2910_v17, 3  ;;  %v2987_v42 = vrot.slane %v2911_v54, 3 }
 0x1e8   : > { %v2988_v52 = vrot.slane %v2912_v8, 3  ;;  %v2990_v63 = vrot.slane %v2913_v38, 3  ;;  %v2991_v5 = vrot.slane %v2914_v51, 3  ;;  %v2993_v11 = vrot.slane %v2915_v33, 3 }
 0x1e9   : > { %v2994_v9 = vrot.slane %v2916_v43, 3  ;;  %v2996_v7 = vrot.slane %v2917_v1, 3  ;;  %v2997_v44 = vrot.slane %v2918_v49, 3  ;;  %v2965_v4 = vsel %vm2802_vm2, %v2963_v21, %v2964_v34 }
 0x1ea   : > { %v2968_v0 = vsel %vm2802_vm2, %v2966_v25, %v2967_v36  ;;  %v2971_v39 = vsel %vm2802_vm2, %v2969_v14, %v2970_v15  ;;  %v2974_v60 = vsel %vm2802_vm2, %v2972_v18, %v2973_v22  ;;  %v2977_v37 = vsel %vm2802_vm2, %v2975_v20, %v2976_v28  ;;  %v17857_v15 = vld [vmem:[#allocation53_spill] sm:$0xff]  ;;  %v17858_v22 = vld [vmem:[#allocation23_spill] sm:$0xff] }
 0x1eb   : > { %v2980_v10 = vsel %vm2802_vm2, %v2978_v3, %v2979_v2  ;;  %v2983_v8 = vsel %vm2802_vm2, %v2981_v19, %v2982_v53  ;;  %v2986_v54 = vsel %vm2802_vm2, %v2984_v55, %v2985_v6  ;;  %v2989_v41 = vsel %vm2802_vm2, %v2987_v42, %v2988_v52  ;;  %v17859_v28 = vld [vmem:[#allocation35_spill] sm:$0xff]  ;;  %v17860_v2 = vld [vmem:[#allocation58_spill] sm:$0xff]  ;;  %v11606_v53 = vld [vmem:[%s16630_s0 + $0x90] sm:$0xff] }
 0x1ec   : > { %v2992_v49 = vsel %vm2802_vm2, %v2990_v63, %v2991_v5  ;;  %v11514_v34 = vadd.f32 %v2953_v12, %v11280_v50  ;;  %v11517_v36 = vadd.f32 %v2956_v56, %v11283_v58  ;;  %v2995_v14 = vsel %vm2802_vm2, %v2993_v11, %v2994_v9  ;;  %v17856_v56 = vld [vmem:[#allocation21_spill] sm:$0xff]  ;;  %17861 = vst [vmem:[#allocation28_spill] sm:$0xff] %v11606_v53  ;;  %v17863_v52 = vld [vmem:[#allocation26_spill] sm:$0xff]  ;;  %v17864_v5 = vld [vmem:[#allocation40_spill] sm:$0xff] }
 0x1ed   : > { %v2998_v25 = vsel %vm2802_vm2, %v2996_v7, %v2997_v44  ;;  %v11522_v21 = vadd.f32 %v2959_v27, %v11288_v23  ;;  %v11525_v17 = vadd.f32 %v2962_v26, %v11291_v48  ;;  %v11528_v1 = vadd.f32 %v2965_v4, %v11294_v61  ;;  %v11613_v6 = vld [vmem:[%s16630_s0 + $0x98] sm:$0xff]  ;;  %v17865_v44 = vld [vmem:[#allocation31_spill] sm:$0xff] }
 0x1ee   : > { %v11531_v38 = vadd.f32 %v2968_v0, %v11297_v29  ;;  %v11534_v50 = vadd.f32 %v2971_v39, %v11300_v16  ;;  %v11537_v58 = vadd.f32 %v2974_v60, %v11303_v30  ;;  %v11540_v7 = vadd.f32 %v2977_v37, %v11306_v47  ;;  %17862 = vst [vmem:[#allocation49_spill] sm:$0xff] %v11613_v6  ;;  %v17866_v0 = vld [vmem:[#allocation25_spill] sm:$0xff]  ;;  %v17867_v60 = vld [vmem:[#allocation14_spill] sm:$0xff] }
 0x1ef   : > { %v11543_v23 = vadd.f32 %v2980_v10, %v11309_v57  ;;  %v11546_v48 = vadd.f32 %v2983_v8, %v11312_v31  ;;  %v11549_v61 = vadd.f32 %v2986_v54, %v11315_v59  ;;  %v11552_v29 = vadd.f32 %v2989_v41, %v11318_v35  ;;  %v17850_v57 = vld [vmem:[#allocation50_spill] sm:$0xff]  ;;  %v17868_v10 = vld [vmem:[#allocation16_spill] sm:$0xff] }
 0x1f0   : > { %v11555_v16 = vadd.f32 %v2992_v49, %v11321_v13  ;;  %v11558_v30 = vadd.f32 %v2995_v14, %v11324_v40  ;;  %v11561_v47 = vadd.f32 %v2998_v25, %v11327_v62  ;;  %v3035_v27 = vmul.f32 %v17821_v24, %v17850_v57  ;;  %v17851_v13 = vld [vmem:[#allocation30_spill] sm:$0xff]  ;;  %v17852_v40 = vld [vmem:[#allocation33_spill] sm:$0xff]  ;;  %v17853_v62 = vld [vmem:[#allocation19_spill] sm:$0xff] }
 0x1f1   : > { %v3036_v31 = vmul.f32 %v17822_v32, %v17850_v57  ;;  %v3037_v59 = vmul.f32 %v11340_v45, %v17850_v57  ;;  %v3038_v35 = vmul.f32 %v17823_v46, %v17850_v57  ;;  %v3039_v26 = vmul.f32 %v17851_v13, %v17850_v57  ;;  %v17854_v24 = vld [vmem:[#allocation55_spill] sm:$0xff]  ;;  %v17855_v32 = vld [vmem:[#allocation37_spill] sm:$0xff]  ;;  %v17869_v54 = vld [vmem:[#allocation24_spill] sm:$0xff] }
 0x1f2   : > { %v3040_v11 = vmul.f32 %v17852_v40, %v17850_v57  ;;  %v3041_v51 = vmul.f32 %v17853_v62, %v17850_v57  ;;  %v3042_v12 = vmul.f32 %v17854_v24, %v17850_v57  ;;  %v11581_v33 = vmul.f32 %v17855_v32, %v17850_v57  ;;  %v17870_v49 = vld [vmem:[#allocation29_spill] sm:$0xff] }
 0x1f3   : > { %v11585_v43 = vmul.f32 %v17856_v56, %v17850_v57  ;;  %v11589_v18 = vmul.f32 %v17857_v15, %v17850_v57  ;;  %v11593_v20 = vmul.f32 %v17858_v22, %v17850_v57  ;;  %v11597_v3 = vmul.f32 %v17859_v28, %v17850_v57  ;;  %v17871_v28 = vld [vmem:[#allocation32_spill] sm:$0xff]  ;;  %v17872_v22 = vld [vmem:[#allocation46_spill] sm:$0xff]  ;;  %v17874_v56 = vld [vmem:[#allocation11_spill] sm:$0xff] }
 0x1f4   : > { %v11601_v19 = vmul.f32 %v17860_v2, %v17850_v57  ;;  %v3049_v55 = vmul.f32 %v11606_v53, %v17850_v57  ;;  %v3050_v42 = vmul.f32 %v11613_v6, %v17850_v57  ;;  %v3051_v63 = vmul.f32 %v17863_v52, %v17850_v57  ;;  %v17873_v15 = vld [vmem:[#allocation56_spill] sm:$0xff] }
 0x1f5   : > { %v3052_v9 = vmul.f32 %v17864_v5, %v17850_v57  ;;  %v3053_v4 = vmul.f32 %v17865_v44, %v17850_v57  ;;  %v3054_v39 = vmul.f32 %v17866_v0, %v17850_v57  ;;  %v3055_v37 = vmul.f32 %v17867_v60, %v17850_v57 }
 0x1f6   : > { %v3056_v8 = vmul.f32 %v17868_v10, %v17850_v57  ;;  %v3057_v41 = vmul.f32 %v17869_v54, %v17850_v57  ;;  %v3058_v14 = vmul.f32 %v17870_v49, %v17850_v57  ;;  %v3099_v25 = vrot.slane %v3035_v27, 3  ;;  %v17875_v27 = vld [vmem:[#allocation34_spill] sm:$0xff] }
 0x1f7   : > { %v3100_v52 = vrot.slane %v3036_v31, 3  ;;  %v3102_v5 = vrot.slane %v3037_v59, 3  ;;  %v3103_v6 = vrot.slane %v3038_v35, 3  ;;  %v3105_v44 = vrot.slane %v3039_v26, 3  ;;  %v17876_v59 = vld [vmem:[#allocation44_spill] sm:$0xff] }
 0x1f8   : > { %v3106_v53 = vrot.slane %v3040_v11, 3  ;;  %v3108_v2 = vrot.slane %v3041_v51, 3  ;;  %v3109_v0 = vrot.slane %v3042_v12, 3  ;;  %v3059_v60 = vmul.f32 %v17871_v28, %v17850_v57  ;;  %v11648_v26 = vld [vmem:[%s16630_s0 + $0x170] sm:$0xff]  ;;  %v11655_v51 = vld [vmem:[%s16630_s0 + $0x178] sm:$0xff] }
 0x1f9   : > { %v3060_v10 = vmul.f32 %v17872_v22, %v17850_v57  ;;  %v3061_v54 = vmul.f32 %v17873_v15, %v17850_v57  ;;  %v3062_v49 = vmul.f32 %v17874_v56, %v17850_v57  ;;  %v3063_v31 = vmul.f32 %v17875_v27, %v17850_v57  ;;  %17877 = vst [vmem:[#allocation17_spill] sm:$0xff] %v11648_v26 }
 0x1fa   : > { %v3064_v35 = vmul.f32 %v17876_v59, %v17850_v57  ;;  %v3065_v11 = vmul.f32 %v11648_v26, %v17850_v57  ;;  %17878 = vst [vmem:[#allocation38_spill] sm:$0xff] %v11655_v51  ;;  %v3066_v12 = vmul.f32 %v11655_v51, %v17850_v57  ;;  %v3101_v27 = vsel %vm2802_vm2, %v3099_v25, %v3100_v52 }
 0x1fb   : > { %v3104_v59 = vsel %vm2802_vm2, %v3102_v5, %v3103_v6  ;;  %v3111_v56 = vrot.slane %v11581_v33, 3  ;;  %v3112_v15 = vrot.slane %v11585_v43, 3  ;;  %v3107_v22 = vsel %vm2802_vm2, %v3105_v44, %v3106_v53 }
 0x1fc   : > { %v3110_v26 = vsel %vm2802_vm2, %v3108_v2, %v3109_v0  ;;  %v3114_v28 = vrot.slane %v11589_v18, 3  ;;  %v3115_v32 = vrot.slane %v11593_v20, 3  ;;  %v3117_v24 = vrot.slane %v11597_v3, 3 }
 0x1fd   : > { %v3118_v57 = vrot.slane %v11601_v19, 3  ;;  %v3120_v51 = vrot.slane %v3049_v55, 3  ;;  %v3121_v25 = vrot.slane %v3050_v42, 3  ;;  %v3123_v52 = vrot.slane %v3051_v63, 3 }
 0x1fe   : > { %v3124_v6 = vrot.slane %v3052_v9, 3  ;;  %v3126_v5 = vrot.slane %v3053_v4, 3  ;;  %v3127_v33 = vrot.slane %v3054_v39, 3  ;;  %v3129_v62 = vrot.slane %v3055_v37, 3 }
 0x1ff   : > { %v3130_v43 = vrot.slane %v3056_v8, 3  ;;  %v3132_v40 = vrot.slane %v3057_v41, 3  ;;  %v3133_v53 = vrot.slane %v3058_v14, 3  ;;  %v3135_v44 = vrot.slane %v3059_v60, 3 }
 0x200   : > { %v3136_v2 = vrot.slane %v3060_v10, 3  ;;  %v3138_v0 = vrot.slane %v3061_v54, 3  ;;  %v3139_v18 = vrot.slane %v3062_v49, 3  ;;  %v3141_v13 = vrot.slane %v3063_v31, 3 }
 0x201   : > { %v3142_v20 = vrot.slane %v3064_v35, 3  ;;  %v3144_v46 = vrot.slane %v3065_v11, 3  ;;  %v3145_v3 = vrot.slane %v3066_v12, 3  ;;  %v3113_v19 = vsel %vm2802_vm2, %v3111_v56, %v3112_v15 }
 0x202   : > { %v3116_v55 = vsel %vm2802_vm2, %v3114_v28, %v3115_v32  ;;  %v3119_v42 = vsel %vm2802_vm2, %v3117_v24, %v3118_v57  ;;  %v3122_v63 = vsel %vm2802_vm2, %v3120_v51, %v3121_v25  ;;  %v3125_v9 = vsel %vm2802_vm2, %v3123_v52, %v3124_v6  ;;  %v17889_v51 = vld [vmem:[#allocation35_spill] sm:$0xff]  ;;  %v17890_v57 = vld [vmem:[#allocation58_spill] sm:$0xff]  ;;  %v17891_v52 = vld [vmem:[#allocation28_spill] sm:$0xff] }
 0x203   : > { %v3128_v4 = vsel %vm2802_vm2, %v3126_v5, %v3127_v33  ;;  %v3131_v39 = vsel %vm2802_vm2, %v3129_v62, %v3130_v43  ;;  %v3134_v60 = vsel %vm2802_vm2, %v3132_v40, %v3133_v53  ;;  %v3137_v37 = vsel %vm2802_vm2, %v3135_v44, %v3136_v2  ;;  %v17892_v5 = vld [vmem:[#allocation49_spill] sm:$0xff]  ;;  %v11772_v43 = vld [vmem:[%s16630_s0 + $0xa0] sm:$0xff]  ;;  %v11779_v44 = vld [vmem:[%s16630_s0 + $0xa8] sm:$0xff] }
 0x204   : > { %v3140_v10 = vsel %vm2802_vm2, %v3138_v0, %v3139_v18  ;;  %v11680_v56 = vadd.f32 %v3101_v27, %v11514_v34  ;;  %v11683_v32 = vadd.f32 %v3104_v59, %v11517_v36  ;;  %v3143_v24 = vsel %vm2802_vm2, %v3141_v13, %v3142_v20  ;;  %v17887_v59 = vld [vmem:[#allocation53_spill] sm:$0xff]  ;;  %17893 = vst [vmem:[#allocation52_spill] sm:$0xff] %v11772_v43  ;;  %v17895_v0 = vld [vmem:[#allocation31_spill] sm:$0xff] }
 0x205   : > { %v3146_v15 = vsel %vm2802_vm2, %v3144_v46, %v3145_v3  ;;  %v11688_v28 = vadd.f32 %v3107_v22, %v11522_v21  ;;  %v11691_v62 = vadd.f32 %v3110_v26, %v11525_v17  ;;  %v11694_v40 = vadd.f32 %v3113_v19, %v11528_v1  ;;  %v17888_v26 = vld [vmem:[#allocation23_spill] sm:$0xff]  ;;  %17894 = vst [vmem:[#allocation51_spill] sm:$0xff] %v11779_v44  ;;  %v17896_v20 = vld [vmem:[#allocation25_spill] sm:$0xff]  ;;  %v17897_v19 = vld [vmem:[#allocation14_spill] sm:$0xff] }
 0x206   : > { %v11697_v8 = vadd.f32 %v3116_v55, %v11531_v38  ;;  %v11700_v34 = vadd.f32 %v3119_v42, %v11534_v50  ;;  %v11703_v36 = vadd.f32 %v3122_v63, %v11537_v58  ;;  %v11706_v46 = vadd.f32 %v3125_v9, %v11540_v7  ;;  %v17898_v42 = vld [vmem:[#allocation16_spill] sm:$0xff] }
 0x207   : > { %v11709_v21 = vadd.f32 %v3128_v4, %v11543_v23  ;;  %v11712_v17 = vadd.f32 %v3131_v39, %v11546_v48  ;;  %v11715_v1 = vadd.f32 %v3134_v60, %v11549_v61  ;;  %v11718_v38 = vadd.f32 %v3137_v37, %v11552_v29  ;;  %v17879_v23 = vld [vmem:[#allocation54_spill] sm:$0xff]  ;;  %v17882_v29 = vld [vmem:[#allocation33_spill] sm:$0xff]  ;;  %v17899_v9 = vld [vmem:[#allocation24_spill] sm:$0xff] }
 0x208   : > { %v11721_v50 = vadd.f32 %v3140_v10, %v11555_v16  ;;  %v11724_v58 = vadd.f32 %v3143_v24, %v11558_v30  ;;  %v11727_v7 = vadd.f32 %v3146_v15, %v11561_v47  ;;  %v3183_v13 = vmul.f32 %v11340_v45, %v17879_v23  ;;  %v17880_v48 = vld [vmem:[#allocation42_spill] sm:$0xff]  ;;  %v17883_v16 = vld [vmem:[#allocation19_spill] sm:$0xff]  ;;  %v17885_v47 = vld [vmem:[#allocation37_spill] sm:$0xff] }
 0x209   : > { %v3184_v22 = vmul.f32 %v17880_v48, %v17879_v23  ;;  %v17881_v61 = vld [vmem:[#allocation30_spill] sm:$0xff]  ;;  %v3186_v41 = vmul.f32 %v17882_v29, %v17879_v23  ;;  %v3187_v49 = vmul.f32 %v17883_v16, %v17879_v23  ;;  %v17884_v30 = vld [vmem:[#allocation55_spill] sm:$0xff]  ;;  %v3189_v27 = vmul.f32 %v17885_v47, %v17879_v23  ;;  %v17886_v45 = vld [vmem:[#allocation21_spill] sm:$0xff] }
 0x20a   : > { %v3185_v54 = vmul.f32 %v17881_v61, %v17879_v23  ;;  %v3188_v14 = vmul.f32 %v17884_v30, %v17879_v23  ;;  %v3190_v31 = vmul.f32 %v17886_v45, %v17879_v23  ;;  %v11747_v35 = vmul.f32 %v17887_v59, %v17879_v23  ;;  %v17900_v39 = vld [vmem:[#allocation29_spill] sm:$0xff]  ;;  %v17901_v37 = vld [vmem:[#allocation32_spill] sm:$0xff]  ;;  %v17902_v24 = vld [vmem:[#allocation46_spill] sm:$0xff] }
 0x20b   : > { %v11751_v11 = vmul.f32 %v17888_v26, %v17879_v23  ;;  %v11755_v12 = vmul.f32 %v17889_v51, %v17879_v23  ;;  %v11759_v25 = vmul.f32 %v17890_v57, %v17879_v23  ;;  %v11763_v6 = vmul.f32 %v17891_v52, %v17879_v23  ;;  %v17905_v52 = vld [vmem:[#allocation34_spill] sm:$0xff]  ;;  %v17906_v57 = vld [vmem:[#allocation44_spill] sm:$0xff] }
 0x20c   : > { %v11767_v33 = vmul.f32 %v17892_v5, %v17879_v23  ;;  %v3197_v53 = vmul.f32 %v11772_v43, %v17879_v23  ;;  %v3198_v2 = vmul.f32 %v11779_v44, %v17879_v23  ;;  %v3199_v18 = vmul.f32 %v17895_v0, %v17879_v23  ;;  %v17903_v43 = vld [vmem:[#allocation56_spill] sm:$0xff]  ;;  %v17904_v5 = vld [vmem:[#allocation11_spill] sm:$0xff] }
 0x20d   : > { %v3200_v3 = vmul.f32 %v17896_v20, %v17879_v23  ;;  %v3201_v55 = vmul.f32 %v17897_v19, %v17879_v23  ;;  %v3202_v63 = vmul.f32 %v17898_v42, %v17879_v23  ;;  %v3203_v4 = vmul.f32 %v17899_v9, %v17879_v23 }
 0x20e   : > { %v3204_v60 = vmul.f32 %v17900_v39, %v17879_v23  ;;  %v3205_v10 = vmul.f32 %v17901_v37, %v17879_v23  ;;  %v3206_v15 = vmul.f32 %v17902_v24, %v17879_v23  ;;  %v3247_v48 = vrot.slane %v3183_v13, 3  ;;  %v17907_v13 = vld [vmem:[#allocation17_spill] sm:$0xff] }
 0x20f   : > { %v3248_v45 = vrot.slane %v3184_v22, 3  ;;  %v3250_v26 = vrot.slane %v3185_v54, 3  ;;  %v3251_v0 = vrot.slane %v3186_v41, 3  ;;  %v3253_v20 = vrot.slane %v3187_v49, 3  ;;  %v17908_v54 = vld [vmem:[#allocation38_spill] sm:$0xff] }
 0x210   : > { %v3254_v19 = vrot.slane %v3188_v14, 3  ;;  %v3256_v44 = vrot.slane %v3189_v27, 3  ;;  %v3257_v42 = vrot.slane %v3190_v31, 3  ;;  %v3207_v9 = vmul.f32 %v17903_v43, %v17879_v23  ;;  %v11814_v49 = vld [vmem:[%s16630_s0 + $0x180] sm:$0xff]  ;;  %v11821_v27 = vld [vmem:[%s16630_s0 + $0x188] sm:$0xff] }
 0x211   : > { %v3208_v39 = vmul.f32 %v17904_v5, %v17879_v23  ;;  %v3209_v37 = vmul.f32 %v17905_v52, %v17879_v23  ;;  %v3210_v24 = vmul.f32 %v17906_v57, %v17879_v23  ;;  %v3211_v22 = vmul.f32 %v17907_v13, %v17879_v23  ;;  %17909 = vst [vmem:[#allocation47_spill] sm:$0xff] %v11814_v49 }
 0x212   : > { %v3212_v41 = vmul.f32 %v17908_v54, %v17879_v23  ;;  %v3213_v14 = vmul.f32 %v11814_v49, %v17879_v23  ;;  %17910 = vst [vmem:[#allocation27_spill] sm:$0xff] %v11821_v27  ;;  %v3214_v31 = vmul.f32 %v11821_v27, %v17879_v23  ;;  %v3249_v5 = vsel %vm2802_vm2, %v3247_v48, %v3248_v45 }
 0x213   : > { %v3252_v54 = vsel %vm2802_vm2, %v3250_v26, %v3251_v0  ;;  %v3259_v13 = vrot.slane %v11747_v35, 3  ;;  %v3260_v57 = vrot.slane %v11751_v11, 3  ;;  %v3255_v52 = vsel %vm2802_vm2, %v3253_v20, %v3254_v19 }
 0x214   : > { %v3258_v49 = vsel %vm2802_vm2, %v3256_v44, %v3257_v42  ;;  %v3262_v43 = vrot.slane %v11755_v12, 3  ;;  %v3263_v51 = vrot.slane %v11759_v25, 3  ;;  %v3265_v59 = vrot.slane %v11763_v6, 3 }
 0x215   : > { %v3266_v23 = vrot.slane %v11767_v33, 3  ;;  %v3268_v27 = vrot.slane %v3197_v53, 3  ;;  %v3269_v48 = vrot.slane %v3198_v2, 3  ;;  %v3271_v45 = vrot.slane %v3199_v18, 3 }
 0x216   : > { %v3272_v26 = vrot.slane %v3200_v3, 3  ;;  %v3274_v0 = vrot.slane %v3201_v55, 3  ;;  %v3275_v35 = vrot.slane %v3202_v63, 3  ;;  %v3277_v47 = vrot.slane %v3203_v4, 3 }
 0x217   : > { %v3278_v11 = vrot.slane %v3204_v60, 3  ;;  %v3280_v30 = vrot.slane %v3205_v10, 3  ;;  %v3281_v19 = vrot.slane %v3206_v15, 3  ;;  %v3283_v20 = vrot.slane %v3207_v9, 3 }
 0x218   : > { %v3284_v44 = vrot.slane %v3208_v39, 3  ;;  %v3286_v42 = vrot.slane %v3209_v37, 3  ;;  %v3287_v12 = vrot.slane %v3210_v24, 3  ;;  %v3289_v16 = vrot.slane %v3211_v22, 3  ;;  %v11917_v22 = vld [vmem:[%s16630_s0 + $0x78] sm:$0xff] }
 0x219   : > { %v3290_v25 = vrot.slane %v3212_v41, 3  ;;  %v3292_v29 = vrot.slane %v3213_v14, 3  ;;  %v3293_v6 = vrot.slane %v3214_v31, 3  ;;  %v3261_v33 = vsel %vm2802_vm2, %v3259_v13, %v3260_v57  ;;  %17918 = vst [vmem:[#allocation7_spill] sm:$0xff] %v11917_v22  ;;  %v17919_v41 = vld [vmem:[#allocation35_spill] sm:$0xff]  ;;  %v17920_v14 = vld [vmem:[#allocation58_spill] sm:$0xff] }
 0x21a   : > { %v3264_v53 = vsel %vm2802_vm2, %v3262_v43, %v3263_v51  ;;  %v3267_v2 = vsel %vm2802_vm2, %v3265_v59, %v3266_v23  ;;  %v3270_v18 = vsel %vm2802_vm2, %v3268_v27, %v3269_v48  ;;  %v3273_v3 = vsel %vm2802_vm2, %v3271_v45, %v3272_v26  ;;  %v17921_v31 = vld [vmem:[#allocation28_spill] sm:$0xff]  ;;  %v17922_v23 = vld [vmem:[#allocation49_spill] sm:$0xff] }
 0x21b   : > { %v3276_v55 = vsel %vm2802_vm2, %v3274_v0, %v3275_v35  ;;  %v3279_v63 = vsel %vm2802_vm2, %v3277_v47, %v3278_v11  ;;  %v3282_v9 = vsel %vm2802_vm2, %v3280_v30, %v3281_v19  ;;  %v3285_v4 = vsel %vm2802_vm2, %v3283_v20, %v3284_v44  ;;  %v17923_v45 = vld [vmem:[#allocation52_spill] sm:$0xff]  ;;  %v17924_v0 = vld [vmem:[#allocation51_spill] sm:$0xff]  ;;  %v11957_v20 = vld [vmem:[%s16630_s0 + $0xb8] sm:$0xff] }
 0x21c   : > { %v3288_v39 = vsel %vm2802_vm2, %v3286_v42, %v3287_v12  ;;  %v11846_v57 = vadd.f32 %v3249_v5, %v11680_v56  ;;  %v11849_v51 = vadd.f32 %v3252_v54, %v11683_v32  ;;  %v3291_v59 = vsel %vm2802_vm2, %v3289_v16, %v3290_v25  ;;  %v11948_v11 = vld [vmem:[%s16630_s0 + $0xb0] sm:$0xff]  ;;  %17926 = vst [vmem:[#allocation20_spill] sm:$0xff] %v11957_v20  ;;  %v17927_v42 = vld [vmem:[#allocation14_spill] sm:$0xff] }
 0x21d   : > { %v3294_v43 = vsel %vm2802_vm2, %v3292_v29, %v3293_v6  ;;  %v11854_v60 = vadd.f32 %v3255_v52, %v11688_v28  ;;  %v11857_v47 = vadd.f32 %v3258_v49, %v11691_v62  ;;  %v11860_v30 = vadd.f32 %v3261_v33, %v11694_v40  ;;  %17925 = vst [vmem:[#allocation45_spill] sm:$0xff] %v11948_v11  ;;  %v17928_v25 = vld [vmem:[#allocation16_spill] sm:$0xff] }
 0x21e   : > { %v11863_v37 = vadd.f32 %v3264_v53, %v11697_v8  ;;  %v11866_v56 = vadd.f32 %v3267_v2, %v11700_v34  ;;  %v11869_v32 = vadd.f32 %v3270_v18, %v11703_v36  ;;  %v11872_v29 = vadd.f32 %v3273_v3, %v11706_v46  ;;  %v17929_v33 = vld [vmem:[#allocation24_spill] sm:$0xff]  ;;  %v17930_v2 = vld [vmem:[#allocation29_spill] sm:$0xff] }
 0x21f   : > { %v11875_v28 = vadd.f32 %v3276_v55, %v11709_v21  ;;  %v11878_v62 = vadd.f32 %v3279_v63, %v11712_v17  ;;  %v11881_v40 = vadd.f32 %v3282_v9, %v11715_v1  ;;  %v11884_v8 = vadd.f32 %v3285_v4, %v11718_v38  ;;  %v17911_v21 = vld [vmem:[#allocation39_spill] sm:$0xff]  ;;  %v17912_v17 = vld [vmem:[#allocation33_spill] sm:$0xff]  ;;  %v17931_v3 = vld [vmem:[#allocation32_spill] sm:$0xff] }
 0x220   : > { %v11887_v34 = vadd.f32 %v3288_v39, %v11721_v50  ;;  %v11890_v36 = vadd.f32 %v3291_v59, %v11724_v58  ;;  %v11893_v46 = vadd.f32 %v3294_v43, %v11727_v7  ;;  %v3331_v16 = vmul.f32 %v17881_v61, %v17911_v21  ;;  %v17913_v1 = vld [vmem:[#allocation19_spill] sm:$0xff]  ;;  %v17915_v50 = vld [vmem:[#allocation37_spill] sm:$0xff]  ;;  %v17933_v4 = vld [vmem:[#allocation56_spill] sm:$0xff] }
 0x221   : > { %v3332_v52 = vmul.f32 %v17912_v17, %v17911_v21  ;;  %v3333_v10 = vmul.f32 %v17913_v1, %v17911_v21  ;;  %v17914_v38 = vld [vmem:[#allocation55_spill] sm:$0xff]  ;;  %v3335_v24 = vmul.f32 %v17915_v50, %v17911_v21  ;;  %v17917_v61 = vld [vmem:[#allocation53_spill] sm:$0xff]  ;;  %v3338_v54 = vmul.f32 %v11917_v22, %v17911_v21 }
 0x222   : > { %v3334_v15 = vmul.f32 %v17914_v38, %v17911_v21  ;;  %v11908_v58 = vld [vmem:[%s16630_s0 + $0x68] sm:$0xff]  ;;  %v3337_v13 = vmul.f32 %v17917_v61, %v17911_v21  ;;  %v11923_v49 = vmul.f32 %v17919_v41, %v17911_v21  ;;  %v11927_v27 = vmul.f32 %v17920_v14, %v17911_v21  ;;  %v11983_v59 = vld [vmem:[%s16630_s0 + $0x158] sm:$0xff]  ;;  %v17938_v14 = vld [vmem:[#allocation38_spill] sm:$0xff] }
 0x223   : > { %17916 = vst [vmem:[#allocation43_spill] sm:$0xff] %v11908_v58  ;;  %v3336_v7 = vmul.f32 %v11908_v58, %v17911_v21  ;;  %v11931_v5 = vmul.f32 %v17921_v31, %v17911_v21  ;;  %v11935_v48 = vmul.f32 %v17922_v23, %v17911_v21  ;;  %v11939_v26 = vmul.f32 %v17923_v45, %v17911_v21  ;;  %v11974_v63 = vld [vmem:[%s16630_s0 + $0x148] sm:$0xff]  ;;  %v17937_v23 = vld [vmem:[#allocation17_spill] sm:$0xff] }
 0x224   : > { %v11943_v35 = vmul.f32 %v17924_v0, %v17911_v21  ;;  %v11952_v19 = vmul.f32 %v11948_v11, %v17911_v21  ;;  %v3346_v44 = vmul.f32 %v11957_v20, %v17911_v21  ;;  %v3347_v12 = vmul.f32 %v17927_v42, %v17911_v21  ;;  %17932 = vst [vmem:[#allocation48_spill] sm:$0xff] %v11974_v63 }
 0x225   : > { %v3348_v6 = vmul.f32 %v17928_v25, %v17911_v21  ;;  %v3349_v53 = vmul.f32 %v17929_v33, %v17911_v21  ;;  %v3350_v18 = vmul.f32 %v17930_v2, %v17911_v21  ;;  %v3351_v55 = vmul.f32 %v17931_v3, %v17911_v21  ;;  %17934 = vst [vmem:[#allocation57_spill] sm:$0xff] %v11983_v59 }
 0x226   : > { %v3352_v9 = vmul.f32 %v11974_v63, %v17911_v21  ;;  %v3353_v39 = vmul.f32 %v17933_v4, %v17911_v21  ;;  %v3354_v43 = vmul.f32 %v11983_v59, %v17911_v21  ;;  %v3395_v17 = vrot.slane %v3331_v16, 3  ;;  %v17935_v63 = vld [vmem:[#allocation34_spill] sm:$0xff]  ;;  %v17936_v4 = vld [vmem:[#allocation44_spill] sm:$0xff]  ;;  %v17939_v16 = vld [vmem:[#allocation47_spill] sm:$0xff] }
 0x227   : > { %v3396_v42 = vrot.slane %v3332_v52, 3  ;;  %v3398_v25 = vrot.slane %v3333_v10, 3  ;;  %v3399_v3 = vrot.slane %v3334_v15, 3  ;;  %v3401_v2 = vrot.slane %v3335_v24, 3  ;;  %v17940_v10 = vld [vmem:[#allocation27_spill] sm:$0xff]  ;;  %v12002_v24 = vld [vmem:[%s16630_s0 + $0x190] sm:$0xff] }
 0x228   : > { %v3402_v33 = vrot.slane %v3336_v7, 3  ;;  %v3404_v20 = vrot.slane %v3337_v13, 3  ;;  %v3405_v11 = vrot.slane %v3338_v54, 3  ;;  %v3355_v0 = vmul.f32 %v17935_v63, %v17911_v21  ;;  %17941 = vst [vmem:[#allocation36_spill] sm:$0xff] %v12002_v24  ;;  %v12009_v13 = vld [vmem:[%s16630_s0 + $0x198] sm:$0xff] }
 0x229   : > { %v3356_v45 = vmul.f32 %v17936_v4, %v17911_v21  ;;  %v3357_v31 = vmul.f32 %v17937_v23, %v17911_v21  ;;  %v3358_v59 = vmul.f32 %v17938_v14, %v17911_v21  ;;  %v3359_v52 = vmul.f32 %v17939_v16, %v17911_v21  ;;  %17942 = vst [vmem:[#allocation15_spill] sm:$0xff] %v12009_v13 }
 0x22a   : > { %v3360_v15 = vmul.f32 %v17940_v10, %v17911_v21  ;;  %v3361_v7 = vmul.f32 %v12002_v24, %v17911_v21  ;;  %v3362_v54 = vmul.f32 %v12009_v13, %v17911_v21  ;;  %v3397_v16 = vsel %vm2802_vm2, %v3395_v17, %v3396_v42 }
 0x22b   : > { %v3400_v10 = vsel %vm2802_vm2, %v3398_v25, %v3399_v3  ;;  %v3407_v14 = vrot.slane %v11923_v49, 3  ;;  %v3408_v23 = vrot.slane %v11927_v27, 3  ;;  %v3403_v4 = vsel %vm2802_vm2, %v3401_v2, %v3402_v33 }
 0x22c   : > { %v3406_v24 = vsel %vm2802_vm2, %v3404_v20, %v3405_v11  ;;  %v3410_v63 = vrot.slane %v11931_v5, 3  ;;  %v3411_v41 = vrot.slane %v11935_v48, 3  ;;  %v3413_v22 = vrot.slane %v11939_v26, 3 }
 0x22d   : > { %v3414_v21 = vrot.slane %v11943_v35, 3  ;;  %v3416_v17 = vrot.slane %v11952_v19, 3  ;;  %v3417_v42 = vrot.slane %v3346_v44, 3  ;;  %v3419_v3 = vrot.slane %v3347_v12, 3 }
 0x22e   : > { %v3420_v25 = vrot.slane %v3348_v6, 3  ;;  %v3422_v49 = vrot.slane %v3349_v53, 3  ;;  %v3423_v13 = vrot.slane %v3350_v18, 3  ;;  %v3425_v27 = vrot.slane %v3351_v55, 3 }
 0x22f   : > { %v3426_v61 = vrot.slane %v3352_v9, 3  ;;  %v3428_v33 = vrot.slane %v3353_v39, 3  ;;  %v3429_v2 = vrot.slane %v3354_v43, 3  ;;  %v3431_v11 = vrot.slane %v3355_v0, 3 }
 0x230   : > { %v3432_v20 = vrot.slane %v3356_v45, 3  ;;  %v3434_v5 = vrot.slane %v3357_v31, 3  ;;  %v3435_v58 = vrot.slane %v3358_v59, 3  ;;  %v3437_v48 = vrot.slane %v3359_v52, 3 }
 0x231   : > { %v3438_v50 = vrot.slane %v3360_v15, 3  ;;  %v3440_v26 = vrot.slane %v3361_v7, 3  ;;  %v3441_v38 = vrot.slane %v3362_v54, 3  ;;  %v3409_v35 = vsel %vm2802_vm2, %v3407_v14, %v3408_v23 }
 0x232   : > { %v3412_v19 = vsel %vm2802_vm2, %v3410_v63, %v3411_v41  ;;  %v3415_v44 = vsel %vm2802_vm2, %v3413_v22, %v3414_v21  ;;  %v3418_v12 = vsel %vm2802_vm2, %v3416_v17, %v3417_v42  ;;  %v3421_v6 = vsel %vm2802_vm2, %v3419_v3, %v3420_v25  ;;  %v17955_v21 = vld [vmem:[#allocation51_spill] sm:$0xff]  ;;  %v17956_v42 = vld [vmem:[#allocation45_spill] sm:$0xff]  ;;  %v17957_v25 = vld [vmem:[#allocation20_spill] sm:$0xff] }
 0x233   : > { %v3424_v53 = vsel %vm2802_vm2, %v3422_v49, %v3423_v13  ;;  %v3427_v45 = vsel %vm2802_vm2, %v3425_v27, %v3426_v61  ;;  %v3430_v31 = vsel %vm2802_vm2, %v3428_v33, %v3429_v2  ;;  %v3433_v0 = vsel %vm2802_vm2, %v3431_v11, %v3432_v20  ;;  %v17954_v13 = vld [vmem:[#allocation52_spill] sm:$0xff]  ;;  %v12115_v27 = vld [vmem:[%s16630_s0 + $0xc0] sm:$0xff]  ;;  %v12122_v2 = vld [vmem:[%s16630_s0 + $0xc8] sm:$0xff] }
 0x234   : > { %v3436_v18 = vsel %vm2802_vm2, %v3434_v5, %v3435_v58  ;;  %v12035_v14 = vadd.f32 %v3397_v16, %v11846_v57  ;;  %v12038_v41 = vadd.f32 %v3400_v10, %v11849_v51  ;;  %v3439_v22 = vsel %vm2802_vm2, %v3437_v48, %v3438_v50  ;;  %v17952_v10 = vld [vmem:[#allocation28_spill] sm:$0xff]  ;;  %17958 = vst [vmem:[#allocation26_spill] sm:$0xff] %v12115_v27  ;;  %v17961_v48 = vld [vmem:[#allocation29_spill] sm:$0xff] }
 0x235   : > { %v3442_v23 = vsel %vm2802_vm2, %v3440_v26, %v3441_v38  ;;  %v12043_v55 = vadd.f32 %v3403_v4, %v11854_v60  ;;  %v12046_v61 = vadd.f32 %v3406_v24, %v11857_v47  ;;  %v12049_v63 = vadd.f32 %v3409_v35, %v11860_v30  ;;  %v17953_v24 = vld [vmem:[#allocation49_spill] sm:$0xff]  ;;  %17959 = vst [vmem:[#allocation40_spill] sm:$0xff] %v12122_v2  ;;  %v17960_v20 = vld [vmem:[#allocation24_spill] sm:$0xff] }
 0x236   : > { %v12052_v58 = vadd.f32 %v3412_v19, %v11863_v37  ;;  %v12055_v57 = vadd.f32 %v3415_v44, %v11866_v56  ;;  %v12058_v51 = vadd.f32 %v3418_v12, %v11869_v32  ;;  %v12061_v38 = vadd.f32 %v3421_v6, %v11872_v29  ;;  %v17962_v35 = vld [vmem:[#allocation32_spill] sm:$0xff] }
 0x237   : > { %v12064_v60 = vadd.f32 %v3424_v53, %v11875_v28  ;;  %v12067_v47 = vadd.f32 %v3427_v45, %v11878_v62  ;;  %v12070_v30 = vadd.f32 %v3430_v31, %v11881_v40  ;;  %v12073_v37 = vadd.f32 %v3433_v0, %v11884_v8  ;;  %v17944_v28 = vld [vmem:[#allocation41_spill] sm:$0xff]  ;;  %v17945_v62 = vld [vmem:[#allocation55_spill] sm:$0xff]  ;;  %v17963_v44 = vld [vmem:[#allocation48_spill] sm:$0xff] }
 0x238   : > { %v12076_v56 = vadd.f32 %v3436_v18, %v11887_v34  ;;  %v12079_v32 = vadd.f32 %v3439_v22, %v11890_v36  ;;  %v12082_v29 = vadd.f32 %v3442_v23, %v11893_v46  ;;  %v3479_v50 = vmul.f32 %v17913_v1, %v17944_v28  ;;  %v17946_v40 = vld [vmem:[#allocation37_spill] sm:$0xff]  ;;  %v17947_v8 = vld [vmem:[#allocation43_spill] sm:$0xff]  ;;  %v17951_v1 = vld [vmem:[#allocation58_spill] sm:$0xff] }
 0x239   : > { %v3480_v9 = vmul.f32 %v17945_v62, %v17944_v28  ;;  %v3481_v4 = vmul.f32 %v17946_v40, %v17944_v28  ;;  %v3482_v39 = vmul.f32 %v17947_v8, %v17944_v28  ;;  %v17948_v34 = vld [vmem:[#allocation53_spill] sm:$0xff]  ;;  %v17949_v36 = vld [vmem:[#allocation7_spill] sm:$0xff]  ;;  %v3486_v52 = vmul.f32 %v17951_v1, %v17944_v28  ;;  %v17964_v6 = vld [vmem:[#allocation56_spill] sm:$0xff] }
 0x23a   : > { %17943 = vst [vmem:[#allocation50_spill] sm:$0xff] %v12082_v29  ;;  %v3483_v59 = vmul.f32 %v17948_v34, %v17944_v28  ;;  %v3484_v43 = vmul.f32 %v17949_v36, %v17944_v28  ;;  %v17950_v46 = vld [vmem:[#allocation35_spill] sm:$0xff]  ;;  %v3487_v15 = vmul.f32 %v17952_v10, %v17944_v28  ;;  %v3488_v7 = vmul.f32 %v17953_v24, %v17944_v28  ;;  %v17965_v45 = vld [vmem:[#allocation57_spill] sm:$0xff]  ;;  %v17966_v0 = vld [vmem:[#allocation34_spill] sm:$0xff] }
 0x23b   : > { %v3485_v16 = vmul.f32 %v17950_v46, %v17944_v28  ;;  %v3489_v54 = vmul.f32 %v17954_v13, %v17944_v28  ;;  %v3490_v17 = vmul.f32 %v17955_v21, %v17944_v28  ;;  %v3491_v3 = vmul.f32 %v17956_v42, %v17944_v28  ;;  %v17967_v22 = vld [vmem:[#allocation44_spill] sm:$0xff]  ;;  %v17968_v42 = vld [vmem:[#allocation17_spill] sm:$0xff]  ;;  %v17969_v21 = vld [vmem:[#allocation38_spill] sm:$0xff] }
 0x23c   : > { %v3492_v49 = vmul.f32 %v17957_v25, %v17944_v28  ;;  %v3493_v33 = vmul.f32 %v12115_v27, %v17944_v28  ;;  %v3494_v11 = vmul.f32 %v12122_v2, %v17944_v28  ;;  %v3495_v5 = vmul.f32 %v17960_v20, %v17944_v28  ;;  %v17970_v13 = vld [vmem:[#allocation47_spill] sm:$0xff] }
 0x23d   : > { %v3496_v26 = vmul.f32 %v17961_v48, %v17944_v28  ;;  %v3497_v19 = vmul.f32 %v17962_v35, %v17944_v28  ;;  %v3498_v12 = vmul.f32 %v17963_v44, %v17944_v28  ;;  %v3499_v53 = vmul.f32 %v17964_v6, %v17944_v28  ;;  %v17971_v24 = vld [vmem:[#allocation27_spill] sm:$0xff] }
 0x23e   : > { %v3500_v31 = vmul.f32 %v17965_v45, %v17944_v28  ;;  %v3501_v18 = vmul.f32 %v17966_v0, %v17944_v28  ;;  %v3502_v23 = vmul.f32 %v17967_v22, %v17944_v28  ;;  %v3543_v62 = vrot.slane %v3479_v50, 3  ;;  %v17972_v50 = vld [vmem:[#allocation36_spill] sm:$0xff] }
 0x23f   : > { %v3544_v20 = vrot.slane %v3480_v9, 3  ;;  %v3546_v48 = vrot.slane %v3481_v4, 3  ;;  %v3547_v2 = vrot.slane %v3482_v39, 3  ;;  %v3549_v35 = vrot.slane %v3483_v59, 3  ;;  %v17973_v4 = vld [vmem:[#allocation15_spill] sm:$0xff]  ;;  %v12157_v59 = vld [vmem:[%s16630_s0 + $0x1a0] sm:$0xff] }
 0x240   : > { %v3550_v27 = vrot.slane %v3484_v43, 3  ;;  %v3552_v25 = vrot.slane %v3485_v16, 3  ;;  %v3553_v44 = vrot.slane %v3486_v52, 3  ;;  %v3503_v6 = vmul.f32 %v17968_v42, %v17944_v28  ;;  %17974 = vst [vmem:[#allocation54_spill] sm:$0xff] %v12157_v59  ;;  %v12164_v16 = vld [vmem:[%s16630_s0 + $0x1a8] sm:$0xff] }
 0x241   : > { %v3504_v45 = vmul.f32 %v17969_v21, %v17944_v28  ;;  %v3505_v0 = vmul.f32 %v17970_v13, %v17944_v28  ;;  %v3506_v22 = vmul.f32 %v17971_v24, %v17944_v28  ;;  %v3507_v9 = vmul.f32 %v17972_v50, %v17944_v28  ;;  %17975 = vst [vmem:[#allocation42_spill] sm:$0xff] %v12164_v16 }
 0x242   : > { %v3508_v39 = vmul.f32 %v17973_v4, %v17944_v28  ;;  %v3509_v43 = vmul.f32 %v12157_v59, %v17944_v28  ;;  %v3510_v52 = vmul.f32 %v12164_v16, %v17944_v28  ;;  %v3545_v50 = vsel %vm2802_vm2, %v3543_v62, %v3544_v20 }
 0x243   : > { %v3548_v4 = vsel %vm2802_vm2, %v3546_v48, %v3547_v2  ;;  %v3555_v24 = vrot.slane %v3487_v15, 3  ;;  %v3556_v13 = vrot.slane %v3488_v7, 3  ;;  %v3551_v21 = vsel %vm2802_vm2, %v3549_v35, %v3550_v27 }
 0x244   : > { %v3554_v42 = vsel %vm2802_vm2, %v3552_v25, %v3553_v44  ;;  %v3558_v10 = vrot.slane %v3489_v54, 3  ;;  %v3559_v59 = vrot.slane %v3490_v17, 3  ;;  %v3561_v1 = vrot.slane %v3491_v3, 3 }
 0x245   : > { %v3562_v46 = vrot.slane %v3492_v49, 3  ;;  %v3564_v36 = vrot.slane %v3493_v33, 3  ;;  %v3565_v34 = vrot.slane %v3494_v11, 3  ;;  %v3567_v8 = vrot.slane %v3495_v5, 3 }
 0x246   : > { %v3568_v40 = vrot.slane %v3496_v26, 3  ;;  %v3570_v29 = vrot.slane %v3497_v19, 3  ;;  %v3571_v28 = vrot.slane %v3498_v12, 3  ;;  %v3573_v16 = vrot.slane %v3499_v53, 3 }
 0x247   : > { %v3574_v62 = vrot.slane %v3500_v31, 3  ;;  %v3576_v20 = vrot.slane %v3501_v18, 3  ;;  %v3577_v2 = vrot.slane %v3502_v23, 3  ;;  %v3579_v15 = vrot.slane %v3503_v6, 3  ;;  %v17982_v31 = vld [vmem:[#allocation22_spill] sm:$0xff]  ;;  %v17984_v18 = vld [vmem:[#allocation37_spill] sm:$0xff] }
 0x248   : > { %v3580_v7 = vrot.slane %v3504_v45, 3  ;;  %v3582_v48 = vrot.slane %v3505_v0, 3  ;;  %v3583_v27 = vrot.slane %v3506_v22, 3  ;;  %v3557_v25 = vsel %vm2802_vm2, %v3555_v24, %v3556_v13  ;;  %v17985_v23 = vld [vmem:[#allocation43_spill] sm:$0xff] }
 0x249   : > { %v3560_v54 = vsel %vm2802_vm2, %v3558_v10, %v3559_v59  ;;  %v3585_v17 = vrot.slane %v3507_v9, 3  ;;  %v3586_v3 = vrot.slane %v3508_v39, 3  ;;  %v3563_v49 = vsel %vm2802_vm2, %v3561_v1, %v3562_v46  ;;  %v7641_v9 = vld [vmem:[%s16631_s1 + $0x18] sm:$0xff]  ;;  %v7642_v59 = vld [vmem:[%s16631_s1 + $0x20] sm:$0xff] }
 0x24a   : > { %v3566_v33 = vsel %vm2802_vm2, %v3564_v36, %v3565_v34  ;;  %v3588_v11 = vrot.slane %v3509_v43, 3  ;;  %v3589_v5 = vrot.slane %v3510_v52, 3  ;;  %v3569_v26 = vsel %vm2802_vm2, %v3567_v8, %v3568_v40  ;;  %v17988_v43 = vld [vmem:[#allocation6_spill] sm:$0xff]  ;;  %v17990_v52 = vld [vmem:[#allocation53_spill] sm:$0xff] }
 0x24b   : > { %v3572_v35 = vsel %vm2802_vm2, %v3570_v29, %v3571_v28  ;;  %v3575_v19 = vsel %vm2802_vm2, %v3573_v16, %v3574_v62  ;;  %v3578_v44 = vsel %vm2802_vm2, %v3576_v20, %v3577_v2  ;;  %v3581_v24 = vsel %vm2802_vm2, %v3579_v15, %v3580_v7  ;;  %v17991_v62 = vld [vmem:[#allocation7_spill] sm:$0xff]  ;;  %v17993_v7 = vld [vmem:[#allocation58_spill] sm:$0xff] }
 0x24c   : > { %v3584_v10 = vsel %vm2802_vm2, %v3582_v48, %v3583_v27  ;;  %v12183_v13 = vadd.f32 %v3545_v50, %v12035_v14  ;;  %v12186_v46 = vadd.f32 %v3548_v4, %v12038_v41  ;;  %v3587_v34 = vsel %vm2802_vm2, %v3585_v17, %v3586_v3  ;;  %v7637_v41 = vld [vmem:[%s16631_s1 + $0x28] sm:$0xff]  ;;  %v17986_v4 = vld [vmem:[#allocation10_spill] sm:$0xff]  ;;  %v17994_v27 = vld [vmem:[#allocation28_spill] sm:$0xff] }
 0x24d   : > { %v12190_v40 = vadd.f32 %v3551_v21, %v12043_v55  ;;  %v12193_v29 = vadd.f32 %v3554_v42, %v12046_v61  ;;  %v12196_v8 = vadd.f32 %v3557_v25, %v12049_v63  ;;  %v3590_v36 = vsel %vm2802_vm2, %v3588_v11, %v3589_v5  ;;  %v17976_v55 = vld [vmem:[#allocation12_spill] sm:$0xff]  ;;  %v17992_v2 = vld [vmem:[#allocation35_spill] sm:$0xff]  ;;  %v17998_v5 = vld [vmem:[#allocation45_spill] sm:$0xff] }
 0x24e   : > { %v12200_v1 = vadd.f32 %v3560_v54, %v12052_v58  ;;  %v12203_v14 = vadd.f32 %v3563_v49, %v12055_v57  ;;  %v3626_v21 = vrot.slane %v7637_v41, %v17976_v55  ;;  %v12210_v61 = vadd.f32 %v3566_v33, %v12058_v51  ;;  %v17995_v54 = vld [vmem:[#allocation49_spill] sm:$0xff]  ;;  %v17996_v3 = vld [vmem:[#allocation52_spill] sm:$0xff]  ;;  %v17997_v33 = vld [vmem:[#allocation51_spill] sm:$0xff] }
 0x24f   : > { %v12213_v63 = vadd.f32 %v3569_v26, %v12061_v38  ;;  %v12216_v42 = vadd.f32 %v3572_v35, %v12064_v60  ;;  %v12219_v58 = vadd.f32 %v3575_v19, %v12067_v47  ;;  %v12222_v57 = vadd.f32 %v3578_v44, %v12070_v30  ;;  %v17977_v38 = vld [vmem:[#allocation50_spill] sm:$0xff]  ;;  %v17978_v47 = vld [vmem:[#allocation13_spill] sm:$0xff]  ;;  %v7639_v30 = vld [vmem:[%s16631_s1 + $0x8] sm:$0xff] }
 0x250   : > { %v12225_v12 = vadd.f32 %v3581_v24, %v12073_v37  ;;  %v12228_v6 = vadd.f32 %v3584_v10, %v12076_v56  ;;  %v12231_v51 = vadd.f32 %v3587_v34, %v12079_v32  ;;  %v12234_v53 = vadd.f32 %v3590_v36, %v17977_v38  ;;  %v7638_v60 = vld [vmem:[%s16631_s1] sm:$0xff]  ;;  %v7640_v32 = vld [vmem:[%s16631_s1 + $0x10] sm:$0xff]  ;;  %v7644_v38 = vld [vmem:[%s16630_s0 + $0xd8] sm:$0xff] }
 0x251   : > { %v12240_v45 = vrot.slane %v7638_v60, %v17978_v47  ;;  %v17980_v37 = vld [vmem:[#allocation18_spill] sm:$0xff]  ;;  %v12252_v0 = vrot.slane %v7640_v32, %v17982_v31  ;;  %v3627_v22 = vmul.f32 %v17984_v18, %v3626_v21  ;;  %v3628_v50 = vmul.f32 %v17985_v23, %v3626_v21  ;;  %v17999_v35 = vld [vmem:[#allocation20_spill] sm:$0xff]  ;;  %v18010_v31 = vld [vmem:[#allocation47_spill] sm:$0xff] }
 0x252   : > { %v12246_v56 = vrot.slane %v7639_v30, %v17980_v37  ;;  %v12260_v39 = vrot.slane %v7641_v9, %v17986_v4  ;;  %v12266_v16 = vrot.slane %v7642_v59, %v17988_v43  ;;  %v3629_v28 = vmul.f32 %v17990_v52, %v3626_v21  ;;  %v18000_v44 = vld [vmem:[#allocation26_spill] sm:$0xff]  ;;  %v18001_v10 = vld [vmem:[#allocation40_spill] sm:$0xff]  ;;  %v18011_v37 = vld [vmem:[#allocation27_spill] sm:$0xff] }
 0x253   : > { %17979 = vst [vmem:[#allocation30_spill] sm:$0xff] %v12240_v45  ;;  %17983 = vst [vmem:[#allocation23_spill] sm:$0xff] %v12252_v0  ;;  %v3630_v20 = vmul.f32 %v17991_v62, %v3626_v21  ;;  %v12271_v15 = vmul.f32 %v17992_v2, %v3626_v21  ;;  %v12274_v48 = vmul.f32 %v17993_v7, %v3626_v21  ;;  %v7643_v36 = vld [vmem:[%s16630_s0 + $0xd0] sm:$0xff]  ;;  %v18005_v2 = vld [vmem:[#allocation57_spill] sm:$0xff] }
 0x254   : > { %17981 = vst [vmem:[#allocation21_spill] sm:$0xff] %v12246_v56  ;;  %17987 = vst [vmem:[#allocation31_spill] sm:$0xff] %v12260_v39  ;;  %v12277_v25 = vmul.f32 %v17994_v27, %v3626_v21  ;;  %v3634_v17 = vmul.f32 %v17995_v54, %v3626_v21  ;;  %v12281_v49 = vmul.f32 %v17996_v3, %v3626_v21  ;;  %v18002_v30 = vld [vmem:[#allocation32_spill] sm:$0xff]  ;;  %v18006_v27 = vld [vmem:[#allocation34_spill] sm:$0xff] }
 0x255   : > { %17989 = vst [vmem:[#allocation25_spill] sm:$0xff] %v12266_v16  ;;  %v12284_v11 = vmul.f32 %v17997_v33, %v3626_v21  ;;  %v12287_v26 = vmul.f32 %v17998_v5, %v3626_v21  ;;  %v3638_v19 = vmul.f32 %v17999_v35, %v3626_v21  ;;  %v12291_v24 = vmul.f32 %v18000_v44, %v3626_v21  ;;  %v18003_v18 = vld [vmem:[#allocation48_spill] sm:$0xff]  ;;  %v18009_v4 = vld [vmem:[#allocation38_spill] sm:$0xff]  ;;  %v18013_v16 = vld [vmem:[#allocation15_spill] sm:$0xff] }
 0x256   : > { %v12294_v34 = vmul.f32 %v18001_v10, %v3626_v21  ;;  %v3641_v41 = vmul.f32 %v7643_v36, %v3626_v21  ;;  %v3642_v60 = vmul.f32 %v7644_v38, %v3626_v21  ;;  %v3643_v32 = vmul.f32 %v18002_v30, %v3626_v21  ;;  %v18004_v59 = vld [vmem:[#allocation56_spill] sm:$0xff]  ;;  %v18008_v36 = vld [vmem:[#allocation17_spill] sm:$0xff]  ;;  %v18014_v0 = vld [vmem:[#allocation54_spill] sm:$0xff] }
 0x257   : > { %v3644_v9 = vmul.f32 %v18003_v18, %v3626_v21  ;;  %v3645_v52 = vmul.f32 %v18004_v59, %v3626_v21  ;;  %v3646_v7 = vmul.f32 %v18005_v2, %v3626_v21  ;;  %v3647_v54 = vmul.f32 %v18006_v27, %v3626_v21  ;;  %v18007_v3 = vld [vmem:[#allocation44_spill] sm:$0xff]  ;;  %v18015_v56 = vld [vmem:[#allocation42_spill] sm:$0xff] }
 0x258   : > { %v3648_v33 = vmul.f32 %v18007_v3, %v3626_v21  ;;  %v3691_v5 = vrot.slane %v3627_v22, 3  ;;  %v3692_v35 = vrot.slane %v3628_v50, 3  ;;  %v3694_v44 = vrot.slane %v3629_v28, 3  ;;  %v18012_v55 = vld [vmem:[#allocation36_spill] sm:$0xff] }
 0x259   : > { %v3695_v10 = vrot.slane %v3630_v20, 3  ;;  %v3649_v43 = vmul.f32 %v18008_v36, %v3626_v21  ;;  %v3650_v38 = vmul.f32 %v18009_v4, %v3626_v21  ;;  %v3651_v30 = vmul.f32 %v18010_v31, %v3626_v21  ;;  %v7645_v22 = vld [vmem:[%s16630_s0 + $0x1b0] sm:$0xff]  ;;  %v7646_v4 = vld [vmem:[%s16630_s0 + $0x1b8] sm:$0xff] }
 0x25a   : > { %v3652_v47 = vmul.f32 %v18011_v37, %v3626_v21  ;;  %v3653_v59 = vmul.f32 %v18012_v55, %v3626_v21  ;;  %v3654_v39 = vmul.f32 %v18013_v16, %v3626_v21  ;;  %v3655_v27 = vmul.f32 %v18014_v0, %v3626_v21 }
 0x25b   : > { %v3656_v3 = vmul.f32 %v18015_v56, %v3626_v21  ;;  %v3657_v50 = vmul.f32 %v7645_v22, %v3626_v21  ;;  %v3658_v31 = vmul.f32 %v7646_v4, %v3626_v21  ;;  %v3697_v37 = vrot.slane %v12271_v15, 3 }
 0x25c   : > { %v3698_v55 = vrot.slane %v12274_v48, 3  ;;  %v3693_v16 = vsel %vm2802_vm2, %v3691_v5, %v3692_v35  ;;  %v3696_v0 = vsel %vm2802_vm2, %v3694_v44, %v3695_v10  ;;  %v3700_v56 = vrot.slane %v12277_v25, 3 }
 0x25d   : > { %v3701_v28 = vrot.slane %v3634_v17, 3  ;;  %v3703_v20 = vrot.slane %v12281_v49, 3  ;;  %v3704_v36 = vrot.slane %v12284_v11, 3  ;;  %v3706_v22 = vrot.slane %v12287_v26, 3 }
 0x25e   : > { %v3707_v2 = vrot.slane %v3638_v19, 3  ;;  %v3709_v21 = vrot.slane %v12291_v24, 3  ;;  %v3710_v15 = vrot.slane %v12294_v34, 3  ;;  %v3712_v4 = vrot.slane %v3641_v41, 3 }
 0x25f   : > { %v3713_v48 = vrot.slane %v3642_v60, 3  ;;  %v3715_v18 = vrot.slane %v3643_v32, 3  ;;  %v3716_v5 = vrot.slane %v3644_v9, 3  ;;  %v3718_v35 = vrot.slane %v3645_v52, 3 }
 0x260   : > { %v3719_v44 = vrot.slane %v3646_v7, 3  ;;  %v3721_v10 = vrot.slane %v3647_v54, 3  ;;  %v3722_v25 = vrot.slane %v3648_v33, 3  ;;  %v3724_v17 = vrot.slane %v3649_v43, 3 }
 0x261   : > { %v3725_v62 = vrot.slane %v3650_v38, 3  ;;  %v3727_v49 = vrot.slane %v3651_v30, 3  ;;  %v3728_v23 = vrot.slane %v3652_v47, 3  ;;  %v3730_v11 = vrot.slane %v3653_v59, 3 }
 0x262   : > { %v3731_v45 = vrot.slane %v3654_v39, 3  ;;  %v3699_v26 = vsel %vm2802_vm2, %v3697_v37, %v3698_v55  ;;  %v3702_v19 = vsel %vm2802_vm2, %v3700_v56, %v3701_v28  ;;  %v3733_v24 = vrot.slane %v3655_v27, 3  ;;  %v12425_v37 = vld [vmem:[%s16630_s0 + $0x20] sm:$0xff]  ;;  %v12443_v56 = vld [vmem:[%s16630_s0 + $0x30] sm:$0xff] }
 0x263   : > { %v3734_v34 = vrot.slane %v3656_v3, 3  ;;  %v3705_v41 = vsel %vm2802_vm2, %v3703_v20, %v3704_v36  ;;  %v3708_v60 = vsel %vm2802_vm2, %v3706_v22, %v3707_v2  ;;  %v3736_v32 = vrot.slane %v3657_v50, 3  ;;  %v12418_v50 = vld [vmem:[%s16630_s0 + $0x18] sm:$0xff]  ;;  %18017 = vst [vmem:[#allocation46_spill] sm:$0xff] %v12425_v37  ;;  %18019 = vst [vmem:[#allocation39_spill] sm:$0xff] %v12443_v56  ;;  %v12461_v22 = vld [vmem:[%s16630_s0 + $0x40] sm:$0xff] }
 0x264   : > { %v3737_v9 = vrot.slane %v3658_v31, 3  ;;  %v3711_v52 = vsel %vm2802_vm2, %v3709_v21, %v3710_v15  ;;  %v3714_v43 = vsel %vm2802_vm2, %v3712_v4, %v3713_v48  ;;  %v3717_v47 = vsel %vm2802_vm2, %v3715_v18, %v3716_v5  ;;  %v12452_v20 = vld [vmem:[%s16630_s0 + $0x38] sm:$0xff]  ;;  %18021 = vst [vmem:[#allocation19_spill] sm:$0xff] %v12461_v22  ;;  %v12470_v15 = vld [vmem:[%s16630_s0 + $0x48] sm:$0xff]  ;;  %v12479_v48 = vld [vmem:[%s16630_s0 + $0x50] sm:$0xff] }
 0x265   : > { %v3720_v39 = vsel %vm2802_vm2, %v3718_v35, %v3719_v44  ;;  %v3723_v7 = vsel %vm2802_vm2, %v3721_v10, %v3722_v25  ;;  %v3726_v54 = vsel %vm2802_vm2, %v3724_v17, %v3725_v62  ;;  %v3729_v33 = vsel %vm2802_vm2, %v3727_v49, %v3728_v23  ;;  %18020 = vst [vmem:[#allocation33_spill] sm:$0xff] %v12452_v20  ;;  %v12488_v35 = vld [vmem:[%s16630_s0 + $0x58] sm:$0xff]  ;;  %v12497_v10 = vld [vmem:[%s16630_s0 + $0x60] sm:$0xff]  ;;  %v18026_v17 = vld [vmem:[#allocation43_spill] sm:$0xff] }
 0x266   : > { %v3732_v38 = vsel %vm2802_vm2, %v3730_v11, %v3731_v45  ;;  %v3735_v2 = vsel %vm2802_vm2, %v3733_v24, %v3734_v34  ;;  %v12346_v30 = vadd.f32 %v3693_v16, %v12183_v13  ;;  %v12349_v59 = vadd.f32 %v3696_v0, %v12186_v46  ;;  %v12434_v16 = vld [vmem:[%s16630_s0 + $0x28] sm:$0xff]  ;;  %18022 = vst [vmem:[#allocation14_spill] sm:$0xff] %v12470_v15  ;;  %v12510_v11 = vld [vmem:[%s16630_s0 + $0x70] sm:$0xff]  ;;  %v7661_v34 = vld [vmem:[%s16630_s0 + $0xe0] sm:$0xff] }
 0x267   : > { %v12352_v18 = vadd.f32 %v3699_v26, %v12190_v40  ;;  %v3738_v27 = vsel %vm2802_vm2, %v3736_v32, %v3737_v9  ;;  %v12356_v3 = vadd.f32 %v3702_v19, %v12193_v29  ;;  %v12359_v23 = vadd.f32 %v3705_v41, %v12196_v8  ;;  %18018 = vst [vmem:[#allocation11_spill] sm:$0xff] %v12434_v16  ;;  %v18028_v19 = vld [vmem:[#allocation7_spill] sm:$0xff]  ;;  %v12535_v9 = vld [vmem:[%s16630_s0 + $0xf0] sm:$0xff] }
 0x268   : > { %v12362_v45 = vadd.f32 %v3708_v60, %v12200_v1  ;;  %v12365_v13 = vadd.f32 %v3711_v52, %v12203_v14  ;;  %v12368_v46 = vadd.f32 %v3714_v43, %v12210_v61  ;;  %v12371_v40 = vadd.f32 %v3717_v47, %v12213_v63  ;;  %18023 = vst [vmem:[#allocation16_spill] sm:$0xff] %v12479_v48  ;;  %v7662_v60 = vld [vmem:[%s16630_s0 + $0xe8] sm:$0xff]  ;;  %v12544_v43 = vld [vmem:[%s16630_s0 + $0xf8] sm:$0xff] }
 0x269   : > { %v12374_v62 = vadd.f32 %v3720_v39, %v12216_v42  ;;  %v12377_v29 = vadd.f32 %v3723_v7, %v12219_v58  ;;  %v12380_v8 = vadd.f32 %v3726_v54, %v12222_v57  ;;  %v12383_v1 = vadd.f32 %v3729_v33, %v12225_v12  ;;  %v7647_v42 = vld [vmem:[%s16630_s0] sm:$0xff]  ;;  %v7648_v12 = vld [vmem:[%s16630_s0 + $0x8] sm:$0xff]  ;;  %18024 = vst [vmem:[#allocation41_spill] sm:$0xff] %v12488_v35 }
 0x26a   : > { %v12386_v14 = vadd.f32 %v3732_v38, %v12228_v6  ;;  %v12389_v61 = vadd.f32 %v3735_v2, %v12231_v51  ;;  %v12392_v63 = vadd.f32 %v3738_v27, %v12234_v53  ;;  %v18016_v58 = vld [vmem:[#allocation30_spill] sm:$0xff]  ;;  %v12409_v51 = vld [vmem:[%s16630_s0 + $0x10] sm:$0xff]  ;;  %18025 = vst [vmem:[#allocation55_spill] sm:$0xff] %v12497_v10  ;;  %18027 = vst [vmem:[#allocation24_spill] sm:$0xff] %v12510_v11 }
 0x26b   : > { %v12398_v57 = vmul.f32 %v7647_v42, %v18016_v58  ;;  %v12404_v6 = vmul.f32 %v7648_v12, %v18016_v58  ;;  %v12413_v53 = vmul.f32 %v12409_v51, %v18016_v58  ;;  %v3778_v31 = vmul.f32 %v12418_v50, %v18016_v58  ;;  %18029 = vst [vmem:[#allocation29_spill] sm:$0xff] %v12535_v9  ;;  %v12553_v39 = vld [vmem:[%s16630_s0 + $0x100] sm:$0xff]  ;;  %v12562_v54 = vld [vmem:[%s16630_s0 + $0x108] sm:$0xff]  ;;  %v12574_v12 = vld [vmem:[%s16630_s0 + $0x110] sm:$0xff] }
 0x26c   : > { %v12429_v55 = vmul.f32 %v12425_v37, %v18016_v58  ;;  %v12438_v0 = vmul.f32 %v12434_v16, %v18016_v58  ;;  %v12447_v28 = vmul.f32 %v12443_v56, %v18016_v58  ;;  %v12456_v36 = vmul.f32 %v12452_v20, %v18016_v58  ;;  %18030 = vst [vmem:[#allocation50_spill] sm:$0xff] %v12544_v43 }
 0x26d   : > { %v12465_v21 = vmul.f32 %v12461_v22, %v18016_v58  ;;  %v12474_v4 = vmul.f32 %v12470_v15, %v18016_v58  ;;  %v12483_v5 = vmul.f32 %v12479_v48, %v18016_v58  ;;  %v12492_v44 = vmul.f32 %v12488_v35, %v18016_v58  ;;  %18031 = vst [vmem:[#allocation37_spill] sm:$0xff] %v12553_v39 }
 0x26e   : > { %v12501_v25 = vmul.f32 %v12497_v10, %v18016_v58  ;;  %v12505_v49 = vmul.f32 %v18026_v17, %v18016_v58  ;;  %v12514_v26 = vmul.f32 %v12510_v11, %v18016_v58  ;;  %v12518_v24 = vmul.f32 %v18028_v19, %v18016_v58  ;;  %18032 = vst [vmem:[#allocation53_spill] sm:$0xff] %v12562_v54 }
 0x26f   : > { %v12524_v41 = vmul.f32 %v7661_v34, %v18016_v58  ;;  %v12530_v32 = vmul.f32 %v7662_v60, %v18016_v58  ;;  %v12539_v52 = vmul.f32 %v12535_v9, %v18016_v58  ;;  %v12548_v47 = vmul.f32 %v12544_v43, %v18016_v58  ;;  %18033 = vst [vmem:[#allocation35_spill] sm:$0xff] %v12574_v12  ;;  %v12581_v60 = vld [vmem:[%s16630_s0 + $0x118] sm:$0xff]  ;;  %v18040_v9 = vld [vmem:[#allocation48_spill] sm:$0xff] }
 0x270   : > { %v12557_v7 = vmul.f32 %v12553_v39, %v18016_v58  ;;  %v12566_v33 = vmul.f32 %v12562_v54, %v18016_v58  ;;  %v3840_v38 = vrot.slane %v12398_v57, 4  ;;  %v3841_v2 = vrot.slane %v12404_v6, 4  ;;  %18034 = vst [vmem:[#allocation58_spill] sm:$0xff] %v12581_v60  ;;  %v12588_v6 = vld [vmem:[%s16630_s0 + $0x120] sm:$0xff] }
 0x271   : > { %v3843_v27 = vrot.slane %v12413_v53, 4  ;;  %v3844_v42 = vrot.slane %v3778_v31, 4  ;;  %v3797_v34 = vmul.f32 %v12574_v12, %v18016_v58  ;;  %v3798_v57 = vmul.f32 %v12581_v60, %v18016_v58  ;;  %18035 = vst [vmem:[#allocation28_spill] sm:$0xff] %v12588_v6  ;;  %v12595_v31 = vld [vmem:[%s16630_s0 + $0x128] sm:$0xff]  ;;  %v12602_v60 = vld [vmem:[%s16630_s0 + $0x130] sm:$0xff] }
 0x272   : > { %v3799_v53 = vmul.f32 %v12588_v6, %v18016_v58  ;;  %18036 = vst [vmem:[#allocation49_spill] sm:$0xff] %v12595_v31  ;;  %v3800_v12 = vmul.f32 %v12595_v31, %v18016_v58  ;;  %18037 = vst [vmem:[#allocation52_spill] sm:$0xff] %v12602_v60  ;;  %v3801_v54 = vmul.f32 %v12602_v60, %v18016_v58  ;;  %v12609_v6 = vld [vmem:[%s16630_s0 + $0x138] sm:$0xff]  ;;  %v12616_v31 = vld [vmem:[%s16630_s0 + $0x140] sm:$0xff]  ;;  %v3846_v10 = vrot.slane %v12429_v55, 4 }
 0x273   : > { %18038 = vst [vmem:[#allocation51_spill] sm:$0xff] %v12609_v6  ;;  %v3802_v39 = vmul.f32 %v12609_v6, %v18016_v58  ;;  %18039 = vst [vmem:[#allocation45_spill] sm:$0xff] %v12616_v31  ;;  %v3803_v43 = vmul.f32 %v12616_v31, %v18016_v58  ;;  %v3804_v19 = vmul.f32 %v18040_v9, %v18016_v58  ;;  %v12625_v60 = vld [vmem:[%s16630_s0 + $0x150] sm:$0xff]  ;;  %v18042_v6 = vld [vmem:[#allocation57_spill] sm:$0xff]  ;;  %v3847_v35 = vrot.slane %v12438_v0, 4 }
 0x274   : > { %18041 = vst [vmem:[#allocation20_spill] sm:$0xff] %v12625_v60  ;;  %v3805_v11 = vmul.f32 %v12625_v60, %v18016_v58  ;;  %v3806_v17 = vmul.f32 %v18042_v6, %v18016_v58  ;;  %v3842_v31 = vsel %vm3839_vm3, %v3840_v38, %v3841_v2  ;;  %v3845_v48 = vsel %vm3839_vm3, %v3843_v27, %v3844_v42 }
 0x275   : > { %v3849_v9 = vrot.slane %v12447_v28, 4  ;;  %v3850_v15 = vrot.slane %v12456_v36, 4  ;;  %v3852_v22 = vrot.slane %v12465_v21, 4  ;;  %v3853_v20 = vrot.slane %v12474_v4, 4 }
 0x276   : > { %v3855_v60 = vrot.slane %v12483_v5, 4  ;;  %v3856_v58 = vrot.slane %v12492_v44, 4  ;;  %v3858_v55 = vrot.slane %v12501_v25, 4  ;;  %v3859_v0 = vrot.slane %v12505_v49, 4 }
 0x277   : > { %v3861_v38 = vrot.slane %v12514_v26, 4  ;;  %v3862_v2 = vrot.slane %v12518_v24, 4  ;;  %v3864_v28 = vrot.slane %v12524_v41, 4  ;;  %v3865_v36 = vrot.slane %v12530_v32, 4 }
 0x278   : > { %v3867_v21 = vrot.slane %v12539_v52, 4  ;;  %v3868_v4 = vrot.slane %v12548_v47, 4  ;;  %v3870_v5 = vrot.slane %v12557_v7, 4  ;;  %v3871_v44 = vrot.slane %v12566_v33, 4 }
 0x279   : > { %v3873_v27 = vrot.slane %v3797_v34, 4  ;;  %v3874_v25 = vrot.slane %v3798_v57, 4  ;;  %v3876_v42 = vrot.slane %v3799_v53, 4  ;;  %v3877_v49 = vrot.slane %v3800_v12, 4 }
 0x27a   : > { %v3879_v6 = vrot.slane %v3801_v54, 4  ;;  %v3880_v26 = vrot.slane %v3802_v39, 4  ;;  %v3848_v24 = vsel %vm3839_vm3, %v3846_v10, %v3847_v35  ;;  %v3851_v41 = vsel %vm3839_vm3, %v3849_v9, %v3850_v15 }
 0x27b   : > { %v3882_v56 = vrot.slane %v3803_v43, 4  ;;  %v3883_v32 = vrot.slane %v3804_v19, 4  ;;  %v3854_v52 = vsel %vm3839_vm3, %v3852_v22, %v3853_v20  ;;  %v3857_v47 = vsel %vm3839_vm3, %v3855_v60, %v3856_v58 }
 0x27c   : > { %v3885_v16 = vrot.slane %v3805_v11, 4  ;;  %v3886_v7 = vrot.slane %v3806_v17, 4  ;;  %v3860_v33 = vsel %vm3839_vm3, %v3858_v55, %v3859_v0  ;;  %v3863_v34 = vsel %vm3839_vm3, %v3861_v38, %v3862_v2  ;;  %v18050_v55 = vld [vmem:[#allocation41_spill] sm:$0xff]  ;;  %v18051_v38 = vld [vmem:[#allocation55_spill] sm:$0xff] }
 0x27d   : > { %v3866_v12 = vsel %vm3839_vm3, %v3864_v28, %v3865_v36  ;;  %v3869_v39 = vsel %vm3839_vm3, %v3867_v21, %v3868_v4  ;;  %v3872_v35 = vsel %vm3839_vm3, %v3870_v5, %v3871_v44  ;;  %v3875_v15 = vsel %vm3839_vm3, %v3873_v27, %v3874_v25  ;;  %v18052_v28 = vld [vmem:[#allocation43_spill] sm:$0xff]  ;;  %v18053_v21 = vld [vmem:[#allocation24_spill] sm:$0xff]  ;;  %v12760_v27 = vld [vmem:[%s16630_s0 + $0x80] sm:$0xff] }
 0x27e   : > { %v3878_v10 = vsel %vm3839_vm3, %v3876_v42, %v3877_v49  ;;  %v3881_v20 = vsel %vm3839_vm3, %v3879_v6, %v3880_v26  ;;  %v3884_v22 = vsel %vm3839_vm3, %v3882_v56, %v3883_v32  ;;  %v12665_v17 = vadd.f32 %v3842_v31, %v12346_v30  ;;  %v18047_v6 = vld [vmem:[#allocation19_spill] sm:$0xff]  ;;  %v18049_v31 = vld [vmem:[#allocation16_spill] sm:$0xff]  ;;  %18055 = vst [vmem:[#allocation26_spill] sm:$0xff] %v12760_v27  ;;  %v18057_v26 = vld [vmem:[#allocation29_spill] sm:$0xff] }
 0x27f   : > { %v12668_v11 = vadd.f32 %v3845_v48, %v12349_v59  ;;  %v12671_v19 = vadd.f32 %v3848_v24, %v12352_v18  ;;  %v3887_v9 = vsel %vm3839_vm3, %v3885_v16, %v3886_v7  ;;  %v12675_v43 = vadd.f32 %v3851_v41, %v12356_v3  ;;  %v18054_v5 = vld [vmem:[#allocation7_spill] sm:$0xff]  ;;  %v18058_v41 = vld [vmem:[#allocation50_spill] sm:$0xff]  ;;  %v18060_v7 = vld [vmem:[#allocation53_spill] sm:$0xff] }
 0x280   : > { %v12678_v54 = vadd.f32 %v3854_v52, %v12359_v23  ;;  %v12681_v60 = vadd.f32 %v3857_v47, %v12362_v45  ;;  %v12684_v30 = vadd.f32 %v3860_v33, %v12365_v13  ;;  %v12687_v59 = vadd.f32 %v3863_v34, %v12368_v46  ;;  %v12767_v42 = vld [vmem:[%s16630_s0 + $0x88] sm:$0xff]  ;;  %v18059_v52 = vld [vmem:[#allocation37_spill] sm:$0xff] }
 0x281   : > { %v12690_v18 = vadd.f32 %v3866_v12, %v12371_v40  ;;  %v12693_v16 = vadd.f32 %v3869_v39, %v12374_v62  ;;  %v12696_v3 = vadd.f32 %v3872_v35, %v12377_v29  ;;  %v12699_v23 = vadd.f32 %v3875_v15, %v12380_v8  ;;  %v18043_v62 = vld [vmem:[#allocation21_spill] sm:$0xff]  ;;  %18056 = vst [vmem:[#allocation40_spill] sm:$0xff] %v12767_v42  ;;  %v18061_v34 = vld [vmem:[#allocation35_spill] sm:$0xff]  ;;  %v18062_v39 = vld [vmem:[#allocation58_spill] sm:$0xff] }
 0x282   : > { %v12702_v45 = vadd.f32 %v3878_v10, %v12383_v1  ;;  %v12705_v13 = vadd.f32 %v3881_v20, %v12386_v14  ;;  %v12708_v46 = vadd.f32 %v3884_v22, %v12389_v61  ;;  %v12711_v40 = vadd.f32 %v3887_v9, %v12392_v63  ;;  %v18044_v1 = vld [vmem:[#allocation11_spill] sm:$0xff]  ;;  %v18046_v61 = vld [vmem:[#allocation33_spill] sm:$0xff]  ;;  %v18063_v9 = vld [vmem:[#allocation28_spill] sm:$0xff] }
 0x283   : > { %v3924_v56 = vmul.f32 %v12409_v51, %v18043_v62  ;;  %v3925_v29 = vmul.f32 %v12418_v50, %v18043_v62  ;;  %v3926_v8 = vmul.f32 %v12425_v37, %v18043_v62  ;;  %v3927_v48 = vmul.f32 %v18044_v1, %v18043_v62  ;;  %v18045_v14 = vld [vmem:[#allocation39_spill] sm:$0xff]  ;;  %v18048_v50 = vld [vmem:[#allocation14_spill] sm:$0xff] }
 0x284   : > { %v12723_v57 = vmul.f32 %v18045_v14, %v18043_v62  ;;  %v12727_v63 = vmul.f32 %v18046_v61, %v18043_v62  ;;  %v12731_v51 = vmul.f32 %v18047_v6, %v18043_v62  ;;  %v3931_v53 = vmul.f32 %v18048_v50, %v18043_v62 }
 0x285   : > { %v12737_v58 = vmul.f32 %v18049_v31, %v18043_v62  ;;  %v12741_v0 = vmul.f32 %v18050_v55, %v18043_v62  ;;  %v12745_v2 = vmul.f32 %v18051_v38, %v18043_v62  ;;  %v3935_v36 = vmul.f32 %v18052_v28, %v18043_v62 }
 0x286   : > { %v12751_v4 = vmul.f32 %v18053_v21, %v18043_v62  ;;  %v12755_v44 = vmul.f32 %v18054_v5, %v18043_v62  ;;  %v3938_v25 = vmul.f32 %v12760_v27, %v18043_v62  ;;  %v3939_v49 = vmul.f32 %v12767_v42, %v18043_v62 }
 0x287   : > { %v3940_v24 = vmul.f32 %v18057_v26, %v18043_v62  ;;  %v3941_v32 = vmul.f32 %v18058_v41, %v18043_v62  ;;  %v3942_v47 = vmul.f32 %v18059_v52, %v18043_v62  ;;  %v3943_v33 = vmul.f32 %v18060_v7, %v18043_v62  ;;  %v18064_v41 = vld [vmem:[#allocation49_spill] sm:$0xff]  ;;  %v18065_v52 = vld [vmem:[#allocation52_spill] sm:$0xff]  ;;  %v18066_v7 = vld [vmem:[#allocation51_spill] sm:$0xff] }
 0x288   : > { %v3944_v12 = vmul.f32 %v18061_v34, %v18043_v62  ;;  %v3945_v35 = vmul.f32 %v18062_v39, %v18043_v62  ;;  %v3988_v15 = vrot.slane %v3924_v56, 4  ;;  %v3989_v10 = vrot.slane %v3925_v29, 4  ;;  %v18067_v34 = vld [vmem:[#allocation45_spill] sm:$0xff]  ;;  %v18068_v56 = vld [vmem:[#allocation48_spill] sm:$0xff] }
 0x289   : > { %v3991_v20 = vrot.slane %v3926_v8, 4  ;;  %v3992_v22 = vrot.slane %v3927_v48, 4  ;;  %v3946_v26 = vmul.f32 %v18063_v9, %v18043_v62  ;;  %v3947_v42 = vmul.f32 %v18064_v41, %v18043_v62  ;;  %v18069_v8 = vld [vmem:[#allocation20_spill] sm:$0xff]  ;;  %v18070_v9 = vld [vmem:[#allocation57_spill] sm:$0xff]  ;;  %v12802_v41 = vld [vmem:[%s16630_s0 + $0x160] sm:$0xff] }
 0x28a   : > { %v3948_v27 = vmul.f32 %v18065_v52, %v18043_v62  ;;  %v3949_v5 = vmul.f32 %v18066_v7, %v18043_v62  ;;  %v3950_v21 = vmul.f32 %v18067_v34, %v18043_v62  ;;  %v3951_v29 = vmul.f32 %v18068_v56, %v18043_v62  ;;  %18071 = vst [vmem:[#allocation32_spill] sm:$0xff] %v12802_v41  ;;  %v12809_v34 = vld [vmem:[%s16630_s0 + $0x168] sm:$0xff] }
 0x28b   : > { %v3952_v48 = vmul.f32 %v18069_v8, %v18043_v62  ;;  %v3953_v39 = vmul.f32 %v18070_v9, %v18043_v62  ;;  %v3954_v7 = vmul.f32 %v12802_v41, %v18043_v62  ;;  %18072 = vst [vmem:[#allocation56_spill] sm:$0xff] %v12809_v34  ;;  %v3955_v56 = vmul.f32 %v12809_v34, %v18043_v62 }
 0x28c   : > { %v3994_v8 = vrot.slane %v12723_v57, 4  ;;  %v3995_v9 = vrot.slane %v12727_v63, 4  ;;  %v3990_v52 = vsel %vm3839_vm3, %v3988_v15, %v3989_v10  ;;  %v3993_v28 = vsel %vm3839_vm3, %v3991_v20, %v3992_v22 }
 0x28d   : > { %v3997_v38 = vrot.slane %v12731_v51, 4  ;;  %v3998_v55 = vrot.slane %v3931_v53, 4  ;;  %v4000_v41 = vrot.slane %v12737_v58, 4  ;;  %v4001_v31 = vrot.slane %v12741_v0, 4 }
 0x28e   : > { %v4003_v50 = vrot.slane %v12745_v2, 4  ;;  %v4004_v6 = vrot.slane %v3935_v36, 4  ;;  %v4006_v62 = vrot.slane %v12751_v4, 4  ;;  %v4007_v57 = vrot.slane %v12755_v44, 4 }
 0x28f   : > { %v4009_v34 = vrot.slane %v3938_v25, 4  ;;  %v4010_v63 = vrot.slane %v3939_v49, 4  ;;  %v4012_v61 = vrot.slane %v3940_v24, 4  ;;  %v4013_v15 = vrot.slane %v3941_v32, 4 }
 0x290   : > { %v4015_v10 = vrot.slane %v3942_v47, 4  ;;  %v4016_v20 = vrot.slane %v3943_v33, 4  ;;  %v4018_v22 = vrot.slane %v3944_v12, 4  ;;  %v4019_v51 = vrot.slane %v3945_v35, 4 }
 0x291   : > { %v4021_v53 = vrot.slane %v3946_v26, 4  ;;  %v4022_v14 = vrot.slane %v3947_v42, 4  ;;  %v4024_v58 = vrot.slane %v3948_v27, 4  ;;  %v4025_v1 = vrot.slane %v3949_v5, 4  ;;  %v18080_v26 = vld [vmem:[#allocation16_spill] sm:$0xff] }
 0x292   : > { %v4027_v0 = vrot.slane %v3950_v21, 4  ;;  %v4028_v37 = vrot.slane %v3951_v29, 4  ;;  %v3996_v2 = vsel %vm3839_vm3, %v3994_v8, %v3995_v9  ;;  %v3999_v36 = vsel %vm3839_vm3, %v3997_v38, %v3998_v55  ;;  %v18082_v8 = vld [vmem:[#allocation55_spill] sm:$0xff] }
 0x293   : > { %v4030_v4 = vrot.slane %v3952_v48, 4  ;;  %v4031_v44 = vrot.slane %v3953_v39, 4  ;;  %v4002_v25 = vsel %vm3839_vm3, %v4000_v41, %v4001_v31  ;;  %v4005_v49 = vsel %vm3839_vm3, %v4003_v50, %v4004_v6 }
 0x294   : > { %v4033_v24 = vrot.slane %v3954_v7, 4  ;;  %v4034_v32 = vrot.slane %v3955_v56, 4  ;;  %v4008_v47 = vsel %vm3839_vm3, %v4006_v62, %v4007_v57  ;;  %v4011_v42 = vsel %vm3839_vm3, %v4009_v34, %v4010_v63  ;;  %v18081_v56 = vld [vmem:[#allocation41_spill] sm:$0xff]  ;;  %v18083_v62 = vld [vmem:[#allocation43_spill] sm:$0xff]  ;;  %v18084_v63 = vld [vmem:[#allocation24_spill] sm:$0xff] }
 0x295   : > { %v4014_v5 = vsel %vm3839_vm3, %v4012_v61, %v4013_v15  ;;  %v4017_v21 = vsel %vm3839_vm3, %v4015_v10, %v4016_v20  ;;  %v4020_v27 = vsel %vm3839_vm3, %v4018_v22, %v4019_v51  ;;  %v4023_v55 = vsel %vm3839_vm3, %v4021_v53, %v4022_v14  ;;  %v18085_v10 = vld [vmem:[#allocation7_spill] sm:$0xff]  ;;  %v18086_v22 = vld [vmem:[#allocation26_spill] sm:$0xff]  ;;  %v18087_v53 = vld [vmem:[#allocation40_spill] sm:$0xff] }
 0x296   : > { %v4026_v38 = vsel %vm3839_vm3, %v4024_v58, %v4025_v1  ;;  %v4029_v31 = vsel %vm3839_vm3, %v4027_v0, %v4028_v37  ;;  %v4032_v6 = vsel %vm3839_vm3, %v4030_v4, %v4031_v44  ;;  %v12837_v50 = vadd.f32 %v3990_v52, %v12665_v17  ;;  %v12932_v0 = vld [vmem:[%s16630_s0 + $0x90] sm:$0xff]  ;;  %v18090_v44 = vld [vmem:[#allocation37_spill] sm:$0xff] }
 0x297   : > { %v12840_v7 = vadd.f32 %v3993_v28, %v12668_v11  ;;  %v12843_v61 = vadd.f32 %v3996_v2, %v12671_v19  ;;  %v4035_v33 = vsel %vm3839_vm3, %v4033_v24, %v4034_v32  ;;  %v12847_v34 = vadd.f32 %v3999_v36, %v12675_v43  ;;  %v18074_v28 = vld [vmem:[#allocation46_spill] sm:$0xff]  ;;  %18088 = vst [vmem:[#allocation34_spill] sm:$0xff] %v12932_v0  ;;  %v12939_v36 = vld [vmem:[%s16630_s0 + $0x98] sm:$0xff]  ;;  %v18092_v32 = vld [vmem:[#allocation35_spill] sm:$0xff] }
 0x298   : > { %v12850_v1 = vadd.f32 %v4002_v25, %v12678_v54  ;;  %v12853_v37 = vadd.f32 %v4005_v49, %v12681_v60  ;;  %v12856_v17 = vadd.f32 %v4008_v47, %v12684_v30  ;;  %v12859_v11 = vadd.f32 %v4011_v42, %v12687_v59  ;;  %18089 = vst [vmem:[#allocation44_spill] sm:$0xff] %v12939_v36  ;;  %v18091_v49 = vld [vmem:[#allocation53_spill] sm:$0xff]  ;;  %v18093_v42 = vld [vmem:[#allocation58_spill] sm:$0xff] }
 0x299   : > { %v12862_v19 = vadd.f32 %v4014_v5, %v12690_v18  ;;  %v12865_v14 = vadd.f32 %v4017_v21, %v12693_v16  ;;  %v12868_v43 = vadd.f32 %v4020_v27, %v12696_v3  ;;  %v12871_v54 = vadd.f32 %v4023_v55, %v12699_v23  ;;  %v18073_v16 = vld [vmem:[#allocation23_spill] sm:$0xff]  ;;  %v18094_v21 = vld [vmem:[#allocation28_spill] sm:$0xff]  ;;  %v18095_v55 = vld [vmem:[#allocation49_spill] sm:$0xff] }
 0x29a   : > { %v12874_v60 = vadd.f32 %v4026_v38, %v12702_v45  ;;  %v12877_v30 = vadd.f32 %v4029_v31, %v12705_v13  ;;  %v12880_v59 = vadd.f32 %v4032_v6, %v12708_v46  ;;  %v12883_v18 = vadd.f32 %v4035_v33, %v12711_v40  ;;  %v18075_v3 = vld [vmem:[#allocation11_spill] sm:$0xff]  ;;  %v18077_v45 = vld [vmem:[#allocation33_spill] sm:$0xff]  ;;  %v18079_v46 = vld [vmem:[#allocation14_spill] sm:$0xff] }
 0x29b   : > { %v4072_v52 = vmul.f32 %v18074_v28, %v18073_v16  ;;  %v4073_v12 = vmul.f32 %v18075_v3, %v18073_v16  ;;  %v18076_v23 = vld [vmem:[#allocation39_spill] sm:$0xff]  ;;  %v4075_v35 = vmul.f32 %v18077_v45, %v18073_v16  ;;  %v12899_v40 = vmul.f32 %v18079_v46, %v18073_v16  ;;  %v18096_v3 = vld [vmem:[#allocation52_spill] sm:$0xff] }
 0x29c   : > { %v4074_v39 = vmul.f32 %v18076_v23, %v18073_v16  ;;  %v18078_v13 = vld [vmem:[#allocation19_spill] sm:$0xff]  ;;  %v12903_v41 = vmul.f32 %v18080_v26, %v18073_v16  ;;  %v4079_v29 = vmul.f32 %v18081_v56, %v18073_v16  ;;  %v12909_v48 = vmul.f32 %v18082_v8, %v18073_v16 }
 0x29d   : > { %v12895_v9 = vmul.f32 %v18078_v13, %v18073_v16  ;;  %v12913_v57 = vmul.f32 %v18083_v62, %v18073_v16  ;;  %v12917_v15 = vmul.f32 %v18084_v63, %v18073_v16  ;;  %v4083_v20 = vmul.f32 %v18085_v10, %v18073_v16  ;;  %v18097_v10 = vld [vmem:[#allocation51_spill] sm:$0xff] }
 0x29e   : > { %v12923_v51 = vmul.f32 %v18086_v22, %v18073_v16  ;;  %v12927_v58 = vmul.f32 %v18087_v53, %v18073_v16  ;;  %v4086_v2 = vmul.f32 %v12932_v0, %v18073_v16  ;;  %v4087_v4 = vmul.f32 %v12939_v36, %v18073_v16 }
 0x29f   : > { %v4088_v25 = vmul.f32 %v18090_v44, %v18073_v16  ;;  %v4089_v24 = vmul.f32 %v18091_v49, %v18073_v16  ;;  %v4090_v47 = vmul.f32 %v18092_v32, %v18073_v16  ;;  %v4091_v5 = vmul.f32 %v18093_v42, %v18073_v16  ;;  %v18098_v49 = vld [vmem:[#allocation45_spill] sm:$0xff]  ;;  %v18099_v42 = vld [vmem:[#allocation48_spill] sm:$0xff] }
 0x2a0   : > { %v4092_v27 = vmul.f32 %v18094_v21, %v18073_v16  ;;  %v4093_v38 = vmul.f32 %v18095_v55, %v18073_v16  ;;  %v4136_v31 = vrot.slane %v4072_v52, 4  ;;  %v4137_v6 = vrot.slane %v4073_v12, 4  ;;  %v18100_v21 = vld [vmem:[#allocation20_spill] sm:$0xff]  ;;  %v18101_v52 = vld [vmem:[#allocation57_spill] sm:$0xff] }
 0x2a1   : > { %v4139_v33 = vrot.slane %v4074_v39, 4  ;;  %v4140_v28 = vrot.slane %v4075_v35, 4  ;;  %v4094_v62 = vmul.f32 %v18096_v3, %v18073_v16  ;;  %v4095_v44 = vmul.f32 %v18097_v10, %v18073_v16  ;;  %v18102_v39 = vld [vmem:[#allocation32_spill] sm:$0xff] }
 0x2a2   : > { %v4096_v32 = vmul.f32 %v18098_v49, %v18073_v16  ;;  %v4097_v36 = vmul.f32 %v18099_v42, %v18073_v16  ;;  %v4098_v0 = vmul.f32 %v18100_v21, %v18073_v16  ;;  %v4099_v12 = vmul.f32 %v18101_v52, %v18073_v16  ;;  %v18103_v3 = vld [vmem:[#allocation56_spill] sm:$0xff]  ;;  %v12981_v21 = vld [vmem:[%s16630_s0 + $0x178] sm:$0xff] }
 0x2a3   : > { %v4100_v35 = vmul.f32 %v18102_v39, %v18073_v16  ;;  %v4101_v55 = vmul.f32 %v18103_v3, %v18073_v16  ;;  %v12974_v10 = vld [vmem:[%s16630_s0 + $0x170] sm:$0xff]  ;;  %18105 = vst [vmem:[#allocation38_spill] sm:$0xff] %v12981_v21  ;;  %v4103_v52 = vmul.f32 %v12981_v21, %v18073_v16  ;;  %v4142_v39 = vrot.slane %v12895_v9, 4 }
 0x2a4   : > { %18104 = vst [vmem:[#allocation17_spill] sm:$0xff] %v12974_v10  ;;  %v4102_v42 = vmul.f32 %v12974_v10, %v18073_v16  ;;  %v4143_v3 = vrot.slane %v12899_v40, 4  ;;  %v4138_v49 = vsel %vm3839_vm3, %v4136_v31, %v4137_v6  ;;  %v4141_v53 = vsel %vm3839_vm3, %v4139_v33, %v4140_v28 }
 0x2a5   : > { %v4145_v22 = vrot.slane %v12903_v41, 4  ;;  %v4146_v63 = vrot.slane %v4079_v29, 4  ;;  %v4148_v10 = vrot.slane %v12909_v48, 4  ;;  %v4149_v8 = vrot.slane %v12913_v57, 4 }
 0x2a6   : > { %v4151_v56 = vrot.slane %v12917_v15, 4  ;;  %v4152_v26 = vrot.slane %v4083_v20, 4  ;;  %v4154_v16 = vrot.slane %v12923_v51, 4  ;;  %v4155_v9 = vrot.slane %v12927_v58, 4 }
 0x2a7   : > { %v4157_v21 = vrot.slane %v4086_v2, 4  ;;  %v4158_v40 = vrot.slane %v4087_v4, 4  ;;  %v4160_v46 = vrot.slane %v4088_v25, 4  ;;  %v4161_v31 = vrot.slane %v4089_v24, 4 }
 0x2a8   : > { %v4163_v6 = vrot.slane %v4090_v47, 4  ;;  %v4164_v33 = vrot.slane %v4091_v5, 4  ;;  %v4166_v28 = vrot.slane %v4092_v27, 4  ;;  %v4167_v41 = vrot.slane %v4093_v38, 4 }
 0x2a9   : > { %v4169_v29 = vrot.slane %v4094_v62, 4  ;;  %v4170_v13 = vrot.slane %v4095_v44, 4  ;;  %v4172_v48 = vrot.slane %v4096_v32, 4  ;;  %v4173_v45 = vrot.slane %v4097_v36, 4 }
 0x2aa   : > { %v4175_v57 = vrot.slane %v4098_v0, 4  ;;  %v4176_v23 = vrot.slane %v4099_v12, 4  ;;  %v4144_v15 = vsel %vm3839_vm3, %v4142_v39, %v4143_v3  ;;  %v4147_v20 = vsel %vm3839_vm3, %v4145_v22, %v4146_v63  ;;  %v13080_v39 = vld [vmem:[%s16630_s0 + $0x68] sm:$0xff] }
 0x2ab   : > { %v4178_v51 = vrot.slane %v4100_v35, 4  ;;  %v4179_v58 = vrot.slane %v4101_v55, 4  ;;  %v4150_v2 = vsel %vm3839_vm3, %v4148_v10, %v4149_v8  ;;  %v4153_v4 = vsel %vm3839_vm3, %v4151_v56, %v4152_v26  ;;  %18114 = vst [vmem:[#allocation47_spill] sm:$0xff] %v13080_v39 }
 0x2ac   : > { %v4181_v25 = vrot.slane %v4102_v42, 4  ;;  %v4182_v24 = vrot.slane %v4103_v52, 4  ;;  %v4156_v47 = vsel %vm3839_vm3, %v4154_v16, %v4155_v9  ;;  %v4159_v5 = vsel %vm3839_vm3, %v4157_v21, %v4158_v40  ;;  %v18115_v42 = vld [vmem:[#allocation24_spill] sm:$0xff]  ;;  %v13093_v16 = vld [vmem:[%s16630_s0 + $0x78] sm:$0xff]  ;;  %v18117_v40 = vld [vmem:[#allocation26_spill] sm:$0xff] }
 0x2ad   : > { %v4162_v36 = vsel %vm3839_vm3, %v4160_v46, %v4161_v31  ;;  %v4165_v0 = vsel %vm3839_vm3, %v4163_v6, %v4164_v33  ;;  %v4168_v32 = vsel %vm3839_vm3, %v4166_v28, %v4167_v41  ;;  %v4171_v63 = vsel %vm3839_vm3, %v4169_v29, %v4170_v13  ;;  %18116 = vst [vmem:[#allocation27_spill] sm:$0xff] %v13093_v16  ;;  %v18118_v6 = vld [vmem:[#allocation40_spill] sm:$0xff]  ;;  %v18119_v28 = vld [vmem:[#allocation34_spill] sm:$0xff] }
 0x2ae   : > { %v4174_v22 = vsel %vm3839_vm3, %v4172_v48, %v4173_v45  ;;  %v4177_v8 = vsel %vm3839_vm3, %v4175_v57, %v4176_v23  ;;  %v4180_v26 = vsel %vm3839_vm3, %v4178_v51, %v4179_v58  ;;  %v13009_v56 = vadd.f32 %v4138_v49, %v12837_v50  ;;  %v18113_v49 = vld [vmem:[#allocation55_spill] sm:$0xff]  ;;  %v18120_v29 = vld [vmem:[#allocation44_spill] sm:$0xff]  ;;  %v13118_v57 = vld [vmem:[%s16630_s0 + $0xa0] sm:$0xff] }
 0x2af   : > { %v13012_v27 = vadd.f32 %v4141_v53, %v12840_v7  ;;  %v13015_v46 = vadd.f32 %v4144_v15, %v12843_v61  ;;  %v4183_v21 = vsel %vm3839_vm3, %v4181_v25, %v4182_v24  ;;  %v13019_v55 = vadd.f32 %v4147_v20, %v12847_v34  ;;  %v18107_v53 = vld [vmem:[#allocation39_spill] sm:$0xff]  ;;  %18121 = vst [vmem:[#allocation36_spill] sm:$0xff] %v13118_v57  ;;  %v18125_v24 = vld [vmem:[#allocation28_spill] sm:$0xff] }
 0x2b0   : > { %v13022_v45 = vadd.f32 %v4150_v2, %v12850_v1  ;;  %v13025_v23 = vadd.f32 %v4153_v4, %v12853_v37  ;;  %v13028_v50 = vadd.f32 %v4156_v47, %v12856_v17  ;;  %v13031_v7 = vadd.f32 %v4159_v5, %v12859_v11  ;;  %v13127_v20 = vld [vmem:[%s16630_s0 + $0xa8] sm:$0xff]  ;;  %v18124_v4 = vld [vmem:[#allocation58_spill] sm:$0xff]  ;;  %v18126_v5 = vld [vmem:[#allocation49_spill] sm:$0xff] }
 0x2b1   : > { %v13034_v61 = vadd.f32 %v4162_v36, %v12862_v19  ;;  %v13037_v13 = vadd.f32 %v4165_v0, %v12865_v14  ;;  %v13040_v34 = vadd.f32 %v4168_v32, %v12868_v43  ;;  %v13043_v1 = vadd.f32 %v4171_v63, %v12871_v54  ;;  %v18106_v14 = vld [vmem:[#allocation31_spill] sm:$0xff]  ;;  %v18108_v43 = vld [vmem:[#allocation33_spill] sm:$0xff]  ;;  %18122 = vst [vmem:[#allocation15_spill] sm:$0xff] %v13127_v20  ;;  %v18127_v0 = vld [vmem:[#allocation52_spill] sm:$0xff] }
 0x2b2   : > { %v13046_v37 = vadd.f32 %v4174_v22, %v12874_v60  ;;  %v13049_v17 = vadd.f32 %v4177_v8, %v12877_v30  ;;  %v13052_v11 = vadd.f32 %v4180_v26, %v12880_v59  ;;  %v13055_v19 = vadd.f32 %v4183_v21, %v12883_v18  ;;  %v18109_v54 = vld [vmem:[#allocation19_spill] sm:$0xff]  ;;  %v18110_v60 = vld [vmem:[#allocation14_spill] sm:$0xff]  ;;  %v18111_v30 = vld [vmem:[#allocation16_spill] sm:$0xff] }
 0x2b3   : > { %v4220_v38 = vmul.f32 %v18107_v53, %v18106_v14  ;;  %v4221_v3 = vmul.f32 %v18108_v43, %v18106_v14  ;;  %v4222_v62 = vmul.f32 %v18109_v54, %v18106_v14  ;;  %v4223_v10 = vmul.f32 %v18110_v60, %v18106_v14  ;;  %v18112_v59 = vld [vmem:[#allocation41_spill] sm:$0xff]  ;;  %v18123_v58 = vld [vmem:[#allocation35_spill] sm:$0xff] }
 0x2b4   : > { %v13067_v44 = vmul.f32 %v18111_v30, %v18106_v14  ;;  %v13071_v18 = vmul.f32 %v18112_v59, %v18106_v14  ;;  %v13075_v12 = vmul.f32 %v18113_v49, %v18106_v14  ;;  %v13084_v35 = vmul.f32 %v13080_v39, %v18106_v14  ;;  %v18128_v63 = vld [vmem:[#allocation51_spill] sm:$0xff]  ;;  %v18129_v43 = vld [vmem:[#allocation45_spill] sm:$0xff] }
 0x2b5   : > { %v13088_v52 = vmul.f32 %v18115_v42, %v18106_v14  ;;  %v13097_v9 = vmul.f32 %v13093_v16, %v18106_v14  ;;  %v13101_v31 = vmul.f32 %v18117_v40, %v18106_v14  ;;  %v13105_v33 = vmul.f32 %v18118_v6, %v18106_v14 }
 0x2b6   : > { %v13109_v41 = vmul.f32 %v18119_v28, %v18106_v14  ;;  %v13113_v48 = vmul.f32 %v18120_v29, %v18106_v14  ;;  %v13122_v15 = vmul.f32 %v13118_v57, %v18106_v14  ;;  %v4235_v51 = vmul.f32 %v13127_v20, %v18106_v14  ;;  %v18135_v20 = vld [vmem:[#allocation17_spill] sm:$0xff]  ;;  %v18136_v57 = vld [vmem:[#allocation38_spill] sm:$0xff] }
 0x2b7   : > { %v4236_v2 = vmul.f32 %v18123_v58, %v18106_v14  ;;  %v4237_v25 = vmul.f32 %v18124_v4, %v18106_v14  ;;  %v4238_v47 = vmul.f32 %v18125_v24, %v18106_v14  ;;  %v4239_v36 = vmul.f32 %v18126_v5, %v18106_v14  ;;  %v13148_v4 = vld [vmem:[%s16630_s0 + $0x148] sm:$0xff]  ;;  %v13172_v29 = vld [vmem:[%s16630_s0 + $0x180] sm:$0xff] }
 0x2b8   : > { %v4240_v32 = vmul.f32 %v18127_v0, %v18106_v14  ;;  %v4241_v22 = vmul.f32 %v18128_v63, %v18106_v14  ;;  %v4284_v8 = vrot.slane %v4220_v38, 4  ;;  %v4285_v26 = vrot.slane %v4221_v3, 4  ;;  %18130 = vst [vmem:[#allocation54_spill] sm:$0xff] %v13148_v4  ;;  %v18131_v0 = vld [vmem:[#allocation20_spill] sm:$0xff]  ;;  %v13157_v38 = vld [vmem:[%s16630_s0 + $0x158] sm:$0xff]  ;;  %18137 = vst [vmem:[#allocation30_spill] sm:$0xff] %v13172_v29 }
 0x2b9   : > { %v4287_v21 = vrot.slane %v4222_v62, 4  ;;  %v4288_v53 = vrot.slane %v4223_v10, 4  ;;  %v4242_v58 = vmul.f32 %v18129_v43, %v18106_v14  ;;  %v4243_v5 = vmul.f32 %v13148_v4, %v18106_v14  ;;  %18132 = vst [vmem:[#allocation42_spill] sm:$0xff] %v13157_v38  ;;  %v18133_v62 = vld [vmem:[#allocation32_spill] sm:$0xff] }
 0x2ba   : > { %v4244_v24 = vmul.f32 %v18131_v0, %v18106_v14  ;;  %v4245_v3 = vmul.f32 %v13157_v38, %v18106_v14  ;;  %v4246_v10 = vmul.f32 %v18133_v62, %v18106_v14  ;;  %v18134_v43 = vld [vmem:[#allocation56_spill] sm:$0xff]  ;;  %v4248_v4 = vmul.f32 %v18135_v20, %v18106_v14  ;;  %v13179_v62 = vld [vmem:[%s16630_s0 + $0x188] sm:$0xff] }
 0x2bb   : > { %v4247_v63 = vmul.f32 %v18134_v43, %v18106_v14  ;;  %v4249_v0 = vmul.f32 %v18136_v57, %v18106_v14  ;;  %v4250_v38 = vmul.f32 %v13172_v29, %v18106_v14  ;;  %18138 = vst [vmem:[#allocation21_spill] sm:$0xff] %v13179_v62  ;;  %v4251_v43 = vmul.f32 %v13179_v62, %v18106_v14 }
 0x2bc   : > { %v4290_v20 = vrot.slane %v13067_v44, 4  ;;  %v4291_v57 = vrot.slane %v13071_v18, 4  ;;  %v4286_v28 = vsel %vm3839_vm3, %v4284_v8, %v4285_v26  ;;  %v4289_v6 = vsel %vm3839_vm3, %v4287_v21, %v4288_v53 }
 0x2bd   : > { %v4293_v40 = vrot.slane %v13075_v12, 4  ;;  %v4294_v29 = vrot.slane %v13084_v35, 4  ;;  %v4296_v16 = vrot.slane %v13088_v52, 4  ;;  %v4297_v42 = vrot.slane %v13097_v9, 4 }
 0x2be   : > { %v4299_v39 = vrot.slane %v13101_v31, 4  ;;  %v4300_v14 = vrot.slane %v13105_v33, 4  ;;  %v4302_v44 = vrot.slane %v13109_v41, 4  ;;  %v4303_v18 = vrot.slane %v13113_v48, 4 }
 0x2bf   : > { %v4305_v8 = vrot.slane %v13122_v15, 4  ;;  %v4306_v26 = vrot.slane %v4235_v51, 4  ;;  %v4308_v21 = vrot.slane %v4236_v2, 4  ;;  %v4309_v53 = vrot.slane %v4237_v25, 4 }
 0x2c0   : > { %v4311_v12 = vrot.slane %v4238_v47, 4  ;;  %v4312_v62 = vrot.slane %v4239_v36, 4  ;;  %v4314_v35 = vrot.slane %v4240_v32, 4  ;;  %v4315_v49 = vrot.slane %v4241_v22, 4 }
 0x2c1   : > { %v4317_v52 = vrot.slane %v4242_v58, 4  ;;  %v4318_v59 = vrot.slane %v4243_v5, 4  ;;  %v4320_v9 = vrot.slane %v4244_v24, 4  ;;  %v4321_v30 = vrot.slane %v4245_v3, 4  ;;  %v18146_v58 = vld [vmem:[#allocation24_spill] sm:$0xff] }
 0x2c2   : > { %v4323_v31 = vrot.slane %v4246_v10, 4  ;;  %v4324_v60 = vrot.slane %v4247_v63, 4  ;;  %v4292_v33 = vsel %vm3839_vm3, %v4290_v20, %v4291_v57  ;;  %v4295_v41 = vsel %vm3839_vm3, %v4293_v40, %v4294_v29 }
 0x2c3   : > { %v4326_v48 = vrot.slane %v4248_v4, 4  ;;  %v4327_v54 = vrot.slane %v4249_v0, 4  ;;  %v4298_v15 = vsel %vm3839_vm3, %v4296_v16, %v4297_v42  ;;  %v4301_v51 = vsel %vm3839_vm3, %v4299_v39, %v4300_v14  ;;  %v18149_v14 = vld [vmem:[#allocation40_spill] sm:$0xff] }
 0x2c4   : > { %v4329_v2 = vrot.slane %v4250_v38, 4  ;;  %v4330_v25 = vrot.slane %v4251_v43, 4  ;;  %v4304_v47 = vsel %vm3839_vm3, %v4302_v44, %v4303_v18  ;;  %v4307_v5 = vsel %vm3839_vm3, %v4305_v8, %v4306_v26  ;;  %v18147_v38 = vld [vmem:[#allocation27_spill] sm:$0xff]  ;;  %v18150_v18 = vld [vmem:[#allocation34_spill] sm:$0xff]  ;;  %v18151_v26 = vld [vmem:[#allocation44_spill] sm:$0xff] }
 0x2c5   : > { %v4310_v24 = vsel %vm3839_vm3, %v4308_v21, %v4309_v53  ;;  %v4313_v36 = vsel %vm3839_vm3, %v4311_v12, %v4312_v62  ;;  %v4316_v57 = vsel %vm3839_vm3, %v4314_v35, %v4315_v49  ;;  %v4319_v40 = vsel %vm3839_vm3, %v4317_v52, %v4318_v59  ;;  %v18140_v59 = vld [vmem:[#allocation19_spill] sm:$0xff]  ;;  %v18148_v62 = vld [vmem:[#allocation26_spill] sm:$0xff]  ;;  %v18152_v53 = vld [vmem:[#allocation36_spill] sm:$0xff] }
 0x2c6   : > { %v4322_v29 = vsel %vm3839_vm3, %v4320_v9, %v4321_v30  ;;  %v4325_v42 = vsel %vm3839_vm3, %v4323_v31, %v4324_v60  ;;  %v4328_v39 = vsel %vm3839_vm3, %v4326_v48, %v4327_v54  ;;  %v13210_v16 = vadd.f32 %v4286_v28, %v13009_v56  ;;  %v18153_v35 = vld [vmem:[#allocation15_spill] sm:$0xff]  ;;  %v13305_v9 = vld [vmem:[%s16630_s0 + $0xb0] sm:$0xff] }
 0x2c7   : > { %v13213_v20 = vadd.f32 %v4289_v6, %v13012_v27  ;;  %v13216_v0 = vadd.f32 %v4292_v33, %v13015_v46  ;;  %v4331_v32 = vsel %vm3839_vm3, %v4329_v2, %v4330_v25  ;;  %v13220_v49 = vadd.f32 %v4295_v41, %v13019_v55  ;;  %18154 = vst [vmem:[#allocation29_spill] sm:$0xff] %v13305_v9  ;;  %v13312_v33 = vld [vmem:[%s16630_s0 + $0xb8] sm:$0xff]  ;;  %v18156_v48 = vld [vmem:[#allocation28_spill] sm:$0xff] }
 0x2c8   : > { %v13223_v30 = vadd.f32 %v4298_v15, %v13022_v45  ;;  %v13226_v60 = vadd.f32 %v4301_v51, %v13025_v23  ;;  %v13229_v56 = vadd.f32 %v4304_v47, %v13028_v50  ;;  %v13232_v27 = vadd.f32 %v4307_v5, %v13031_v7  ;;  %18155 = vst [vmem:[#allocation50_spill] sm:$0xff] %v13312_v33  ;;  %v18157_v51 = vld [vmem:[#allocation49_spill] sm:$0xff]  ;;  %v18158_v25 = vld [vmem:[#allocation52_spill] sm:$0xff]  ;;  %v18159_v5 = vld [vmem:[#allocation51_spill] sm:$0xff] }
 0x2c9   : > { %v13235_v46 = vadd.f32 %v4310_v24, %v13034_v61  ;;  %v13238_v54 = vadd.f32 %v4313_v36, %v13037_v13  ;;  %v13241_v55 = vadd.f32 %v4316_v57, %v13040_v34  ;;  %v13244_v45 = vadd.f32 %v4319_v40, %v13043_v1  ;;  %v18139_v13 = vld [vmem:[#allocation25_spill] sm:$0xff]  ;;  %v18141_v34 = vld [vmem:[#allocation14_spill] sm:$0xff]  ;;  %v18142_v1 = vld [vmem:[#allocation16_spill] sm:$0xff] }
 0x2ca   : > { %v13247_v23 = vadd.f32 %v4322_v29, %v13046_v37  ;;  %v13250_v50 = vadd.f32 %v4325_v42, %v13049_v17  ;;  %v13253_v7 = vadd.f32 %v4328_v39, %v13052_v11  ;;  %v13256_v61 = vadd.f32 %v4331_v32, %v13055_v19  ;;  %v18143_v37 = vld [vmem:[#allocation41_spill] sm:$0xff]  ;;  %v18144_v17 = vld [vmem:[#allocation55_spill] sm:$0xff]  ;;  %v18161_v40 = vld [vmem:[#allocation54_spill] sm:$0xff] }
 0x2cb   : > { %v4368_v6 = vmul.f32 %v18140_v59, %v18139_v13  ;;  %v4369_v28 = vmul.f32 %v18141_v34, %v18139_v13  ;;  %v4370_v63 = vmul.f32 %v18142_v1, %v18139_v13  ;;  %v4371_v22 = vmul.f32 %v18143_v37, %v18139_v13  ;;  %v18145_v11 = vld [vmem:[#allocation47_spill] sm:$0xff]  ;;  %v18160_v36 = vld [vmem:[#allocation45_spill] sm:$0xff]  ;;  %v18162_v34 = vld [vmem:[#allocation20_spill] sm:$0xff] }
 0x2cc   : > { %v13268_v43 = vmul.f32 %v18144_v17, %v18139_v13  ;;  %v13272_v19 = vmul.f32 %v18145_v11, %v18139_v13  ;;  %v13276_v4 = vmul.f32 %v18146_v58, %v18139_v13  ;;  %v4375_v3 = vmul.f32 %v18147_v38, %v18139_v13 }
 0x2cd   : > { %v13282_v10 = vmul.f32 %v18148_v62, %v18139_v13  ;;  %v13286_v44 = vmul.f32 %v18149_v14, %v18139_v13  ;;  %v13290_v8 = vmul.f32 %v18150_v18, %v18139_v13  ;;  %v4379_v21 = vmul.f32 %v18151_v26, %v18139_v13 }
 0x2ce   : > { %v13296_v12 = vmul.f32 %v18152_v53, %v18139_v13  ;;  %v13300_v52 = vmul.f32 %v18153_v35, %v18139_v13  ;;  %v4382_v31 = vmul.f32 %v13305_v9, %v18139_v13  ;;  %v4383_v41 = vmul.f32 %v13312_v33, %v18139_v13 }
 0x2cf   : > { %v4384_v15 = vmul.f32 %v18156_v48, %v18139_v13  ;;  %v4385_v2 = vmul.f32 %v18157_v51, %v18139_v13  ;;  %v4386_v47 = vmul.f32 %v18158_v25, %v18139_v13  ;;  %v4387_v24 = vmul.f32 %v18159_v5, %v18139_v13  ;;  %v18163_v51 = vld [vmem:[#allocation42_spill] sm:$0xff]  ;;  %v18164_v25 = vld [vmem:[#allocation32_spill] sm:$0xff] }
 0x2d0   : > { %v4388_v57 = vmul.f32 %v18160_v36, %v18139_v13  ;;  %v4389_v29 = vmul.f32 %v18161_v40, %v18139_v13  ;;  %v4432_v42 = vrot.slane %v4368_v6, 4  ;;  %v4433_v39 = vrot.slane %v4369_v28, 4  ;;  %v18165_v5 = vld [vmem:[#allocation56_spill] sm:$0xff]  ;;  %v18166_v36 = vld [vmem:[#allocation17_spill] sm:$0xff]  ;;  %v18167_v6 = vld [vmem:[#allocation38_spill] sm:$0xff] }
 0x2d1   : > { %v4435_v32 = vrot.slane %v4370_v63, 4  ;;  %v4436_v59 = vrot.slane %v4371_v22, 4  ;;  %v4390_v48 = vmul.f32 %v18162_v34, %v18139_v13  ;;  %v4391_v33 = vmul.f32 %v18163_v51, %v18139_v13  ;;  %v18168_v63 = vld [vmem:[#allocation30_spill] sm:$0xff]  ;;  %v18169_v34 = vld [vmem:[#allocation21_spill] sm:$0xff]  ;;  %v13347_v51 = vld [vmem:[%s16630_s0 + $0x190] sm:$0xff] }
 0x2d2   : > { %v4392_v9 = vmul.f32 %v18164_v25, %v18139_v13  ;;  %v4393_v35 = vmul.f32 %v18165_v5, %v18139_v13  ;;  %v4394_v53 = vmul.f32 %v18166_v36, %v18139_v13  ;;  %v4395_v28 = vmul.f32 %v18167_v6, %v18139_v13  ;;  %18170 = vst [vmem:[#allocation23_spill] sm:$0xff] %v13347_v51  ;;  %v13354_v36 = vld [vmem:[%s16630_s0 + $0x198] sm:$0xff] }
 0x2d3   : > { %v4396_v22 = vmul.f32 %v18168_v63, %v18139_v13  ;;  %v4397_v40 = vmul.f32 %v18169_v34, %v18139_v13  ;;  %v4398_v5 = vmul.f32 %v13347_v51, %v18139_v13  ;;  %18171 = vst [vmem:[#allocation46_spill] sm:$0xff] %v13354_v36  ;;  %v4399_v6 = vmul.f32 %v13354_v36, %v18139_v13 }
 0x2d4   : > { %v4438_v63 = vrot.slane %v13268_v43, 4  ;;  %v4439_v34 = vrot.slane %v13272_v19, 4  ;;  %v4434_v25 = vsel %vm3839_vm3, %v4432_v42, %v4433_v39  ;;  %v4437_v26 = vsel %vm3839_vm3, %v4435_v32, %v4436_v59 }
 0x2d5   : > { %v4441_v18 = vrot.slane %v13276_v4, 4  ;;  %v4442_v14 = vrot.slane %v4375_v3, 4  ;;  %v4444_v51 = vrot.slane %v13282_v10, 4  ;;  %v4445_v62 = vrot.slane %v13286_v44, 4 }
 0x2d6   : > { %v4447_v38 = vrot.slane %v13290_v8, 4  ;;  %v4448_v58 = vrot.slane %v4379_v21, 4  ;;  %v4450_v13 = vrot.slane %v13296_v12, 4  ;;  %v4451_v43 = vrot.slane %v13300_v52, 4 }
 0x2d7   : > { %v4453_v36 = vrot.slane %v4382_v31, 4  ;;  %v4454_v19 = vrot.slane %v4383_v41, 4  ;;  %v4456_v11 = vrot.slane %v4384_v15, 4  ;;  %v4457_v42 = vrot.slane %v4385_v2, 4 }
 0x2d8   : > { %v4459_v39 = vrot.slane %v4386_v47, 4  ;;  %v4460_v32 = vrot.slane %v4387_v24, 4  ;;  %v4462_v59 = vrot.slane %v4388_v57, 4  ;;  %v4463_v4 = vrot.slane %v4389_v29, 4 }
 0x2d9   : > { %v4465_v3 = vrot.slane %v4390_v48, 4  ;;  %v4466_v17 = vrot.slane %v4391_v33, 4  ;;  %v4468_v10 = vrot.slane %v4392_v9, 4  ;;  %v4469_v37 = vrot.slane %v4393_v35, 4  ;;  %v18178_v48 = vld [vmem:[#allocation18_spill] sm:$0xff] }
 0x2da   : > { %v4471_v44 = vrot.slane %v4394_v53, 4  ;;  %v4472_v1 = vrot.slane %v4395_v28, 4  ;;  %v4440_v8 = vsel %vm3839_vm3, %v4438_v63, %v4439_v34  ;;  %v4443_v21 = vsel %vm3839_vm3, %v4441_v18, %v4442_v14  ;;  %v7699_v34 = vld [vmem:[%s16631_s1 + $0x10] sm:$0xff]  ;;  %v18180_v28 = vld [vmem:[#allocation22_spill] sm:$0xff] }
 0x2db   : > { %v4474_v12 = vrot.slane %v4396_v22, 4  ;;  %v4475_v52 = vrot.slane %v4397_v40, 4  ;;  %v4446_v31 = vsel %vm3839_vm3, %v4444_v51, %v4445_v62  ;;  %v4449_v41 = vsel %vm3839_vm3, %v4447_v38, %v4448_v58  ;;  %v18182_v22 = vld [vmem:[#allocation16_spill] sm:$0xff] }
 0x2dc   : > { %v4477_v15 = vrot.slane %v4398_v5, 4  ;;  %v4478_v2 = vrot.slane %v4399_v6, 4  ;;  %v4452_v47 = vsel %vm3839_vm3, %v4450_v13, %v4451_v43  ;;  %v4455_v33 = vsel %vm3839_vm3, %v4453_v36, %v4454_v19  ;;  %v7700_v6 = vld [vmem:[%s16631_s1 + $0x18] sm:$0xff] }
 0x2dd   : > { %v4458_v35 = vsel %vm3839_vm3, %v4456_v11, %v4457_v42  ;;  %v4461_v53 = vsel %vm3839_vm3, %v4459_v39, %v4460_v32  ;;  %v4464_v9 = vsel %vm3839_vm3, %v4462_v59, %v4463_v4  ;;  %v4467_v14 = vsel %vm3839_vm3, %v4465_v3, %v4466_v17  ;;  %v18172_v17 = vld [vmem:[#allocation8_spill] sm:$0xff]  ;;  %v18183_v43 = vld [vmem:[#allocation41_spill] sm:$0xff]  ;;  %v18184_v42 = vld [vmem:[#allocation55_spill] sm:$0xff] }
 0x2de   : > { %v4470_v18 = vsel %vm3839_vm3, %v4468_v10, %v4469_v37  ;;  %v4473_v62 = vsel %vm3839_vm3, %v4471_v44, %v4472_v1  ;;  %v4476_v58 = vsel %vm3839_vm3, %v4474_v12, %v4475_v52  ;;  %v13382_v38 = vadd.f32 %v4434_v25, %v13210_v16  ;;  %v18185_v32 = vld [vmem:[#allocation47_spill] sm:$0xff]  ;;  %v18186_v4 = vld [vmem:[#allocation24_spill] sm:$0xff] }
 0x2df   : > { %v13385_v5 = vadd.f32 %v4437_v26, %v13213_v20  ;;  %v13388_v11 = vadd.f32 %v4440_v8, %v13216_v0  ;;  %v4479_v24 = vsel %vm3839_vm3, %v4477_v15, %v4478_v2  ;;  %v13392_v36 = vadd.f32 %v4443_v21, %v13220_v49  ;;  %v7695_v49 = vld [vmem:[%s16631_s1 + $0x20] sm:$0xff]  ;;  %v18187_v10 = vld [vmem:[#allocation27_spill] sm:$0xff]  ;;  %v18189_v12 = vld [vmem:[#allocation40_spill] sm:$0xff] }
 0x2e0   : > { %v13395_v37 = vadd.f32 %v4446_v31, %v13223_v30  ;;  %v13398_v1 = vadd.f32 %v4449_v41, %v13226_v60  ;;  %v13401_v16 = vadd.f32 %v4452_v47, %v13229_v56  ;;  %v13404_v20 = vadd.f32 %v4455_v33, %v13232_v27  ;;  %v18188_v8 = vld [vmem:[#allocation26_spill] sm:$0xff]  ;;  %v18191_v15 = vld [vmem:[#allocation44_spill] sm:$0xff] }
 0x2e1   : > { %v13407_v0 = vadd.f32 %v4458_v35, %v13235_v46  ;;  %v4515_v26 = vrot.slane %v7695_v49, %v18172_v17  ;;  %v13414_v30 = vadd.f32 %v4461_v53, %v13238_v54  ;;  %v13417_v60 = vadd.f32 %v4464_v9, %v13241_v55  ;;  %v7696_v54 = vld [vmem:[%s16631_s1 + $0x28] sm:$0xff]  ;;  %v18173_v55 = vld [vmem:[#allocation9_spill] sm:$0xff]  ;;  %v18190_v31 = vld [vmem:[#allocation34_spill] sm:$0xff] }
 0x2e2   : > { %v13420_v56 = vadd.f32 %v4467_v14, %v13244_v45  ;;  %v13423_v27 = vadd.f32 %v4470_v18, %v13247_v23  ;;  %v13426_v46 = vadd.f32 %v4473_v62, %v13250_v50  ;;  %v13429_v25 = vadd.f32 %v4476_v58, %v13253_v7  ;;  %v7697_v45 = vld [vmem:[%s16631_s1] sm:$0xff]  ;;  %v18174_v23 = vld [vmem:[#allocation12_spill] sm:$0xff]  ;;  %v7698_v7 = vld [vmem:[%s16631_s1 + $0x8] sm:$0xff] }
 0x2e3   : > { %v13432_v57 = vadd.f32 %v4479_v24, %v13256_v61  ;;  %v13438_v40 = vrot.slane %v7696_v54, %v18173_v55  ;;  %v13444_v50 = vrot.slane %v7697_v45, %v18174_v23  ;;  %v18176_v61 = vld [vmem:[#allocation13_spill] sm:$0xff]  ;;  %v13456_v51 = vrot.slane %v7699_v34, %v18178_v48  ;;  %v18192_v47 = vld [vmem:[#allocation36_spill] sm:$0xff]  ;;  %v18193_v35 = vld [vmem:[#allocation15_spill] sm:$0xff] }
 0x2e4   : > { %v13450_v29 = vrot.slane %v7698_v7, %v18176_v61  ;;  %v13462_v63 = vrot.slane %v7700_v6, %v18180_v28  ;;  %v4516_v13 = vmul.f32 %v18182_v22, %v4515_v26  ;;  %v4517_v19 = vmul.f32 %v18183_v43, %v4515_v26  ;;  %v18194_v9 = vld [vmem:[#allocation29_spill] sm:$0xff]  ;;  %v18195_v18 = vld [vmem:[#allocation50_spill] sm:$0xff]  ;;  %v13499_v49 = vld [vmem:[%s16630_s0 + $0xc8] sm:$0xff] }
 0x2e5   : > { %18175 = vst [vmem:[#allocation11_spill] sm:$0xff] %v13444_v50  ;;  %18179 = vst [vmem:[#allocation7_spill] sm:$0xff] %v13456_v51  ;;  %v4518_v39 = vmul.f32 %v18184_v42, %v4515_v26  ;;  %v4519_v59 = vmul.f32 %v18185_v32, %v4515_v26  ;;  %v4520_v3 = vmul.f32 %v18186_v4, %v4515_v26  ;;  %v13493_v58 = vld [vmem:[%s16630_s0 + $0xc0] sm:$0xff]  ;;  %v18198_v45 = vld [vmem:[#allocation52_spill] sm:$0xff] }
 0x2e6   : > { %18177 = vst [vmem:[#allocation43_spill] sm:$0xff] %v13450_v29  ;;  %18181 = vst [vmem:[#allocation37_spill] sm:$0xff] %v13462_v63  ;;  %v4521_v44 = vmul.f32 %v18187_v10, %v4515_v26  ;;  %v4522_v21 = vmul.f32 %v18188_v8, %v4515_v26  ;;  %v4523_v52 = vmul.f32 %v18189_v12, %v4515_v26  ;;  %v18199_v34 = vld [vmem:[#allocation51_spill] sm:$0xff]  ;;  %v18200_v22 = vld [vmem:[#allocation45_spill] sm:$0xff]  ;;  %v4580_v29 = vrot.slane %v4516_v13, 4 }
 0x2e7   : > { %v13473_v41 = vmul.f32 %v18190_v31, %v4515_v26  ;;  %v13476_v2 = vmul.f32 %v18191_v15, %v4515_v26  ;;  %v13479_v33 = vmul.f32 %v18192_v47, %v4515_v26  ;;  %v13482_v53 = vmul.f32 %v18193_v35, %v4515_v26  ;;  %18196 = vst [vmem:[#allocation53_spill] sm:$0xff] %v13493_v58  ;;  %v18201_v42 = vld [vmem:[#allocation54_spill] sm:$0xff]  ;;  %v18202_v28 = vld [vmem:[#allocation20_spill] sm:$0xff]  ;;  %v18206_v35 = vld [vmem:[#allocation17_spill] sm:$0xff] }
 0x2e8   : > { %v13485_v14 = vmul.f32 %v18194_v9, %v4515_v26  ;;  %v13488_v62 = vmul.f32 %v18195_v18, %v4515_v26  ;;  %v4530_v24 = vmul.f32 %v13493_v58, %v4515_v26  ;;  %18197 = vst [vmem:[#allocation48_spill] sm:$0xff] %v13499_v49  ;;  %v4531_v54 = vmul.f32 %v13499_v49, %v4515_v26  ;;  %v18203_v61 = vld [vmem:[#allocation42_spill] sm:$0xff]  ;;  %v18204_v55 = vld [vmem:[#allocation32_spill] sm:$0xff]  ;;  %v18209_v31 = vld [vmem:[#allocation21_spill] sm:$0xff] }
 0x2e9   : > { %v4532_v7 = vmul.f32 %v18198_v45, %v4515_v26  ;;  %v4533_v6 = vmul.f32 %v18199_v34, %v4515_v26  ;;  %v4534_v43 = vmul.f32 %v18200_v22, %v4515_v26  ;;  %v4535_v4 = vmul.f32 %v18201_v42, %v4515_v26  ;;  %v18205_v63 = vld [vmem:[#allocation56_spill] sm:$0xff]  ;;  %v18207_v47 = vld [vmem:[#allocation38_spill] sm:$0xff]  ;;  %v18210_v12 = vld [vmem:[#allocation23_spill] sm:$0xff] }
 0x2ea   : > { %v4536_v48 = vmul.f32 %v18202_v28, %v4515_v26  ;;  %v4537_v23 = vmul.f32 %v18203_v61, %v4515_v26  ;;  %v4538_v17 = vmul.f32 %v18204_v55, %v4515_v26  ;;  %v4539_v51 = vmul.f32 %v18205_v63, %v4515_v26  ;;  %v18208_v15 = vld [vmem:[#allocation30_spill] sm:$0xff] }
 0x2eb   : > { %v4581_v50 = vrot.slane %v4517_v19, 4  ;;  %v4583_v58 = vrot.slane %v4518_v39, 4  ;;  %v4584_v49 = vrot.slane %v4519_v59, 4  ;;  %v4586_v18 = vrot.slane %v4520_v3, 4  ;;  %v18211_v8 = vld [vmem:[#allocation46_spill] sm:$0xff]  ;;  %v13525_v39 = vld [vmem:[%s16630_s0 + $0x1a8] sm:$0xff] }
 0x2ec   : > { %v4587_v45 = vrot.slane %v4521_v44, 4  ;;  %v4589_v9 = vrot.slane %v4522_v21, 4  ;;  %v4590_v34 = vrot.slane %v4523_v52, 4  ;;  %v4540_v22 = vmul.f32 %v18206_v35, %v4515_v26  ;;  %v13519_v13 = vld [vmem:[%s16630_s0 + $0x1a0] sm:$0xff]  ;;  %18213 = vst [vmem:[#allocation31_spill] sm:$0xff] %v13525_v39 }
 0x2ed   : > { %v4541_v42 = vmul.f32 %v18207_v47, %v4515_v26  ;;  %v4542_v28 = vmul.f32 %v18208_v15, %v4515_v26  ;;  %v4543_v61 = vmul.f32 %v18209_v31, %v4515_v26  ;;  %v4544_v55 = vmul.f32 %v18210_v12, %v4515_v26  ;;  %18212 = vst [vmem:[#allocation57_spill] sm:$0xff] %v13519_v13 }
 0x2ee   : > { %v4545_v63 = vmul.f32 %v18211_v8, %v4515_v26  ;;  %v4546_v19 = vmul.f32 %v13519_v13, %v4515_v26  ;;  %v4547_v59 = vmul.f32 %v13525_v39, %v4515_v26  ;;  %v4582_v3 = vsel %vm3839_vm3, %v4580_v29, %v4581_v50 }
 0x2ef   : > { %v4585_v44 = vsel %vm3839_vm3, %v4583_v58, %v4584_v49  ;;  %v4592_v21 = vrot.slane %v13473_v41, 4  ;;  %v4593_v52 = vrot.slane %v13476_v2, 4  ;;  %v4588_v8 = vsel %vm3839_vm3, %v4586_v18, %v4587_v45 }
 0x2f0   : > { %v4591_v12 = vsel %vm3839_vm3, %v4589_v9, %v4590_v34  ;;  %v4595_v13 = vrot.slane %v13479_v33, 4  ;;  %v4596_v31 = vrot.slane %v13482_v53, 4  ;;  %v4598_v15 = vrot.slane %v13485_v14, 4 }
 0x2f1   : > { %v4599_v26 = vrot.slane %v13488_v62, 4  ;;  %v4601_v39 = vrot.slane %v4530_v24, 4  ;;  %v4602_v50 = vrot.slane %v4531_v54, 4  ;;  %v4604_v29 = vrot.slane %v4532_v7, 4 }
 0x2f2   : > { %v4605_v58 = vrot.slane %v4533_v6, 4  ;;  %v4607_v49 = vrot.slane %v4534_v43, 4  ;;  %v4608_v41 = vrot.slane %v4535_v4, 4  ;;  %v4610_v47 = vrot.slane %v4536_v48, 4  ;;  %v18219_v4 = vld [vmem:[#allocation40_spill] sm:$0xff] }
 0x2f3   : > { %v4611_v2 = vrot.slane %v4537_v23, 4  ;;  %v4613_v35 = vrot.slane %v4538_v17, 4  ;;  %v4614_v18 = vrot.slane %v4539_v51, 4  ;;  %v4616_v45 = vrot.slane %v4540_v22, 4 }
 0x2f4   : > { %v4617_v9 = vrot.slane %v4541_v42, 4  ;;  %v4619_v34 = vrot.slane %v4542_v28, 4  ;;  %v4620_v33 = vrot.slane %v4543_v61, 4  ;;  %v4622_v10 = vrot.slane %v4544_v55, 4  ;;  %v18220_v28 = vld [vmem:[#allocation34_spill] sm:$0xff] }
 0x2f5   : > { %v4623_v53 = vrot.slane %v4545_v63, 4  ;;  %v4625_v32 = vrot.slane %v4546_v19, 4  ;;  %v4626_v14 = vrot.slane %v4547_v59, 4  ;;  %v4594_v62 = vsel %vm3839_vm3, %v4592_v21, %v4593_v52  ;;  %v18221_v19 = vld [vmem:[#allocation44_spill] sm:$0xff]  ;;  %v18224_v52 = vld [vmem:[#allocation29_spill] sm:$0xff] }
 0x2f6   : > { %v4597_v24 = vsel %vm3839_vm3, %v4595_v13, %v4596_v31  ;;  %v4600_v54 = vsel %vm3839_vm3, %v4598_v15, %v4599_v26  ;;  %v4603_v7 = vsel %vm3839_vm3, %v4601_v39, %v4602_v50  ;;  %v4606_v23 = vsel %vm3839_vm3, %v4604_v29, %v4605_v58  ;;  %v18222_v59 = vld [vmem:[#allocation36_spill] sm:$0xff]  ;;  %v18225_v50 = vld [vmem:[#allocation50_spill] sm:$0xff]  ;;  %v18226_v58 = vld [vmem:[#allocation53_spill] sm:$0xff] }
 0x2f7   : > { %v4609_v17 = vsel %vm3839_vm3, %v4607_v49, %v4608_v41  ;;  %v4612_v48 = vsel %vm3839_vm3, %v4610_v47, %v4611_v2  ;;  %v4615_v61 = vsel %vm3839_vm3, %v4613_v35, %v4614_v18  ;;  %v4618_v55 = vsel %vm3839_vm3, %v4616_v45, %v4617_v9  ;;  %v18227_v41 = vld [vmem:[#allocation48_spill] sm:$0xff]  ;;  %v7708_v9 = vld [vmem:[%s16630_s0 + $0xd8] sm:$0xff] }
 0x2f8   : > { %v4621_v51 = vsel %vm3839_vm3, %v4619_v34, %v4620_v33  ;;  %v13549_v63 = vadd.f32 %v4582_v3, %v13382_v38  ;;  %v13552_v31 = vadd.f32 %v4585_v44, %v13385_v5  ;;  %v4624_v15 = vsel %vm3839_vm3, %v4622_v10, %v4623_v53  ;;  %v18223_v44 = vld [vmem:[#allocation15_spill] sm:$0xff]  ;;  %v7707_v18 = vld [vmem:[%s16630_s0 + $0xd0] sm:$0xff]  ;;  %v13661_v33 = vld [vmem:[%s16630_s0 + $0x140] sm:$0xff] }
 0x2f9   : > { %v4627_v6 = vsel %vm3839_vm3, %v4625_v32, %v4626_v14  ;;  %v13557_v43 = vadd.f32 %v4588_v8, %v13388_v11  ;;  %v13560_v47 = vadd.f32 %v4591_v12, %v13392_v36  ;;  %v13563_v35 = vadd.f32 %v4594_v62, %v13395_v37  ;;  %v18218_v8 = vld [vmem:[#allocation26_spill] sm:$0xff]  ;;  %18228 = vst [vmem:[#allocation35_spill] sm:$0xff] %v13661_v33 }
 0x2fa   : > { %v13566_v42 = vadd.f32 %v4597_v24, %v13398_v1  ;;  %v13569_v38 = vadd.f32 %v4600_v54, %v13401_v16  ;;  %v13572_v5 = vadd.f32 %v4603_v7, %v13404_v20  ;;  %v13575_v32 = vadd.f32 %v4606_v23, %v13407_v0  ;;  %v18229_v14 = vld [vmem:[#allocation54_spill] sm:$0xff]  ;;  %v13670_v24 = vld [vmem:[%s16630_s0 + $0x150] sm:$0xff] }
 0x2fb   : > { %v13578_v11 = vadd.f32 %v4609_v17, %v13414_v30  ;;  %v13581_v36 = vadd.f32 %v4612_v48, %v13417_v60  ;;  %v13584_v37 = vadd.f32 %v4615_v61, %v13420_v56  ;;  %v13587_v1 = vadd.f32 %v4618_v55, %v13423_v27  ;;  %v13601_v30 = vld [vmem:[%s16630_s0 + $0x60] sm:$0xff]  ;;  %v18215_v56 = vld [vmem:[#allocation47_spill] sm:$0xff]  ;;  %18230 = vst [vmem:[#allocation58_spill] sm:$0xff] %v13670_v24  ;;  %v18232_v17 = vld [vmem:[#allocation32_spill] sm:$0xff] }
 0x2fc   : > { %v13590_v16 = vadd.f32 %v4621_v51, %v13426_v46  ;;  %v13593_v20 = vadd.f32 %v4624_v15, %v13429_v25  ;;  %v13596_v0 = vadd.f32 %v4627_v6, %v13432_v57  ;;  %18214 = vst [vmem:[#allocation39_spill] sm:$0xff] %v13601_v30  ;;  %v4664_v60 = vmul.f32 %v13601_v30, %v13438_v40  ;;  %v13610_v46 = vld [vmem:[%s16630_s0 + $0x70] sm:$0xff]  ;;  %v18217_v57 = vld [vmem:[#allocation27_spill] sm:$0xff]  ;;  %v18231_v7 = vld [vmem:[#allocation42_spill] sm:$0xff] }
 0x2fd   : > { %v4665_v27 = vmul.f32 %v18215_v56, %v13438_v40  ;;  %18216 = vst [vmem:[#allocation33_spill] sm:$0xff] %v13610_v46  ;;  %v4666_v25 = vmul.f32 %v13610_v46, %v13438_v40  ;;  %v4667_v10 = vmul.f32 %v18217_v57, %v13438_v40  ;;  %v4668_v12 = vmul.f32 %v18218_v8, %v13438_v40  ;;  %v18233_v61 = vld [vmem:[#allocation56_spill] sm:$0xff]  ;;  %v18234_v51 = vld [vmem:[#allocation17_spill] sm:$0xff]  ;;  %v18235_v6 = vld [vmem:[#allocation38_spill] sm:$0xff] }
 0x2fe   : > { %v4669_v22 = vmul.f32 %v18219_v4, %v13438_v40  ;;  %v4670_v13 = vmul.f32 %v18220_v28, %v13438_v40  ;;  %v4671_v39 = vmul.f32 %v18221_v19, %v13438_v40  ;;  %v13626_v3 = vmul.f32 %v18222_v59, %v13438_v40 }
 0x2ff   : > { %v13630_v21 = vmul.f32 %v18223_v44, %v13438_v40  ;;  %v13634_v26 = vmul.f32 %v18224_v52, %v13438_v40  ;;  %v13638_v29 = vmul.f32 %v18225_v50, %v13438_v40  ;;  %v13642_v49 = vmul.f32 %v18226_v58, %v13438_v40 }
 0x300   : > { %v13646_v2 = vmul.f32 %v18227_v41, %v13438_v40  ;;  %v13652_v45 = vmul.f32 %v7707_v18, %v13438_v40  ;;  %v4679_v34 = vmul.f32 %v7708_v9, %v13438_v40  ;;  %v4680_v53 = vmul.f32 %v13661_v33, %v13438_v40  ;;  %v18236_v41 = vld [vmem:[#allocation30_spill] sm:$0xff]  ;;  %v18237_v9 = vld [vmem:[#allocation21_spill] sm:$0xff] }
 0x301   : > { %v4681_v62 = vmul.f32 %v18229_v14, %v13438_v40  ;;  %v4682_v54 = vmul.f32 %v13670_v24, %v13438_v40  ;;  %v4683_v23 = vmul.f32 %v18231_v7, %v13438_v40  ;;  %v4684_v48 = vmul.f32 %v18232_v17, %v13438_v40  ;;  %v18239_v7 = vld [vmem:[#allocation46_spill] sm:$0xff] }
 0x302   : > { %v4685_v55 = vmul.f32 %v18233_v61, %v13438_v40  ;;  %v4686_v15 = vmul.f32 %v18234_v51, %v13438_v40  ;;  %v4687_v8 = vmul.f32 %v18235_v6, %v13438_v40  ;;  %v4728_v4 = vrot.slane %v4664_v60, 4  ;;  %v18238_v61 = vld [vmem:[#allocation23_spill] sm:$0xff]  ;;  %v18240_v60 = vld [vmem:[#allocation57_spill] sm:$0xff] }
 0x303   : > { %v4729_v28 = vrot.slane %v4665_v27, 4  ;;  %v4731_v19 = vrot.slane %v4666_v25, 4  ;;  %v4732_v59 = vrot.slane %v4667_v10, 4  ;;  %v4734_v44 = vrot.slane %v4668_v12, 4  ;;  %v18241_v25 = vld [vmem:[#allocation31_spill] sm:$0xff]  ;;  %v7711_v12 = vld [vmem:[%s16630_s0 + $0x1b0] sm:$0xff] }
 0x304   : > { %v4735_v52 = vrot.slane %v4669_v22, 4  ;;  %v4737_v50 = vrot.slane %v4670_v13, 4  ;;  %v4738_v58 = vrot.slane %v4671_v39, 4  ;;  %v4688_v18 = vmul.f32 %v18236_v41, %v13438_v40  ;;  %v7712_v13 = vld [vmem:[%s16630_s0 + $0x1b8] sm:$0xff] }
 0x305   : > { %v4689_v17 = vmul.f32 %v18237_v9, %v13438_v40  ;;  %v4690_v51 = vmul.f32 %v18238_v61, %v13438_v40  ;;  %v4691_v6 = vmul.f32 %v18239_v7, %v13438_v40  ;;  %v4692_v27 = vmul.f32 %v18240_v60, %v13438_v40 }
 0x306   : > { %v4693_v10 = vmul.f32 %v18241_v25, %v13438_v40  ;;  %v4694_v22 = vmul.f32 %v7711_v12, %v13438_v40  ;;  %v4695_v39 = vmul.f32 %v7712_v13, %v13438_v40  ;;  %v4730_v7 = vsel %vm3839_vm3, %v4728_v4, %v4729_v28 }
 0x307   : > { %v4733_v41 = vsel %vm3839_vm3, %v4731_v19, %v4732_v59  ;;  %v4740_v9 = vrot.slane %v13626_v3, 4  ;;  %v4741_v61 = vrot.slane %v13630_v21, 4  ;;  %v4736_v60 = vsel %vm3839_vm3, %v4734_v44, %v4735_v52 }
 0x308   : > { %v4739_v25 = vsel %vm3839_vm3, %v4737_v50, %v4738_v58  ;;  %v4743_v12 = vrot.slane %v13634_v26, 4  ;;  %v4744_v24 = vrot.slane %v13638_v29, 4  ;;  %v4746_v14 = vrot.slane %v13642_v49, 4 }
 0x309   : > { %v4747_v40 = vrot.slane %v13646_v2, 4  ;;  %v4749_v4 = vrot.slane %v13652_v45, 4  ;;  %v4750_v28 = vrot.slane %v4679_v34, 4  ;;  %v4752_v19 = vrot.slane %v4680_v53, 4 }
 0x30a   : > { %v4753_v59 = vrot.slane %v4681_v62, 4  ;;  %v4755_v3 = vrot.slane %v4682_v54, 4  ;;  %v4756_v13 = vrot.slane %v4683_v23, 4  ;;  %v4758_v21 = vrot.slane %v4684_v48, 4 }
 0x30b   : > { %v4759_v33 = vrot.slane %v4685_v55, 4  ;;  %v4761_v44 = vrot.slane %v4686_v15, 4  ;;  %v4762_v52 = vrot.slane %v4687_v8, 4  ;;  %v4764_v50 = vrot.slane %v4688_v18, 4 }
 0x30c   : > { %v4765_v58 = vrot.slane %v4689_v17, 4  ;;  %v4767_v26 = vrot.slane %v4690_v51, 4  ;;  %v4768_v57 = vrot.slane %v4691_v6, 4  ;;  %v4770_v29 = vrot.slane %v4692_v27, 4  ;;  %v13804_v27 = vld [vmem:[%s16630_s0 + $0x20] sm:$0xff] }
 0x30d   : > { %v4771_v46 = vrot.slane %v4693_v10, 4  ;;  %v4773_v49 = vrot.slane %v4694_v22, 4  ;;  %v4774_v56 = vrot.slane %v4695_v39, 4  ;;  %v4742_v2 = vsel %vm3839_vm3, %v4740_v9, %v4741_v61  ;;  %v13811_v22 = vld [vmem:[%s16630_s0 + $0x28] sm:$0xff]  ;;  %v13825_v9 = vld [vmem:[%s16630_s0 + $0x38] sm:$0xff] }
 0x30e   : > { %v4745_v45 = vsel %vm3839_vm3, %v4743_v12, %v4744_v24  ;;  %v4748_v34 = vsel %vm3839_vm3, %v4746_v14, %v4747_v40  ;;  %v4751_v53 = vsel %vm3839_vm3, %v4749_v4, %v4750_v28  ;;  %v4754_v62 = vsel %vm3839_vm3, %v4752_v19, %v4753_v59  ;;  %18243 = vst [vmem:[#allocation25_spill] sm:$0xff] %v13811_v22  ;;  %v13841_v12 = vld [vmem:[%s16630_s0 + $0x48] sm:$0xff]  ;;  %v13850_v4 = vld [vmem:[%s16630_s0 + $0x50] sm:$0xff]  ;;  %v13859_v19 = vld [vmem:[%s16630_s0 + $0x58] sm:$0xff] }
 0x30f   : > { %v4757_v54 = vsel %vm3839_vm3, %v4755_v3, %v4756_v13  ;;  %v4760_v23 = vsel %vm3839_vm3, %v4758_v21, %v4759_v33  ;;  %v4763_v48 = vsel %vm3839_vm3, %v4761_v44, %v4762_v52  ;;  %v4766_v55 = vsel %vm3839_vm3, %v4764_v50, %v4765_v58  ;;  %18245 = vst [vmem:[#allocation14_spill] sm:$0xff] %v13825_v9  ;;  %v18250_v13 = vld [vmem:[#allocation47_spill] sm:$0xff]  ;;  %v18251_v44 = vld [vmem:[#allocation33_spill] sm:$0xff] }
 0x310   : > { %v4769_v15 = vsel %vm3839_vm3, %v4767_v26, %v4768_v57  ;;  %v13726_v8 = vadd.f32 %v4730_v7, %v13549_v63  ;;  %v13729_v24 = vadd.f32 %v4733_v41, %v13552_v31  ;;  %v4772_v14 = vsel %vm3839_vm3, %v4770_v29, %v4771_v46  ;;  %v13797_v46 = vld [vmem:[%s16630_s0 + $0x18] sm:$0xff]  ;;  %v13818_v7 = vld [vmem:[%s16630_s0 + $0x30] sm:$0xff]  ;;  %18247 = vst [vmem:[#allocation49_spill] sm:$0xff] %v13841_v12  ;;  %v18252_v50 = vld [vmem:[#allocation27_spill] sm:$0xff] }
 0x311   : > { %v4775_v18 = vsel %vm3839_vm3, %v4773_v49, %v4774_v56  ;;  %v13734_v17 = vadd.f32 %v4736_v60, %v13557_v43  ;;  %v13737_v33 = vadd.f32 %v4739_v25, %v13560_v47  ;;  %v13740_v51 = vadd.f32 %v4742_v2, %v13563_v35  ;;  %18244 = vst [vmem:[#allocation19_spill] sm:$0xff] %v13818_v7  ;;  %v13832_v60 = vld [vmem:[%s16630_s0 + $0x40] sm:$0xff]  ;;  %v7726_v49 = vld [vmem:[%s16630_s0 + $0xe8] sm:$0xff] }
 0x312   : > { %v13743_v57 = vadd.f32 %v4745_v45, %v13566_v42  ;;  %v13746_v63 = vadd.f32 %v4748_v34, %v13569_v38  ;;  %v13749_v31 = vadd.f32 %v4751_v53, %v13572_v5  ;;  %v13752_v56 = vadd.f32 %v4754_v62, %v13575_v32  ;;  %18246 = vst [vmem:[#allocation28_spill] sm:$0xff] %v13832_v60  ;;  %v7725_v26 = vld [vmem:[%s16630_s0 + $0xe0] sm:$0xff]  ;;  %v13896_v45 = vld [vmem:[%s16630_s0 + $0xf0] sm:$0xff]  ;;  %v13905_v53 = vld [vmem:[%s16630_s0 + $0xf8] sm:$0xff] }
 0x313   : > { %v13755_v43 = vadd.f32 %v4757_v54, %v13578_v11  ;;  %v13758_v47 = vadd.f32 %v4760_v23, %v13581_v36  ;;  %v13761_v35 = vadd.f32 %v4763_v48, %v13584_v37  ;;  %v13764_v42 = vadd.f32 %v4766_v55, %v13587_v1  ;;  %v7713_v11 = vld [vmem:[%s16630_s0] sm:$0xff]  ;;  %v18242_v36 = vld [vmem:[#allocation11_spill] sm:$0xff]  ;;  %18248 = vst [vmem:[#allocation16_spill] sm:$0xff] %v13850_v4 }
 0x314   : > { %v13767_v38 = vadd.f32 %v4769_v15, %v13590_v16  ;;  %v13770_v5 = vadd.f32 %v4772_v14, %v13593_v20  ;;  %v13773_v32 = vadd.f32 %v4775_v18, %v13596_v0  ;;  %v13779_v37 = vmul.f32 %v7713_v11, %v18242_v36  ;;  %v7714_v1 = vld [vmem:[%s16630_s0 + $0x8] sm:$0xff]  ;;  %v13790_v20 = vld [vmem:[%s16630_s0 + $0x10] sm:$0xff]  ;;  %18249 = vst [vmem:[#allocation41_spill] sm:$0xff] %v13859_v19  ;;  %v13914_v54 = vld [vmem:[%s16630_s0 + $0x100] sm:$0xff] }
 0x315   : > { %v13785_v16 = vmul.f32 %v7714_v1, %v18242_v36  ;;  %v4814_v0 = vmul.f32 %v13790_v20, %v18242_v36  ;;  %v4815_v6 = vmul.f32 %v13797_v46, %v18242_v36  ;;  %v4816_v10 = vmul.f32 %v13804_v27, %v18242_v36  ;;  %18253 = vst [vmem:[#allocation55_spill] sm:$0xff] %v13896_v45  ;;  %v13923_v48 = vld [vmem:[%s16630_s0 + $0x108] sm:$0xff]  ;;  %v13930_v15 = vld [vmem:[%s16630_s0 + $0x110] sm:$0xff]  ;;  %v13937_v18 = vld [vmem:[%s16630_s0 + $0x118] sm:$0xff] }
 0x316   : > { %v4817_v39 = vmul.f32 %v13811_v22, %v18242_v36  ;;  %v4818_v41 = vmul.f32 %v13818_v7, %v18242_v36  ;;  %v4819_v61 = vmul.f32 %v13825_v9, %v18242_v36  ;;  %v13836_v25 = vmul.f32 %v13832_v60, %v18242_v36  ;;  %18254 = vst [vmem:[#allocation24_spill] sm:$0xff] %v13905_v53 }
 0x317   : > { %v13845_v40 = vmul.f32 %v13841_v12, %v18242_v36  ;;  %v13854_v28 = vmul.f32 %v13850_v4, %v18242_v36  ;;  %v13863_v59 = vmul.f32 %v13859_v19, %v18242_v36  ;;  %v13867_v3 = vmul.f32 %v13601_v30, %v18242_v36  ;;  %18255 = vst [vmem:[#allocation52_spill] sm:$0xff] %v13914_v54  ;;  %v18266_v30 = vld [vmem:[#allocation42_spill] sm:$0xff] }
 0x318   : > { %v13871_v21 = vmul.f32 %v18250_v13, %v18242_v36  ;;  %v13875_v52 = vmul.f32 %v18251_v44, %v18242_v36  ;;  %v13879_v58 = vmul.f32 %v18252_v50, %v18242_v36  ;;  %v13885_v29 = vmul.f32 %v7725_v26, %v18242_v36  ;;  %18256 = vst [vmem:[#allocation51_spill] sm:$0xff] %v13923_v48 }
 0x319   : > { %v13891_v2 = vmul.f32 %v7726_v49, %v18242_v36  ;;  %v13900_v34 = vmul.f32 %v13896_v45, %v18242_v36  ;;  %v13909_v62 = vmul.f32 %v13905_v53, %v18242_v36  ;;  %v13918_v23 = vmul.f32 %v13914_v54, %v18242_v36  ;;  %18257 = vst [vmem:[#allocation45_spill] sm:$0xff] %v13930_v15 }
 0x31a   : > { %v4833_v55 = vmul.f32 %v13923_v48, %v18242_v36  ;;  %v4834_v14 = vmul.f32 %v13930_v15, %v18242_v36  ;;  %18258 = vst [vmem:[#allocation20_spill] sm:$0xff] %v13937_v18  ;;  %v4835_v11 = vmul.f32 %v13937_v18, %v18242_v36  ;;  %v4877_v1 = vrot.slane %v13779_v37, 5  ;;  %v13946_v15 = vld [vmem:[%s16630_s0 + $0x120] sm:$0xff]  ;;  %v13953_v37 = vld [vmem:[%s16630_s0 + $0x128] sm:$0xff] }
 0x31b   : > { %v4878_v26 = vrot.slane %v13785_v16, 5  ;;  %v4880_v49 = vrot.slane %v4814_v0, 5  ;;  %v4881_v48 = vrot.slane %v4815_v6, 5  ;;  %v4883_v54 = vrot.slane %v4816_v10, 5  ;;  %18259 = vst [vmem:[#allocation26_spill] sm:$0xff] %v13946_v15  ;;  %18260 = vst [vmem:[#allocation40_spill] sm:$0xff] %v13953_v37 }
 0x31c   : > { %v4884_v53 = vrot.slane %v4817_v39, 5  ;;  %v4886_v45 = vrot.slane %v4818_v41, 5  ;;  %v4887_v50 = vrot.slane %v4819_v61, 5  ;;  %v4836_v44 = vmul.f32 %v13946_v15, %v18242_v36  ;;  %v13960_v0 = vld [vmem:[%s16630_s0 + $0x130] sm:$0xff]  ;;  %v13967_v10 = vld [vmem:[%s16630_s0 + $0x138] sm:$0xff]  ;;  %v18263_v41 = vld [vmem:[#allocation35_spill] sm:$0xff] }
 0x31d   : > { %v4837_v16 = vmul.f32 %v13953_v37, %v18242_v36  ;;  %18261 = vst [vmem:[#allocation34_spill] sm:$0xff] %v13960_v0  ;;  %v4838_v6 = vmul.f32 %v13960_v0, %v18242_v36  ;;  %18262 = vst [vmem:[#allocation44_spill] sm:$0xff] %v13967_v10  ;;  %v4839_v39 = vmul.f32 %v13967_v10, %v18242_v36  ;;  %v18264_v37 = vld [vmem:[#allocation54_spill] sm:$0xff]  ;;  %v4889_v12 = vrot.slane %v13836_v25, 5 }
 0x31e   : > { %v4840_v61 = vmul.f32 %v18263_v41, %v18242_v36  ;;  %v4841_v15 = vmul.f32 %v18264_v37, %v18242_v36  ;;  %v18265_v18 = vld [vmem:[#allocation58_spill] sm:$0xff]  ;;  %v4843_v0 = vmul.f32 %v18266_v30, %v18242_v36  ;;  %v4879_v19 = vsel %vm4876_vm4, %v4877_v1, %v4878_v26 }
 0x31f   : > { %v4842_v13 = vmul.f32 %v18265_v18, %v18242_v36  ;;  %v4882_v4 = vsel %vm4876_vm4, %v4880_v49, %v4881_v48  ;;  %v4890_v10 = vrot.slane %v13845_v40, 5  ;;  %v4885_v60 = vsel %vm4876_vm4, %v4883_v54, %v4884_v53 }
 0x320   : > { %v4888_v41 = vsel %vm4876_vm4, %v4886_v45, %v4887_v50  ;;  %v4892_v37 = vrot.slane %v13854_v28, 5  ;;  %v4893_v9 = vrot.slane %v13863_v59, 5  ;;  %v4895_v18 = vrot.slane %v13867_v3, 5 }
 0x321   : > { %v4896_v36 = vrot.slane %v13871_v21, 5  ;;  %v4898_v1 = vrot.slane %v13875_v52, 5  ;;  %v4899_v48 = vrot.slane %v13879_v58, 5  ;;  %v4901_v25 = vrot.slane %v13885_v29, 5 }
 0x322   : > { %v4902_v40 = vrot.slane %v13891_v2, 5  ;;  %v4904_v53 = vrot.slane %v13900_v34, 5  ;;  %v4905_v50 = vrot.slane %v13909_v62, 5  ;;  %v4907_v28 = vrot.slane %v13918_v23, 5 }
 0x323   : > { %v4908_v45 = vrot.slane %v4833_v55, 5  ;;  %v4910_v59 = vrot.slane %v4834_v14, 5  ;;  %v4911_v54 = vrot.slane %v4835_v11, 5  ;;  %v4913_v3 = vrot.slane %v4836_v44, 5 }
 0x324   : > { %v4914_v26 = vrot.slane %v4837_v16, 5  ;;  %v4916_v21 = vrot.slane %v4838_v6, 5  ;;  %v4917_v49 = vrot.slane %v4839_v39, 5  ;;  %v4919_v52 = vrot.slane %v4840_v61, 5 }
 0x325   : > { %v4920_v30 = vrot.slane %v4841_v15, 5  ;;  %v4922_v58 = vrot.slane %v4842_v13, 5  ;;  %v4923_v7 = vrot.slane %v4843_v0, 5  ;;  %v4891_v29 = vsel %vm4876_vm4, %v4889_v12, %v4890_v10 }
 0x326   : > { %v4894_v2 = vsel %vm4876_vm4, %v4892_v37, %v4893_v9  ;;  %v4897_v34 = vsel %vm4876_vm4, %v4895_v18, %v4896_v36  ;;  %v4900_v62 = vsel %vm4876_vm4, %v4898_v1, %v4899_v48  ;;  %v4903_v23 = vsel %vm4876_vm4, %v4901_v25, %v4902_v40  ;;  %v18274_v36 = vld [vmem:[#allocation39_spill] sm:$0xff]  ;;  %v18276_v40 = vld [vmem:[#allocation33_spill] sm:$0xff] }
 0x327   : > { %v4906_v55 = vsel %vm4876_vm4, %v4904_v53, %v4905_v50  ;;  %v4909_v44 = vsel %vm4876_vm4, %v4907_v28, %v4908_v45  ;;  %v4912_v14 = vsel %vm4876_vm4, %v4910_v59, %v4911_v54  ;;  %v4915_v15 = vsel %vm4876_vm4, %v4913_v3, %v4914_v26  ;;  %v18275_v48 = vld [vmem:[#allocation47_spill] sm:$0xff]  ;;  %v14099_v45 = vld [vmem:[%s16630_s0 + $0x80] sm:$0xff] }
 0x328   : > { %v4918_v13 = vsel %vm4876_vm4, %v4916_v21, %v4917_v49  ;;  %v14007_v12 = vadd.f32 %v4879_v19, %v13726_v8  ;;  %v14010_v9 = vadd.f32 %v4882_v4, %v13729_v24  ;;  %v4921_v18 = vsel %vm4876_vm4, %v4919_v52, %v4920_v30  ;;  %v18277_v50 = vld [vmem:[#allocation27_spill] sm:$0xff]  ;;  %18278 = vst [vmem:[#allocation36_spill] sm:$0xff] %v14099_v45  ;;  %v18281_v49 = vld [vmem:[#allocation24_spill] sm:$0xff] }
 0x329   : > { %v4924_v11 = vsel %vm4876_vm4, %v4922_v58, %v4923_v7  ;;  %v14015_v37 = vadd.f32 %v4885_v60, %v13734_v17  ;;  %v14018_v16 = vadd.f32 %v4888_v41, %v13737_v33  ;;  %v14021_v0 = vadd.f32 %v4891_v29, %v13740_v51  ;;  %v18273_v41 = vld [vmem:[#allocation41_spill] sm:$0xff]  ;;  %v14106_v54 = vld [vmem:[%s16630_s0 + $0x88] sm:$0xff]  ;;  %v18282_v58 = vld [vmem:[#allocation52_spill] sm:$0xff] }
 0x32a   : > { %v14024_v6 = vadd.f32 %v4894_v2, %v13743_v57  ;;  %v14027_v8 = vadd.f32 %v4897_v34, %v13746_v63  ;;  %v14030_v24 = vadd.f32 %v4900_v62, %v13749_v31  ;;  %v14033_v30 = vadd.f32 %v4903_v23, %v13752_v56  ;;  %18279 = vst [vmem:[#allocation15_spill] sm:$0xff] %v14106_v54  ;;  %v18280_v26 = vld [vmem:[#allocation55_spill] sm:$0xff]  ;;  %v18284_v62 = vld [vmem:[#allocation45_spill] sm:$0xff] }
 0x32b   : > { %v14036_v17 = vadd.f32 %v4906_v55, %v13755_v43  ;;  %v14039_v33 = vadd.f32 %v4909_v44, %v13758_v47  ;;  %v14042_v51 = vadd.f32 %v4912_v14, %v13761_v35  ;;  %v14045_v57 = vadd.f32 %v4915_v15, %v13764_v42  ;;  %v18267_v43 = vld [vmem:[#allocation43_spill] sm:$0xff]  ;;  %v18285_v55 = vld [vmem:[#allocation20_spill] sm:$0xff]  ;;  %v18286_v14 = vld [vmem:[#allocation26_spill] sm:$0xff] }
 0x32c   : > { %v14048_v63 = vadd.f32 %v4918_v13, %v13767_v38  ;;  %v14051_v31 = vadd.f32 %v4921_v18, %v13770_v5  ;;  %v14054_v56 = vadd.f32 %v4924_v11, %v13773_v32  ;;  %v4961_v7 = vmul.f32 %v13790_v20, %v18267_v43  ;;  %v18268_v38 = vld [vmem:[#allocation19_spill] sm:$0xff]  ;;  %v18269_v5 = vld [vmem:[#allocation14_spill] sm:$0xff]  ;;  %v18270_v32 = vld [vmem:[#allocation28_spill] sm:$0xff] }
 0x32d   : > { %v4962_v47 = vmul.f32 %v13797_v46, %v18267_v43  ;;  %v4963_v35 = vmul.f32 %v13804_v27, %v18267_v43  ;;  %v4964_v42 = vmul.f32 %v13811_v22, %v18267_v43  ;;  %v4965_v60 = vmul.f32 %v18268_v38, %v18267_v43  ;;  %v18271_v20 = vld [vmem:[#allocation49_spill] sm:$0xff]  ;;  %v18272_v46 = vld [vmem:[#allocation16_spill] sm:$0xff]  ;;  %v18283_v2 = vld [vmem:[#allocation51_spill] sm:$0xff] }
 0x32e   : > { %v4966_v4 = vmul.f32 %v18269_v5, %v18267_v43  ;;  %v4967_v19 = vmul.f32 %v18270_v32, %v18267_v43  ;;  %v4968_v10 = vmul.f32 %v18271_v20, %v18267_v43  ;;  %v14074_v39 = vmul.f32 %v18272_v46, %v18267_v43  ;;  %v18287_v13 = vld [vmem:[#allocation40_spill] sm:$0xff] }
 0x32f   : > { %v14078_v61 = vmul.f32 %v18273_v41, %v18267_v43  ;;  %v14082_v1 = vmul.f32 %v18274_v36, %v18267_v43  ;;  %v14086_v25 = vmul.f32 %v18275_v48, %v18267_v43  ;;  %v14090_v53 = vmul.f32 %v18276_v40, %v18267_v43  ;;  %v18289_v40 = vld [vmem:[#allocation44_spill] sm:$0xff]  ;;  %v18290_v36 = vld [vmem:[#allocation35_spill] sm:$0xff]  ;;  %v18291_v41 = vld [vmem:[#allocation54_spill] sm:$0xff] }
 0x330   : > { %v14094_v28 = vmul.f32 %v18277_v50, %v18267_v43  ;;  %v4975_v59 = vmul.f32 %v14099_v45, %v18267_v43  ;;  %v4976_v3 = vmul.f32 %v14106_v54, %v18267_v43  ;;  %v4977_v21 = vmul.f32 %v18280_v26, %v18267_v43  ;;  %v18288_v45 = vld [vmem:[#allocation34_spill] sm:$0xff] }
 0x331   : > { %v4978_v52 = vmul.f32 %v18281_v49, %v18267_v43  ;;  %v4979_v29 = vmul.f32 %v18282_v58, %v18267_v43  ;;  %v4980_v34 = vmul.f32 %v18283_v2, %v18267_v43  ;;  %v4981_v23 = vmul.f32 %v18284_v62, %v18267_v43 }
 0x332   : > { %v4982_v44 = vmul.f32 %v18285_v55, %v18267_v43  ;;  %v4983_v15 = vmul.f32 %v18286_v14, %v18267_v43  ;;  %v4984_v18 = vmul.f32 %v18287_v13, %v18267_v43  ;;  %v5025_v11 = vrot.slane %v4961_v7, 5  ;;  %v18292_v7 = vld [vmem:[#allocation58_spill] sm:$0xff] }
 0x333   : > { %v5026_v48 = vrot.slane %v4962_v47, 5  ;;  %v5028_v50 = vrot.slane %v4963_v35, 5  ;;  %v5029_v26 = vrot.slane %v4964_v42, 5  ;;  %v5031_v49 = vrot.slane %v4965_v60, 5  ;;  %v18293_v35 = vld [vmem:[#allocation42_spill] sm:$0xff] }
 0x334   : > { %v5032_v58 = vrot.slane %v4966_v4, 5  ;;  %v5034_v54 = vrot.slane %v4967_v19, 5  ;;  %v5035_v2 = vrot.slane %v4968_v10, 5  ;;  %v4985_v62 = vmul.f32 %v18288_v45, %v18267_v43  ;;  %v14141_v60 = vld [vmem:[%s16630_s0 + $0x160] sm:$0xff]  ;;  %v14148_v19 = vld [vmem:[%s16630_s0 + $0x168] sm:$0xff] }
 0x335   : > { %v4986_v55 = vmul.f32 %v18289_v40, %v18267_v43  ;;  %v4987_v14 = vmul.f32 %v18290_v36, %v18267_v43  ;;  %v4988_v13 = vmul.f32 %v18291_v41, %v18267_v43  ;;  %v4989_v47 = vmul.f32 %v18292_v7, %v18267_v43  ;;  %18294 = vst [vmem:[#allocation29_spill] sm:$0xff] %v14141_v60 }
 0x336   : > { %v4990_v42 = vmul.f32 %v18293_v35, %v18267_v43  ;;  %v4991_v4 = vmul.f32 %v14141_v60, %v18267_v43  ;;  %18295 = vst [vmem:[#allocation50_spill] sm:$0xff] %v14148_v19  ;;  %v4992_v10 = vmul.f32 %v14148_v19, %v18267_v43  ;;  %v5027_v41 = vsel %vm4876_vm4, %v5025_v11, %v5026_v48 }
 0x337   : > { %v5030_v35 = vsel %vm4876_vm4, %v5028_v50, %v5029_v26  ;;  %v5037_v7 = vrot.slane %v14074_v39, 5  ;;  %v5038_v36 = vrot.slane %v14078_v61, 5  ;;  %v5033_v40 = vsel %vm4876_vm4, %v5031_v49, %v5032_v58 }
 0x338   : > { %v5036_v60 = vsel %vm4876_vm4, %v5034_v54, %v5035_v2  ;;  %v5040_v45 = vrot.slane %v14082_v1, 5  ;;  %v5041_v46 = vrot.slane %v14086_v25, 5  ;;  %v5043_v20 = vrot.slane %v14090_v53, 5 }
 0x339   : > { %v5044_v43 = vrot.slane %v14094_v28, 5  ;;  %v5046_v19 = vrot.slane %v4975_v59, 5  ;;  %v5047_v11 = vrot.slane %v4976_v3, 5  ;;  %v5049_v48 = vrot.slane %v4977_v21, 5 }
 0x33a   : > { %v5050_v50 = vrot.slane %v4978_v52, 5  ;;  %v5052_v26 = vrot.slane %v4979_v29, 5  ;;  %v5053_v39 = vrot.slane %v4980_v34, 5  ;;  %v5055_v32 = vrot.slane %v4981_v23, 5 }
 0x33b   : > { %v5056_v61 = vrot.slane %v4982_v44, 5  ;;  %v5058_v5 = vrot.slane %v4983_v15, 5  ;;  %v5059_v58 = vrot.slane %v4984_v18, 5  ;;  %v5061_v49 = vrot.slane %v4985_v62, 5 }
 0x33c   : > { %v5062_v54 = vrot.slane %v4986_v55, 5  ;;  %v5064_v2 = vrot.slane %v4987_v14, 5  ;;  %v5065_v1 = vrot.slane %v4988_v13, 5  ;;  %v5067_v38 = vrot.slane %v4989_v47, 5 }
 0x33d   : > { %v5068_v25 = vrot.slane %v4990_v42, 5  ;;  %v5070_v22 = vrot.slane %v4991_v4, 5  ;;  %v5071_v53 = vrot.slane %v4992_v10, 5  ;;  %v5039_v28 = vsel %vm4876_vm4, %v5037_v7, %v5038_v36 }
 0x33e   : > { %v5042_v59 = vsel %vm4876_vm4, %v5040_v45, %v5041_v46  ;;  %v5045_v3 = vsel %vm4876_vm4, %v5043_v20, %v5044_v43  ;;  %v5048_v21 = vsel %vm4876_vm4, %v5046_v19, %v5047_v11  ;;  %v5051_v52 = vsel %vm4876_vm4, %v5049_v48, %v5050_v50  ;;  %v14245_v19 = vld [vmem:[%s16630_s0 + $0x68] sm:$0xff]  ;;  %v14258_v43 = vld [vmem:[%s16630_s0 + $0x78] sm:$0xff]  ;;  %v18308_v48 = vld [vmem:[#allocation36_spill] sm:$0xff] }
 0x33f   : > { %v5054_v29 = vsel %vm4876_vm4, %v5052_v26, %v5053_v39  ;;  %v5057_v34 = vsel %vm4876_vm4, %v5055_v32, %v5056_v61  ;;  %v5060_v62 = vsel %vm4876_vm4, %v5058_v5, %v5059_v58  ;;  %v5063_v23 = vsel %vm4876_vm4, %v5061_v49, %v5062_v54  ;;  %18305 = vst [vmem:[#allocation53_spill] sm:$0xff] %v14245_v19  ;;  %v18309_v26 = vld [vmem:[#allocation15_spill] sm:$0xff]  ;;  %v14275_v61 = vld [vmem:[%s16630_s0 + $0x90] sm:$0xff]  ;;  %v14284_v49 = vld [vmem:[%s16630_s0 + $0x98] sm:$0xff] }
 0x340   : > { %v5066_v55 = vsel %vm4876_vm4, %v5064_v2, %v5065_v1  ;;  %v14173_v36 = vadd.f32 %v5027_v41, %v14007_v12  ;;  %v14176_v46 = vadd.f32 %v5030_v35, %v14010_v9  ;;  %v5069_v20 = vsel %vm4876_vm4, %v5067_v38, %v5068_v25  ;;  %v18306_v41 = vld [vmem:[#allocation33_spill] sm:$0xff]  ;;  %18307 = vst [vmem:[#allocation48_spill] sm:$0xff] %v14258_v43  ;;  %v18312_v2 = vld [vmem:[#allocation52_spill] sm:$0xff]  ;;  %v18313_v25 = vld [vmem:[#allocation51_spill] sm:$0xff] }
 0x341   : > { %v5072_v45 = vsel %vm4876_vm4, %v5070_v22, %v5071_v53  ;;  %v14181_v44 = vadd.f32 %v5033_v40, %v14015_v37  ;;  %v14184_v32 = vadd.f32 %v5036_v60, %v14018_v16  ;;  %v14187_v5 = vadd.f32 %v5039_v28, %v14021_v0  ;;  %v18304_v60 = vld [vmem:[#allocation39_spill] sm:$0xff]  ;;  %18310 = vst [vmem:[#allocation32_spill] sm:$0xff] %v14275_v61  ;;  %v18314_v28 = vld [vmem:[#allocation45_spill] sm:$0xff] }
 0x342   : > { %v14190_v14 = vadd.f32 %v5042_v59, %v14024_v6  ;;  %v14193_v12 = vadd.f32 %v5045_v3, %v14027_v8  ;;  %v14196_v9 = vadd.f32 %v5048_v21, %v14030_v24  ;;  %v14199_v22 = vadd.f32 %v5051_v52, %v14033_v30  ;;  %18311 = vst [vmem:[#allocation56_spill] sm:$0xff] %v14284_v49  ;;  %v18315_v3 = vld [vmem:[#allocation20_spill] sm:$0xff]  ;;  %v18316_v52 = vld [vmem:[#allocation26_spill] sm:$0xff] }
 0x343   : > { %v14202_v37 = vadd.f32 %v5054_v29, %v14036_v17  ;;  %v14205_v16 = vadd.f32 %v5057_v34, %v14039_v33  ;;  %v14208_v0 = vadd.f32 %v5060_v62, %v14042_v51  ;;  %v14211_v6 = vadd.f32 %v5063_v23, %v14045_v57  ;;  %v18296_v17 = vld [vmem:[#allocation7_spill] sm:$0xff]  ;;  %v18297_v33 = vld [vmem:[#allocation25_spill] sm:$0xff]  ;;  %v18299_v57 = vld [vmem:[#allocation14_spill] sm:$0xff] }
 0x344   : > { %v14214_v8 = vadd.f32 %v5066_v55, %v14048_v63  ;;  %v14217_v24 = vadd.f32 %v5069_v20, %v14051_v31  ;;  %v14220_v30 = vadd.f32 %v5072_v45, %v14054_v56  ;;  %v5109_v38 = vmul.f32 %v13804_v27, %v18296_v17  ;;  %v18298_v51 = vld [vmem:[#allocation19_spill] sm:$0xff]  ;;  %v18300_v63 = vld [vmem:[#allocation28_spill] sm:$0xff]  ;;  %v18301_v31 = vld [vmem:[#allocation49_spill] sm:$0xff] }
 0x345   : > { %v5110_v40 = vmul.f32 %v18297_v33, %v18296_v17  ;;  %v5111_v15 = vmul.f32 %v18298_v51, %v18296_v17  ;;  %v5112_v13 = vmul.f32 %v18299_v57, %v18296_v17  ;;  %v5113_v18 = vmul.f32 %v18300_v63, %v18296_v17  ;;  %v18302_v56 = vld [vmem:[#allocation16_spill] sm:$0xff]  ;;  %v18303_v27 = vld [vmem:[#allocation41_spill] sm:$0xff]  ;;  %v18318_v23 = vld [vmem:[#allocation34_spill] sm:$0xff] }
 0x346   : > { %v5114_v7 = vmul.f32 %v18301_v31, %v18296_v17  ;;  %v5115_v47 = vmul.f32 %v18302_v56, %v18296_v17  ;;  %v5116_v42 = vmul.f32 %v18303_v27, %v18296_v17  ;;  %v14240_v4 = vmul.f32 %v18304_v60, %v18296_v17  ;;  %v18317_v34 = vld [vmem:[#allocation40_spill] sm:$0xff] }
 0x347   : > { %v14249_v10 = vmul.f32 %v14245_v19, %v18296_v17  ;;  %v14253_v35 = vmul.f32 %v18306_v41, %v18296_v17  ;;  %v14262_v11 = vmul.f32 %v14258_v43, %v18296_v17  ;;  %v14266_v50 = vmul.f32 %v18308_v48, %v18296_v17  ;;  %v18319_v20 = vld [vmem:[#allocation44_spill] sm:$0xff]  ;;  %v18320_v48 = vld [vmem:[#allocation35_spill] sm:$0xff] }
 0x348   : > { %v14270_v39 = vmul.f32 %v18309_v26, %v18296_v17  ;;  %v14279_v58 = vmul.f32 %v14275_v61, %v18296_v17  ;;  %v5124_v54 = vmul.f32 %v14284_v49, %v18296_v17  ;;  %v5125_v1 = vmul.f32 %v18312_v2, %v18296_v17 }
 0x349   : > { %v5126_v53 = vmul.f32 %v18313_v25, %v18296_v17  ;;  %v5127_v59 = vmul.f32 %v18314_v28, %v18296_v17  ;;  %v5128_v21 = vmul.f32 %v18315_v3, %v18296_v17  ;;  %v5129_v29 = vmul.f32 %v18316_v52, %v18296_v17 }
 0x34a   : > { %v5130_v62 = vmul.f32 %v18317_v34, %v18296_v17  ;;  %v5131_v55 = vmul.f32 %v18318_v23, %v18296_v17  ;;  %v5132_v45 = vmul.f32 %v18319_v20, %v18296_v17  ;;  %v5173_v33 = vrot.slane %v5109_v38, 5  ;;  %v14309_v34 = vld [vmem:[%s16630_s0 + $0x148] sm:$0xff]  ;;  %v18322_v38 = vld [vmem:[#allocation58_spill] sm:$0xff] }
 0x34b   : > { %v5174_v2 = vrot.slane %v5110_v40, 5  ;;  %v5176_v25 = vrot.slane %v5111_v15, 5  ;;  %v5177_v49 = vrot.slane %v5112_v13, 5  ;;  %v5179_v28 = vrot.slane %v5113_v18, 5  ;;  %18321 = vst [vmem:[#allocation17_spill] sm:$0xff] %v14309_v34  ;;  %v14318_v15 = vld [vmem:[%s16630_s0 + $0x158] sm:$0xff] }
 0x34c   : > { %v5180_v61 = vrot.slane %v5114_v7, 5  ;;  %v5182_v26 = vrot.slane %v5115_v47, 5  ;;  %v5183_v3 = vrot.slane %v5116_v42, 5  ;;  %v5133_v52 = vmul.f32 %v18320_v48, %v18296_v17  ;;  %18323 = vst [vmem:[#allocation38_spill] sm:$0xff] %v14318_v15  ;;  %v18324_v18 = vld [vmem:[#allocation29_spill] sm:$0xff]  ;;  %v18325_v47 = vld [vmem:[#allocation50_spill] sm:$0xff] }
 0x34d   : > { %v5134_v23 = vmul.f32 %v14309_v34, %v18296_v17  ;;  %v5135_v40 = vmul.f32 %v18322_v38, %v18296_v17  ;;  %v5136_v13 = vmul.f32 %v14318_v15, %v18296_v17  ;;  %v5137_v7 = vmul.f32 %v18324_v18, %v18296_v17  ;;  %v14329_v34 = vld [vmem:[%s16630_s0 + $0x170] sm:$0xff]  ;;  %v14336_v48 = vld [vmem:[%s16630_s0 + $0x178] sm:$0xff] }
 0x34e   : > { %v5138_v42 = vmul.f32 %v18325_v47, %v18296_v17  ;;  %18326 = vst [vmem:[#allocation30_spill] sm:$0xff] %v14329_v34  ;;  %v5139_v38 = vmul.f32 %v14329_v34, %v18296_v17  ;;  %18327 = vst [vmem:[#allocation21_spill] sm:$0xff] %v14336_v48  ;;  %v5140_v15 = vmul.f32 %v14336_v48, %v18296_v17  ;;  %v5185_v20 = vrot.slane %v14240_v4, 5 }
 0x34f   : > { %v5175_v18 = vsel %vm4876_vm4, %v5173_v33, %v5174_v2  ;;  %v5178_v47 = vsel %vm4876_vm4, %v5176_v25, %v5177_v49  ;;  %v5186_v43 = vrot.slane %v14249_v10, 5  ;;  %v5181_v41 = vsel %vm4876_vm4, %v5179_v28, %v5180_v61 }
 0x350   : > { %v5184_v34 = vsel %vm4876_vm4, %v5182_v26, %v5183_v3  ;;  %v5188_v19 = vrot.slane %v14253_v35, 5  ;;  %v5189_v60 = vrot.slane %v14262_v11, 5  ;;  %v5191_v27 = vrot.slane %v14266_v50, 5 }
 0x351   : > { %v5192_v17 = vrot.slane %v14270_v39, 5  ;;  %v5194_v33 = vrot.slane %v14279_v58, 5  ;;  %v5195_v2 = vrot.slane %v5124_v54, 5  ;;  %v5197_v49 = vrot.slane %v5125_v1, 5 }
 0x352   : > { %v5198_v25 = vrot.slane %v5126_v53, 5  ;;  %v5200_v4 = vrot.slane %v5127_v59, 5  ;;  %v5201_v48 = vrot.slane %v5128_v21, 5  ;;  %v5203_v10 = vrot.slane %v5129_v29, 5 }
 0x353   : > { %v5204_v56 = vrot.slane %v5130_v62, 5  ;;  %v5206_v61 = vrot.slane %v5131_v55, 5  ;;  %v5207_v28 = vrot.slane %v5132_v45, 5  ;;  %v5209_v26 = vrot.slane %v5133_v52, 5 }
 0x354   : > { %v5210_v3 = vrot.slane %v5134_v23, 5  ;;  %v5212_v35 = vrot.slane %v5135_v40, 5  ;;  %v5213_v31 = vrot.slane %v5136_v13, 5  ;;  %v5215_v11 = vrot.slane %v5137_v7, 5 }
 0x355   : > { %v5216_v63 = vrot.slane %v5138_v42, 5  ;;  %v5218_v50 = vrot.slane %v5139_v38, 5  ;;  %v5219_v57 = vrot.slane %v5140_v15, 5  ;;  %v5187_v39 = vsel %vm4876_vm4, %v5185_v20, %v5186_v43  ;;  %v18337_v15 = vld [vmem:[#allocation33_spill] sm:$0xff] }
 0x356   : > { %v5190_v58 = vsel %vm4876_vm4, %v5188_v19, %v5189_v60  ;;  %v5193_v54 = vsel %vm4876_vm4, %v5191_v27, %v5192_v17  ;;  %v5196_v1 = vsel %vm4876_vm4, %v5194_v33, %v5195_v2  ;;  %v5199_v53 = vsel %vm4876_vm4, %v5197_v49, %v5198_v25  ;;  %v18340_v17 = vld [vmem:[#allocation15_spill] sm:$0xff]  ;;  %v18341_v2 = vld [vmem:[#allocation32_spill] sm:$0xff] }
 0x357   : > { %v5202_v59 = vsel %vm4876_vm4, %v5200_v4, %v5201_v48  ;;  %v5205_v21 = vsel %vm4876_vm4, %v5203_v10, %v5204_v56  ;;  %v5208_v52 = vsel %vm4876_vm4, %v5206_v61, %v5207_v28  ;;  %v5211_v29 = vsel %vm4876_vm4, %v5209_v26, %v5210_v3  ;;  %v18342_v25 = vld [vmem:[#allocation56_spill] sm:$0xff]  ;;  %v14442_v10 = vld [vmem:[%s16630_s0 + $0xa0] sm:$0xff]  ;;  %v14449_v28 = vld [vmem:[%s16630_s0 + $0xa8] sm:$0xff] }
 0x358   : > { %v5214_v62 = vsel %vm4876_vm4, %v5212_v35, %v5213_v31  ;;  %v14362_v43 = vadd.f32 %v5175_v18, %v14173_v36  ;;  %v14365_v60 = vadd.f32 %v5178_v47, %v14176_v46  ;;  %v5217_v27 = vsel %vm4876_vm4, %v5215_v11, %v5216_v63  ;;  %v18338_v18 = vld [vmem:[#allocation48_spill] sm:$0xff]  ;;  %18343 = vst [vmem:[#allocation46_spill] sm:$0xff] %v14442_v10  ;;  %v18345_v3 = vld [vmem:[#allocation45_spill] sm:$0xff] }
 0x359   : > { %v5220_v19 = vsel %vm4876_vm4, %v5218_v50, %v5219_v57  ;;  %v14370_v48 = vadd.f32 %v5181_v41, %v14181_v44  ;;  %v14373_v56 = vadd.f32 %v5184_v34, %v14184_v32  ;;  %v14376_v23 = vadd.f32 %v5187_v39, %v14187_v5  ;;  %v18339_v47 = vld [vmem:[#allocation36_spill] sm:$0xff]  ;;  %18344 = vst [vmem:[#allocation57_spill] sm:$0xff] %v14449_v28  ;;  %v18347_v39 = vld [vmem:[#allocation26_spill] sm:$0xff] }
 0x35a   : > { %v14379_v31 = vadd.f32 %v5190_v58, %v14190_v14  ;;  %v14382_v36 = vadd.f32 %v5193_v54, %v14193_v12  ;;  %v14385_v46 = vadd.f32 %v5196_v1, %v14196_v9  ;;  %v14388_v57 = vadd.f32 %v5199_v53, %v14199_v22  ;;  %v18346_v11 = vld [vmem:[#allocation20_spill] sm:$0xff]  ;;  %v18349_v53 = vld [vmem:[#allocation34_spill] sm:$0xff] }
 0x35b   : > { %v14391_v44 = vadd.f32 %v5202_v59, %v14202_v37  ;;  %v14394_v32 = vadd.f32 %v5205_v21, %v14205_v16  ;;  %v14397_v5 = vadd.f32 %v5208_v52, %v14208_v0  ;;  %v14400_v14 = vadd.f32 %v5211_v29, %v14211_v6  ;;  %v18329_v37 = vld [vmem:[#allocation37_spill] sm:$0xff]  ;;  %v18330_v16 = vld [vmem:[#allocation14_spill] sm:$0xff]  ;;  %v18331_v0 = vld [vmem:[#allocation28_spill] sm:$0xff] }
 0x35c   : > { %v14403_v12 = vadd.f32 %v5214_v62, %v14214_v8  ;;  %v14406_v9 = vadd.f32 %v5217_v27, %v14217_v24  ;;  %v14409_v22 = vadd.f32 %v5220_v19, %v14220_v30  ;;  %v5257_v63 = vmul.f32 %v18298_v51, %v18329_v37  ;;  %v18332_v6 = vld [vmem:[#allocation49_spill] sm:$0xff]  ;;  %v18333_v8 = vld [vmem:[#allocation16_spill] sm:$0xff]  ;;  %v18335_v30 = vld [vmem:[#allocation39_spill] sm:$0xff] }
 0x35d   : > { %v5258_v41 = vmul.f32 %v18330_v16, %v18329_v37  ;;  %v5259_v34 = vmul.f32 %v18331_v0, %v18329_v37  ;;  %v5260_v55 = vmul.f32 %v18332_v6, %v18329_v37  ;;  %v5261_v20 = vmul.f32 %v18333_v8, %v18329_v37  ;;  %v18334_v24 = vld [vmem:[#allocation41_spill] sm:$0xff]  ;;  %v18348_v54 = vld [vmem:[#allocation40_spill] sm:$0xff]  ;;  %v18351_v29 = vld [vmem:[#allocation35_spill] sm:$0xff] }
 0x35e   : > { %18328 = vst [vmem:[#allocation23_spill] sm:$0xff] %v14409_v22  ;;  %v5262_v45 = vmul.f32 %v18334_v24, %v18329_v37  ;;  %v5263_v38 = vmul.f32 %v18335_v30, %v18329_v37  ;;  %v18336_v51 = vld [vmem:[#allocation53_spill] sm:$0xff]  ;;  %v5265_v13 = vmul.f32 %v18337_v15, %v18329_v37  ;;  %v5266_v7 = vmul.f32 %v18338_v18, %v18329_v37  ;;  %v18350_v21 = vld [vmem:[#allocation44_spill] sm:$0xff]  ;;  %v18356_v18 = vld [vmem:[#allocation50_spill] sm:$0xff] }
 0x35f   : > { %v5264_v40 = vmul.f32 %v18336_v51, %v18329_v37  ;;  %v5267_v42 = vmul.f32 %v18339_v47, %v18329_v37  ;;  %v5268_v33 = vmul.f32 %v18340_v17, %v18329_v37  ;;  %v5269_v49 = vmul.f32 %v18341_v2, %v18329_v37  ;;  %v18352_v27 = vld [vmem:[#allocation17_spill] sm:$0xff]  ;;  %v18353_v2 = vld [vmem:[#allocation58_spill] sm:$0xff] }
 0x360   : > { %v5270_v4 = vmul.f32 %v18342_v25, %v18329_v37  ;;  %v5271_v61 = vmul.f32 %v14442_v10, %v18329_v37  ;;  %v5272_v26 = vmul.f32 %v14449_v28, %v18329_v37  ;;  %v5273_v35 = vmul.f32 %v18345_v3, %v18329_v37  ;;  %v18354_v17 = vld [vmem:[#allocation38_spill] sm:$0xff]  ;;  %v18355_v47 = vld [vmem:[#allocation29_spill] sm:$0xff] }
 0x361   : > { %v5274_v50 = vmul.f32 %v18346_v11, %v18329_v37  ;;  %v5275_v58 = vmul.f32 %v18347_v39, %v18329_v37  ;;  %v5276_v1 = vmul.f32 %v18348_v54, %v18329_v37  ;;  %v5277_v59 = vmul.f32 %v18349_v53, %v18329_v37 }
 0x362   : > { %v5278_v52 = vmul.f32 %v18350_v21, %v18329_v37  ;;  %v5279_v62 = vmul.f32 %v18351_v29, %v18329_v37  ;;  %v5280_v19 = vmul.f32 %v18352_v27, %v18329_v37  ;;  %v5321_v16 = vrot.slane %v5257_v63, 5  ;;  %v18357_v63 = vld [vmem:[#allocation30_spill] sm:$0xff] }
 0x363   : > { %v5322_v3 = vrot.slane %v5258_v41, 5  ;;  %v5324_v11 = vrot.slane %v5259_v34, 5  ;;  %v5325_v28 = vrot.slane %v5260_v55, 5  ;;  %v5327_v39 = vrot.slane %v5261_v20, 5  ;;  %v18358_v34 = vld [vmem:[#allocation21_spill] sm:$0xff]  ;;  %v14484_v20 = vld [vmem:[%s16630_s0 + $0x180] sm:$0xff] }
 0x364   : > { %v5328_v10 = vrot.slane %v5262_v45, 5  ;;  %v5330_v25 = vrot.slane %v5263_v38, 5  ;;  %v5331_v54 = vrot.slane %v5264_v40, 5  ;;  %v5281_v53 = vmul.f32 %v18353_v2, %v18329_v37  ;;  %18359 = vst [vmem:[#allocation31_spill] sm:$0xff] %v14484_v20  ;;  %v14491_v38 = vld [vmem:[%s16630_s0 + $0x188] sm:$0xff] }
 0x365   : > { %v5282_v21 = vmul.f32 %v18354_v17, %v18329_v37  ;;  %v5283_v29 = vmul.f32 %v18355_v47, %v18329_v37  ;;  %v5284_v27 = vmul.f32 %v18356_v18, %v18329_v37  ;;  %v5285_v41 = vmul.f32 %v18357_v63, %v18329_v37  ;;  %18360 = vst [vmem:[#allocation11_spill] sm:$0xff] %v14491_v38 }
 0x366   : > { %v5286_v55 = vmul.f32 %v18358_v34, %v18329_v37  ;;  %v5287_v45 = vmul.f32 %v14484_v20, %v18329_v37  ;;  %v5288_v40 = vmul.f32 %v14491_v38, %v18329_v37  ;;  %v5323_v63 = vsel %vm4876_vm4, %v5321_v16, %v5322_v3 }
 0x367   : > { %v5326_v34 = vsel %vm4876_vm4, %v5324_v11, %v5325_v28  ;;  %v5333_v18 = vrot.slane %v5265_v13, 5  ;;  %v5334_v47 = vrot.slane %v5266_v7, 5  ;;  %v5329_v17 = vsel %vm4876_vm4, %v5327_v39, %v5328_v10 }
 0x368   : > { %v5332_v2 = vsel %vm4876_vm4, %v5330_v25, %v5331_v54  ;;  %v5336_v15 = vrot.slane %v5267_v42, 5  ;;  %v5337_v20 = vrot.slane %v5268_v33, 5  ;;  %v5339_v51 = vrot.slane %v5269_v49, 5 }
 0x369   : > { %v5340_v30 = vrot.slane %v5270_v4, 5  ;;  %v5342_v24 = vrot.slane %v5271_v61, 5  ;;  %v5343_v8 = vrot.slane %v5272_v26, 5  ;;  %v5345_v6 = vrot.slane %v5273_v35, 5 }
 0x36a   : > { %v5346_v0 = vrot.slane %v5274_v50, 5  ;;  %v5348_v22 = vrot.slane %v5275_v58, 5  ;;  %v5349_v37 = vrot.slane %v5276_v1, 5  ;;  %v5351_v38 = vrot.slane %v5277_v59, 5 }
 0x36b   : > { %v5352_v16 = vrot.slane %v5278_v52, 5  ;;  %v5354_v3 = vrot.slane %v5279_v62, 5  ;;  %v5355_v28 = vrot.slane %v5280_v19, 5  ;;  %v5357_v13 = vrot.slane %v5281_v53, 5 }
 0x36c   : > { %v5358_v7 = vrot.slane %v5282_v21, 5  ;;  %v5360_v11 = vrot.slane %v5283_v29, 5  ;;  %v5361_v10 = vrot.slane %v5284_v27, 5  ;;  %v5335_v25 = vsel %vm4876_vm4, %v5333_v18, %v5334_v47  ;;  %v18369_v29 = vld [vmem:[#allocation28_spill] sm:$0xff]  ;;  %v18370_v27 = vld [vmem:[#allocation49_spill] sm:$0xff] }
 0x36d   : > { %v5338_v42 = vsel %vm4876_vm4, %v5336_v15, %v5337_v20  ;;  %v5363_v33 = vrot.slane %v5285_v41, 5  ;;  %v5364_v49 = vrot.slane %v5286_v55, 5  ;;  %v5341_v4 = vsel %vm4876_vm4, %v5339_v51, %v5340_v30  ;;  %v18371_v41 = vld [vmem:[#allocation12_spill] sm:$0xff]  ;;  %v18373_v20 = vld [vmem:[#allocation13_spill] sm:$0xff] }
 0x36e   : > { %v5344_v61 = vsel %vm4876_vm4, %v5342_v24, %v5343_v8  ;;  %v5366_v26 = vrot.slane %v5287_v45, 5  ;;  %v5367_v35 = vrot.slane %v5288_v40, 5  ;;  %v5347_v50 = vsel %vm4876_vm4, %v5345_v6, %v5346_v0  ;;  %v7757_v55 = vld [vmem:[%s16631_s1 + $0x10] sm:$0xff] }
 0x36f   : > { %v5350_v39 = vsel %vm4876_vm4, %v5348_v22, %v5349_v37  ;;  %v5353_v58 = vsel %vm4876_vm4, %v5351_v38, %v5352_v16  ;;  %v5356_v54 = vsel %vm4876_vm4, %v5354_v3, %v5355_v28  ;;  %v5359_v18 = vsel %vm4876_vm4, %v5357_v13, %v5358_v7  ;;  %v18375_v38 = vld [vmem:[#allocation16_spill] sm:$0xff]  ;;  %v18376_v37 = vld [vmem:[#allocation41_spill] sm:$0xff]  ;;  %v18377_v3 = vld [vmem:[#allocation39_spill] sm:$0xff] }
 0x370   : > { %v5362_v15 = vsel %vm4876_vm4, %v5360_v11, %v5361_v10  ;;  %v14510_v47 = vadd.f32 %v5323_v63, %v14362_v43  ;;  %v14513_v30 = vadd.f32 %v5326_v34, %v14365_v60  ;;  %v5365_v8 = vsel %vm4876_vm4, %v5363_v33, %v5364_v49  ;;  %v7753_v60 = vld [vmem:[%s16631_s1 + $0x20] sm:$0xff]  ;;  %v7756_v63 = vld [vmem:[%s16631_s1 + $0x8] sm:$0xff]  ;;  %v18378_v13 = vld [vmem:[#allocation53_spill] sm:$0xff] }
 0x371   : > { %v14517_v0 = vadd.f32 %v5329_v17, %v14370_v48  ;;  %v14520_v22 = vadd.f32 %v5332_v2, %v14373_v56  ;;  %v14523_v6 = vadd.f32 %v5335_v25, %v14376_v23  ;;  %v5368_v24 = vsel %vm4876_vm4, %v5366_v26, %v5367_v35  ;;  %v18361_v48 = vld [vmem:[#allocation10_spill] sm:$0xff]  ;;  %v18379_v11 = vld [vmem:[#allocation33_spill] sm:$0xff]  ;;  %v18380_v25 = vld [vmem:[#allocation48_spill] sm:$0xff] }
 0x372   : > { %v14527_v51 = vadd.f32 %v5338_v42, %v14379_v31  ;;  %v14530_v43 = vadd.f32 %v5341_v4, %v14382_v36  ;;  %v5404_v17 = vrot.slane %v7753_v60, %v18361_v48  ;;  %v14537_v56 = vadd.f32 %v5344_v61, %v14385_v46  ;;  %v18381_v33 = vld [vmem:[#allocation36_spill] sm:$0xff]  ;;  %v18382_v4 = vld [vmem:[#allocation15_spill] sm:$0xff]  ;;  %v14629_v60 = vld [vmem:[%s16630_s0 + $0xb8] sm:$0xff] }
 0x373   : > { %v14540_v23 = vadd.f32 %v5347_v50, %v14388_v57  ;;  %v14543_v2 = vadd.f32 %v5350_v39, %v14391_v44  ;;  %v14546_v31 = vadd.f32 %v5353_v58, %v14394_v32  ;;  %v14549_v36 = vadd.f32 %v5356_v54, %v14397_v5  ;;  %v18362_v57 = vld [vmem:[#allocation23_spill] sm:$0xff]  ;;  %v18363_v32 = vld [vmem:[#allocation6_spill] sm:$0xff]  ;;  %v18365_v5 = vld [vmem:[#allocation8_spill] sm:$0xff]  ;;  %18388 = vst [vmem:[#allocation42_spill] sm:$0xff] %v14629_v60 }
 0x374   : > { %v14552_v1 = vadd.f32 %v5359_v18, %v14400_v14  ;;  %v14555_v53 = vadd.f32 %v5362_v15, %v14403_v12  ;;  %v14558_v46 = vadd.f32 %v5365_v8, %v14406_v9  ;;  %v14561_v59 = vadd.f32 %v5368_v24, %v18362_v57  ;;  %v7754_v44 = vld [vmem:[%s16631_s1 + $0x28] sm:$0xff]  ;;  %v7755_v14 = vld [vmem:[%s16631_s1] sm:$0xff]  ;;  %v18367_v12 = vld [vmem:[#allocation9_spill] sm:$0xff] }
 0x375   : > { %v14567_v21 = vrot.slane %v7754_v44, %v18363_v32  ;;  %v14570_v52 = vrot.slane %v7754_v44, %v18365_v5  ;;  %v14576_v9 = vrot.slane %v7755_v14, %v18367_v12  ;;  %v5405_v62 = vmul.f32 %v18369_v29, %v5404_v17  ;;  %v18383_v26 = vld [vmem:[#allocation32_spill] sm:$0xff]  ;;  %v18385_v58 = vld [vmem:[#allocation46_spill] sm:$0xff]  ;;  %v18386_v18 = vld [vmem:[#allocation57_spill] sm:$0xff] }
 0x376   : > { %v5406_v19 = vmul.f32 %v18370_v27, %v5404_v17  ;;  %v14584_v34 = vrot.slane %v7756_v63, %v18371_v41  ;;  %v14590_v45 = vrot.slane %v7757_v55, %v18373_v20  ;;  %v5407_v40 = vmul.f32 %v18375_v38, %v5404_v17  ;;  %v18384_v50 = vld [vmem:[#allocation56_spill] sm:$0xff]  ;;  %v18389_v44 = vld [vmem:[#allocation26_spill] sm:$0xff]  ;;  %v18393_v55 = vld [vmem:[#allocation35_spill] sm:$0xff] }
 0x377   : > { %18364 = vst [vmem:[#allocation43_spill] sm:$0xff] %v14567_v21  ;;  %18366 = vst [vmem:[#allocation47_spill] sm:$0xff] %v14570_v52  ;;  %v5408_v16 = vmul.f32 %v18376_v37, %v5404_v17  ;;  %v14595_v28 = vmul.f32 %v18377_v3, %v5404_v17  ;;  %v14598_v7 = vmul.f32 %v18378_v13, %v5404_v17  ;;  %v14623_v8 = vld [vmem:[%s16630_s0 + $0xb0] sm:$0xff]  ;;  %v18391_v29 = vld [vmem:[#allocation34_spill] sm:$0xff]  ;;  %v5469_v32 = vrot.slane %v5405_v62, 5 }
 0x378   : > { %18368 = vst [vmem:[#allocation27_spill] sm:$0xff] %v14576_v9  ;;  %18372 = vst [vmem:[#allocation55_spill] sm:$0xff] %v14584_v34  ;;  %v14601_v10 = vmul.f32 %v18379_v11, %v5404_v17  ;;  %v5412_v42 = vmul.f32 %v18380_v25, %v5404_v17  ;;  %v14605_v49 = vmul.f32 %v18381_v33, %v5404_v17  ;;  %v18390_v14 = vld [vmem:[#allocation40_spill] sm:$0xff]  ;;  %v18394_v3 = vld [vmem:[#allocation17_spill] sm:$0xff]  ;;  %v5470_v48 = vrot.slane %v5406_v19, 5 }
 0x379   : > { %18374 = vst [vmem:[#allocation24_spill] sm:$0xff] %v14590_v45  ;;  %v14608_v61 = vmul.f32 %v18382_v4, %v5404_v17  ;;  %v14611_v35 = vmul.f32 %v18383_v26, %v5404_v17  ;;  %v5416_v39 = vmul.f32 %v18384_v50, %v5404_v17  ;;  %v14615_v54 = vmul.f32 %v18385_v58, %v5404_v17  ;;  %v18392_v63 = vld [vmem:[#allocation44_spill] sm:$0xff]  ;;  %v18395_v9 = vld [vmem:[#allocation58_spill] sm:$0xff]  ;;  %v18400_v26 = vld [vmem:[#allocation21_spill] sm:$0xff] }
 0x37a   : > { %v14618_v15 = vmul.f32 %v18386_v18, %v5404_v17  ;;  %18387 = vst [vmem:[#allocation54_spill] sm:$0xff] %v14623_v8  ;;  %v5419_v24 = vmul.f32 %v14623_v8, %v5404_v17  ;;  %v5420_v57 = vmul.f32 %v14629_v60, %v5404_v17  ;;  %v5421_v5 = vmul.f32 %v18389_v44, %v5404_v17  ;;  %v18396_v8 = vld [vmem:[#allocation38_spill] sm:$0xff]  ;;  %v18397_v18 = vld [vmem:[#allocation29_spill] sm:$0xff]  ;;  %v18401_v4 = vld [vmem:[#allocation31_spill] sm:$0xff] }
 0x37b   : > { %v5422_v12 = vmul.f32 %v18390_v14, %v5404_v17  ;;  %v5423_v27 = vmul.f32 %v18391_v29, %v5404_v17  ;;  %v5424_v41 = vmul.f32 %v18392_v63, %v5404_v17  ;;  %v5425_v20 = vmul.f32 %v18393_v55, %v5404_v17  ;;  %v18398_v58 = vld [vmem:[#allocation50_spill] sm:$0xff]  ;;  %v18402_v33 = vld [vmem:[#allocation11_spill] sm:$0xff]  ;;  %v14649_v62 = vld [vmem:[%s16630_s0 + $0x190] sm:$0xff] }
 0x37c   : > { %v5426_v11 = vmul.f32 %v18394_v3, %v5404_v17  ;;  %v5472_v45 = vrot.slane %v5407_v40, 5  ;;  %v5473_v34 = vrot.slane %v5408_v16, 5  ;;  %v5427_v52 = vmul.f32 %v18395_v9, %v5404_v17  ;;  %v18399_v50 = vld [vmem:[#allocation30_spill] sm:$0xff]  ;;  %18403 = vst [vmem:[#allocation7_spill] sm:$0xff] %v14649_v62  ;;  %v14655_v19 = vld [vmem:[%s16630_s0 + $0x198] sm:$0xff] }
 0x37d   : > { %v5428_v60 = vmul.f32 %v18396_v8, %v5404_v17  ;;  %v5429_v44 = vmul.f32 %v18397_v18, %v5404_v17  ;;  %v5430_v14 = vmul.f32 %v18398_v58, %v5404_v17  ;;  %v5431_v29 = vmul.f32 %v18399_v50, %v5404_v17  ;;  %18404 = vst [vmem:[#allocation25_spill] sm:$0xff] %v14655_v19 }
 0x37e   : > { %v5432_v63 = vmul.f32 %v18400_v26, %v5404_v17  ;;  %v5433_v55 = vmul.f32 %v18401_v4, %v5404_v17  ;;  %v5434_v3 = vmul.f32 %v18402_v33, %v5404_v17  ;;  %v5435_v9 = vmul.f32 %v14649_v62, %v5404_v17 }
 0x37f   : > { %v5436_v40 = vmul.f32 %v14655_v19, %v5404_v17  ;;  %v5475_v16 = vrot.slane %v14595_v28, 5  ;;  %v5476_v4 = vrot.slane %v14598_v7, 5  ;;  %v5471_v33 = vsel %vm4876_vm4, %v5469_v32, %v5470_v48 }
 0x380   : > { %v5474_v26 = vsel %vm4876_vm4, %v5472_v45, %v5473_v34  ;;  %v5478_v50 = vrot.slane %v14601_v10, 5  ;;  %v5479_v58 = vrot.slane %v5412_v42, 5  ;;  %v5481_v62 = vrot.slane %v14605_v49, 5 }
 0x381   : > { %v5482_v18 = vrot.slane %v14608_v61, 5  ;;  %v5484_v8 = vrot.slane %v14611_v35, 5  ;;  %v5485_v25 = vrot.slane %v5416_v39, 5  ;;  %v5487_v17 = vrot.slane %v14615_v54, 5 }
 0x382   : > { %v5488_v28 = vrot.slane %v14618_v15, 5  ;;  %v5490_v19 = vrot.slane %v5419_v24, 5  ;;  %v5491_v7 = vrot.slane %v5420_v57, 5  ;;  %v5493_v13 = vrot.slane %v5421_v5, 5 }
 0x383   : > { %v5494_v48 = vrot.slane %v5422_v12, 5  ;;  %v5496_v32 = vrot.slane %v5423_v27, 5  ;;  %v5497_v34 = vrot.slane %v5424_v41, 5  ;;  %v5499_v45 = vrot.slane %v5425_v20, 5 }
 0x384   : > { %v5500_v10 = vrot.slane %v5426_v11, 5  ;;  %v5502_v42 = vrot.slane %v5427_v52, 5  ;;  %v5503_v37 = vrot.slane %v5428_v60, 5  ;;  %v5505_v49 = vrot.slane %v5429_v44, 5  ;;  %v18411_v44 = vld [vmem:[#allocation48_spill] sm:$0xff] }
 0x385   : > { %v5506_v38 = vrot.slane %v5430_v14, 5  ;;  %v5508_v61 = vrot.slane %v5431_v29, 5  ;;  %v5509_v21 = vrot.slane %v5432_v63, 5  ;;  %v5477_v35 = vsel %vm4876_vm4, %v5475_v16, %v5476_v4 }
 0x386   : > { %v5480_v39 = vsel %vm4876_vm4, %v5478_v50, %v5479_v58  ;;  %v5511_v54 = vrot.slane %v5433_v55, 5  ;;  %v5512_v15 = vrot.slane %v5434_v3, 5  ;;  %v5483_v24 = vsel %vm4876_vm4, %v5481_v62, %v5482_v18  ;;  %v18412_v55 = vld [vmem:[#allocation36_spill] sm:$0xff] }
 0x387   : > { %v5486_v57 = vsel %vm4876_vm4, %v5484_v8, %v5485_v25  ;;  %v5514_v5 = vrot.slane %v5435_v9, 5  ;;  %v5515_v12 = vrot.slane %v5436_v40, 5  ;;  %v5489_v27 = vsel %vm4876_vm4, %v5487_v17, %v5488_v28  ;;  %v18413_v9 = vld [vmem:[#allocation15_spill] sm:$0xff]  ;;  %v18414_v40 = vld [vmem:[#allocation32_spill] sm:$0xff] }
 0x388   : > { %v5492_v52 = vsel %vm4876_vm4, %v5490_v19, %v5491_v7  ;;  %v5495_v60 = vsel %vm4876_vm4, %v5493_v13, %v5494_v48  ;;  %v5498_v29 = vsel %vm4876_vm4, %v5496_v32, %v5497_v34  ;;  %v5501_v4 = vsel %vm4876_vm4, %v5499_v45, %v5500_v10  ;;  %v18415_v17 = vld [vmem:[#allocation56_spill] sm:$0xff]  ;;  %v18416_v7 = vld [vmem:[#allocation46_spill] sm:$0xff]  ;;  %v18417_v32 = vld [vmem:[#allocation57_spill] sm:$0xff] }
 0x389   : > { %v5504_v50 = vsel %vm4876_vm4, %v5502_v42, %v5503_v37  ;;  %v5507_v58 = vsel %vm4876_vm4, %v5505_v49, %v5506_v38  ;;  %v5510_v18 = vsel %vm4876_vm4, %v5508_v61, %v5509_v21  ;;  %v5513_v25 = vsel %vm4876_vm4, %v5511_v54, %v5512_v15  ;;  %v18418_v45 = vld [vmem:[#allocation54_spill] sm:$0xff] }
 0x38a   : > { %v14682_v8 = vadd.f32 %v5471_v33, %v14510_v47  ;;  %v14685_v63 = vadd.f32 %v5474_v26, %v14513_v30  ;;  %v14688_v13 = vadd.f32 %v5477_v35, %v14517_v0  ;;  %v5516_v41 = vsel %vm4876_vm4, %v5514_v5, %v5515_v12  ;;  %v18406_v33 = vld [vmem:[#allocation16_spill] sm:$0xff]  ;;  %v18419_v42 = vld [vmem:[#allocation42_spill] sm:$0xff] }
 0x38b   : > { %v14692_v20 = vadd.f32 %v5480_v39, %v14520_v22  ;;  %v14695_v38 = vadd.f32 %v5483_v24, %v14523_v6  ;;  %v14698_v21 = vadd.f32 %v5486_v57, %v14527_v51  ;;  %v14701_v47 = vadd.f32 %v5489_v27, %v14530_v43  ;;  %v14791_v61 = vld [vmem:[%s16630_s0 + $0xc0] sm:$0xff]  ;;  %v14800_v39 = vld [vmem:[%s16630_s0 + $0xc8] sm:$0xff]  ;;  %v18423_v57 = vld [vmem:[#allocation44_spill] sm:$0xff] }
 0x38c   : > { %v14704_v30 = vadd.f32 %v5492_v52, %v14537_v56  ;;  %v14707_v0 = vadd.f32 %v5495_v60, %v14540_v23  ;;  %v14710_v37 = vadd.f32 %v5498_v29, %v14543_v2  ;;  %v14713_v22 = vadd.f32 %v5501_v4, %v14546_v31  ;;  %v18405_v2 = vld [vmem:[#allocation43_spill] sm:$0xff]  ;;  %v18407_v31 = vld [vmem:[#allocation41_spill] sm:$0xff]  ;;  %18420 = vst [vmem:[#allocation51_spill] sm:$0xff] %v14791_v61  ;;  %v18422_v15 = vld [vmem:[#allocation34_spill] sm:$0xff] }
 0x38d   : > { %v14716_v6 = vadd.f32 %v5504_v50, %v14549_v36  ;;  %v14719_v51 = vadd.f32 %v5507_v58, %v14552_v1  ;;  %v14722_v43 = vadd.f32 %v5510_v18, %v14555_v53  ;;  %v14725_v56 = vadd.f32 %v5513_v25, %v14558_v46  ;;  %v14737_v36 = vld [vmem:[%s16630_s0 + $0x60] sm:$0xff]  ;;  %v18409_v53 = vld [vmem:[#allocation53_spill] sm:$0xff]  ;;  %18421 = vst [vmem:[#allocation37_spill] sm:$0xff] %v14800_v39  ;;  %v14820_v29 = vld [vmem:[%s16630_s0 + $0x150] sm:$0xff] }
 0x38e   : > { %v14728_v23 = vadd.f32 %v5516_v41, %v14561_v59  ;;  %v5553_v26 = vmul.f32 %v18406_v33, %v18405_v2  ;;  %v5554_v3 = vmul.f32 %v18407_v31, %v18405_v2  ;;  %18408 = vst [vmem:[#allocation19_spill] sm:$0xff] %v14737_v36  ;;  %v5555_v1 = vmul.f32 %v14737_v36, %v18405_v2  ;;  %v14746_v59 = vld [vmem:[%s16630_s0 + $0x70] sm:$0xff]  ;;  %v14811_v12 = vld [vmem:[%s16630_s0 + $0x140] sm:$0xff]  ;;  %v18425_v52 = vld [vmem:[#allocation17_spill] sm:$0xff] }
 0x38f   : > { %v5556_v46 = vmul.f32 %v18409_v53, %v18405_v2  ;;  %18410 = vst [vmem:[#allocation52_spill] sm:$0xff] %v14746_v59  ;;  %v14750_v11 = vmul.f32 %v14746_v59, %v18405_v2  ;;  %v14754_v14 = vmul.f32 %v18411_v44, %v18405_v2  ;;  %v14758_v62 = vmul.f32 %v18412_v55, %v18405_v2  ;;  %v18427_v50 = vld [vmem:[#allocation38_spill] sm:$0xff]  ;;  %v18428_v31 = vld [vmem:[#allocation29_spill] sm:$0xff] }
 0x390   : > { %v14762_v19 = vmul.f32 %v18413_v9, %v18405_v2  ;;  %v14766_v16 = vmul.f32 %v18414_v40, %v18405_v2  ;;  %v14770_v28 = vmul.f32 %v18415_v17, %v18405_v2  ;;  %v14774_v48 = vmul.f32 %v18416_v7, %v18405_v2  ;;  %18424 = vst [vmem:[#allocation14_spill] sm:$0xff] %v14811_v12 }
 0x391   : > { %v14778_v34 = vmul.f32 %v18417_v32, %v18405_v2  ;;  %v14782_v10 = vmul.f32 %v18418_v45, %v18405_v2  ;;  %v14786_v49 = vmul.f32 %v18419_v42, %v18405_v2  ;;  %v14795_v35 = vmul.f32 %v14791_v61, %v18405_v2  ;;  %18426 = vst [vmem:[#allocation45_spill] sm:$0xff] %v14820_v29  ;;  %v18431_v61 = vld [vmem:[#allocation21_spill] sm:$0xff] }
 0x392   : > { %v5568_v54 = vmul.f32 %v14800_v39, %v18405_v2  ;;  %v5569_v24 = vmul.f32 %v18422_v15, %v18405_v2  ;;  %v5570_v5 = vmul.f32 %v18423_v57, %v18405_v2  ;;  %v5571_v27 = vmul.f32 %v14811_v12, %v18405_v2  ;;  %v18429_v57 = vld [vmem:[#allocation50_spill] sm:$0xff] }
 0x393   : > { %v5572_v60 = vmul.f32 %v18425_v52, %v18405_v2  ;;  %v5573_v4 = vmul.f32 %v14820_v29, %v18405_v2  ;;  %v5574_v58 = vmul.f32 %v18427_v50, %v18405_v2  ;;  %v5617_v18 = vrot.slane %v5553_v26, 5  ;;  %v18430_v12 = vld [vmem:[#allocation30_spill] sm:$0xff]  ;;  %v18432_v29 = vld [vmem:[#allocation31_spill] sm:$0xff] }
 0x394   : > { %v5618_v25 = vrot.slane %v5554_v3, 5  ;;  %v5620_v41 = vrot.slane %v5555_v1, 5  ;;  %v5621_v33 = vrot.slane %v5556_v46, 5  ;;  %v5575_v15 = vmul.f32 %v18428_v31, %v18405_v2  ;;  %v18433_v26 = vld [vmem:[#allocation11_spill] sm:$0xff]  ;;  %v18435_v31 = vld [vmem:[#allocation25_spill] sm:$0xff] }
 0x395   : > { %v5576_v52 = vmul.f32 %v18429_v57, %v18405_v2  ;;  %v5577_v39 = vmul.f32 %v18430_v12, %v18405_v2  ;;  %v5578_v42 = vmul.f32 %v18431_v61, %v18405_v2  ;;  %v5579_v45 = vmul.f32 %v18432_v29, %v18405_v2  ;;  %v18434_v1 = vld [vmem:[#allocation7_spill] sm:$0xff]  ;;  %v14845_v57 = vld [vmem:[%s16630_s0 + $0x1a0] sm:$0xff] }
 0x396   : > { %v5580_v3 = vmul.f32 %v18433_v26, %v18405_v2  ;;  %v5581_v46 = vmul.f32 %v18434_v1, %v18405_v2  ;;  %v5582_v50 = vmul.f32 %v18435_v31, %v18405_v2  ;;  %18436 = vst [vmem:[#allocation20_spill] sm:$0xff] %v14845_v57  ;;  %v5583_v61 = vmul.f32 %v14845_v57, %v18405_v2  ;;  %v14852_v29 = vld [vmem:[%s16630_s0 + $0x1a8] sm:$0xff] }
 0x397   : > { %18437 = vst [vmem:[#allocation23_spill] sm:$0xff] %v14852_v29  ;;  %v5584_v26 = vmul.f32 %v14852_v29, %v18405_v2  ;;  %v5623_v1 = vrot.slane %v14750_v11, 5  ;;  %v5624_v31 = vrot.slane %v14754_v14, 5  ;;  %v5619_v12 = vsel %vm4876_vm4, %v5617_v18, %v5618_v25 }
 0x398   : > { %v5622_v32 = vsel %vm4876_vm4, %v5620_v41, %v5621_v33  ;;  %v5626_v7 = vrot.slane %v14758_v62, 5  ;;  %v5627_v57 = vrot.slane %v14762_v19, 5  ;;  %v5629_v17 = vrot.slane %v14766_v16, 5 }
 0x399   : > { %v5630_v40 = vrot.slane %v14770_v28, 5  ;;  %v5632_v9 = vrot.slane %v14774_v48, 5  ;;  %v5633_v2 = vrot.slane %v14778_v34, 5  ;;  %v5635_v11 = vrot.slane %v14782_v10, 5 }
 0x39a   : > { %v5636_v14 = vrot.slane %v14786_v49, 5  ;;  %v5638_v18 = vrot.slane %v14795_v35, 5  ;;  %v5639_v25 = vrot.slane %v5568_v54, 5  ;;  %v5641_v41 = vrot.slane %v5569_v24, 5 }
 0x39b   : > { %v5642_v33 = vrot.slane %v5570_v5, 5  ;;  %v5644_v62 = vrot.slane %v5571_v27, 5  ;;  %v5645_v29 = vrot.slane %v5572_v60, 5  ;;  %v5647_v19 = vrot.slane %v5573_v4, 5 }
 0x39c   : > { %v5648_v55 = vrot.slane %v5574_v58, 5  ;;  %v5650_v16 = vrot.slane %v5575_v15, 5  ;;  %v5651_v44 = vrot.slane %v5576_v52, 5  ;;  %v5653_v28 = vrot.slane %v5577_v39, 5  ;;  %v18445_v15 = vld [vmem:[#allocation32_spill] sm:$0xff] }
 0x39d   : > { %v5654_v59 = vrot.slane %v5578_v42, 5  ;;  %v5656_v48 = vrot.slane %v5579_v45, 5  ;;  %v5657_v53 = vrot.slane %v5580_v3, 5  ;;  %v5625_v34 = vsel %vm4876_vm4, %v5623_v1, %v5624_v31  ;;  %v18447_v1 = vld [vmem:[#allocation46_spill] sm:$0xff] }
 0x39e   : > { %v5628_v10 = vsel %vm4876_vm4, %v5626_v7, %v5627_v57  ;;  %v5659_v49 = vrot.slane %v5581_v46, 5  ;;  %v5660_v36 = vrot.slane %v5582_v50, 5  ;;  %v5631_v35 = vsel %vm4876_vm4, %v5629_v17, %v5630_v40 }
 0x39f   : > { %v5634_v54 = vsel %vm4876_vm4, %v5632_v9, %v5633_v2  ;;  %v5662_v24 = vrot.slane %v5583_v61, 5  ;;  %v5663_v5 = vrot.slane %v5584_v26, 5  ;;  %v5637_v27 = vsel %vm4876_vm4, %v5635_v11, %v5636_v14  ;;  %v18446_v26 = vld [vmem:[#allocation56_spill] sm:$0xff]  ;;  %v18448_v2 = vld [vmem:[#allocation57_spill] sm:$0xff]  ;;  %v18449_v14 = vld [vmem:[#allocation54_spill] sm:$0xff] }
 0x3a0   : > { %v5640_v52 = vsel %vm4876_vm4, %v5638_v18, %v5639_v25  ;;  %v5643_v42 = vsel %vm4876_vm4, %v5641_v41, %v5642_v33  ;;  %v5646_v45 = vsel %vm4876_vm4, %v5644_v62, %v5645_v29  ;;  %v5649_v39 = vsel %vm4876_vm4, %v5647_v19, %v5648_v55  ;;  %v18450_v25 = vld [vmem:[#allocation42_spill] sm:$0xff]  ;;  %v18451_v33 = vld [vmem:[#allocation51_spill] sm:$0xff]  ;;  %v18452_v19 = vld [vmem:[#allocation37_spill] sm:$0xff] }
 0x3a1   : > { %v5652_v7 = vsel %vm4876_vm4, %v5650_v16, %v5651_v44  ;;  %v5655_v60 = vsel %vm4876_vm4, %v5653_v28, %v5654_v59  ;;  %v5658_v40 = vsel %vm4876_vm4, %v5656_v48, %v5657_v53  ;;  %v5661_v9 = vsel %vm4876_vm4, %v5659_v49, %v5660_v36  ;;  %v18439_v44 = vld [vmem:[#allocation19_spill] sm:$0xff]  ;;  %v7770_v28 = vld [vmem:[%s16630_s0 + $0xd0] sm:$0xff]  ;;  %v18453_v49 = vld [vmem:[#allocation14_spill] sm:$0xff] }
 0x3a2   : > { %v14883_v17 = vadd.f32 %v5619_v12, %v14682_v8  ;;  %v14886_v61 = vadd.f32 %v5622_v32, %v14685_v63  ;;  %v14889_v4 = vadd.f32 %v5625_v34, %v14688_v13  ;;  %v5664_v29 = vsel %vm4876_vm4, %v5662_v24, %v5663_v5  ;;  %v7771_v34 = vld [vmem:[%s16630_s0 + $0xd8] sm:$0xff] }
 0x3a3   : > { %v14893_v55 = vadd.f32 %v5628_v10, %v14692_v20  ;;  %v14896_v59 = vadd.f32 %v5631_v35, %v14695_v38  ;;  %v14899_v53 = vadd.f32 %v5634_v54, %v14698_v21  ;;  %v14902_v8 = vadd.f32 %v5637_v27, %v14701_v47  ;;  %v18454_v54 = vld [vmem:[#allocation17_spill] sm:$0xff] }
 0x3a4   : > { %v14905_v63 = vadd.f32 %v5640_v52, %v14704_v30  ;;  %v14908_v13 = vadd.f32 %v5643_v42, %v14707_v0  ;;  %v14911_v36 = vadd.f32 %v5646_v45, %v14710_v37  ;;  %v14914_v20 = vadd.f32 %v5649_v39, %v14713_v22  ;;  %v18438_v37 = vld [vmem:[#allocation47_spill] sm:$0xff]  ;;  %v18440_v22 = vld [vmem:[#allocation53_spill] sm:$0xff]  ;;  %v18456_v52 = vld [vmem:[#allocation38_spill] sm:$0xff] }
 0x3a5   : > { %v14917_v38 = vadd.f32 %v5652_v7, %v14716_v6  ;;  %v14920_v21 = vadd.f32 %v5655_v60, %v14719_v51  ;;  %v14923_v47 = vadd.f32 %v5658_v40, %v14722_v43  ;;  %v14926_v30 = vadd.f32 %v5661_v9, %v14725_v56  ;;  %v18441_v6 = vld [vmem:[#allocation52_spill] sm:$0xff]  ;;  %v18444_v56 = vld [vmem:[#allocation15_spill] sm:$0xff]  ;;  %v18455_v5 = vld [vmem:[#allocation45_spill] sm:$0xff] }
 0x3a6   : > { %v14929_v0 = vadd.f32 %v5664_v29, %v14728_v23  ;;  %v5701_v32 = vmul.f32 %v18439_v44, %v18438_v37  ;;  %v5702_v12 = vmul.f32 %v18440_v22, %v18438_v37  ;;  %v5703_v50 = vmul.f32 %v18441_v6, %v18438_v37  ;;  %v18442_v51 = vld [vmem:[#allocation48_spill] sm:$0xff]  ;;  %v18457_v45 = vld [vmem:[#allocation29_spill] sm:$0xff]  ;;  %v18458_v7 = vld [vmem:[#allocation50_spill] sm:$0xff] }
 0x3a7   : > { %v5704_v58 = vmul.f32 %v18442_v51, %v18438_v37  ;;  %v18443_v43 = vld [vmem:[#allocation36_spill] sm:$0xff]  ;;  %v14945_v23 = vmul.f32 %v18444_v56, %v18438_v37  ;;  %v14949_v57 = vmul.f32 %v18445_v15, %v18438_v37  ;;  %v5708_v3 = vmul.f32 %v18446_v26, %v18438_v37  ;;  %v18459_v56 = vld [vmem:[#allocation30_spill] sm:$0xff]  ;;  %v18460_v26 = vld [vmem:[#allocation21_spill] sm:$0xff] }
 0x3a8   : > { %v14941_v31 = vmul.f32 %v18443_v43, %v18438_v37  ;;  %v14955_v46 = vmul.f32 %v18447_v1, %v18438_v37  ;;  %v14959_v11 = vmul.f32 %v18448_v2, %v18438_v37  ;;  %v14963_v18 = vmul.f32 %v18449_v14, %v18438_v37  ;;  %v18461_v2 = vld [vmem:[#allocation31_spill] sm:$0xff] }
 0x3a9   : > { %v5712_v41 = vmul.f32 %v18450_v25, %v18438_v37  ;;  %v14969_v62 = vmul.f32 %v18451_v33, %v18438_v37  ;;  %v14973_v16 = vmul.f32 %v18452_v19, %v18438_v37  ;;  %v5715_v48 = vmul.f32 %v7770_v28, %v18438_v37  ;;  %v18462_v25 = vld [vmem:[#allocation11_spill] sm:$0xff] }
 0x3aa   : > { %v5716_v10 = vmul.f32 %v7771_v34, %v18438_v37  ;;  %v5717_v35 = vmul.f32 %v18453_v49, %v18438_v37  ;;  %v5718_v24 = vmul.f32 %v18454_v54, %v18438_v37  ;;  %v5719_v27 = vmul.f32 %v18455_v5, %v18438_v37  ;;  %v18463_v19 = vld [vmem:[#allocation7_spill] sm:$0xff] }
 0x3ab   : > { %v5720_v42 = vmul.f32 %v18456_v52, %v18438_v37  ;;  %v5721_v39 = vmul.f32 %v18457_v45, %v18438_v37  ;;  %v5722_v60 = vmul.f32 %v18458_v7, %v18438_v37  ;;  %v5765_v40 = vrot.slane %v5701_v32, 5  ;;  %v18464_v32 = vld [vmem:[#allocation25_spill] sm:$0xff]  ;;  %v18466_v34 = vld [vmem:[#allocation23_spill] sm:$0xff]  ;;  %v7772_v7 = vld [vmem:[%s16630_s0 + $0x1b0] sm:$0xff] }
 0x3ac   : > { %v5766_v9 = vrot.slane %v5702_v12, 5  ;;  %v5768_v29 = vrot.slane %v5703_v50, 5  ;;  %v5769_v43 = vrot.slane %v5704_v58, 5  ;;  %v5723_v15 = vmul.f32 %v18459_v56, %v18438_v37  ;;  %v18465_v50 = vld [vmem:[#allocation20_spill] sm:$0xff] }
 0x3ad   : > { %v5724_v1 = vmul.f32 %v18460_v26, %v18438_v37  ;;  %v5725_v14 = vmul.f32 %v18461_v2, %v18438_v37  ;;  %v5726_v33 = vmul.f32 %v18462_v25, %v18438_v37  ;;  %v5727_v28 = vmul.f32 %v18463_v19, %v18438_v37  ;;  %v7773_v26 = vld [vmem:[%s16630_s0 + $0x1b8] sm:$0xff] }
 0x3ae   : > { %v5728_v12 = vmul.f32 %v18464_v32, %v18438_v37  ;;  %v5729_v58 = vmul.f32 %v18465_v50, %v18438_v37  ;;  %v5730_v45 = vmul.f32 %v18466_v34, %v18438_v37  ;;  %v5731_v56 = vmul.f32 %v7772_v7, %v18438_v37 }
 0x3af   : > { %v5732_v2 = vmul.f32 %v7773_v26, %v18438_v37  ;;  %v5771_v25 = vrot.slane %v14941_v31, 5  ;;  %v5772_v19 = vrot.slane %v14945_v23, 5  ;;  %v5767_v32 = vsel %vm4876_vm4, %v5765_v40, %v5766_v9 }
 0x3b0   : > { %v5770_v50 = vsel %vm4876_vm4, %v5768_v29, %v5769_v43  ;;  %v5774_v34 = vrot.slane %v14949_v57, 5  ;;  %v5775_v52 = vrot.slane %v5708_v3, 5  ;;  %v5777_v5 = vrot.slane %v14955_v46, 5 }
 0x3b1   : > { %v5778_v7 = vrot.slane %v14959_v11, 5  ;;  %v5780_v54 = vrot.slane %v14963_v18, 5  ;;  %v5781_v49 = vrot.slane %v5712_v41, 5  ;;  %v5783_v37 = vrot.slane %v14969_v62, 5 }
 0x3b2   : > { %v5784_v31 = vrot.slane %v14973_v16, 5  ;;  %v5786_v26 = vrot.slane %v5715_v48, 5  ;;  %v5787_v23 = vrot.slane %v5716_v10, 5  ;;  %v5789_v51 = vrot.slane %v5717_v35, 5 }
 0x3b3   : > { %v5790_v40 = vrot.slane %v5718_v24, 5  ;;  %v5792_v9 = vrot.slane %v5719_v27, 5  ;;  %v5793_v29 = vrot.slane %v5720_v42, 5  ;;  %v5795_v43 = vrot.slane %v5721_v39, 5 }
 0x3b4   : > { %v5796_v57 = vrot.slane %v5722_v60, 5  ;;  %v5798_v3 = vrot.slane %v5723_v15, 5  ;;  %v5799_v6 = vrot.slane %v5724_v1, 5  ;;  %v5801_v46 = vrot.slane %v5725_v14, 5 }
 0x3b5   : > { %v5802_v22 = vrot.slane %v5726_v33, 5  ;;  %v5804_v11 = vrot.slane %v5727_v28, 5  ;;  %v5805_v44 = vrot.slane %v5728_v12, 5  ;;  %v5773_v18 = vsel %vm4876_vm4, %v5771_v25, %v5772_v19  ;;  %v15111_v12 = vld [vmem:[%s16630_s0 + $0x18] sm:$0xff]  ;;  %v15136_v19 = vld [vmem:[%s16630_s0 + $0x30] sm:$0xff] }
 0x3b6   : > { %v5776_v41 = vsel %vm4876_vm4, %v5774_v34, %v5775_v52  ;;  %v5807_v62 = vrot.slane %v5729_v58, 5  ;;  %v5808_v16 = vrot.slane %v5730_v45, 5  ;;  %v5779_v48 = vsel %vm4876_vm4, %v5777_v5, %v5778_v7  ;;  %v15118_v45 = vld [vmem:[%s16630_s0 + $0x20] sm:$0xff]  ;;  %18470 = vst [vmem:[#allocation28_spill] sm:$0xff] %v15136_v19 }
 0x3b7   : > { %v5782_v10 = vsel %vm4876_vm4, %v5780_v54, %v5781_v49  ;;  %v5810_v35 = vrot.slane %v5731_v56, 5  ;;  %v5811_v24 = vrot.slane %v5732_v2, 5  ;;  %v5785_v27 = vsel %vm4876_vm4, %v5783_v37, %v5784_v31  ;;  %18468 = vst [vmem:[#allocation8_spill] sm:$0xff] %v15118_v45  ;;  %v15127_v2 = vld [vmem:[%s16630_s0 + $0x28] sm:$0xff]  ;;  %v15154_v7 = vld [vmem:[%s16630_s0 + $0x40] sm:$0xff] }
 0x3b8   : > { %v5788_v42 = vsel %vm4876_vm4, %v5786_v26, %v5787_v23  ;;  %v5791_v39 = vsel %vm4876_vm4, %v5789_v51, %v5790_v40  ;;  %v5794_v60 = vsel %vm4876_vm4, %v5792_v9, %v5793_v29  ;;  %v5797_v15 = vsel %vm4876_vm4, %v5795_v43, %v5796_v57  ;;  %18469 = vst [vmem:[#allocation9_spill] sm:$0xff] %v15127_v2  ;;  %v15163_v31 = vld [vmem:[%s16630_s0 + $0x48] sm:$0xff]  ;;  %v15172_v23 = vld [vmem:[%s16630_s0 + $0x50] sm:$0xff]  ;;  %v15181_v9 = vld [vmem:[%s16630_s0 + $0x58] sm:$0xff] }
 0x3b9   : > { %v5800_v52 = vsel %vm4876_vm4, %v5798_v3, %v5799_v6  ;;  %v5803_v1 = vsel %vm4876_vm4, %v5801_v46, %v5802_v22  ;;  %v5806_v5 = vsel %vm4876_vm4, %v5804_v11, %v5805_v44  ;;  %v5809_v49 = vsel %vm4876_vm4, %v5807_v62, %v5808_v16  ;;  %18472 = vst [vmem:[#allocation12_spill] sm:$0xff] %v15154_v7  ;;  %v18476_v43 = vld [vmem:[#allocation19_spill] sm:$0xff]  ;;  %v18477_v3 = vld [vmem:[#allocation53_spill] sm:$0xff]  ;;  %v18478_v11 = vld [vmem:[#allocation52_spill] sm:$0xff] }
 0x3ba   : > { %v15043_v54 = vadd.f32 %v5767_v32, %v14883_v17  ;;  %v15046_v14 = vadd.f32 %v5770_v50, %v14886_v61  ;;  %v15049_v51 = vadd.f32 %v5773_v18, %v14889_v4  ;;  %v5812_v33 = vsel %vm4876_vm4, %v5810_v35, %v5811_v24  ;;  %v15145_v50 = vld [vmem:[%s16630_s0 + $0x38] sm:$0xff]  ;;  %18473 = vst [vmem:[#allocation13_spill] sm:$0xff] %v15163_v31  ;;  %v7786_v16 = vld [vmem:[%s16630_s0 + $0xe0] sm:$0xff]  ;;  %v15218_v24 = vld [vmem:[%s16630_s0 + $0xf0] sm:$0xff] }
 0x3bb   : > { %v15053_v28 = vadd.f32 %v5776_v41, %v14893_v55  ;;  %v15056_v22 = vadd.f32 %v5779_v48, %v14896_v59  ;;  %v15059_v44 = vadd.f32 %v5782_v10, %v14899_v53  ;;  %v15062_v17 = vadd.f32 %v5785_v27, %v14902_v8  ;;  %18471 = vst [vmem:[#allocation49_spill] sm:$0xff] %v15145_v50  ;;  %v18479_v41 = vld [vmem:[#allocation48_spill] sm:$0xff]  ;;  %v7787_v10 = vld [vmem:[%s16630_s0 + $0xe8] sm:$0xff] }
 0x3bc   : > { %v15065_v61 = vadd.f32 %v5788_v42, %v14905_v63  ;;  %v15068_v4 = vadd.f32 %v5791_v39, %v14908_v13  ;;  %v15071_v6 = vadd.f32 %v5794_v60, %v14911_v36  ;;  %v15074_v55 = vadd.f32 %v5797_v15, %v14914_v20  ;;  %v7774_v36 = vld [vmem:[%s16630_s0] sm:$0xff]  ;;  %v18467_v20 = vld [vmem:[#allocation27_spill] sm:$0xff]  ;;  %18474 = vst [vmem:[#allocation39_spill] sm:$0xff] %v15172_v23  ;;  %v15227_v42 = vld [vmem:[%s16630_s0 + $0xf8] sm:$0xff] }
 0x3bd   : > { %v15077_v59 = vadd.f32 %v5800_v52, %v14917_v38  ;;  %v15080_v53 = vadd.f32 %v5803_v1, %v14920_v21  ;;  %v15083_v8 = vadd.f32 %v5806_v5, %v14923_v47  ;;  %v15086_v63 = vadd.f32 %v5809_v49, %v14926_v30  ;;  %v7775_v21 = vld [vmem:[%s16630_s0 + $0x8] sm:$0xff]  ;;  %v15104_v30 = vld [vmem:[%s16630_s0 + $0x10] sm:$0xff]  ;;  %18475 = vst [vmem:[#allocation33_spill] sm:$0xff] %v15181_v9  ;;  %v15236_v60 = vld [vmem:[%s16630_s0 + $0x100] sm:$0xff] }
 0x3be   : > { %v15089_v13 = vadd.f32 %v5812_v33, %v14929_v0  ;;  %v15095_v38 = vmul.f32 %v7774_v36, %v18467_v20  ;;  %v5850_v47 = vmul.f32 %v7775_v21, %v18467_v20  ;;  %v5851_v0 = vmul.f32 %v15104_v30, %v18467_v20  ;;  %18480 = vst [vmem:[#allocation26_spill] sm:$0xff] %v15218_v24  ;;  %v15245_v52 = vld [vmem:[%s16630_s0 + $0x108] sm:$0xff]  ;;  %v15253_v21 = vld [vmem:[%s16630_s0 + $0x110] sm:$0xff] }
 0x3bf   : > { %v5852_v58 = vmul.f32 %v15111_v12, %v18467_v20  ;;  %v15122_v56 = vmul.f32 %v15118_v45, %v18467_v20  ;;  %v15131_v25 = vmul.f32 %v15127_v2, %v18467_v20  ;;  %v15140_v32 = vmul.f32 %v15136_v19, %v18467_v20  ;;  %18481 = vst [vmem:[#allocation40_spill] sm:$0xff] %v15227_v42 }
 0x3c0   : > { %v15149_v34 = vmul.f32 %v15145_v50, %v18467_v20  ;;  %v15158_v37 = vmul.f32 %v15154_v7, %v18467_v20  ;;  %v15167_v26 = vmul.f32 %v15163_v31, %v18467_v20  ;;  %v15176_v40 = vmul.f32 %v15172_v23, %v18467_v20  ;;  %18482 = vst [vmem:[#allocation35_spill] sm:$0xff] %v15236_v60 }
 0x3c1   : > { %v15185_v29 = vmul.f32 %v15181_v9, %v18467_v20  ;;  %v15189_v57 = vmul.f32 %v18476_v43, %v18467_v20  ;;  %v15193_v46 = vmul.f32 %v18477_v3, %v18467_v20  ;;  %v15197_v18 = vmul.f32 %v18478_v11, %v18467_v20  ;;  %18483 = vst [vmem:[#allocation58_spill] sm:$0xff] %v15245_v52  ;;  %v18493_v43 = vld [vmem:[#allocation38_spill] sm:$0xff] }
 0x3c2   : > { %v15201_v62 = vmul.f32 %v18479_v41, %v18467_v20  ;;  %v15207_v48 = vmul.f32 %v7786_v16, %v18467_v20  ;;  %v15213_v35 = vmul.f32 %v7787_v10, %v18467_v20  ;;  %v15222_v27 = vmul.f32 %v15218_v24, %v18467_v20  ;;  %18484 = vst [vmem:[#allocation43_spill] sm:$0xff] %v15253_v21  ;;  %v15260_v41 = vld [vmem:[%s16630_s0 + $0x118] sm:$0xff]  ;;  %v15281_v10 = vld [vmem:[%s16630_s0 + $0x130] sm:$0xff] }
 0x3c3   : > { %v15231_v39 = vmul.f32 %v15227_v42, %v18467_v20  ;;  %v15240_v15 = vmul.f32 %v15236_v60, %v18467_v20  ;;  %v5870_v1 = vmul.f32 %v15245_v52, %v18467_v20  ;;  %v5914_v5 = vrot.slane %v15095_v38, 6  ;;  %18485 = vst [vmem:[#allocation16_spill] sm:$0xff] %v15260_v41  ;;  %v15267_v38 = vld [vmem:[%s16630_s0 + $0x120] sm:$0xff]  ;;  %18488 = vst [vmem:[#allocation44_spill] sm:$0xff] %v15281_v10  ;;  %v18492_v24 = vld [vmem:[#allocation45_spill] sm:$0xff] }
 0x3c4   : > { %v5915_v49 = vrot.slane %v5850_v47, 6  ;;  %v5917_v33 = vrot.slane %v5851_v0, 6  ;;  %v5918_v36 = vrot.slane %v5852_v58, 6  ;;  %v5871_v3 = vmul.f32 %v15253_v21, %v18467_v20  ;;  %18486 = vst [vmem:[#allocation41_spill] sm:$0xff] %v15267_v38  ;;  %v15274_v0 = vld [vmem:[%s16630_s0 + $0x128] sm:$0xff]  ;;  %v18490_v52 = vld [vmem:[#allocation14_spill] sm:$0xff] }
 0x3c5   : > { %v5872_v16 = vmul.f32 %v15260_v41, %v18467_v20  ;;  %v5873_v47 = vmul.f32 %v15267_v38, %v18467_v20  ;;  %18487 = vst [vmem:[#allocation34_spill] sm:$0xff] %v15274_v0  ;;  %v5874_v58 = vmul.f32 %v15274_v0, %v18467_v20  ;;  %v5875_v41 = vmul.f32 %v15281_v10, %v18467_v20  ;;  %v15288_v38 = vld [vmem:[%s16630_s0 + $0x138] sm:$0xff] }
 0x3c6   : > { %18489 = vst [vmem:[#allocation47_spill] sm:$0xff] %v15288_v38  ;;  %v5876_v21 = vmul.f32 %v15288_v38, %v18467_v20  ;;  %v5877_v60 = vmul.f32 %v18490_v52, %v18467_v20  ;;  %v18491_v0 = vld [vmem:[#allocation17_spill] sm:$0xff]  ;;  %v5879_v11 = vmul.f32 %v18492_v24, %v18467_v20  ;;  %v5880_v10 = vmul.f32 %v18493_v43, %v18467_v20 }
 0x3c7   : > { %v5878_v42 = vmul.f32 %v18491_v0, %v18467_v20  ;;  %v5920_v9 = vrot.slane %v15122_v56, 6  ;;  %v5921_v23 = vrot.slane %v15131_v25, 6  ;;  %v5916_v31 = vsel %vm5913_vm5, %v5914_v5, %v5915_v49 }
 0x3c8   : > { %v5919_v38 = vsel %vm5913_vm5, %v5917_v33, %v5918_v36  ;;  %v5923_v7 = vrot.slane %v15140_v32, 6  ;;  %v5924_v52 = vrot.slane %v15149_v34, 6  ;;  %v5926_v0 = vrot.slane %v15158_v37, 6 }
 0x3c9   : > { %v5927_v50 = vrot.slane %v15167_v26, 6  ;;  %v5929_v24 = vrot.slane %v15176_v40, 6  ;;  %v5930_v20 = vrot.slane %v15185_v29, 6  ;;  %v5932_v56 = vrot.slane %v15189_v57, 6 }
 0x3ca   : > { %v5933_v25 = vrot.slane %v15193_v46, 6  ;;  %v5935_v43 = vrot.slane %v15197_v18, 6  ;;  %v5936_v5 = vrot.slane %v15201_v62, 6  ;;  %v5938_v32 = vrot.slane %v15207_v48, 6 }
 0x3cb   : > { %v5939_v34 = vrot.slane %v15213_v35, 6  ;;  %v5941_v37 = vrot.slane %v15222_v27, 6  ;;  %v5942_v26 = vrot.slane %v15231_v39, 6  ;;  %v5944_v40 = vrot.slane %v15240_v15, 6 }
 0x3cc   : > { %v5945_v49 = vrot.slane %v5870_v1, 6  ;;  %v5947_v29 = vrot.slane %v5871_v3, 6  ;;  %v5948_v33 = vrot.slane %v5872_v16, 6  ;;  %v5950_v57 = vrot.slane %v5873_v47, 6 }
 0x3cd   : > { %v5951_v36 = vrot.slane %v5874_v58, 6  ;;  %v5953_v46 = vrot.slane %v5875_v41, 6  ;;  %v5954_v19 = vrot.slane %v5876_v21, 6  ;;  %v5922_v18 = vsel %vm5913_vm5, %v5920_v9, %v5921_v23  ;;  %v18499_v58 = vld [vmem:[#allocation12_spill] sm:$0xff] }
 0x3ce   : > { %v5925_v62 = vsel %vm5913_vm5, %v5923_v7, %v5924_v52  ;;  %v5956_v48 = vrot.slane %v5877_v60, 6  ;;  %v5957_v2 = vrot.slane %v5878_v42, 6  ;;  %v5928_v35 = vsel %vm5913_vm5, %v5926_v0, %v5927_v50  ;;  %v18501_v0 = vld [vmem:[#allocation39_spill] sm:$0xff] }
 0x3cf   : > { %v5931_v27 = vsel %vm5913_vm5, %v5929_v24, %v5930_v20  ;;  %v5959_v39 = vrot.slane %v5879_v11, 6  ;;  %v5960_v45 = vrot.slane %v5880_v10, 6  ;;  %v5934_v15 = vsel %vm5913_vm5, %v5932_v56, %v5933_v25  ;;  %v18502_v56 = vld [vmem:[#allocation33_spill] sm:$0xff] }
 0x3d0   : > { %v5937_v1 = vsel %vm5913_vm5, %v5935_v43, %v5936_v5  ;;  %v5940_v3 = vsel %vm5913_vm5, %v5938_v32, %v5939_v34  ;;  %v5943_v21 = vsel %vm5913_vm5, %v5941_v37, %v5942_v26  ;;  %v5946_v23 = vsel %vm5913_vm5, %v5944_v40, %v5945_v49  ;;  %v18503_v43 = vld [vmem:[#allocation19_spill] sm:$0xff]  ;;  %v18505_v37 = vld [vmem:[#allocation52_spill] sm:$0xff]  ;;  %v15433_v40 = vld [vmem:[%s16630_s0 + $0x78] sm:$0xff] }
 0x3d1   : > { %v5949_v7 = vsel %vm5913_vm5, %v5947_v29, %v5948_v33  ;;  %v5952_v9 = vsel %vm5913_vm5, %v5950_v57, %v5951_v36  ;;  %v5955_v50 = vsel %vm5913_vm5, %v5953_v46, %v5954_v19  ;;  %v5958_v24 = vsel %vm5913_vm5, %v5956_v48, %v5957_v2  ;;  %v15420_v32 = vld [vmem:[%s16630_s0 + $0x68] sm:$0xff]  ;;  %18506 = vst [vmem:[#allocation15_spill] sm:$0xff] %v15433_v40  ;;  %v15442_v29 = vld [vmem:[%s16630_s0 + $0x80] sm:$0xff] }
 0x3d2   : > { %v15333_v11 = vadd.f32 %v5916_v31, %v15043_v54  ;;  %v15336_v42 = vadd.f32 %v5919_v38, %v15046_v14  ;;  %v15339_v60 = vadd.f32 %v5922_v18, %v15049_v51  ;;  %v5961_v52 = vsel %vm5913_vm5, %v5959_v39, %v5960_v45  ;;  %18504 = vst [vmem:[#allocation36_spill] sm:$0xff] %v15420_v32  ;;  %v15451_v57 = vld [vmem:[%s16630_s0 + $0x88] sm:$0xff]  ;;  %v18509_v46 = vld [vmem:[#allocation26_spill] sm:$0xff] }
 0x3d3   : > { %v15343_v41 = vadd.f32 %v5925_v62, %v15053_v28  ;;  %v15346_v16 = vadd.f32 %v5928_v35, %v15056_v22  ;;  %v15349_v19 = vadd.f32 %v5931_v27, %v15059_v44  ;;  %v15352_v54 = vadd.f32 %v5934_v15, %v15062_v17  ;;  %18507 = vst [vmem:[#allocation32_spill] sm:$0xff] %v15442_v29  ;;  %v18510_v62 = vld [vmem:[#allocation40_spill] sm:$0xff]  ;;  %v18511_v35 = vld [vmem:[#allocation35_spill] sm:$0xff]  ;;  %v18512_v39 = vld [vmem:[#allocation58_spill] sm:$0xff] }
 0x3d4   : > { %v15355_v14 = vadd.f32 %v5937_v1, %v15065_v61  ;;  %v15358_v51 = vadd.f32 %v5940_v3, %v15068_v4  ;;  %v15361_v45 = vadd.f32 %v5943_v21, %v15071_v6  ;;  %v15364_v28 = vadd.f32 %v5946_v23, %v15074_v55  ;;  %v18494_v6 = vld [vmem:[#allocation55_spill] sm:$0xff]  ;;  %18508 = vst [vmem:[#allocation56_spill] sm:$0xff] %v15451_v57  ;;  %v18514_v21 = vld [vmem:[#allocation16_spill] sm:$0xff] }
 0x3d5   : > { %v15367_v22 = vadd.f32 %v5949_v7, %v15077_v59  ;;  %v15370_v44 = vadd.f32 %v5952_v9, %v15080_v53  ;;  %v15373_v17 = vadd.f32 %v5955_v50, %v15083_v8  ;;  %v15376_v61 = vadd.f32 %v5958_v24, %v15086_v63  ;;  %v18495_v59 = vld [vmem:[#allocation8_spill] sm:$0xff]  ;;  %v18496_v53 = vld [vmem:[#allocation9_spill] sm:$0xff]  ;;  %v18513_v1 = vld [vmem:[#allocation43_spill] sm:$0xff] }
 0x3d6   : > { %v15379_v4 = vadd.f32 %v5961_v52, %v15089_v13  ;;  %v5998_v2 = vmul.f32 %v15104_v30, %v18494_v6  ;;  %v5999_v55 = vmul.f32 %v15111_v12, %v18494_v6  ;;  %v6000_v31 = vmul.f32 %v18495_v59, %v18494_v6  ;;  %v18497_v8 = vld [vmem:[#allocation28_spill] sm:$0xff]  ;;  %v18498_v63 = vld [vmem:[#allocation49_spill] sm:$0xff] }
 0x3d7   : > { %v6001_v38 = vmul.f32 %v18496_v53, %v18494_v6  ;;  %v15391_v47 = vmul.f32 %v18497_v8, %v18494_v6  ;;  %v15395_v13 = vmul.f32 %v18498_v63, %v18494_v6  ;;  %v15399_v30 = vmul.f32 %v18499_v58, %v18494_v6  ;;  %v18500_v12 = vld [vmem:[#allocation13_spill] sm:$0xff] }
 0x3d8   : > { %v15403_v10 = vmul.f32 %v18500_v12, %v18494_v6  ;;  %v15407_v20 = vmul.f32 %v18501_v0, %v18494_v6  ;;  %v15411_v25 = vmul.f32 %v18502_v56, %v18494_v6  ;;  %v15415_v5 = vmul.f32 %v18503_v43, %v18494_v6  ;;  %v18515_v52 = vld [vmem:[#allocation41_spill] sm:$0xff] }
 0x3d9   : > { %v15424_v34 = vmul.f32 %v15420_v32, %v18494_v6  ;;  %v15428_v26 = vmul.f32 %v18505_v37, %v18494_v6  ;;  %v15437_v49 = vmul.f32 %v15433_v40, %v18494_v6  ;;  %v15446_v33 = vmul.f32 %v15442_v29, %v18494_v6 }
 0x3da   : > { %v6013_v36 = vmul.f32 %v15451_v57, %v18494_v6  ;;  %v6014_v18 = vmul.f32 %v18509_v46, %v18494_v6  ;;  %v6015_v48 = vmul.f32 %v18510_v62, %v18494_v6  ;;  %v6016_v27 = vmul.f32 %v18511_v35, %v18494_v6  ;;  %v18516_v62 = vld [vmem:[#allocation34_spill] sm:$0xff]  ;;  %v18517_v35 = vld [vmem:[#allocation44_spill] sm:$0xff] }
 0x3db   : > { %v6017_v15 = vmul.f32 %v18512_v39, %v18494_v6  ;;  %v6018_v3 = vmul.f32 %v18513_v1, %v18494_v6  ;;  %v6019_v23 = vmul.f32 %v18514_v21, %v18494_v6  ;;  %v6062_v7 = vrot.slane %v5998_v2, 6  ;;  %v18518_v39 = vld [vmem:[#allocation47_spill] sm:$0xff]  ;;  %v18519_v1 = vld [vmem:[#allocation14_spill] sm:$0xff] }
 0x3dc   : > { %v6063_v9 = vrot.slane %v5999_v55, 6  ;;  %v6065_v50 = vrot.slane %v6000_v31, 6  ;;  %v6066_v24 = vrot.slane %v6001_v38, 6  ;;  %v6020_v46 = vmul.f32 %v18515_v52, %v18494_v6  ;;  %v15480_v2 = vld [vmem:[%s16630_s0 + $0x148] sm:$0xff]  ;;  %v18521_v31 = vld [vmem:[#allocation45_spill] sm:$0xff] }
 0x3dd   : > { %v6021_v57 = vmul.f32 %v18516_v62, %v18494_v6  ;;  %v6022_v29 = vmul.f32 %v18517_v35, %v18494_v6  ;;  %v6023_v40 = vmul.f32 %v18518_v39, %v18494_v6  ;;  %v6024_v37 = vmul.f32 %v18519_v1, %v18494_v6  ;;  %18520 = vst [vmem:[#allocation46_spill] sm:$0xff] %v15480_v2  ;;  %v15489_v35 = vld [vmem:[%s16630_s0 + $0x158] sm:$0xff]  ;;  %v15496_v1 = vld [vmem:[%s16630_s0 + $0x160] sm:$0xff] }
 0x3de   : > { %v6025_v55 = vmul.f32 %v15480_v2, %v18494_v6  ;;  %v6026_v38 = vmul.f32 %v18521_v31, %v18494_v6  ;;  %18522 = vst [vmem:[#allocation57_spill] sm:$0xff] %v15489_v35  ;;  %v6027_v39 = vmul.f32 %v15489_v35, %v18494_v6  ;;  %18523 = vst [vmem:[#allocation54_spill] sm:$0xff] %v15496_v1  ;;  %v15503_v31 = vld [vmem:[%s16630_s0 + $0x168] sm:$0xff]  ;;  %v6068_v52 = vrot.slane %v15391_v47, 6 }
 0x3df   : > { %v6028_v62 = vmul.f32 %v15496_v1, %v18494_v6  ;;  %18524 = vst [vmem:[#allocation42_spill] sm:$0xff] %v15503_v31  ;;  %v6029_v2 = vmul.f32 %v15503_v31, %v18494_v6  ;;  %v6069_v35 = vrot.slane %v15395_v13, 6  ;;  %v6064_v21 = vsel %vm5913_vm5, %v6062_v7, %v6063_v9 }
 0x3e0   : > { %v6067_v32 = vsel %vm5913_vm5, %v6065_v50, %v6066_v24  ;;  %v6071_v43 = vrot.slane %v15399_v30, 6  ;;  %v6072_v1 = vrot.slane %v15403_v10, 6  ;;  %v6074_v56 = vrot.slane %v15407_v20, 6 }
 0x3e1   : > { %v6075_v0 = vrot.slane %v15411_v25, 6  ;;  %v6077_v12 = vrot.slane %v15415_v5, 6  ;;  %v6078_v6 = vrot.slane %v15424_v34, 6  ;;  %v6080_v47 = vrot.slane %v15428_v26, 6 }
 0x3e2   : > { %v6081_v13 = vrot.slane %v15437_v49, 6  ;;  %v6083_v7 = vrot.slane %v15446_v33, 6  ;;  %v6084_v9 = vrot.slane %v6013_v36, 6  ;;  %v6086_v50 = vrot.slane %v6014_v18, 6 }
 0x3e3   : > { %v6087_v24 = vrot.slane %v6015_v48, 6  ;;  %v6089_v30 = vrot.slane %v6016_v27, 6  ;;  %v6090_v31 = vrot.slane %v6017_v15, 6  ;;  %v6092_v10 = vrot.slane %v6018_v3, 6 }
 0x3e4   : > { %v6093_v58 = vrot.slane %v6019_v23, 6  ;;  %v6095_v20 = vrot.slane %v6020_v46, 6  ;;  %v6096_v63 = vrot.slane %v6021_v57, 6  ;;  %v6098_v25 = vrot.slane %v6022_v29, 6  ;;  %v18532_v46 = vld [vmem:[#allocation39_spill] sm:$0xff] }
 0x3e5   : > { %v6099_v8 = vrot.slane %v6023_v40, 6  ;;  %v6101_v5 = vrot.slane %v6024_v37, 6  ;;  %v6102_v53 = vrot.slane %v6025_v55, 6  ;;  %v6070_v34 = vsel %vm5913_vm5, %v6068_v52, %v6069_v35 }
 0x3e6   : > { %v6073_v26 = vsel %vm5913_vm5, %v6071_v43, %v6072_v1  ;;  %v6104_v49 = vrot.slane %v6026_v38, 6  ;;  %v6105_v59 = vrot.slane %v6027_v39, 6  ;;  %v6076_v33 = vsel %vm5913_vm5, %v6074_v56, %v6075_v0 }
 0x3e7   : > { %v6079_v36 = vsel %vm5913_vm5, %v6077_v12, %v6078_v6  ;;  %v6107_v18 = vrot.slane %v6028_v62, 6  ;;  %v6108_v48 = vrot.slane %v6029_v2, 6  ;;  %v6082_v27 = vsel %vm5913_vm5, %v6080_v47, %v6081_v13  ;;  %v18533_v2 = vld [vmem:[#allocation33_spill] sm:$0xff]  ;;  %v18535_v6 = vld [vmem:[#allocation36_spill] sm:$0xff] }
 0x3e8   : > { %v6085_v57 = vsel %vm5913_vm5, %v6083_v7, %v6084_v9  ;;  %v6088_v40 = vsel %vm5913_vm5, %v6086_v50, %v6087_v24  ;;  %v6091_v37 = vsel %vm5913_vm5, %v6089_v30, %v6090_v31  ;;  %v6094_v29 = vsel %vm5913_vm5, %v6092_v10, %v6093_v58  ;;  %v18534_v31 = vld [vmem:[#allocation19_spill] sm:$0xff]  ;;  %v18536_v13 = vld [vmem:[#allocation52_spill] sm:$0xff] }
 0x3e9   : > { %v6097_v43 = vsel %vm5913_vm5, %v6095_v20, %v6096_v63  ;;  %v6100_v35 = vsel %vm5913_vm5, %v6098_v25, %v6099_v8  ;;  %v6103_v0 = vsel %vm5913_vm5, %v6101_v5, %v6102_v53  ;;  %v6106_v12 = vsel %vm5913_vm5, %v6104_v49, %v6105_v59  ;;  %v18526_v63 = vld [vmem:[#allocation8_spill] sm:$0xff]  ;;  %v18537_v9 = vld [vmem:[#allocation15_spill] sm:$0xff] }
 0x3ea   : > { %v15534_v56 = vadd.f32 %v6064_v21, %v15333_v11  ;;  %v15537_v39 = vadd.f32 %v6067_v32, %v15336_v42  ;;  %v15540_v15 = vadd.f32 %v6070_v34, %v15339_v60  ;;  %v6109_v1 = vsel %vm5913_vm5, %v6107_v18, %v6108_v48  ;;  %v18538_v24 = vld [vmem:[#allocation32_spill] sm:$0xff]  ;;  %v15636_v34 = vld [vmem:[%s16630_s0 + $0x98] sm:$0xff]  ;;  %v18542_v49 = vld [vmem:[#allocation35_spill] sm:$0xff] }
 0x3eb   : > { %v15544_v58 = vadd.f32 %v6073_v26, %v15343_v41  ;;  %v15547_v8 = vadd.f32 %v6076_v33, %v15346_v16  ;;  %v15550_v53 = vadd.f32 %v6079_v36, %v15349_v19  ;;  %v15553_v11 = vadd.f32 %v6082_v27, %v15352_v54  ;;  %v18539_v10 = vld [vmem:[#allocation56_spill] sm:$0xff]  ;;  %18541 = vst [vmem:[#allocation37_spill] sm:$0xff] %v15636_v34  ;;  %v18543_v36 = vld [vmem:[#allocation58_spill] sm:$0xff]  ;;  %v18544_v48 = vld [vmem:[#allocation43_spill] sm:$0xff] }
 0x3ec   : > { %v15556_v42 = vadd.f32 %v6085_v57, %v15355_v14  ;;  %v15559_v60 = vadd.f32 %v6088_v40, %v15358_v51  ;;  %v15562_v59 = vadd.f32 %v6091_v37, %v15361_v45  ;;  %v15565_v41 = vadd.f32 %v6094_v29, %v15364_v28  ;;  %v18525_v45 = vld [vmem:[#allocation24_spill] sm:$0xff]  ;;  %v18527_v28 = vld [vmem:[#allocation9_spill] sm:$0xff] }
 0x3ed   : > { %v15568_v16 = vadd.f32 %v6097_v43, %v15367_v22  ;;  %v15571_v19 = vadd.f32 %v6100_v35, %v15370_v44  ;;  %v15574_v54 = vadd.f32 %v6103_v0, %v15373_v17  ;;  %v15577_v14 = vadd.f32 %v6106_v12, %v15376_v61  ;;  %v18528_v22 = vld [vmem:[#allocation28_spill] sm:$0xff]  ;;  %v18529_v44 = vld [vmem:[#allocation49_spill] sm:$0xff]  ;;  %v18547_v43 = vld [vmem:[#allocation34_spill] sm:$0xff] }
 0x3ee   : > { %v15580_v51 = vadd.f32 %v6109_v1, %v15379_v4  ;;  %v6146_v32 = vmul.f32 %v18526_v63, %v18525_v45  ;;  %v6147_v3 = vmul.f32 %v18527_v28, %v18525_v45  ;;  %v6148_v21 = vmul.f32 %v18528_v22, %v18525_v45  ;;  %v18530_v17 = vld [vmem:[#allocation12_spill] sm:$0xff]  ;;  %v18531_v61 = vld [vmem:[#allocation13_spill] sm:$0xff] }
 0x3ef   : > { %v6149_v23 = vmul.f32 %v18529_v44, %v18525_v45  ;;  %v15592_v52 = vmul.f32 %v18530_v17, %v18525_v45  ;;  %v15596_v4 = vmul.f32 %v18531_v61, %v18525_v45  ;;  %v15600_v62 = vmul.f32 %v18532_v46, %v18525_v45  ;;  %v15629_v25 = vld [vmem:[%s16630_s0 + $0x90] sm:$0xff]  ;;  %v18546_v37 = vld [vmem:[#allocation41_spill] sm:$0xff] }
 0x3f0   : > { %v6153_v55 = vmul.f32 %v18533_v2, %v18525_v45  ;;  %v15606_v38 = vmul.f32 %v18534_v31, %v18525_v45  ;;  %v15610_v47 = vmul.f32 %v18535_v6, %v18525_v45  ;;  %v15614_v7 = vmul.f32 %v18536_v13, %v18525_v45  ;;  %18540 = vst [vmem:[#allocation51_spill] sm:$0xff] %v15629_v25  ;;  %v18545_v57 = vld [vmem:[#allocation16_spill] sm:$0xff] }
 0x3f1   : > { %v6157_v50 = vmul.f32 %v18537_v9, %v18525_v45  ;;  %v15620_v30 = vmul.f32 %v18538_v24, %v18525_v45  ;;  %v15624_v20 = vmul.f32 %v18539_v10, %v18525_v45  ;;  %v6160_v5 = vmul.f32 %v15629_v25, %v18525_v45  ;;  %v18548_v28 = vld [vmem:[#allocation44_spill] sm:$0xff] }
 0x3f2   : > { %v6161_v26 = vmul.f32 %v15636_v34, %v18525_v45  ;;  %v6162_v33 = vmul.f32 %v18542_v49, %v18525_v45  ;;  %v6163_v18 = vmul.f32 %v18543_v36, %v18525_v45  ;;  %v6164_v27 = vmul.f32 %v18544_v48, %v18525_v45  ;;  %v18549_v36 = vld [vmem:[#allocation47_spill] sm:$0xff]  ;;  %v18550_v48 = vld [vmem:[#allocation14_spill] sm:$0xff] }
 0x3f3   : > { %v6165_v40 = vmul.f32 %v18545_v57, %v18525_v45  ;;  %v6166_v29 = vmul.f32 %v18546_v37, %v18525_v45  ;;  %v6167_v35 = vmul.f32 %v18547_v43, %v18525_v45  ;;  %v6210_v0 = vrot.slane %v6146_v32, 6  ;;  %v18551_v57 = vld [vmem:[#allocation46_spill] sm:$0xff]  ;;  %v18552_v37 = vld [vmem:[#allocation45_spill] sm:$0xff] }
 0x3f4   : > { %v6211_v12 = vrot.slane %v6147_v3, 6  ;;  %v6213_v1 = vrot.slane %v6148_v21, 6  ;;  %v6214_v63 = vrot.slane %v6149_v23, 6  ;;  %v6168_v49 = vmul.f32 %v18548_v28, %v18525_v45  ;;  %v18553_v32 = vld [vmem:[#allocation57_spill] sm:$0xff]  ;;  %v18554_v21 = vld [vmem:[#allocation54_spill] sm:$0xff] }
 0x3f5   : > { %v6169_v34 = vmul.f32 %v18549_v36, %v18525_v45  ;;  %v6170_v25 = vmul.f32 %v18550_v48, %v18525_v45  ;;  %v6171_v10 = vmul.f32 %v18551_v57, %v18525_v45  ;;  %v6172_v2 = vmul.f32 %v18552_v37, %v18525_v45  ;;  %v18555_v28 = vld [vmem:[#allocation42_spill] sm:$0xff]  ;;  %v15671_v36 = vld [vmem:[%s16630_s0 + $0x170] sm:$0xff]  ;;  %v15678_v37 = vld [vmem:[%s16630_s0 + $0x178] sm:$0xff] }
 0x3f6   : > { %v6173_v3 = vmul.f32 %v18553_v32, %v18525_v45  ;;  %v6174_v23 = vmul.f32 %v18554_v21, %v18525_v45  ;;  %v6175_v43 = vmul.f32 %v18555_v28, %v18525_v45  ;;  %18556 = vst [vmem:[#allocation29_spill] sm:$0xff] %v15671_v36  ;;  %v6176_v57 = vmul.f32 %v15671_v36, %v18525_v45 }
 0x3f7   : > { %18557 = vst [vmem:[#allocation50_spill] sm:$0xff] %v15678_v37  ;;  %v6177_v32 = vmul.f32 %v15678_v37, %v18525_v45  ;;  %v6216_v21 = vrot.slane %v15592_v52, 6  ;;  %v6217_v28 = vrot.slane %v15596_v4, 6  ;;  %v6212_v48 = vsel %vm5913_vm5, %v6210_v0, %v6211_v12 }
 0x3f8   : > { %v6215_v46 = vsel %vm5913_vm5, %v6213_v1, %v6214_v63  ;;  %v6219_v61 = vrot.slane %v15600_v62, 6  ;;  %v6220_v17 = vrot.slane %v6153_v55, 6  ;;  %v6222_v36 = vrot.slane %v15606_v38, 6 }
 0x3f9   : > { %v6223_v24 = vrot.slane %v15610_v47, 6  ;;  %v6225_v9 = vrot.slane %v15614_v7, 6  ;;  %v6226_v44 = vrot.slane %v6157_v50, 6  ;;  %v6228_v45 = vrot.slane %v15620_v30, 6 }
 0x3fa   : > { %v6229_v52 = vrot.slane %v15624_v20, 6  ;;  %v6231_v37 = vrot.slane %v6160_v5, 6  ;;  %v6232_v4 = vrot.slane %v6161_v26, 6  ;;  %v6234_v22 = vrot.slane %v6162_v33, 6 }
 0x3fb   : > { %v6235_v0 = vrot.slane %v6163_v18, 6  ;;  %v6237_v12 = vrot.slane %v6164_v27, 6  ;;  %v6238_v1 = vrot.slane %v6165_v40, 6  ;;  %v6240_v63 = vrot.slane %v6166_v29, 6 }
 0x3fc   : > { %v6241_v62 = vrot.slane %v6167_v35, 6  ;;  %v6243_v55 = vrot.slane %v6168_v49, 6  ;;  %v6244_v13 = vrot.slane %v6169_v34, 6  ;;  %v6246_v38 = vrot.slane %v6170_v25, 6 }
 0x3fd   : > { %v6247_v6 = vrot.slane %v6171_v10, 6  ;;  %v6249_v47 = vrot.slane %v6172_v2, 6  ;;  %v6250_v31 = vrot.slane %v6173_v3, 6  ;;  %v6218_v7 = vsel %vm5913_vm5, %v6216_v21, %v6217_v28  ;;  %v18570_v3 = vld [vmem:[#allocation28_spill] sm:$0xff] }
 0x3fe   : > { %v6221_v50 = vsel %vm5913_vm5, %v6219_v61, %v6220_v17  ;;  %v6252_v30 = vrot.slane %v6174_v23, 6  ;;  %v6253_v20 = vrot.slane %v6175_v43, 6  ;;  %v6224_v5 = vsel %vm5913_vm5, %v6222_v36, %v6223_v24  ;;  %v18568_v36 = vld [vmem:[#allocation52_spill] sm:$0xff]  ;;  %v18571_v23 = vld [vmem:[#allocation49_spill] sm:$0xff] }
 0x3ff   : > { %v6227_v26 = vsel %vm5913_vm5, %v6225_v9, %v6226_v44  ;;  %v6255_v33 = vrot.slane %v6176_v57, 6  ;;  %v6256_v18 = vrot.slane %v6177_v32, 6  ;;  %v6230_v27 = vsel %vm5913_vm5, %v6228_v45, %v6229_v52  ;;  %v18572_v52 = vld [vmem:[#allocation15_spill] sm:$0xff] }
 0x400   : > { %v6233_v34 = vsel %vm5913_vm5, %v6231_v37, %v6232_v4  ;;  %v6236_v10 = vsel %vm5913_vm5, %v6234_v22, %v6235_v0  ;;  %v6239_v2 = vsel %vm5913_vm5, %v6237_v12, %v6238_v1  ;;  %v6242_v25 = vsel %vm5913_vm5, %v6240_v63, %v6241_v62  ;;  %v18574_v0 = vld [vmem:[#allocation32_spill] sm:$0xff]  ;;  %v18577_v62 = vld [vmem:[#allocation13_spill] sm:$0xff] }
 0x401   : > { %v6245_v17 = vsel %vm5913_vm5, %v6243_v55, %v6244_v13  ;;  %v6248_v61 = vsel %vm5913_vm5, %v6246_v38, %v6247_v6  ;;  %v6251_v24 = vsel %vm5913_vm5, %v6249_v47, %v6250_v31  ;;  %v6254_v44 = vsel %vm5913_vm5, %v6252_v30, %v6253_v20  ;;  %v18576_v1 = vld [vmem:[#allocation12_spill] sm:$0xff]  ;;  %v18578_v38 = vld [vmem:[#allocation39_spill] sm:$0xff] }
 0x402   : > { %v15706_v9 = vadd.f32 %v6212_v48, %v15534_v56  ;;  %v15709_v57 = vadd.f32 %v6215_v46, %v15537_v39  ;;  %v15712_v22 = vadd.f32 %v6218_v7, %v15540_v15  ;;  %v6257_v40 = vsel %vm5913_vm5, %v6255_v33, %v6256_v18  ;;  %v15727_v56 = vld [vmem:[%s16631_s1 + $0x30] ss:$0 sm:$0xff]  ;;  %v18579_v7 = vld [vmem:[#allocation33_spill] sm:$0xff] }
 0x403   : > { %v15716_v37 = vadd.f32 %v6221_v50, %v15544_v58  ;;  %v15719_v6 = vadd.f32 %v6224_v5, %v15547_v8  ;;  %v15722_v31 = vadd.f32 %v6227_v26, %v15550_v53  ;;  %18558 = vst [vmem:[#allocation30_spill] sm:$0xff] %v15727_v56  ;;  %v15730_v39 = vadd.f32 %v6230_v27, %v15553_v11  ;;  %v7810_v8 = vld [vmem:[%s16631_s1 + $0x18] sm:$0xff]  ;;  %v18559_v53 = vld [vmem:[#allocation18_spill] sm:$0xff]  ;;  %v18580_v18 = vld [vmem:[#allocation56_spill] sm:$0xff] }
 0x404   : > { %v15733_v15 = vadd.f32 %v6233_v34, %v15556_v42  ;;  %v15736_v58 = vadd.f32 %v6236_v10, %v15559_v60  ;;  %v6293_v46 = vrot.slane %v7810_v8, %v18559_v53  ;;  %v15743_v13 = vadd.f32 %v6239_v2, %v15562_v59  ;;  %v7811_v59 = vld [vmem:[%s16631_s1 + $0x20] sm:$0xff]  ;;  %v18581_v34 = vld [vmem:[#allocation51_spill] sm:$0xff]  ;;  %v18582_v2 = vld [vmem:[#allocation37_spill] sm:$0xff] }
 0x405   : > { %v15746_v48 = vadd.f32 %v6242_v25, %v15565_v41  ;;  %v15749_v11 = vadd.f32 %v6245_v17, %v15568_v16  ;;  %v15752_v42 = vadd.f32 %v6248_v61, %v15571_v19  ;;  %v15755_v60 = vadd.f32 %v6251_v24, %v15574_v54  ;;  %v18560_v41 = vld [vmem:[#allocation22_spill] sm:$0xff]  ;;  %v7812_v16 = vld [vmem:[%s16631_s1 + $0x28] sm:$0xff]  ;;  %v18586_v53 = vld [vmem:[#allocation16_spill] sm:$0xff] }
 0x406   : > { %v15758_v29 = vadd.f32 %v6254_v44, %v15577_v14  ;;  %v15761_v43 = vadd.f32 %v6257_v40, %v15580_v51  ;;  %v15767_v35 = vrot.slane %v7811_v59, %v18560_v41  ;;  %v18562_v19 = vld [vmem:[#allocation10_spill] sm:$0xff]  ;;  %v18564_v14 = vld [vmem:[#allocation19_spill] sm:$0xff]  ;;  %v18566_v51 = vld [vmem:[#allocation36_spill] sm:$0xff]  ;;  %v15785_v32 = vmul.f32 %v18568_v36, %v15727_v56 }
 0x407   : > { %v15773_v54 = vrot.slane %v7812_v16, %v18562_v19  ;;  %v15777_v28 = vmul.f32 %v18564_v14, %v15727_v56  ;;  %v15781_v49 = vmul.f32 %v18566_v51, %v15727_v56  ;;  %v6294_v21 = vmul.f32 %v18570_v3, %v6293_v46  ;;  %v15828_v17 = vld [vmem:[%s16630_s0 + $0xa0] sm:$0xff]  ;;  %v15834_v24 = vld [vmem:[%s16630_s0 + $0xa8] sm:$0xff]  ;;  %v18587_v41 = vld [vmem:[#allocation41_spill] sm:$0xff] }
 0x408   : > { %18561 = vst [vmem:[#allocation21_spill] sm:$0xff] %v15767_v35  ;;  %18569 = vst [vmem:[#allocation25_spill] sm:$0xff] %v15785_v32  ;;  %v6295_v45 = vmul.f32 %v18571_v23, %v6293_v46  ;;  %v15791_v4 = vmul.f32 %v18572_v52, %v15727_v56  ;;  %v15795_v12 = vmul.f32 %v18574_v0, %v15727_v56  ;;  %v18585_v40 = vld [vmem:[#allocation43_spill] sm:$0xff]  ;;  %v18588_v19 = vld [vmem:[#allocation34_spill] sm:$0xff] }
 0x409   : > { %18563 = vst [vmem:[#allocation31_spill] sm:$0xff] %v15773_v54  ;;  %18565 = vst [vmem:[#allocation11_spill] sm:$0xff] %v15777_v28  ;;  %v6296_v63 = vmul.f32 %v18576_v1, %v6293_v46  ;;  %v6297_v55 = vmul.f32 %v18577_v62, %v6293_v46  ;;  %v15800_v47 = vmul.f32 %v18578_v38, %v6293_v46  ;;  %v18590_v23 = vld [vmem:[#allocation47_spill] sm:$0xff]  ;;  %v18591_v56 = vld [vmem:[#allocation14_spill] sm:$0xff] }
 0x40a   : > { %18567 = vst [vmem:[#allocation7_spill] sm:$0xff] %v15781_v49  ;;  %18573 = vst [vmem:[#allocation20_spill] sm:$0xff] %v15791_v4  ;;  %v15803_v50 = vmul.f32 %v18579_v7, %v6293_v46  ;;  %v15806_v30 = vmul.f32 %v18564_v14, %v6293_v46  ;;  %v6301_v20 = vmul.f32 %v18566_v51, %v6293_v46  ;;  %v6358_v4 = vrot.slane %v6294_v21, 6  ;;  %v18598_v51 = vld [vmem:[#allocation50_spill] sm:$0xff] }
 0x40b   : > { %18575 = vst [vmem:[#allocation23_spill] sm:$0xff] %v15795_v12  ;;  %v15810_v5 = vmul.f32 %v18568_v36, %v6293_v46  ;;  %v15813_v26 = vmul.f32 %v18572_v52, %v6293_v46  ;;  %v15816_v33 = vmul.f32 %v18574_v0, %v6293_v46  ;;  %v6305_v27 = vmul.f32 %v18580_v18, %v6293_v46  ;;  %v18589_v36 = vld [vmem:[#allocation44_spill] sm:$0xff]  ;;  %v18595_v18 = vld [vmem:[#allocation54_spill] sm:$0xff]  ;;  %v18597_v52 = vld [vmem:[#allocation29_spill] sm:$0xff] }
 0x40c   : > { %v15820_v10 = vmul.f32 %v18581_v34, %v6293_v46  ;;  %v15823_v25 = vmul.f32 %v18582_v2, %v6293_v46  ;;  %18583 = vst [vmem:[#allocation27_spill] sm:$0xff] %v15828_v17  ;;  %v6308_v61 = vmul.f32 %v15828_v17, %v6293_v46  ;;  %18584 = vst [vmem:[#allocation53_spill] sm:$0xff] %v15834_v24  ;;  %v6359_v32 = vrot.slane %v6295_v45, 6  ;;  %v18592_v17 = vld [vmem:[#allocation46_spill] sm:$0xff]  ;;  %v18593_v2 = vld [vmem:[#allocation45_spill] sm:$0xff] }
 0x40d   : > { %v6309_v44 = vmul.f32 %v15834_v24, %v6293_v46  ;;  %v6310_v8 = vmul.f32 %v18585_v40, %v6293_v46  ;;  %v6311_v59 = vmul.f32 %v18586_v53, %v6293_v46  ;;  %v6312_v16 = vmul.f32 %v18587_v41, %v6293_v46  ;;  %v18594_v34 = vld [vmem:[#allocation57_spill] sm:$0xff]  ;;  %v18596_v0 = vld [vmem:[#allocation42_spill] sm:$0xff]  ;;  %v15860_v45 = vld [vmem:[%s16630_s0 + $0x188] sm:$0xff] }
 0x40e   : > { %v6313_v14 = vmul.f32 %v18588_v19, %v6293_v46  ;;  %v6314_v3 = vmul.f32 %v18589_v36, %v6293_v46  ;;  %v6315_v12 = vmul.f32 %v18590_v23, %v6293_v46  ;;  %v6361_v49 = vrot.slane %v6296_v63, 6  ;;  %v15854_v21 = vld [vmem:[%s16630_s0 + $0x180] sm:$0xff]  ;;  %18600 = vst [vmem:[#allocation17_spill] sm:$0xff] %v15860_v45 }
 0x40f   : > { %v6362_v28 = vrot.slane %v6297_v55, 6  ;;  %v6316_v54 = vmul.f32 %v18591_v56, %v6293_v46  ;;  %v6317_v24 = vmul.f32 %v18592_v17, %v6293_v46  ;;  %v6318_v40 = vmul.f32 %v18593_v2, %v6293_v46  ;;  %18599 = vst [vmem:[#allocation48_spill] sm:$0xff] %v15854_v21 }
 0x410   : > { %v6319_v53 = vmul.f32 %v18594_v34, %v6293_v46  ;;  %v6320_v41 = vmul.f32 %v18595_v18, %v6293_v46  ;;  %v6321_v19 = vmul.f32 %v18596_v0, %v6293_v46  ;;  %v6322_v36 = vmul.f32 %v18597_v52, %v6293_v46 }
 0x411   : > { %v6323_v23 = vmul.f32 %v18598_v51, %v6293_v46  ;;  %v6324_v56 = vmul.f32 %v15854_v21, %v6293_v46  ;;  %v6325_v63 = vmul.f32 %v15860_v45, %v6293_v46  ;;  %v6364_v55 = vrot.slane %v15800_v47, 6 }
 0x412   : > { %v6365_v2 = vrot.slane %v15803_v50, 6  ;;  %v6360_v51 = vsel %vm5913_vm5, %v6358_v4, %v6359_v32  ;;  %v6363_v52 = vsel %vm5913_vm5, %v6361_v49, %v6362_v28  ;;  %v6367_v0 = vrot.slane %v15806_v30, 6 }
 0x413   : > { %v6368_v18 = vrot.slane %v6301_v20, 6  ;;  %v6370_v21 = vrot.slane %v15810_v5, 6  ;;  %v6371_v34 = vrot.slane %v15813_v26, 6  ;;  %v6373_v17 = vrot.slane %v15816_v33, 6 }
 0x414   : > { %v6374_v7 = vrot.slane %v6305_v27, 6  ;;  %v6376_v46 = vrot.slane %v15820_v10, 6  ;;  %v6377_v47 = vrot.slane %v15823_v25, 6  ;;  %v6379_v45 = vrot.slane %v6308_v61, 6 }
 0x415   : > { %v6380_v50 = vrot.slane %v6309_v44, 6  ;;  %v6382_v38 = vrot.slane %v6310_v8, 6  ;;  %v6383_v32 = vrot.slane %v6311_v59, 6  ;;  %v6385_v4 = vrot.slane %v6312_v16, 6 }
 0x416   : > { %v6386_v28 = vrot.slane %v6313_v14, 6  ;;  %v6388_v49 = vrot.slane %v6314_v3, 6  ;;  %v6389_v30 = vrot.slane %v6315_v12, 6  ;;  %v6391_v20 = vrot.slane %v6316_v54, 6 }
 0x417   : > { %v6392_v62 = vrot.slane %v6317_v24, 6  ;;  %v6394_v5 = vrot.slane %v6318_v40, 6  ;;  %v6395_v1 = vrot.slane %v6319_v53, 6  ;;  %v6397_v26 = vrot.slane %v6320_v41, 6 }
 0x418   : > { %v6398_v35 = vrot.slane %v6321_v19, 6  ;;  %v6366_v33 = vsel %vm5913_vm5, %v6364_v55, %v6365_v2  ;;  %v6369_v27 = vsel %vm5913_vm5, %v6367_v0, %v6368_v18  ;;  %v6400_v10 = vrot.slane %v6322_v36, 6  ;;  %v18615_v55 = vld [vmem:[#allocation32_spill] sm:$0xff] }
 0x419   : > { %v6401_v25 = vrot.slane %v6323_v23, 6  ;;  %v6372_v61 = vsel %vm5913_vm5, %v6370_v21, %v6371_v34  ;;  %v6375_v44 = vsel %vm5913_vm5, %v6373_v17, %v6374_v7  ;;  %v6403_v8 = vrot.slane %v6324_v56, 6  ;;  %v15955_v21 = vld [vmem:[%s16630_s0 + $0x70] sm:$0xff] }
 0x41a   : > { %v6404_v59 = vrot.slane %v6325_v63, 6  ;;  %v6378_v12 = vsel %vm5913_vm5, %v6376_v46, %v6377_v47  ;;  %v6381_v54 = vsel %vm5913_vm5, %v6379_v45, %v6380_v50  ;;  %v6384_v24 = vsel %vm5913_vm5, %v6382_v38, %v6383_v32  ;;  %18613 = vst [vmem:[#allocation9_spill] sm:$0xff] %v15955_v21  ;;  %v18614_v45 = vld [vmem:[#allocation15_spill] sm:$0xff]  ;;  %v18616_v46 = vld [vmem:[#allocation56_spill] sm:$0xff] }
 0x41b   : > { %v6387_v41 = vsel %vm5913_vm5, %v6385_v4, %v6386_v28  ;;  %v6390_v16 = vsel %vm5913_vm5, %v6388_v49, %v6389_v30  ;;  %v6393_v0 = vsel %vm5913_vm5, %v6391_v20, %v6392_v62  ;;  %v6396_v18 = vsel %vm5913_vm5, %v6394_v5, %v6395_v1  ;;  %v18617_v50 = vld [vmem:[#allocation51_spill] sm:$0xff]  ;;  %v18618_v4 = vld [vmem:[#allocation37_spill] sm:$0xff] }
 0x41c   : > { %v6399_v34 = vsel %vm5913_vm5, %v6397_v26, %v6398_v35  ;;  %v6402_v7 = vsel %vm5913_vm5, %v6400_v10, %v6401_v25  ;;  %v15887_v17 = vadd.f32 %v6360_v51, %v15706_v9  ;;  %v15890_v19 = vadd.f32 %v6363_v52, %v15709_v57  ;;  %v18607_v52 = vld [vmem:[#allocation12_spill] sm:$0xff]  ;;  %v18619_v49 = vld [vmem:[#allocation27_spill] sm:$0xff]  ;;  %v18620_v20 = vld [vmem:[#allocation53_spill] sm:$0xff] }
 0x41d   : > { %v15893_v38 = vadd.f32 %v6366_v33, %v15712_v22  ;;  %v6405_v14 = vsel %vm5913_vm5, %v6403_v8, %v6404_v59  ;;  %v15897_v36 = vadd.f32 %v6369_v27, %v15716_v37  ;;  %v15900_v1 = vadd.f32 %v6372_v61, %v15719_v6  ;;  %v15976_v26 = vld [vmem:[%s16630_s0 + $0xb0] sm:$0xff]  ;;  %v15983_v27 = vld [vmem:[%s16630_s0 + $0xb8] sm:$0xff] }
 0x41e   : > { %v15903_v35 = vadd.f32 %v6375_v44, %v15722_v31  ;;  %v15906_v9 = vadd.f32 %v6378_v12, %v15730_v39  ;;  %v15909_v57 = vadd.f32 %v6381_v54, %v15733_v15  ;;  %v15912_v22 = vadd.f32 %v6384_v24, %v15736_v58  ;;  %18621 = vst [vmem:[#allocation35_spill] sm:$0xff] %v15976_v26  ;;  %v18623_v25 = vld [vmem:[#allocation41_spill] sm:$0xff]  ;;  %v18624_v44 = vld [vmem:[#allocation34_spill] sm:$0xff]  ;;  %v18625_v59 = vld [vmem:[#allocation44_spill] sm:$0xff] }
 0x41f   : > { %v15915_v51 = vadd.f32 %v6387_v41, %v15743_v13  ;;  %v15918_v37 = vadd.f32 %v6390_v16, %v15746_v48  ;;  %v15921_v6 = vadd.f32 %v6393_v0, %v15749_v11  ;;  %v15924_v31 = vadd.f32 %v6396_v18, %v15752_v42  ;;  %v18606_v13 = vld [vmem:[#allocation21_spill] sm:$0xff]  ;;  %v18609_v11 = vld [vmem:[#allocation39_spill] sm:$0xff]  ;;  %18622 = vst [vmem:[#allocation58_spill] sm:$0xff] %v15983_v27  ;;  %v15998_v41 = vld [vmem:[%s16630_s0 + $0x140] sm:$0xff] }
 0x420   : > { %v15927_v39 = vadd.f32 %v6399_v34, %v15755_v60  ;;  %v15930_v15 = vadd.f32 %v6402_v7, %v15758_v29  ;;  %v15933_v58 = vadd.f32 %v6405_v14, %v15761_v43  ;;  %v6442_v62 = vmul.f32 %v18607_v52, %v18606_v13  ;;  %v18608_v48 = vld [vmem:[#allocation13_spill] sm:$0xff]  ;;  %v15946_v60 = vld [vmem:[%s16630_s0 + $0x60] sm:$0xff]  ;;  %v18612_v43 = vld [vmem:[#allocation36_spill] sm:$0xff] }
 0x421   : > { %18601 = vst [vmem:[#allocation38_spill] sm:$0xff] %v15921_v6  ;;  %18602 = vst [vmem:[#allocation55_spill] sm:$0xff] %v15924_v31  ;;  %v6443_v3 = vmul.f32 %v18608_v48, %v18606_v13  ;;  %v6444_v23 = vmul.f32 %v18609_v11, %v18606_v13  ;;  %v18610_v42 = vld [vmem:[#allocation33_spill] sm:$0xff]  ;;  %v6446_v29 = vmul.f32 %v15946_v60, %v18606_v13  ;;  %v18626_v54 = vld [vmem:[#allocation47_spill] sm:$0xff] }
 0x422   : > { %18603 = vst [vmem:[#allocation26_spill] sm:$0xff] %v15927_v39  ;;  %18604 = vst [vmem:[#allocation40_spill] sm:$0xff] %v15930_v15  ;;  %v6445_v40 = vmul.f32 %v18610_v42, %v18606_v13  ;;  %v6447_v53 = vmul.f32 %v18612_v43, %v18606_v13  ;;  %v6448_v56 = vmul.f32 %v15955_v21, %v18606_v13  ;;  %v18627_v0 = vld [vmem:[#allocation46_spill] sm:$0xff]  ;;  %v16007_v34 = vld [vmem:[%s16630_s0 + $0x150] sm:$0xff]  ;;  %v6506_v48 = vrot.slane %v6442_v62, 6 }
 0x423   : > { %18605 = vst [vmem:[#allocation24_spill] sm:$0xff] %v15933_v58  ;;  %18611 = vst [vmem:[#allocation8_spill] sm:$0xff] %v15946_v60  ;;  %v6449_v63 = vmul.f32 %v18614_v45, %v18606_v13  ;;  %v6450_v2 = vmul.f32 %v18615_v55, %v18606_v13  ;;  %v6451_v47 = vmul.f32 %v18616_v46, %v18606_v13  ;;  %v18629_v14 = vld [vmem:[#allocation57_spill] sm:$0xff]  ;;  %v18630_v55 = vld [vmem:[#allocation54_spill] sm:$0xff] }
 0x424   : > { %v6452_v32 = vmul.f32 %v18617_v50, %v18606_v13  ;;  %v6453_v28 = vmul.f32 %v18618_v4, %v18606_v13  ;;  %v6454_v30 = vmul.f32 %v18619_v49, %v18606_v13  ;;  %v6455_v5 = vmul.f32 %v18620_v20, %v18606_v13  ;;  %18628 = vst [vmem:[#allocation18_spill] sm:$0xff] %v16007_v34  ;;  %v18631_v21 = vld [vmem:[#allocation42_spill] sm:$0xff] }
 0x425   : > { %v6456_v33 = vmul.f32 %v15976_v26, %v18606_v13  ;;  %v6457_v10 = vmul.f32 %v15983_v27, %v18606_v13  ;;  %v6458_v61 = vmul.f32 %v18623_v25, %v18606_v13  ;;  %v6459_v8 = vmul.f32 %v18624_v44, %v18606_v13 }
 0x426   : > { %v6460_v12 = vmul.f32 %v18625_v59, %v18606_v13  ;;  %v6461_v24 = vmul.f32 %v18626_v54, %v18606_v13  ;;  %v6462_v16 = vmul.f32 %v15998_v41, %v18606_v13  ;;  %v6463_v18 = vmul.f32 %v18627_v0, %v18606_v13 }
 0x427   : > { %v6464_v7 = vmul.f32 %v16007_v34, %v18606_v13  ;;  %v6465_v52 = vmul.f32 %v18629_v14, %v18606_v13  ;;  %v6507_v25 = vrot.slane %v6443_v3, 6  ;;  %v6509_v44 = vrot.slane %v6444_v23, 6  ;;  %v18632_v14 = vld [vmem:[#allocation29_spill] sm:$0xff]  ;;  %v18633_v3 = vld [vmem:[#allocation50_spill] sm:$0xff] }
 0x428   : > { %v6510_v27 = vrot.slane %v6445_v40, 6  ;;  %v6512_v26 = vrot.slane %v6446_v29, 6  ;;  %v6513_v20 = vrot.slane %v6447_v53, 6  ;;  %v6515_v49 = vrot.slane %v6448_v56, 6  ;;  %v18634_v40 = vld [vmem:[#allocation48_spill] sm:$0xff]  ;;  %v18635_v53 = vld [vmem:[#allocation17_spill] sm:$0xff] }
 0x429   : > { %v6516_v4 = vrot.slane %v6449_v63, 6  ;;  %v6518_v50 = vrot.slane %v6450_v2, 6  ;;  %v6519_v46 = vrot.slane %v6451_v47, 6  ;;  %v6466_v45 = vmul.f32 %v18630_v55, %v18606_v13  ;;  %v16028_v63 = vld [vmem:[%s16630_s0 + $0x190] sm:$0xff]  ;;  %v16035_v47 = vld [vmem:[%s16630_s0 + $0x198] sm:$0xff] }
 0x42a   : > { %v6467_v43 = vmul.f32 %v18631_v21, %v18606_v13  ;;  %v6521_v34 = vrot.slane %v6452_v32, 6  ;;  %v6522_v60 = vrot.slane %v6453_v28, 6  ;;  %v6468_v62 = vmul.f32 %v18632_v14, %v18606_v13  ;;  %18636 = vst [vmem:[#allocation22_spill] sm:$0xff] %v16028_v63  ;;  %18637 = vst [vmem:[#allocation10_spill] sm:$0xff] %v16035_v47 }
 0x42b   : > { %v6469_v23 = vmul.f32 %v18633_v3, %v18606_v13  ;;  %v6470_v29 = vmul.f32 %v18634_v40, %v18606_v13  ;;  %v6471_v56 = vmul.f32 %v18635_v53, %v18606_v13  ;;  %v6472_v2 = vmul.f32 %v16028_v63, %v18606_v13 }
 0x42c   : > { %v6473_v32 = vmul.f32 %v16035_v47, %v18606_v13  ;;  %v6508_v28 = vsel %vm5913_vm5, %v6506_v48, %v6507_v25  ;;  %v6511_v53 = vsel %vm5913_vm5, %v6509_v44, %v6510_v27  ;;  %v6514_v40 = vsel %vm5913_vm5, %v6512_v26, %v6513_v20 }
 0x42d   : > { %v6517_v3 = vsel %vm5913_vm5, %v6515_v49, %v6516_v4  ;;  %v6520_v14 = vsel %vm5913_vm5, %v6518_v50, %v6519_v46  ;;  %v6524_v21 = vrot.slane %v6454_v30, 6  ;;  %v6523_v63 = vsel %vm5913_vm5, %v6521_v34, %v6522_v60  ;;  %v18638_v60 = vld [vmem:[#allocation31_spill] sm:$0xff]  ;;  %v18639_v34 = vld [vmem:[#allocation30_spill] sm:$0xff] }
 0x42e   : > { %v6525_v55 = vrot.slane %v6455_v5, 6  ;;  %v6527_v58 = vrot.slane %v6456_v33, 6  ;;  %v6528_v15 = vrot.slane %v6457_v10, 6  ;;  %v6530_v39 = vrot.slane %v6458_v61, 6 }
 0x42f   : > { %v6531_v31 = vrot.slane %v6459_v8, 6  ;;  %v6533_v6 = vrot.slane %v6460_v12, 6  ;;  %v6534_v13 = vrot.slane %v6461_v24, 6  ;;  %v6536_v47 = vrot.slane %v6462_v16, 6 }
 0x430   : > { %v6537_v48 = vrot.slane %v6463_v18, 6  ;;  %v6539_v25 = vrot.slane %v6464_v7, 6  ;;  %v6540_v27 = vrot.slane %v6465_v52, 6  ;;  %v6542_v44 = vrot.slane %v6466_v45, 6 }
 0x431   : > { %v6543_v20 = vrot.slane %v6467_v43, 6  ;;  %v6545_v26 = vrot.slane %v6468_v62, 6  ;;  %v6546_v4 = vrot.slane %v6469_v23, 6  ;;  %v6526_v46 = vsel %vm5913_vm5, %v6524_v21, %v6525_v55  ;;  %v18641_v62 = vld [vmem:[#allocation11_spill] sm:$0xff] }
 0x432   : > { %v6529_v50 = vsel %vm5913_vm5, %v6527_v58, %v6528_v15  ;;  %v6590_v49 = vmul.f32 %v18609_v11, %v18638_v60  ;;  %v6591_v30 = vmul.f32 %v18610_v42, %v18638_v60  ;;  %v6532_v5 = vsel %vm5913_vm5, %v6530_v39, %v6531_v31  ;;  %v18642_v23 = vld [vmem:[#allocation7_spill] sm:$0xff] }
 0x433   : > { %v6535_v33 = vsel %vm5913_vm5, %v6533_v6, %v6534_v13  ;;  %v6548_v10 = vrot.slane %v6470_v29, 6  ;;  %v6549_v61 = vrot.slane %v6471_v56, 6  ;;  %v6538_v43 = vsel %vm5913_vm5, %v6536_v47, %v6537_v48  ;;  %v18644_v56 = vld [vmem:[#allocation55_spill] sm:$0xff]  ;;  %v18651_v48 = vld [vmem:[#allocation8_spill] sm:$0xff] }
 0x434   : > { %v6541_v45 = vsel %vm5913_vm5, %v6539_v25, %v6540_v27  ;;  %v6606_v21 = vmul.f32 %v18625_v59, %v18638_v60  ;;  %v6607_v15 = vmul.f32 %v18626_v54, %v18638_v60  ;;  %v6544_v58 = vsel %vm5913_vm5, %v6542_v44, %v6543_v20  ;;  %v18652_v44 = vld [vmem:[#allocation36_spill] sm:$0xff] }
 0x435   : > { %v6547_v11 = vsel %vm5913_vm5, %v6545_v26, %v6546_v4  ;;  %v6551_v31 = vrot.slane %v6472_v2, 6  ;;  %v6552_v39 = vrot.slane %v6473_v32, 6  ;;  %v6570_v6 = vadd.f32 %v6508_v28, %v15887_v17  ;;  %v18647_v32 = vld [vmem:[#allocation40_spill] sm:$0xff]  ;;  %v18653_v26 = vld [vmem:[#allocation9_spill] sm:$0xff] }
 0x436   : > { %v16063_v42 = vadd.f32 %v6511_v53, %v15890_v19  ;;  %v6654_v55 = vrot.slane %v6590_v49, 6  ;;  %v6655_v8 = vrot.slane %v6591_v30, 6  ;;  %v6550_v12 = vsel %vm5913_vm5, %v6548_v10, %v6549_v61  ;;  %v18643_v53 = vld [vmem:[#allocation38_spill] sm:$0xff]  ;;  %v18655_v30 = vld [vmem:[#allocation32_spill] sm:$0xff]  ;;  %v18657_v61 = vld [vmem:[#allocation51_spill] sm:$0xff] }
 0x437   : > { %v16067_v59 = vadd.f32 %v6514_v40, %v15893_v38  ;;  %v16070_v54 = vadd.f32 %v6517_v3, %v15897_v36  ;;  %v16073_v24 = vadd.f32 %v6520_v14, %v15900_v1  ;;  %v6678_v16 = vrot.slane %v6606_v21, 6  ;;  %v18658_v21 = vld [vmem:[#allocation37_spill] sm:$0xff] }
 0x438   : > { %v6679_v18 = vrot.slane %v6607_v15, 6  ;;  %v6754_v17 = vmul.f32 %v15998_v41, %v18639_v34  ;;  %v6755_v19 = vmul.f32 %v18627_v0, %v18639_v34  ;;  %v6553_v7 = vsel %vm5913_vm5, %v6551_v31, %v6552_v39  ;;  %v18660_v31 = vld [vmem:[#allocation53_spill] sm:$0xff] }
 0x439   : > { %v16082_v38 = vadd.f32 %v6523_v63, %v15903_v35  ;;  %v16085_v36 = vadd.f32 %v6526_v46, %v15906_v9  ;;  %v16088_v1 = vadd.f32 %v6529_v50, %v15909_v57  ;;  %v6578_v14 = vadd.f32 %v6532_v5, %v15912_v22  ;;  %v18645_v22 = vld [vmem:[#allocation26_spill] sm:$0xff]  ;;  %v18654_v46 = vld [vmem:[#allocation15_spill] sm:$0xff] }
 0x43a   : > { %v6656_v52 = vsel %vm5913_vm5, %v6654_v55, %v6655_v8  ;;  %v6802_v3 = vrot.slane %v18641_v62, 6  ;;  %v6803_v40 = vrot.slane %v18642_v23, 6  ;;  %v16095_v29 = vadd.f32 %v6535_v33, %v15915_v51  ;;  %v18656_v33 = vld [vmem:[#allocation56_spill] sm:$0xff]  ;;  %v18661_v55 = vld [vmem:[#allocation35_spill] sm:$0xff] }
 0x43b   : > { %18640 = vst [vmem:[#allocation19_spill] sm:$0xff] %v16088_v1  ;;  %v16098_v35 = vadd.f32 %v6538_v43, %v15918_v37  ;;  %v16101_v9 = vadd.f32 %v6541_v45, %v18643_v53  ;;  %v16104_v57 = vadd.f32 %v6544_v58, %v18644_v56  ;;  %v16111_v63 = vadd.f32 %v6547_v11, %v18645_v22  ;;  %v18649_v37 = vld [vmem:[#allocation24_spill] sm:$0xff]  ;;  %v18659_v58 = vld [vmem:[#allocation27_spill] sm:$0xff]  ;;  %v18664_v56 = vld [vmem:[#allocation57_spill] sm:$0xff] }
 0x43c   : > { %v6680_v2 = vsel %vm5913_vm5, %v6678_v16, %v6679_v18  ;;  %v6826_v47 = vrot.slane %v6754_v17, 6  ;;  %v6827_v51 = vrot.slane %v6755_v19, 6  ;;  %v16115_v28 = vadd.f32 %v6550_v12, %v18647_v32  ;;  %v18662_v12 = vld [vmem:[#allocation58_spill] sm:$0xff]  ;;  %v6883_v53 = vld [vmem:[%s16189_s8 + $0x8] sm:$0xff]  ;;  %v6884_v32 = vld [vmem:[%s16189_s8 + $0x10] sm:$0xff] }
 0x43d   : > { %18646 = vst [vmem:[#allocation52_spill] sm:$0xff] %v16111_v63  ;;  %v16118_v13 = vadd.f32 %v6553_v7, %v18649_v37  ;;  %v6592_v25 = vmul.f32 %v18651_v48, %v18638_v60  ;;  %v6718_v27 = vadd.f32 %v6656_v52, %v6570_v6  ;;  %v6593_v20 = vmul.f32 %v18652_v44, %v18638_v60  ;;  %v16161_v18 = vld [vmem:[%s16630_s0 + $0xc0] sm:$0xff]  ;;  %v16170_v7 = vld [vmem:[%s16630_s0 + $0xc8] sm:$0xff]  ;;  %v6885_v37 = vld [vmem:[%s16189_s8 + $0x18] sm:$0xff] }
 0x43e   : > { %18648 = vst [vmem:[#allocation28_spill] sm:$0xff] %v16115_v28  ;;  %v6594_v4 = vmul.f32 %v18653_v26, %v18638_v60  ;;  %v6595_v50 = vmul.f32 %v18654_v46, %v18638_v60  ;;  %v6804_v49 = vsel %vm5913_vm5, %v6802_v3, %v6803_v40  ;;  %v6596_v5 = vmul.f32 %v18655_v30, %v18638_v60  ;;  %v18663_v3 = vld [vmem:[#allocation18_spill] sm:$0xff]  ;;  %v18667_v48 = vld [vmem:[#allocation29_spill] sm:$0xff] }
 0x43f   : > { %18650 = vst [vmem:[#allocation49_spill] sm:$0xff] %v16118_v13  ;;  %v6597_v10 = vmul.f32 %v18656_v33, %v18638_v60  ;;  %v16135_v43 = vmul.f32 %v18657_v61, %v18638_v60  ;;  %v6726_v45 = vadd.f32 %v6680_v2, %v6578_v14  ;;  %v16139_v15 = vmul.f32 %v18658_v21, %v18638_v60  ;;  %v6882_v40 = vld [vmem:[%s16189_s8] sm:$0xff] }
 0x440   : > { %v16143_v11 = vmul.f32 %v18659_v58, %v18638_v60  ;;  %v16147_v39 = vmul.f32 %v18660_v31, %v18638_v60  ;;  %v6828_v6 = vsel %vm5913_vm5, %v6826_v47, %v6827_v51  ;;  %v16152_v8 = vmul.f32 %v18661_v55, %v18638_v60  ;;  %v18665_v22 = vld [vmem:[#allocation54_spill] sm:$0xff] }
 0x441   : > { %v16156_v16 = vmul.f32 %v18662_v12, %v18638_v60  ;;  %v16165_v17 = vmul.f32 %v16161_v18, %v18638_v60  ;;  %v6866_v19 = vadd.f32 %v6804_v49, %v6718_v27  ;;  %v16174_v14 = vmul.f32 %v16170_v7, %v18638_v60  ;;  %v18666_v2 = vld [vmem:[#allocation42_spill] sm:$0xff] }
 0x442   : > { %v16178_v52 = vmul.f32 %v15998_v41, %v18638_v60  ;;  %v16182_v62 = vmul.f32 %v18627_v0, %v18638_v60  ;;  %v16186_v23 = vmul.f32 %v18663_v3, %v18638_v60  ;;  %v16195_v41 = vmul.f32 %v18664_v56, %v18638_v60 }
 0x443   : > { %v16199_v0 = vmul.f32 %v18665_v22, %v18638_v60  ;;  %v16203_v47 = vmul.f32 %v18666_v2, %v18638_v60  ;;  %v6874_v51 = vadd.f32 %v6828_v6, %v6726_v45  ;;  %7377 = vmatprep.mubr.f32.mxu0 %v6866_v19  ;;  %v16209_v27 = vmul.f32 %v18667_v48, %v18638_v60  ;;  %v18668_v22 = vld [vmem:[#allocation50_spill] sm:$0xff]  ;;  %v18669_v6 = vld [vmem:[#allocation48_spill] sm:$0xff]  ;;  %v18670_v19 = vld [vmem:[#allocation17_spill] sm:$0xff] }
 0x444   : > { %v6657_v44 = vrot.slane %v6592_v25, 6  ;;  %v6658_v26 = vrot.slane %v6593_v20, 6  ;;  %v6660_v46 = vrot.slane %v6594_v4, 6  ;;  %v6661_v49 = vrot.slane %v6595_v50, 6  ;;  %v6886_v25 = vld [vmem:[%s16189_s8 + $0x20] sm:$0xff]  ;;  %v6887_v20 = vld [vmem:[%s16189_s8 + $0x28] sm:$0xff] }
 0x445   : > { %v6663_v30 = vrot.slane %v6596_v5, 6  ;;  %v6664_v33 = vrot.slane %v6597_v10, 6  ;;  %v7401_v56 = vpack.c.bf16 %v6883_v53, %v6882_v40  ;;  %7389 = vmatprep.mubr.f32.mxu1 %v6874_v51  ;;  %v16213_v45 = vmul.f32 %v18668_v22, %v18638_v60  ;;  %v18671_v50 = vld [vmem:[#allocation22_spill] sm:$0xff] }
 0x446   : > { %v16217_v2 = vmul.f32 %v18669_v6, %v18638_v60  ;;  %v16221_v13 = vmul.f32 %v18670_v19, %v18638_v60  ;;  %v7405_v4 = vpack.c.bf16 %v6885_v37, %v6884_v32  ;;  %v16227_v5 = vmul.f32 %v18671_v50, %v18638_v60  ;;  %v18672_v10 = vld [vmem:[#allocation10_spill] sm:$0xff]  ;;  %v16243_v32 = vld [vmem:[%s16630_s0 + $0x1a8] sm:$0xff] }
 0x447   : > { %v6619_v40 = vmul.f32 %v18672_v10, %v18638_v60  ;;  %v16234_v53 = vld [vmem:[%s16630_s0 + $0x1a0] sm:$0xff]  ;;  %7402 = vmatprep.subr.bf16.mxu0 %v7401_v56  ;;  %7433 = vmatprep.subr.bf16.mxu1 %v7401_v56  ;;  %18674 = vst [vmem:[#allocation16_spill] sm:$0xff] %v16243_v32  ;;  %v6621_v37 = vmul.f32 %v16243_v32, %v18638_v60  ;;  %v6666_v28 = vrot.slane %v16135_v43, 6  ;;  %v6667_v63 = vrot.slane %v16139_v15, 6  ;;  %v6888_v15 = vld [vmem:[%s16189_s8 + $0x30] sm:$0xff]  ;;  %v6889_v32 = vld [vmem:[%s16189_s8 + $0x38] sm:$0xff] }
 0x448   : > { %18673 = vst [vmem:[#allocation43_spill] sm:$0xff] %v16234_v53  ;;  %v16238_v51 = vmul.f32 %v16234_v53, %v18638_v60  ;;  %v6659_v1 = vsel %vm5913_vm5, %v6657_v44, %v6658_v26  ;;  %7404 = vmatpush3.bf16.msra.mxu0 %v7401_v56  ;;  %7441 = vmatpush3.bf16.msra.mxu1 %v7401_v56  ;;  %v6669_v50 = vrot.slane %v16143_v11, 6  ;;  %v6670_v60 = vrot.slane %v16147_v39, 6 }
 0x449   : > { %v6662_v53 = vsel %vm5913_vm5, %v6660_v46, %v6661_v49  ;;  %v6665_v10 = vsel %vm5913_vm5, %v6663_v30, %v6664_v33  ;;  %7406 = vmatprep.subr.bf16.mxu0 %v7405_v4  ;;  %v7409_v19 = vpack.c.bf16 %v6887_v20, %v6886_v25  ;;  %7434 = vmatprep.subr.bf16.mxu1 %v7405_v4  ;;  %v6672_v44 = vrot.slane %v16152_v8, 6  ;;  %v6890_v33 = vld [vmem:[%s16189_s8 + $0x40] sm:$0xff] }
 0x44a   : > { %v6673_v26 = vrot.slane %v16156_v16, 6  ;;  %v6675_v43 = vrot.slane %v16165_v17, 6  ;;  %v6676_v56 = vrot.slane %v16174_v14, 6  ;;  %v6681_v46 = vrot.slane %v16178_v52, 6 }
 0x44b   : > { %v6682_v49 = vrot.slane %v16182_v62, 6  ;;  %v6684_v11 = vrot.slane %v16186_v23, 6  ;;  %v6685_v30 = vrot.slane %v16195_v41, 6  ;;  %v6687_v39 = vrot.slane %v16199_v0, 6 }
 0x44c   : > { %v6688_v8 = vrot.slane %v16203_v47, 6  ;;  %v6690_v16 = vrot.slane %v16209_v27, 6  ;;  %7408 = vmatpush3.bf16.msra.mxu0 %v7405_v4  ;;  %7442 = vmatpush3.bf16.msra.mxu1 %v7405_v4  ;;  %v6691_v17 = vrot.slane %v16213_v45, 6  ;;  %v6693_v14 = vrot.slane %v16217_v2, 6  ;;  %v6891_v27 = vld [vmem:[%s16189_s8 + $0x48] sm:$0xff] }
 0x44d   : > { %v6694_v52 = vrot.slane %v16221_v13, 6  ;;  %7410 = vmatprep.subr.bf16.mxu0 %v7409_v19  ;;  %v7413_v62 = vpack.c.bf16 %v6889_v32, %v6888_v15  ;;  %7435 = vmatprep.subr.bf16.mxu1 %v7409_v19  ;;  %v6668_v23 = vsel %vm5913_vm5, %v6666_v28, %v6667_v63  ;;  %v6671_v41 = vsel %vm5913_vm5, %v6669_v50, %v6670_v60  ;;  %v6893_v60 = vld [vmem:[%s16189_s8 + $0x58] sm:$0xff]  ;;  %v6895_v15 = vld [vmem:[%s16189_s8 + $0x68] sm:$0xff] }
 0x44e   : > { %v6696_v0 = vrot.slane %v16227_v5, 6  ;;  %v6697_v47 = vrot.slane %v6619_v40, 6  ;;  %v6674_v25 = vsel %vm5913_vm5, %v6672_v44, %v6673_v26  ;;  %v16277_v45 = vsel %vm5913_vm5, %v6675_v43, %v6676_v56 }
 0x44f   : > { %v6699_v2 = vrot.slane %v16238_v51, 6  ;;  %v6700_v13 = vrot.slane %v6621_v37, 6  ;;  %v6683_v20 = vsel %vm5913_vm5, %v6681_v46, %v6682_v49  ;;  %v6686_v63 = vsel %vm5913_vm5, %v6684_v11, %v6685_v30 }
 0x450   : > { %v6689_v28 = vsel %vm5913_vm5, %v6687_v39, %v6688_v8  ;;  %7412 = vmatpush3.bf16.msra.mxu0 %v7409_v19  ;;  %7443 = vmatpush3.bf16.msra.mxu1 %v7409_v19  ;;  %v6692_v4 = vsel %vm5913_vm5, %v6690_v16, %v6691_v17  ;;  %v16285_v50 = vsel %vm5913_vm5, %v6693_v14, %v6694_v52  ;;  %v6892_v19 = vld [vmem:[%s16189_s8 + $0x50] sm:$0xff]  ;;  %v7834_v39 = vld [vmem:[%s16630_s0 + $0xd8] sm:$0xff] }
 0x451   : > { %7414 = vmatprep.subr.bf16.mxu0 %v7413_v62  ;;  %v7417_v5 = vpack.c.bf16 %v6891_v27, %v6890_v33  ;;  %7436 = vmatprep.subr.bf16.mxu1 %v7413_v62  ;;  %v16288_v40 = vsel %vm5913_vm5, %v6696_v0, %v6697_v47  ;;  %v16291_v51 = vadd.f32 %v6659_v1, %v16063_v42  ;;  %v6896_v52 = vld [vmem:[%s16189_s8 + $0x70] sm:$0xff]  ;;  %v18676_v0 = vld [vmem:[#allocation22_spill] sm:$0xff] }
 0x452   : > { %v16294_v32 = vadd.f32 %v6662_v53, %v16067_v59  ;;  %v16297_v37 = vadd.f32 %v6665_v10, %v16070_v54  ;;  %v16302_v44 = vsel %vm5913_vm5, %v6699_v2, %v6700_v13  ;;  %v16305_v26 = vadd.f32 %v6668_v23, %v16073_v24  ;;  %v6894_v53 = vld [vmem:[%s16189_s8 + $0x60] sm:$0xff]  ;;  %v18675_v23 = vld [vmem:[#allocation17_spill] sm:$0xff]  ;;  %v18679_v2 = vld [vmem:[#allocation20_spill] sm:$0xff] }
 0x453   : > { %v16308_v43 = vadd.f32 %v6671_v41, %v16082_v38  ;;  %v16311_v42 = vadd.f32 %v6674_v25, %v16085_v36  ;;  %v16314_v59 = vadd.f32 %v6683_v20, %v16095_v29  ;;  %v16317_v54 = vadd.f32 %v6686_v63, %v16098_v35  ;;  %v7829_v38 = vld [vmem:[%s16630_s0 + $0x88] sm:$0xff]  ;;  %v18677_v33 = vld [vmem:[#allocation10_spill] sm:$0xff] }
 0x454   : > { %v16320_v1 = vadd.f32 %v6689_v28, %v16101_v9  ;;  %7416 = vmatpush3.bf16.msra.mxu0 %v7413_v62  ;;  %7444 = vmatpush3.bf16.msra.mxu1 %v7413_v62  ;;  %v16323_v24 = vadd.f32 %v6692_v4, %v16104_v57  ;;  %v16329_v36 = vmul.f32 %v7829_v38, %v18639_v34  ;;  %v6897_v62 = vld [vmem:[%s16189_s8 + $0x78] sm:$0xff]  ;;  %v18680_v13 = vld [vmem:[#allocation23_spill] sm:$0xff] }
 0x455   : > { %7418 = vmatprep.subr.bf16.mxu0 %v7417_v5  ;;  %v7421_v29 = vpack.c.bf16 %v6893_v60, %v6892_v19  ;;  %7437 = vmatprep.subr.bf16.mxu1 %v7417_v5  ;;  %v16333_v35 = vmul.f32 %v18657_v61, %v18639_v34  ;;  %v16337_v9 = vmul.f32 %v18658_v21, %v18639_v34  ;;  %v6808_v20 = vrot.slane %v18680_v13, 6  ;;  %v18681_v60 = vld [vmem:[#allocation43_spill] sm:$0xff] }
 0x456   : > { %v16341_v57 = vmul.f32 %v18659_v58, %v18639_v34  ;;  %v16345_v10 = vmul.f32 %v18660_v31, %v18639_v34  ;;  %v16351_v56 = vmul.f32 %v18661_v55, %v18639_v34  ;;  %v16355_v61 = vmul.f32 %v18662_v12, %v18639_v34  ;;  %v7830_v31 = vld [vmem:[%s16630_s0 + $0xd0] sm:$0xff]  ;;  %v7831_v12 = vld [vmem:[%s16630_s0 + $0x158] sm:$0xff] }
 0x457   : > { %v16359_v21 = vmul.f32 %v16161_v18, %v18639_v34  ;;  %v16363_v58 = vmul.f32 %v16170_v7, %v18639_v34  ;;  %v16369_v46 = vmul.f32 %v7830_v31, %v18639_v34  ;;  %v6756_v55 = vmul.f32 %v18663_v3, %v18639_v34  ;;  %v7832_v7 = vld [vmem:[%s16630_s0 + $0x160] sm:$0xff]  ;;  %v7833_v3 = vld [vmem:[%s16630_s0 + $0x168] sm:$0xff] }
 0x458   : > { %v6757_v18 = vmul.f32 %v7831_v12, %v18639_v34  ;;  %7420 = vmatpush3.bf16.msra.mxu0 %v7417_v5  ;;  %7445 = vmatpush3.bf16.msra.mxu1 %v7417_v5  ;;  %v6758_v49 = vmul.f32 %v7832_v7, %v18639_v34  ;;  %v6759_v11 = vmul.f32 %v7833_v3, %v18639_v34  ;;  %v6809_v28 = vrot.slane %v16329_v36, 6  ;;  %v7836_v12 = vld [vmem:[%s16630_s0 + $0x1b8] sm:$0xff] }
 0x459   : > { %7422 = vmatprep.subr.bf16.mxu0 %v7421_v29  ;;  %v7425_v30 = vpack.c.bf16 %v6895_v15, %v6894_v53  ;;  %7438 = vmatprep.subr.bf16.mxu1 %v7421_v29  ;;  %v16389_v8 = vmul.f32 %v7834_v39, %v18639_v34  ;;  %v6760_v16 = vmul.f32 %v18667_v48, %v18639_v34  ;;  %v18678_v48 = vld [vmem:[#allocation25_spill] sm:$0xff]  ;;  %v18682_v53 = vld [vmem:[#allocation16_spill] sm:$0xff]  ;;  %v6811_v31 = vrot.slane %v16333_v35, 6 }
 0x45a   : > { %v6761_v17 = vmul.f32 %v18668_v22, %v18639_v34  ;;  %v6762_v14 = vmul.f32 %v18669_v6, %v18639_v34  ;;  %v6763_v41 = vmul.f32 %v18675_v23, %v18639_v34  ;;  %v16403_v47 = vmul.f32 %v18676_v0, %v18639_v34 }
 0x45b   : > { %v16407_v27 = vmul.f32 %v18677_v33, %v18639_v34  ;;  %v6805_v25 = vrot.slane %v18678_v48, 6  ;;  %v6806_v22 = vrot.slane %v18679_v2, 6  ;;  %v6829_v6 = vrot.slane %v6756_v55, 6  ;;  %v18683_v2 = vld [vmem:[#allocation52_spill] sm:$0xff] }
 0x45c   : > { %v6830_v63 = vrot.slane %v6757_v18, 6  ;;  %7424 = vmatpush3.bf16.msra.mxu0 %v7421_v29  ;;  %7446 = vmatpush3.bf16.msra.mxu1 %v7421_v29  ;;  %v6832_v4 = vrot.slane %v6758_v49, 6  ;;  %v6833_v5 = vrot.slane %v6759_v11, 6  ;;  %v7429_v19 = vpack.c.bf16 %v6897_v62, %v6896_v52  ;;  %v7835_v29 = vld [vmem:[%s16630_s0 + $0x1b0] sm:$0xff] }
 0x45d   : > { %7426 = vmatprep.subr.bf16.mxu0 %v7425_v30  ;;  %7439 = vmatprep.subr.bf16.mxu1 %v7425_v30  ;;  %v6766_v38 = vmul.f32 %v18681_v60, %v18639_v34  ;;  %v6767_v15 = vmul.f32 %v18682_v53, %v18639_v34  ;;  %v6812_v55 = vrot.slane %v16337_v9, 6  ;;  %v6768_v36 = vmul.f32 %v7835_v29, %v18639_v34 }
 0x45e   : > { %v6769_v18 = vmul.f32 %v7836_v12, %v18639_v34  ;;  %v6814_v7 = vrot.slane %v16341_v57, 6  ;;  %v6815_v49 = vrot.slane %v16345_v10, 6  ;;  %v6807_v35 = vsel %vm5913_vm5, %v6805_v25, %v6806_v22 }
 0x45f   : > { %v6831_v9 = vsel %vm5913_vm5, %v6829_v6, %v6830_v63  ;;  %v6835_v3 = vrot.slane %v6760_v16, 6  ;;  %v6836_v11 = vrot.slane %v6761_v17, 6  ;;  %v6810_v39 = vsel %vm5913_vm5, %v6808_v20, %v6809_v28  ;;  %v18685_v28 = vld [vmem:[#allocation19_spill] sm:$0xff] }
 0x460   : > { %7428 = vmatpush3.bf16.msra.mxu0 %v7425_v30  ;;  %7447 = vmatpush3.bf16.msra.mxu1 %v7425_v30  ;;  %v6834_v52 = vsel %vm5913_vm5, %v6832_v4, %v6833_v5  ;;  %v6838_v62 = vrot.slane %v6762_v14, 6  ;;  %v6839_v23 = vrot.slane %v6763_v41, 6  ;;  %v6813_v34 = vsel %vm5913_vm5, %v6811_v31, %v6812_v55  ;;  %v18686_v4 = vld [vmem:[#allocation49_spill] sm:$0xff] }
 0x461   : > { %7430 = vmatprep.subr.bf16.mxu0 %v7429_v19  ;;  %7440 = vmatprep.subr.bf16.mxu1 %v7429_v19  ;;  %v6817_v57 = vrot.slane %v16351_v56, 6  ;;  %v6818_v10 = vrot.slane %v16355_v61, 6  ;;  %v6820_v0 = vrot.slane %v16359_v21, 6  ;;  %v6816_v16 = vsel %vm5913_vm5, %v6814_v7, %v6815_v49 }
 0x462   : > { %v6841_v30 = vrot.slane %v16403_v47, 6  ;;  %v6867_v17 = vadd.f32 %v6807_v35, %v16291_v51  ;;  %v6875_v33 = vadd.f32 %v6831_v9, %v16314_v59  ;;  %v6837_v14 = vsel %vm5913_vm5, %v6835_v3, %v6836_v11  ;;  %v18684_v59 = vld [vmem:[#allocation28_spill] sm:$0xff] }
 0x463   : > { %v6842_v41 = vrot.slane %v16407_v27, 6  ;;  %v6868_v48 = vadd.f32 %v6810_v39, %v16294_v32  ;;  %v6876_v56 = vadd.f32 %v6834_v52, %v16317_v54  ;;  %v6821_v61 = vrot.slane %v16363_v58, 6 }
 0x464   : > { %7432 = vmatpush3.bf16.msra.mxu0 %v7429_v19  ;;  %7448 = vmatpush3.bf16.msra.mxu1 %v7429_v19  ;;  %v6840_v21 = vsel %vm5913_vm5, %v6838_v62, %v6839_v23  ;;  %v6844_v25 = vrot.slane %v6766_v38, 6  ;;  %v6845_v47 = vrot.slane %v6767_v15, 6  ;;  %v6731_v51 = vadd.f32 %v16285_v50, %v18683_v2 }
 0x465   : > { %v6732_v22 = vadd.f32 %v16288_v40, %v18684_v59  ;;  %v6823_v27 = vrot.slane %v16369_v46, 6  ;;  %v6824_v32 = vrot.slane %v16389_v8, 6  ;;  %v6819_v54 = vsel %vm5913_vm5, %v6817_v57, %v6818_v10 }
 0x466   : > { %v6847_v13 = vrot.slane %v6768_v36, 6  ;;  %v6869_v20 = vadd.f32 %v6813_v34, %v16297_v37  ;;  %v6877_v58 = vadd.f32 %v6837_v14, %v16320_v1  ;;  %v6843_v6 = vsel %vm5913_vm5, %v6841_v30, %v6842_v41 }
 0x467   : > { %7378 = vmatmul.mubr.f32.vlgmr.msra.gmra.mrb[0].mxu0 %v6867_v17  ;;  %7390 = vmatmul.mubr.f32.vlgmr.msra.gmra.mrb[0].mxu1 %v6875_v33  ;;  %v6848_v63 = vrot.slane %v6769_v18, 6  ;;  %v6870_v50 = vadd.f32 %v6816_v16, %v16305_v26  ;;  %v6878_v40 = vadd.f32 %v6840_v21, %v16323_v24  ;;  %v6822_v46 = vsel %vm5913_vm5, %v6820_v0, %v6821_v61 }
 0x468   : > { %7380 = vmatprep.mubr.f32.mxu0 %v6868_v48  ;;  %7392 = vmatprep.mubr.f32.mxu1 %v6876_v56  ;;  %v6846_v8 = vsel %vm5913_vm5, %v6844_v25, %v6845_v47  ;;  %v6725_v37 = vadd.f32 %v16277_v45, %v18685_v28  ;;  %v6733_v1 = vadd.f32 %v16302_v44, %v18686_v4 }
 0x469   : > { %v6825_v5 = vsel %vm5913_vm5, %v6823_v27, %v6824_v32  ;;  %v6871_v19 = vadd.f32 %v6819_v54, %v16308_v43  ;;  %v6879_v60 = vadd.f32 %v6843_v6, %v6731_v51  ;;  %v6849_v26 = vsel %vm5913_vm5, %v6847_v13, %v6848_v63 }
 0x46a   : > { %v6872_v24 = vadd.f32 %v6822_v46, %v16311_v42  ;;  %v6880_v38 = vadd.f32 %v6846_v8, %v6732_v22  ;;  %v6873_v53 = vadd.f32 %v6825_v5, %v6725_v37  ;;  %v6881_v15 = vadd.f32 %v6849_v26, %v6733_v1 }
 0x46b   : > { %7381 = vmatmul.mubr.f32.gmra.mrb[2].mxu0 %v6869_v20  ;;  %7393 = vmatmul.mubr.f32.gmra.mrb[2].mxu1 %v6877_v58 }
 0x46c   : > { %7383 = vmatprep.mubr.f32.mxu0 %v6870_v50  ;;  %7395 = vmatprep.mubr.f32.mxu1 %v6878_v40 }
 0x46f   : > { %7384 = vmatmul.mubr.f32.gmra.mrb[4].mxu0 %v6871_v19  ;;  %7396 = vmatmul.mubr.f32.gmra.mrb[4].mxu1 %v6879_v60 }
 0x470   : > { %7386 = vmatprep.mubr.f32.mxu0 %v6872_v24  ;;  %7398 = vmatprep.mubr.f32.mxu1 %v6880_v38 }
 0x473   : > { %7387 = vmatmul.mubr.f32.gmra.mrb[6].mxu0 %v6873_v53  ;;  %7399 = vmatmul.mubr.f32.gmra.mrb[6].mxu1 %v6881_v15 }
 0x53a   : > { %v7379_v45 = vpop.f32.mrb[0].mxu0  ;;  %v7391_v44 = vpop.f32.mrb[0].mxu1 }
 0x53b   : > { %v6964_v43 = vpop.f32.mrb[1].mxu0  ;;  %v7004_v31 = vpop.f32.mrb[1].mxu1 }
 0x53c   : > { %v7043_v55 = vadd.f32 %v7379_v45, %v6964_v43 }
 0x53e   : > { %v7382_v29 = vpop.f32.mrb[2].mxu0  ;;  %v7394_v36 = vpop.f32.mrb[2].mxu1 }
 0x53f   : > { %v6974_v12 = vpop.f32.mrb[3].mxu0  ;;  %v7014_v42 = vpop.f32.mrb[3].mxu1 }
 0x540   : > { %v7044_v18 = vadd.f32 %v7043_v55, %v6974_v12 }
 0x542   : > { %v7385_v7 = vpop.f32.mrb[4].mxu0  ;;  %v7397_v49 = vpop.f32.mrb[4].mxu1  ;;  %v7045_v35 = vadd.f32 %v7382_v29, %v7044_v18 }
 0x543   : > { %v6984_v9 = vpop.f32.mrb[5].mxu0  ;;  %v7024_v3 = vpop.f32.mrb[5].mxu1 }
 0x544   : > { %v7046_v11 = vadd.f32 %v7045_v35, %v6984_v9 }
 0x546   : > { %v7388_v39 = vpop.f32.mrb[6].mxu0  ;;  %v7400_v52 = vpop.f32.mrb[6].mxu1  ;;  %v7047_v62 = vadd.f32 %v7385_v7, %v7046_v11 }
 0x547   : > { %v6994_v23 = vpop.f32.mrb[7].mxu0  ;;  %v7034_v34 = vpop.f32.mrb[7].mxu1 }
 0x548   : > { %v7048_v57 = vadd.f32 %v7047_v62, %v6994_v23 }
 0x54a   : > { %v7049_v10 = vadd.f32 %v7388_v39, %v7048_v57 }
 0x54c   : > { %v7050_v0 = vadd.f32 %v7049_v10, %v7004_v31 }
 0x54e   : > { %v7051_v16 = vadd.f32 %v7391_v44, %v7050_v0 }
 0x550   : > { %v7052_v30 = vadd.f32 %v7051_v16, %v7014_v42 }
 0x552   : > { %v7053_v17 = vadd.f32 %v7394_v36, %v7052_v30 }
 0x554   : > { %v7054_v33 = vadd.f32 %v7053_v17, %v7024_v3 }
 0x556   : > { %v7055_v14 = vadd.f32 %v7397_v49, %v7054_v33 }
 0x558   : > { %v7056_v41 = vadd.f32 %v7055_v14, %v7034_v34 }
 0x55a   : > { %v7057_v48 = vadd.f32 %v7400_v52, %v7056_v41  ;;  %v7119_v41 = vld [vmem:[%s341_s26] sm:$0x1] }
 0x55c   : > { %v7058_v56 = vrot.slane %v7057_v48, 4 }
 0x55e   : > { %v7059_v61 = vadd.f32 %v7058_v56, %v7057_v48 }
 0x560   : > { %v7060_v21 = vrot.slane %v7059_v61, 2 }
 0x562   : > { %v7061_v25 = vadd.f32 %v7060_v21, %v7059_v61  ;;  %v18687_v61 = vld [vmem:[#allocation6_spill] sm:$0xff] }
 0x564   : > { %v7062_v47 = vrot.slane %v7061_v25, 1 }
 0x566   : > { %v7063_v2 = vadd.f32 %v7062_v47, %v7061_v25 }
 0x568   : > { %v7064_v51 = vmul.f32 0.0078125, %v7063_v2 }
 0x56a   : > { %v16469_v59 = vsub.f32 %v6964_v43, %v7064_v51  ;;  %v16471_v22 = vsub.f32 %v7379_v45, %v7064_v51  ;;  %v16473_v27 = vsub.f32 %v6974_v12, %v7064_v51  ;;  %v16475_v32 = vsub.f32 %v7382_v29, %v7064_v51 }
 0x56b   : > { %v16477_v54 = vsub.f32 %v6984_v9, %v7064_v51  ;;  %v16479_v13 = vsub.f32 %v7385_v7, %v7064_v51  ;;  %v16481_v20 = vsub.f32 %v6994_v23, %v7064_v51  ;;  %v16483_v58 = vsub.f32 %v7388_v39, %v7064_v51 }
 0x56c   : > { %v16485_v6 = vsub.f32 %v7004_v31, %v7064_v51  ;;  %v16487_v63 = vsub.f32 %v7391_v44, %v7064_v51  ;;  %v16489_v50 = vsub.f32 %v7014_v42, %v7064_v51  ;;  %v16491_v40 = vsub.f32 %v7394_v36, %v7064_v51 }
 0x56d   : > { %v16493_v46 = vsub.f32 %v7024_v3, %v7064_v51  ;;  %v16495_v8 = vsub.f32 %v7397_v49, %v7064_v51  ;;  %v16497_v28 = vsub.f32 %v7034_v34, %v7064_v51  ;;  %v16499_v37 = vsub.f32 %v7400_v52, %v7064_v51 }
 0x56e   : > { %v7081_v4 = vmul.f32 %v16469_v59, %v16469_v59  ;;  %v7082_v1 = vmul.f32 %v16471_v22, %v16471_v22  ;;  %v7083_v5 = vmul.f32 %v16473_v27, %v16473_v27  ;;  %v7084_v60 = vmul.f32 %v16475_v32, %v16475_v32 }
 0x56f   : > { %v7085_v24 = vmul.f32 %v16477_v54, %v16477_v54  ;;  %v7086_v53 = vmul.f32 %v16479_v13, %v16479_v13  ;;  %v7087_v45 = vmul.f32 %v16481_v20, %v16481_v20  ;;  %v7088_v43 = vmul.f32 %v16483_v58, %v16483_v58 }
 0x570   : > { %v7097_v19 = vadd.f32 %v7082_v1, %v7081_v4  ;;  %v7089_v55 = vmul.f32 %v16485_v6, %v16485_v6  ;;  %v7090_v36 = vmul.f32 %v16487_v63, %v16487_v63  ;;  %v7091_v42 = vmul.f32 %v16489_v50, %v16489_v50 }
 0x571   : > { %v7092_v7 = vmul.f32 %v16491_v40, %v16491_v40  ;;  %v7093_v35 = vmul.f32 %v16493_v46, %v16493_v46  ;;  %v7094_v3 = vmul.f32 %v16495_v8, %v16495_v8  ;;  %v7095_v39 = vmul.f32 %v16497_v28, %v16497_v28 }
 0x572   : > { %v7098_v26 = vadd.f32 %v7097_v19, %v7083_v5  ;;  %v7096_v62 = vmul.f32 %v16499_v37, %v16499_v37 }
 0x574   : > { %v7099_v38 = vadd.f32 %v7098_v26, %v7084_v60  ;;  %v7308_v60 = vld [vmem:[%s344_s7] ss:$0 sm:$0xff] }
 0x576   : > { %v7100_v15 = vadd.f32 %v7099_v38, %v7085_v24 }
 0x578   : > { %v7101_v44 = vadd.f32 %v7100_v15, %v7086_v53 }
 0x57a   : > { %v7102_v31 = vadd.f32 %v7101_v44, %v7087_v45 }
 0x57c   : > { %v7103_v29 = vadd.f32 %v7102_v31, %v7088_v43 }
 0x57e   : > { %v7104_v12 = vadd.f32 %v7103_v29, %v7089_v55 }
 0x580   : > { %v7105_v18 = vadd.f32 %v7104_v12, %v7090_v36 }
 0x582   : > { %v7106_v49 = vadd.f32 %v7105_v18, %v7091_v42 }
 0x584   : > { %v7107_v9 = vadd.f32 %v7106_v49, %v7092_v7 }
 0x586   : > { %v7108_v11 = vadd.f32 %v7107_v9, %v7093_v35 }
 0x588   : > { %v7109_v52 = vadd.f32 %v7108_v11, %v7094_v3 }
 0x58a   : > { %v7110_v23 = vadd.f32 %v7109_v52, %v7095_v39 }
 0x58c   : > { %v7111_v34 = vadd.f32 %v7110_v23, %v7096_v62 }
 0x58e   : > { %v7112_v57 = vrot.slane %v7111_v34, 4 }
 0x590   : > { %v7113_v10 = vadd.f32 %v7112_v57, %v7111_v34 }
 0x592   : > { %v7114_v0 = vrot.slane %v7113_v10, 2 }
 0x594   : > { %v7115_v16 = vadd.f32 %v7114_v0, %v7113_v10 }
 0x596   : > { %v7116_v30 = vrot.slane %v7115_v16, 1 }
 0x598   : > { %v7117_v17 = vadd.f32 %v7116_v30, %v7115_v16 }
 0x59a   : > { %v7118_v33 = vmul.f32 0.0078125, %v7117_v17 }
 0x59c   : > { %v7120_v14 = vadd.f32 1e-05, %v7118_v33 }
 0x59e   : > { %7491 = vrsqrt.f32 %v7120_v14 }
 0x5a8   : > { %v7492_v48 = vpop.eup %7491 }
 0x5a9   : > { %v7122_v56 = vmul.f32 %v7492_v48, %v7119_v41 }
 0x5ab   : > { %v7127_v21 = vrot.slane %v7122_v56, %v18687_v61 }
 0x5ad   : > { %v7129_v25 = vmul.f32 %v7127_v21, %v16469_v59  ;;  %v7130_v47 = vmul.f32 %v7127_v21, %v16471_v22  ;;  %v7131_v2 = vmul.f32 %v7127_v21, %v16473_v27  ;;  %v7132_v51 = vmul.f32 %v7127_v21, %v16475_v32 }
 0x5ae   : > { %v7133_v4 = vmul.f32 %v7127_v21, %v16477_v54  ;;  %v7134_v1 = vmul.f32 %v7127_v21, %v16479_v13  ;;  %v7135_v5 = vmul.f32 %v7127_v21, %v16481_v20  ;;  %v7136_v19 = vmul.f32 %v7127_v21, %v16483_v58 }
 0x5af   : > { %v7137_v26 = vmul.f32 %v7127_v21, %v16485_v6  ;;  %v7138_v24 = vmul.f32 %v7127_v21, %v16487_v63  ;;  %v7139_v59 = vmul.f32 %v7127_v21, %v16489_v50  ;;  %v7140_v22 = vmul.f32 %v7127_v21, %v16491_v40 }
 0x5b0   : > { %v7141_v27 = vmul.f32 %v7127_v21, %v16493_v46  ;;  %v7142_v32 = vmul.f32 %v7127_v21, %v16495_v8  ;;  %v7143_v54 = vmul.f32 %v7127_v21, %v16497_v28  ;;  %v7144_v13 = vmul.f32 %v7127_v21, %v16499_v37 }
 0x5b1   : > { %v7152_v20 = vadd.f32 %v7308_v60, %v7129_v25  ;;  %v7153_v58 = vadd.f32 %v7308_v60, %v7130_v47  ;;  %v7154_v38 = vadd.f32 %v7308_v60, %v7131_v2  ;;  %v7155_v6 = vadd.f32 %v7308_v60, %v7132_v51 }
 0x5b2   : > { %v7156_v53 = vadd.f32 %v7308_v60, %v7133_v4  ;;  %v7157_v63 = vadd.f32 %v7308_v60, %v7134_v1  ;;  %v7158_v15 = vadd.f32 %v7308_v60, %v7135_v5  ;;  %v7159_v50 = vadd.f32 %v7308_v60, %v7136_v19 }
 0x5b3   : > { %v7160_v45 = vadd.f32 %v7308_v60, %v7137_v26  ;;  %v7161_v40 = vadd.f32 %v7308_v60, %v7138_v24  ;;  %v7162_v44 = vadd.f32 %v7308_v60, %v7139_v59  ;;  %v7163_v46 = vadd.f32 %v7308_v60, %v7140_v22 }
 0x5b4   : > { %v7164_v43 = vadd.f32 %v7308_v60, %v7141_v27  ;;  %v7165_v8 = vadd.f32 %v7308_v60, %v7142_v32  ;;  %v7166_v31 = vadd.f32 %v7308_v60, %v7143_v54  ;;  %v7167_v28 = vadd.f32 %v7308_v60, %v7144_v13 }
 0x5b5   : > { %v7168_v37 = vmax.f32 %v7152_v20, 0.0  ;;  %v7169_v55 = vmax.f32 %v7153_v58, 0.0  ;;  %v7170_v29 = vmax.f32 %v7154_v38, 0.0  ;;  %v7171_v36 = vmax.f32 %v7155_v6, 0.0 }
 0x5b6   : > { %v7172_v12 = vmax.f32 %v7156_v53, 0.0  ;;  %v7173_v42 = vmax.f32 %v7157_v63, 0.0  ;;  %v7174_v18 = vmax.f32 %v7158_v15, 0.0  ;;  %v7175_v7 = vmax.f32 %v7159_v50, 0.0 }
 0x5b7   : > { %v7176_v49 = vmax.f32 %v7160_v45, 0.0  ;;  %v7177_v35 = vmax.f32 %v7161_v40, 0.0  ;;  %v7178_v9 = vmax.f32 %v7162_v44, 0.0  ;;  %v7179_v3 = vmax.f32 %v7163_v46, 0.0  ;;  %7184 = vst [vmem:[%s16560_s10] sm:$0xff] %v7168_v37  ;;  %7185 = vst [vmem:[%s16560_s10 + $0x8] sm:$0xff] %v7169_v55 }
 0x5b8   : > { %7186 = vst [vmem:[%s16560_s10 + $0x10] sm:$0xff] %v7170_v29  ;;  %7187 = vst [vmem:[%s16560_s10 + $0x18] sm:$0xff] %v7171_v36  ;;  %v7180_v11 = vmax.f32 %v7164_v43, 0.0  ;;  %v7181_v39 = vmax.f32 %v7165_v8, 0.0  ;;  %v7182_v52 = vmax.f32 %v7166_v31, 0.0  ;;  %v7183_v62 = vmax.f32 %v7167_v28, 0.0 }
 0x5b9   : > { %7188 = vst [vmem:[%s16560_s10 + $0x20] sm:$0xff] %v7172_v12  ;;  %7189 = vst [vmem:[%s16560_s10 + $0x28] sm:$0xff] %v7173_v42 }
 0x5ba   : > { %7190 = vst [vmem:[%s16560_s10 + $0x30] sm:$0xff] %v7174_v18  ;;  %7191 = vst [vmem:[%s16560_s10 + $0x38] sm:$0xff] %v7175_v7 }
 0x5bb   : > { %7192 = vst [vmem:[%s16560_s10 + $0x40] sm:$0xff] %v7176_v49  ;;  %7193 = vst [vmem:[%s16560_s10 + $0x48] sm:$0xff] %v7177_v35 }
 0x5bc   : > { %7194 = vst [vmem:[%s16560_s10 + $0x50] sm:$0xff] %v7178_v9  ;;  %7195 = vst [vmem:[%s16560_s10 + $0x58] sm:$0xff] %v7179_v3 }
 0x5bd   : > { %7196 = vst [vmem:[%s16560_s10 + $0x60] sm:$0xff] %v7180_v11  ;;  %7197 = vst [vmem:[%s16560_s10 + $0x68] sm:$0xff] %v7181_v39 }
 0x5be   : > { %7198 = vst [vmem:[%s16560_s10 + $0x70] sm:$0xff] %v7182_v52  ;;  %7199 = vst [vmem:[%s16560_s10 + $0x78] sm:$0xff] %v7183_v62 }
 0x5bf   : > { %7850 = shalt.err (!%p7847_p7)
}
 0x5c0   : > { %s7851_s23 = scalar_lea.hbm %s16566_s25, 2048  ;;  %s7855_s30 = scalar_lea.hbm %s16635_s5, 4096 }
 0x5c1   : > { %p7852_p10 = scmp.ne.s32.totalorder %s16566_s25, %s7851_s23  ;;  %p7856_p13 = scmp.lt.u32.totalorder %s16566_s25, %s16635_s5 }
 0x5c2   : > { %p7857_p0 = scmp.lt.u32.totalorder %s7855_s30, %s7851_s23  ;;  %p7859_p2 = scmp.lt.u32.totalorder %s7851_s23, %s16566_s25 }
 0x5c3   : > { %p7853_p11 = pnand %p7852_p10, %p7974_p6 }
 0x5c4   : > { %p7858_p1 = por %p7857_p0, %p7856_p13 }
 0x5c5   : > { %p7854_p12 = pneg %p7853_p11 }
 0x5c6   : > { %p7860_p3 = por %p7859_p2, %p7858_p1 }
 0x5c8   : > { %p7861_p4 = pnand %p7860_p3, %p7854_p12 }
 0x5ca   : > { %7864 = shalt.err (!%p7861_p4)
}
 0x5cb   : > { %s7902_s9 = smov 128   ;;  %s7903_s10 = smov 256  }
 0x5cc   : > { %s7904_s22 = smov 8  }
 0x5cd   : > { %7449 = dma.vmem_to_hbm [thread:$0]  (%p7974_p6), %s16572_s11, 2048, %s16566_s25, %s16588_s12, %s7902_s9, %s7903_s10, %s7904_s22  }
 0x5ce PF: > { %s7228_s8 = sand.u32 1, %s7887_s18   ;;  %p7452_p5 = pnand %p7301_p9, %p7978_p8 }
 0x5cf   : > { %s7229_s13 = scalar_lea.sflag [#allocation4], %s7228_s8 }
 0x5d0   : > { %7882 = dma.done.wait (!%p7452_p5), %s7229_s13, 2048  }
 0x5d1   : > { %7884 = vsyncadd (!%p7452_p5), %s7229_s13, 4294965248  ;;  %p15_p7 = scmp.ge.s32.totalorder %s7960_s24, 4   ;;  %s18688_s18 = smov %s7891_s19 }
 0x5d2   : > { %s18689_s19 = smov %s7895_s20  ;;  %s18690_s20 = smov %s7972_s27 }
 0x5d3   : > { %s18691_s21 = smov %s7960_s24  ;;  %17 = sbr.rel (!%p15_p7) target bundleno = 3 (0x3), region = 124 }
 0x5da   :  { %7234 = vsyncpa [#allocation4], 1 }
 0x5db   :  { %7236 = vsyncpa [#allocation4 + $0x1], 1 }

</bundles_post_ra>
